<compile_context>
chip_gen: v5e
topology: v5e:2x2
jax: 0.10.0
libtpu: 0.0.40
codegen_flags: <defaults>
</compile_context>

<pallas_src>
import functools

import jax
import jax.numpy as jnp
from jax.experimental import pallas as pl
from jax.experimental.pallas import tpu as pltpu


# ----------------------------------------------------------------------------
# Stage 1: hoisted x-projection kernel (parallel over T and B)
#   xcol : (T, B, H*W, K) bf16, K = KH*KW*C_in  (im2col built once in wrapper)
#   wx   : (K, 4*C_hid) bf16
#   bias : (1, 4*C_hid) f32
#   out  : (T, B, H*W, 4*C_hid) f32 = xcol @ wx + bias   (lane-dense output)
# ----------------------------------------------------------------------------
def _xproj_kernel(xcol_ref, wx_ref, b_ref, out_ref):
    x = xcol_ref[0, 0]                                     # (M, K) bf16
    acc = jnp.dot(x, wx_ref[...], preferred_element_type=jnp.float32)
    out_ref[0, 0] = acc + b_ref[...]                       # broadcast (1, N)


def xproj(xcol, wx, bias):
    T, B, M, K = xcol.shape
    N = wx.shape[-1]
    return pl.pallas_call(
        _xproj_kernel,
        out_shape=jax.ShapeDtypeStruct((T, B, M, N), jnp.float32),
        grid_spec=pltpu.PrefetchScalarGridSpec(
            num_scalar_prefetch=0,
            grid=(T, B),
            in_specs=[
                pl.BlockSpec((1, 1, M, K), lambda t, b: (t, b, 0, 0)),
                pl.BlockSpec((K, N), lambda t, b: (0, 0)),       # resident
                pl.BlockSpec((1, N), lambda t, b: (0, 0)),       # resident
            ],
            out_specs=pl.BlockSpec((1, 1, M, N), lambda t, b: (t, b, 0, 0)),
        ),
        compiler_params=pltpu.CompilerParams(
            dimension_semantics=("parallel", "parallel")),
    )(xcol, wx, bias)


# ----------------------------------------------------------------------------
# Stage 2: fused recurrent kernel (whole sequence in one pallas_call)
#   xw    : (T, B, H*W, 4*C_hid) f32   precomputed x-contribution (incl. bias)
#   wh    : (KH*KW, C_hid, 4*C_hid) bf16
#   h_seq : (T, B, H, W, C_hid) f32    all hidden states (output)
#   c_last: (B, H, W, C_hid) f32       final cell state (output)
#   scratch: h_pad (1, H+KH-1, W+KW-1, C_hid) bf16 (zero halo),
#            c (H*W, C_hid) f32, acc (H*W, 4*C_hid) f32
# ----------------------------------------------------------------------------
def _convlstm_recurrent_kernel(xw_ref, wh_ref, h_seq_ref, c_last_ref,
                               h_pad_ref, c_ref, acc_ref,
                               *, H, W, KH, KW, C_hid):
    t = pl.program_id(1)

    # Reset the recurrent state at the start of each batch element's sequence.
    @pl.when(t == 0)
    def _():
        h_pad_ref[...] = jnp.zeros_like(h_pad_ref)   # halo stays zero forever
        c_ref[...] = jnp.zeros_like(c_ref)

    # Start from the hoisted x-contribution (already contains the conv bias).
    acc_ref[...] = xw_ref[0, 0]

    # Recurrent "same" conv as KH*KW shifted-patch matmuls on the MXU
    # (bf16 operands, f32 accumulation in VMEM scratch).
    for ky in range(KH):
        for kx in range(KW):
            patch = h_pad_ref[0, ky:ky + H, kx:kx + W, :].reshape(H * W, C_hid)
            wk = wh_ref[ky * KW + kx]                # (C_hid, 4*C_hid) bf16
            acc_ref[...] += jnp.dot(patch, wk,
                                    preferred_element_type=jnp.float32)

    acc = acc_ref[...]                               # (H*W, 4*C_hid) f32
    cc_i = acc[:, 0 * C_hid:1 * C_hid]
    cc_f = acc[:, 1 * C_hid:2 * C_hid]
    cc_o = acc[:, 2 * C_hid:3 * C_hid]
    cc_g = acc[:, 3 * C_hid:4 * C_hid]

    # Gate math and state update stay in f32 (safe on v5e, fine on v6e/v7x).
    i = jax.nn.sigmoid(cc_i)
    f = jax.nn.sigmoid(cc_f)
    o = jax.nn.sigmoid(cc_o)
    g = jnp.tanh(cc_g)

    c_next = f * c_ref[...] + i * g
    h_next = o * jnp.tanh(c_next)
    c_ref[...] = c_next

    ph, pw = KH // 2, KW // 2
    h_img = h_next.reshape(H, W, C_hid)
    # Keep h resident (pre-padded, bf16) for the next step's tap matmuls.
    h_pad_ref[0, ph:ph + H, pw:pw + W, :] = h_img.astype(h_pad_ref.dtype)
    # Stream this timestep's hidden state out.
    h_seq_ref[0, 0] = h_img
    # c_last block index is constant over t -> stays in VMEM, flushed per b.
    c_last_ref[0] = c_next.reshape(H, W, C_hid)


@functools.partial(jax.jit, static_argnames=("hidden_dim", "kernel_size"))
def convlstm_layer_forward(x_seq, wx, wh, bias, *, hidden_dim, kernel_size):
    """One ConvLSTM layer over a full sequence.

    x_seq: (T, B, H, W, C_in) f32.
    Returns h_seq (T, B, H, W, hidden_dim) f32 and c_last (B, H, W, hidden_dim).
    """
    T, B, H, W, C_in = x_seq.shape
    C_hid = hidden_dim
    KH, KW = kernel_size
    ph, pw = KH // 2, KW // 2

    # ---- Stage 1: hoisted x projection for all timesteps --------------------
    x_pad = jnp.pad(x_seq, ((0, 0), (0, 0), (ph, ph), (pw, pw), (0, 0)))
    taps = [x_pad[:, :, ky:ky + H, kx:kx + W, :]
            for ky in range(KH) for kx in range(KW)]
    xcol = jnp.concatenate(taps, axis=-1)                     # (T,B,H,W,KH*KW*C_in)
    xcol = xcol.reshape(T, B, H * W, KH * KW * C_in).astype(jnp.bfloat16)
    wx_flat = wx.reshape(KH * KW * C_in, 4 * C_hid).astype(jnp.bfloat16)
    xw = xproj(xcol, wx_flat, bias)                           # (T,B,H*W,4*C_hid) f32

    # ---- Stage 2: fused recurrence ------------------------------------------
    wh_bf16 = wh.astype(jnp.bfloat16)
    kernel = functools.partial(_convlstm_recurrent_kernel,
                               H=H, W=W, KH=KH, KW=KW, C_hid=C_hid)
    h_seq, c_last = pl.pallas_call(
        kernel,
        out_shape=(jax.ShapeDtypeStruct((T, B, H, W, C_hid), jnp.float32),
                   jax.ShapeDtypeStruct((B, H, W, C_hid), jnp.float32)),
        grid_spec=pltpu.PrefetchScalarGridSpec(
            num_scalar_prefetch=0,
            grid=(B, T),
            in_specs=[
                pl.BlockSpec((1, 1, H * W, 4 * C_hid),
                             lambda b, t: (t, b, 0, 0)),
                pl.BlockSpec((KH * KW, C_hid, 4 * C_hid),
                             lambda b, t: (0, 0, 0)),          # resident weights
            ],
            out_specs=(
                pl.BlockSpec((1, 1, H, W, C_hid), lambda b, t: (t, b, 0, 0, 0)),
                pl.BlockSpec((1, H, W, C_hid), lambda b, t: (b, 0, 0, 0)),
            ),
            scratch_shapes=[
                pltpu.VMEM((1, H + KH - 1, W + KW - 1, C_hid), jnp.bfloat16),
                pltpu.VMEM((H * W, C_hid), jnp.float32),
                pltpu.VMEM((H * W, 4 * C_hid), jnp.float32),
            ]),
        compiler_params=pltpu.CompilerParams(
            dimension_semantics=("parallel", "arbitrary")),
    )(xw, wh_bf16)
    # TODO(synk): for large H*W add spatial row-tiling with a (KH-1) halo and a
    # lane-dense (W*C_hid) packing of h_seq; the whole frame currently fits one
    # VMEM block per step for the small configs exercised here.
    return h_seq, c_last


# ----------------------------------------------------------------------------
# Multi-layer ConvLSTM forward (PyTorch semantics, return_all_layers=False).
# ----------------------------------------------------------------------------
def init_convlstm_params(key, input_dim, hidden_dims, kernel_sizes):
    """PyTorch Conv2d-style uniform init; weights stored split as Wx / Wh."""
    params = []
    for layer_idx, (hid, (kh, kw)) in enumerate(zip(hidden_dims, kernel_sizes)):
        cin = input_dim if layer_idx == 0 else hidden_dims[layer_idx - 1]
        fan_in = (cin + hid) * kh * kw
        bound = 1.0 / (float(fan_in) ** 0.5)
        key, k1, k2, k3 = jax.random.split(key, 4)
        wx = jax.random.uniform(k1, (kh * kw, cin, 4 * hid), jnp.float32,
                                -bound, bound)
        wh = jax.random.uniform(k2, (kh * kw, hid, 4 * hid), jnp.float32,
                                -bound, bound)
        b = jax.random.uniform(k3, (1, 4 * hid), jnp.float32, -bound, bound)
        params.append({"wx": wx, "wh": wh, "b": b,
                       "hidden_dim": hid, "kernel_size": (kh, kw)})
    return params


def convlstm_forward(params, input_tensor, batch_first=True):
    """input_tensor: (B, T, C, H, W) if batch_first else (T, B, C, H, W)."""
    x = input_tensor if batch_first else jnp.transpose(input_tensor,
                                                       (1, 0, 2, 3, 4))
    # Single layout change for the whole sequence: (B,T,C,H,W) -> (T,B,H,W,C).
    cur = jnp.transpose(x, (1, 0, 3, 4, 2)).astype(jnp.float32)

    layer_output_list = []
    last_state_list = []
    for layer in params:
        h_seq, c_last = convlstm_layer_forward(
            cur, layer["wx"], layer["wh"], layer["b"],
            hidden_dim=layer["hidden_dim"], kernel_size=layer["kernel_size"])
        cur = h_seq
        layer_output_list.append(h_seq)
        last_state_list.append((h_seq[-1], c_last))

    # return_all_layers=False: keep last layer only; convert back to PyTorch
    # layouts once at the end.
    out = jnp.transpose(layer_output_list[-1], (1, 0, 4, 2, 3))     # (B,T,C,H,W)
    h_last = jnp.transpose(last_state_list[-1][0], (0, 3, 1, 2))    # (B,C,H,W)
    c_last = jnp.transpose(last_state_list[-1][1], (0, 3, 1, 2))    # (B,C,H,W)
    return [out], [(h_last, c_last)]


# ----------------------------------------------------------------------------
# Pure-JAX f32 reference (mirrors the PyTorch module exactly).
# ----------------------------------------------------------------------------
def _convlstm_forward_ref(params, x_btchw):
    B, T, _, H, W = x_btchw.shape
    cur = jnp.transpose(x_btchw, (0, 1, 3, 4, 2)).astype(jnp.float32)  # B,T,H,W,C
    h = c = None
    for layer in params:
        hid = layer["hidden_dim"]
        KH, KW = layer["kernel_size"]
        cin = cur.shape[-1]
        w_hwio = jnp.concatenate([layer["wx"], layer["wh"]],
                                 axis=1).reshape(KH, KW, cin + hid, 4 * hid)
        h = jnp.zeros((B, H, W, hid), jnp.float32)
        c = jnp.zeros((B, H, W, hid), jnp.float32)
        outs = []
        for t in range(T):
            xh = jnp.concatenate([cur[:, t], h], axis=-1)
            conv = jax.lax.conv_general_dilated(
                xh, w_hwio, (1, 1), "SAME",
                dimension_numbers=("NHWC", "HWIO", "NHWC")) + layer["b"][0]
            cc_i, cc_f, cc_o, cc_g = jnp.split(conv, 4, axis=-1)
            i = jax.nn.sigmoid(cc_i)
            f = jax.nn.sigmoid(cc_f)
            o = jax.nn.sigmoid(cc_o)
            g = jnp.tanh(cc_g)
            c = f * c + i * g
            h = o * jnp.tanh(c)
            outs.append(h)
        cur = jnp.stack(outs, axis=1)
    out = jnp.transpose(cur, (0, 1, 4, 2, 3))
    return out, jnp.transpose(h, (0, 3, 1, 2)), jnp.transpose(c, (0, 3, 1, 2))


if __name__ == "__main__":
    key = jax.random.PRNGKey(0)

    # batch=2, seq=8, input channels=4, spatial 16x16, hidden=32, 3x3, 2 layers.
    B, T, C, H, W = 2, 8, 4, 16, 16
    hidden_dims = [32, 32]
    kernel_sizes = [(3, 3), (3, 3)]

    key, kx = jax.random.split(key)
    x = jax.random.normal(kx, (B, T, C, H, W), jnp.float32)
    params = init_convlstm_params(key, C, hidden_dims, kernel_sizes)

    layer_outputs, last_states = convlstm_forward(params, x, batch_first=True)
    out = jax.block_until_ready(layer_outputs[0])
    h_last = jax.block_until_ready(last_states[0][0])
    c_last = jax.block_until_ready(last_states[0][1])

    assert out.shape == (B, T, hidden_dims[-1], H, W)
    assert h_last.shape == (B, hidden_dims[-1], H, W)
    assert c_last.shape == (B, hidden_dims[-1], H, W)

    # Correctness vs. f32 reference (bf16 MXU operands -> relaxed tolerance).
    ref_out, ref_h, ref_c = _convlstm_forward_ref(params, x)
    assert jnp.allclose(out, ref_out, atol=3e-2, rtol=3e-2), \
        f"max|diff|={float(jnp.max(jnp.abs(out - ref_out)))}"
    assert jnp.allclose(h_last, ref_h, atol=3e-2, rtol=3e-2), \
        f"max|diff|={float(jnp.max(jnp.abs(h_last - ref_h)))}"
    assert jnp.allclose(c_last, ref_c, atol=3e-2, rtol=3e-2), \
        f"max|diff|={float(jnp.max(jnp.abs(c_last - ref_c)))}"

    print("KERNEL_OK")
</pallas_src>

<mosaic_0001>
module attributes {stable_mosaic.version = 11 : i64} {
  func.func @_xproj_kernel(%arg0: i32, %arg1: i32, %arg2: memref<1x1x256x36xbf16, #tpu.memory_space<vmem>>, %arg3: memref<36x128xbf16, #tpu.memory_space<vmem>>, %arg4: memref<1x128xf32, #tpu.memory_space<vmem>>, %arg5: memref<1x1x256x128xf32, #tpu.memory_space<vmem>>) attributes {dimension_semantics = [#tpu.dimension_semantics<parallel>, #tpu.dimension_semantics<parallel>], iteration_bounds = array<i64: 8, 2>, scalar_prefetch = 0 : i64, scratch_operands = 0 : i64, tpu.core_type = #tpu.core_type<tc>, window_params = [{transform_indices = @transform_0, window_bounds = array<i64: 1, 1, 256, 36>}, {pipeline_mode = #tpu.pipeline_mode<synchronous>, transform_indices = @transform_1, window_bounds = array<i64: 36, 128>}, {pipeline_mode = #tpu.pipeline_mode<synchronous>, transform_indices = @transform_2, window_bounds = array<i64: 1, 128>}, {transform_indices = @transform_3, window_bounds = array<i64: 1, 1, 256, 128>}]} {
    %c0 = arith.constant 0 : index
    %c0_0 = arith.constant 0 : index
    %c0_1 = arith.constant 0 : index
    %c0_2 = arith.constant 0 : index
    %0 = vector.load %arg2[%c0, %c0_0, %c0_1, %c0_2] : memref<1x1x256x36xbf16, #tpu.memory_space<vmem>>, vector<1x1x256x36xbf16>
    %1 = vector.shape_cast %0 : vector<1x1x256x36xbf16> to vector<256x36xbf16>
    %c0_3 = arith.constant 0 : index
    %c0_4 = arith.constant 0 : index
    %2 = vector.load %arg3[%c0_3, %c0_4] : memref<36x128xbf16, #tpu.memory_space<vmem>>, vector<36x128xbf16>
    %cst = arith.constant dense<0.000000e+00> : vector<256x128xf32>
    %3 = tpu.matmul %1, %2, %cst {dimension_numbers = #tpu.dot_dimension_numbers<[1], [0], [0], [1], [0, 0, 1, 1], [], []>} : vector<256x36xbf16>, vector<36x128xbf16>, vector<256x128xf32> -> vector<256x128xf32>
    %c0_5 = arith.constant 0 : index
    %c0_6 = arith.constant 0 : index
    %4 = vector.load %arg4[%c0_5, %c0_6] : memref<1x128xf32, #tpu.memory_space<vmem>>, vector<1x128xf32>
    %5 = vector.broadcast %4 : vector<1x128xf32> to vector<256x128xf32>
    %6 = arith.addf %3, %5 : vector<256x128xf32>
    %c0_7 = arith.constant 0 : index
    %c0_8 = arith.constant 0 : index
    %c0_9 = arith.constant 0 : index
    %c0_10 = arith.constant 0 : index
    %7 = vector.load %arg5[%c0_7, %c0_8, %c0_9, %c0_10] : memref<1x1x256x128xf32, #tpu.memory_space<vmem>>, vector<1x1x256x128xf32>
    %8 = vector.shape_cast %7 : vector<1x1x256x128xf32> to vector<256x128xf32>
    %9 = vector.shape_cast %6 : vector<256x128xf32> to vector<1x1x256x128xf32>
    tpu.vector_store %arg5[%c0_7, %c0_8, %c0_9, %c0_10], %9 {strides = array<i32>} : memref<1x1x256x128xf32, #tpu.memory_space<vmem>>, vector<1x1x256x128xf32>,
    return
  }
  func.func @transform_0(%arg0: i32, %arg1: i32) -> (i32, i32, i32, i32) {
    %c0_i32 = arith.constant 0 : i32
    %c0_i32_0 = arith.constant 0 : i32
    %c0_i32_1 = arith.constant 0 : i32
    return %arg0, %arg1, %c0_i32, %c0_i32_0 : i32, i32, i32, i32
  }
  func.func @transform_1(%arg0: i32, %arg1: i32) -> (i32, i32) {
    %c0_i32 = arith.constant 0 : i32
    %c0_i32_0 = arith.constant 0 : i32
    %c0_i32_1 = arith.constant 0 : i32
    return %c0_i32, %c0_i32_0 : i32, i32
  }
  func.func @transform_2(%arg0: i32, %arg1: i32) -> (i32, i32) {
    %c0_i32 = arith.constant 0 : i32
    %c0_i32_0 = arith.constant 0 : i32
    %c0_i32_1 = arith.constant 0 : i32
    return %c0_i32, %c0_i32_0 : i32, i32
  }
  func.func @transform_3(%arg0: i32, %arg1: i32) -> (i32, i32, i32, i32) {
    %c0_i32 = arith.constant 0 : i32
    %c0_i32_0 = arith.constant 0 : i32
    %c0_i32_1 = arith.constant 0 : i32
    return %arg0, %arg1, %c0_i32, %c0_i32_0 : i32, i32, i32, i32
  }
}

module attributes {stable_mosaic.version = 11 : i64} {
  func.func @_convlstm_recurrent_kernel(%arg0: i32, %arg1: i32, %arg2: memref<1x1x256x128xf32, #tpu.memory_space<vmem>>, %arg3: memref<9x32x128xbf16, #tpu.memory_space<vmem>>, %arg4: memref<1x1x16x16x32xf32, #tpu.memory_space<vmem>>, %arg5: memref<1x16x16x32xf32, #tpu.memory_space<vmem>>, %arg6: memref<1x18x18x32xbf16, #tpu.memory_space<vmem>>, %arg7: memref<256x32xf32, #tpu.memory_space<vmem>>, %arg8: memref<256x128xf32, #tpu.memory_space<vmem>>) attributes {dimension_semantics = [#tpu.dimension_semantics<parallel>, #tpu.dimension_semantics<arbitrary>], iteration_bounds = array<i64: 2, 8>, scalar_prefetch = 0 : i64, scratch_operands = 3 : i64, tpu.core_type = #tpu.core_type<tc>, window_params = [{transform_indices = @transform_0, window_bounds = array<i64: 1, 1, 256, 128>}, {pipeline_mode = #tpu.pipeline_mode<synchronous>, transform_indices = @transform_1, window_bounds = array<i64: 9, 32, 128>}, {transform_indices = @transform_2, window_bounds = array<i64: 1, 1, 16, 16, 32>}, {transform_indices = @transform_3, window_bounds = array<i64: 1, 16, 16, 32>}]} {
    %c0_i32 = arith.constant 0 : i32
    %0 = arith.cmpi eq, %arg1, %c0_i32 : i32
    %1 = arith.extui %0 : i1 to i32
    %c0_i32_0 = arith.constant 0 : i32
    %2 = arith.cmpi ne, %1, %c0_i32_0 : i32
    scf.if %2 {
      %cst_127 = arith.constant 0.000000e+00 : bf16
      %127 = vector.broadcast %cst_127 : bf16 to vector<1x18x18x32xbf16>
      %c0_128 = arith.constant 0 : index
      %c0_129 = arith.constant 0 : index
      %c0_130 = arith.constant 0 : index
      %c0_131 = arith.constant 0 : index
      %128 = vector.load %arg6[%c0_128, %c0_129, %c0_130, %c0_131] : memref<1x18x18x32xbf16, #tpu.memory_space<vmem>>, vector<1x18x18x32xbf16>
      tpu.vector_store %arg6[%c0_128, %c0_129, %c0_130, %c0_131], %127 {strides = array<i32>} : memref<1x18x18x32xbf16, #tpu.memory_space<vmem>>, vector<1x18x18x32xbf16>,
      %cst_132 = arith.constant 0.000000e+00 : f32
      %129 = vector.broadcast %cst_132 : f32 to vector<256x32xf32>
      %c0_133 = arith.constant 0 : index
      %c0_134 = arith.constant 0 : index
      %130 = vector.load %arg7[%c0_133, %c0_134] : memref<256x32xf32, #tpu.memory_space<vmem>>, vector<256x32xf32>
      tpu.vector_store %arg7[%c0_133, %c0_134], %129 {strides = array<i32>} : memref<256x32xf32, #tpu.memory_space<vmem>>, vector<256x32xf32>,
    } else {
    }
    %c0 = arith.constant 0 : index
    %c0_1 = arith.constant 0 : index
    %c0_2 = arith.constant 0 : index
    %c0_3 = arith.constant 0 : index
    %3 = vector.load %arg2[%c0, %c0_1, %c0_2, %c0_3] : memref<1x1x256x128xf32, #tpu.memory_space<vmem>>, vector<1x1x256x128xf32>
    %4 = vector.shape_cast %3 : vector<1x1x256x128xf32> to vector<256x128xf32>
    %c0_4 = arith.constant 0 : index
    %c0_5 = arith.constant 0 : index
    %5 = vector.load %arg8[%c0_4, %c0_5] : memref<256x128xf32, #tpu.memory_space<vmem>>, vector<256x128xf32>
    tpu.vector_store %arg8[%c0_4, %c0_5], %4 {strides = array<i32>} : memref<256x128xf32, #tpu.memory_space<vmem>>, vector<256x128xf32>,
    %c0_6 = arith.constant 0 : index
    %c0_7 = arith.constant 0 : index
    %c0_8 = arith.constant 0 : index
    %c0_9 = arith.constant 0 : index
    %6 = vector.load %arg6[%c0_6, %c0_7, %c0_8, %c0_9] : memref<1x18x18x32xbf16, #tpu.memory_space<vmem>>, vector<1x16x16x32xbf16>
    %7 = vector.shape_cast %6 : vector<1x16x16x32xbf16> to vector<16x16x32xbf16>
    %8 = vector.shape_cast %7 : vector<16x16x32xbf16> to vector<256x32xbf16>
    %c0_10 = arith.constant 0 : index
    %c0_11 = arith.constant 0 : index
    %c0_12 = arith.constant 0 : index
    %9 = vector.load %arg3[%c0_10, %c0_11, %c0_12] : memref<9x32x128xbf16, #tpu.memory_space<vmem>>, vector<1x32x128xbf16>
    %10 = vector.shape_cast %9 : vector<1x32x128xbf16> to vector<32x128xbf16>
    %c0_13 = arith.constant 0 : index
    %c0_14 = arith.constant 0 : index
    %11 = vector.load %arg8[%c0_13, %c0_14] : memref<256x128xf32, #tpu.memory_space<vmem>>, vector<256x128xf32>
    %cst = arith.constant dense<0.000000e+00> : vector<256x128xf32>
    %12 = tpu.matmul %8, %10, %cst {dimension_numbers = #tpu.dot_dimension_numbers<[1], [0], [0], [1], [0, 0, 1, 1], [], []>} : vector<256x32xbf16>, vector<32x128xbf16>, vector<256x128xf32> -> vector<256x128xf32>
    %13 = arith.addf %11, %12 : vector<256x128xf32>
    %c0_15 = arith.constant 0 : index
    %c0_16 = arith.constant 0 : index
    %14 = vector.load %arg8[%c0_15, %c0_16] : memref<256x128xf32, #tpu.memory_space<vmem>>, vector<256x128xf32>
    tpu.vector_store %arg8[%c0_15, %c0_16], %13 {strides = array<i32>} : memref<256x128xf32, #tpu.memory_space<vmem>>, vector<256x128xf32>,
    %c0_17 = arith.constant 0 : index
    %c0_18 = arith.constant 0 : index
    %c1 = arith.constant 1 : index
    %c0_19 = arith.constant 0 : index
    %15 = vector.load %arg6[%c0_17, %c0_18, %c1, %c0_19] : memref<1x18x18x32xbf16, #tpu.memory_space<vmem>>, vector<1x16x16x32xbf16>
    %16 = vector.shape_cast %15 : vector<1x16x16x32xbf16> to vector<16x16x32xbf16>
    %17 = vector.shape_cast %16 : vector<16x16x32xbf16> to vector<256x32xbf16>
    %c1_20 = arith.constant 1 : index
    %c0_21 = arith.constant 0 : index
    %c0_22 = arith.constant 0 : index
    %18 = vector.load %arg3[%c1_20, %c0_21, %c0_22] : memref<9x32x128xbf16, #tpu.memory_space<vmem>>, vector<1x32x128xbf16>
    %19 = vector.shape_cast %18 : vector<1x32x128xbf16> to vector<32x128xbf16>
    %c0_23 = arith.constant 0 : index
    %c0_24 = arith.constant 0 : index
    %20 = vector.load %arg8[%c0_23, %c0_24] : memref<256x128xf32, #tpu.memory_space<vmem>>, vector<256x128xf32>
    %cst_25 = arith.constant dense<0.000000e+00> : vector<256x128xf32>
    %21 = tpu.matmul %17, %19, %cst_25 {dimension_numbers = #tpu.dot_dimension_numbers<[1], [0], [0], [1], [0, 0, 1, 1], [], []>} : vector<256x32xbf16>, vector<32x128xbf16>, vector<256x128xf32> -> vector<256x128xf32>
    %22 = arith.addf %20, %21 : vector<256x128xf32>
    %c0_26 = arith.constant 0 : index
    %c0_27 = arith.constant 0 : index
    %23 = vector.load %arg8[%c0_26, %c0_27] : memref<256x128xf32, #tpu.memory_space<vmem>>, vector<256x128xf32>
    tpu.vector_store %arg8[%c0_26, %c0_27], %22 {strides = array<i32>} : memref<256x128xf32, #tpu.memory_space<vmem>>, vector<256x128xf32>,
    %c0_28 = arith.constant 0 : index
    %c0_29 = arith.constant 0 : index
    %c2 = arith.constant 2 : index
    %c0_30 = arith.constant 0 : index
    %24 = vector.load %arg6[%c0_28, %c0_29, %c2, %c0_30] : memref<1x18x18x32xbf16, #tpu.memory_space<vmem>>, vector<1x16x16x32xbf16>
    %25 = vector.shape_cast %24 : vector<1x16x16x32xbf16> to vector<16x16x32xbf16>
    %26 = vector.shape_cast %25 : vector<16x16x32xbf16> to vector<256x32xbf16>
    %c2_31 = arith.constant 2 : index
    %c0_32 = arith.constant 0 : index
    %c0_33 = arith.constant 0 : index
    %27 = vector.load %arg3[%c2_31, %c0_32, %c0_33] : memref<9x32x128xbf16, #tpu.memory_space<vmem>>, vector<1x32x128xbf16>
    %28 = vector.shape_cast %27 : vector<1x32x128xbf16> to vector<32x128xbf16>
    %c0_34 = arith.constant 0 : index
    %c0_35 = arith.constant 0 : index
    %29 = vector.load %arg8[%c0_34, %c0_35] : memref<256x128xf32, #tpu.memory_space<vmem>>, vector<256x128xf32>
    %cst_36 = arith.constant dense<0.000000e+00> : vector<256x128xf32>
    %30 = tpu.matmul %26, %28, %cst_36 {dimension_numbers = #tpu.dot_dimension_numbers<[1], [0], [0], [1], [0, 0, 1, 1], [], []>} : vector<256x32xbf16>, vector<32x128xbf16>, vector<256x128xf32> -> vector<256x128xf32>
    %31 = arith.addf %29, %30 : vector<256x128xf32>
    %c0_37 = arith.constant 0 : index
    %c0_38 = arith.constant 0 : index
    %32 = vector.load %arg8[%c0_37, %c0_38] : memref<256x128xf32, #tpu.memory_space<vmem>>, vector<256x128xf32>
    tpu.vector_store %arg8[%c0_37, %c0_38], %31 {strides = array<i32>} : memref<256x128xf32, #tpu.memory_space<vmem>>, vector<256x128xf32>,
    %c0_39 = arith.constant 0 : index
    %c1_40 = arith.constant 1 : index
    %c0_41 = arith.constant 0 : index
    %c0_42 = arith.constant 0 : index
    %33 = vector.load %arg6[%c0_39, %c1_40, %c0_41, %c0_42] : memref<1x18x18x32xbf16, #tpu.memory_space<vmem>>, vector<1x16x16x32xbf16>
    %34 = vector.shape_cast %33 : vector<1x16x16x32xbf16> to vector<16x16x32xbf16>
    %35 = vector.shape_cast %34 : vector<16x16x32xbf16> to vector<256x32xbf16>
    %c3 = arith.constant 3 : index
    %c0_43 = arith.constant 0 : index
    %c0_44 = arith.constant 0 : index
    %36 = vector.load %arg3[%c3, %c0_43, %c0_44] : memref<9x32x128xbf16, #tpu.memory_space<vmem>>, vector<1x32x128xbf16>
    %37 = vector.shape_cast %36 : vector<1x32x128xbf16> to vector<32x128xbf16>
    %c0_45 = arith.constant 0 : index
    %c0_46 = arith.constant 0 : index
    %38 = vector.load %arg8[%c0_45, %c0_46] : memref<256x128xf32, #tpu.memory_space<vmem>>, vector<256x128xf32>
    %cst_47 = arith.constant dense<0.000000e+00> : vector<256x128xf32>
    %39 = tpu.matmul %35, %37, %cst_47 {dimension_numbers = #tpu.dot_dimension_numbers<[1], [0], [0], [1], [0, 0, 1, 1], [], []>} : vector<256x32xbf16>, vector<32x128xbf16>, vector<256x128xf32> -> vector<256x128xf32>
    %40 = arith.addf %38, %39 : vector<256x128xf32>
    %c0_48 = arith.constant 0 : index
    %c0_49 = arith.constant 0 : index
    %41 = vector.load %arg8[%c0_48, %c0_49] : memref<256x128xf32, #tpu.memory_space<vmem>>, vector<256x128xf32>
    tpu.vector_store %arg8[%c0_48, %c0_49], %40 {strides = array<i32>} : memref<256x128xf32, #tpu.memory_space<vmem>>, vector<256x128xf32>,
    %c0_50 = arith.constant 0 : index
    %c1_51 = arith.constant 1 : index
    %c1_52 = arith.constant 1 : index
    %c0_53 = arith.constant 0 : index
    %42 = vector.load %arg6[%c0_50, %c1_51, %c1_52, %c0_53] : memref<1x18x18x32xbf16, #tpu.memory_space<vmem>>, vector<1x16x16x32xbf16>
    %43 = vector.shape_cast %42 : vector<1x16x16x32xbf16> to vector<16x16x32xbf16>
    %44 = vector.shape_cast %43 : vector<16x16x32xbf16> to vector<256x32xbf16>
    %c4 = arith.constant 4 : index
    %c0_54 = arith.constant 0 : index
    %c0_55 = arith.constant 0 : index
    %45 = vector.load %arg3[%c4, %c0_54, %c0_55] : memref<9x32x128xbf16, #tpu.memory_space<vmem>>, vector<1x32x128xbf16>
    %46 = vector.shape_cast %45 : vector<1x32x128xbf16> to vector<32x128xbf16>
    %c0_56 = arith.constant 0 : index
    %c0_57 = arith.constant 0 : index
    %47 = vector.load %arg8[%c0_56, %c0_57] : memref<256x128xf32, #tpu.memory_space<vmem>>, vector<256x128xf32>
    %cst_58 = arith.constant dense<0.000000e+00> : vector<256x128xf32>
    %48 = tpu.matmul %44, %46, %cst_58 {dimension_numbers = #tpu.dot_dimension_numbers<[1], [0], [0], [1], [0, 0, 1, 1], [], []>} : vector<256x32xbf16>, vector<32x128xbf16>, vector<256x128xf32> -> vector<256x128xf32>
    %49 = arith.addf %47, %48 : vector<256x128xf32>
    %c0_59 = arith.constant 0 : index
    %c0_60 = arith.constant 0 : index
    %50 = vector.load %arg8[%c0_59, %c0_60] : memref<256x128xf32, #tpu.memory_space<vmem>>, vector<256x128xf32>
    tpu.vector_store %arg8[%c0_59, %c0_60], %49 {strides = array<i32>} : memref<256x128xf32, #tpu.memory_space<vmem>>, vector<256x128xf32>,
    %c0_61 = arith.constant 0 : index
    %c1_62 = arith.constant 1 : index
    %c2_63 = arith.constant 2 : index
    %c0_64 = arith.constant 0 : index
    %51 = vector.load %arg6[%c0_61, %c1_62, %c2_63, %c0_64] : memref<1x18x18x32xbf16, #tpu.memory_space<vmem>>, vector<1x16x16x32xbf16>
    %52 = vector.shape_cast %51 : vector<1x16x16x32xbf16> to vector<16x16x32xbf16>
    %53 = vector.shape_cast %52 : vector<16x16x32xbf16> to vector<256x32xbf16>
    %c5 = arith.constant 5 : index
    %c0_65 = arith.constant 0 : index
    %c0_66 = arith.constant 0 : index
    %54 = vector.load %arg3[%c5, %c0_65, %c0_66] : memref<9x32x128xbf16, #tpu.memory_space<vmem>>, vector<1x32x128xbf16>
    %55 = vector.shape_cast %54 : vector<1x32x128xbf16> to vector<32x128xbf16>
    %c0_67 = arith.constant 0 : index
    %c0_68 = arith.constant 0 : index
    %56 = vector.load %arg8[%c0_67, %c0_68] : memref<256x128xf32, #tpu.memory_space<vmem>>, vector<256x128xf32>
    %cst_69 = arith.constant dense<0.000000e+00> : vector<256x128xf32>
    %57 = tpu.matmul %53, %55, %cst_69 {dimension_numbers = #tpu.dot_dimension_numbers<[1], [0], [0], [1], [0, 0, 1, 1], [], []>} : vector<256x32xbf16>, vector<32x128xbf16>, vector<256x128xf32> -> vector<256x128xf32>
    %58 = arith.addf %56, %57 : vector<256x128xf32>
    %c0_70 = arith.constant 0 : index
    %c0_71 = arith.constant 0 : index
    %59 = vector.load %arg8[%c0_70, %c0_71] : memref<256x128xf32, #tpu.memory_space<vmem>>, vector<256x128xf32>
    tpu.vector_store %arg8[%c0_70, %c0_71], %58 {strides = array<i32>} : memref<256x128xf32, #tpu.memory_space<vmem>>, vector<256x128xf32>,
    %c0_72 = arith.constant 0 : index
    %c2_73 = arith.constant 2 : index
    %c0_74 = arith.constant 0 : index
    %c0_75 = arith.constant 0 : index
    %60 = vector.load %arg6[%c0_72, %c2_73, %c0_74, %c0_75] : memref<1x18x18x32xbf16, #tpu.memory_space<vmem>>, vector<1x16x16x32xbf16>
    %61 = vector.shape_cast %60 : vector<1x16x16x32xbf16> to vector<16x16x32xbf16>
    %62 = vector.shape_cast %61 : vector<16x16x32xbf16> to vector<256x32xbf16>
    %c6 = arith.constant 6 : index
    %c0_76 = arith.constant 0 : index
    %c0_77 = arith.constant 0 : index
    %63 = vector.load %arg3[%c6, %c0_76, %c0_77] : memref<9x32x128xbf16, #tpu.memory_space<vmem>>, vector<1x32x128xbf16>
    %64 = vector.shape_cast %63 : vector<1x32x128xbf16> to vector<32x128xbf16>
    %c0_78 = arith.constant 0 : index
    %c0_79 = arith.constant 0 : index
    %65 = vector.load %arg8[%c0_78, %c0_79] : memref<256x128xf32, #tpu.memory_space<vmem>>, vector<256x128xf32>
    %cst_80 = arith.constant dense<0.000000e+00> : vector<256x128xf32>
    %66 = tpu.matmul %62, %64, %cst_80 {dimension_numbers = #tpu.dot_dimension_numbers<[1], [0], [0], [1], [0, 0, 1, 1], [], []>} : vector<256x32xbf16>, vector<32x128xbf16>, vector<256x128xf32> -> vector<256x128xf32>
    %67 = arith.addf %65, %66 : vector<256x128xf32>
    %c0_81 = arith.constant 0 : index
    %c0_82 = arith.constant 0 : index
    %68 = vector.load %arg8[%c0_81, %c0_82] : memref<256x128xf32, #tpu.memory_space<vmem>>, vector<256x128xf32>
    tpu.vector_store %arg8[%c0_81, %c0_82], %67 {strides = array<i32>} : memref<256x128xf32, #tpu.memory_space<vmem>>, vector<256x128xf32>,
    %c0_83 = arith.constant 0 : index
    %c2_84 = arith.constant 2 : index
    %c1_85 = arith.constant 1 : index
    %c0_86 = arith.constant 0 : index
    %69 = vector.load %arg6[%c0_83, %c2_84, %c1_85, %c0_86] : memref<1x18x18x32xbf16, #tpu.memory_space<vmem>>, vector<1x16x16x32xbf16>
    %70 = vector.shape_cast %69 : vector<1x16x16x32xbf16> to vector<16x16x32xbf16>
    %71 = vector.shape_cast %70 : vector<16x16x32xbf16> to vector<256x32xbf16>
    %c7 = arith.constant 7 : index
    %c0_87 = arith.constant 0 : index
    %c0_88 = arith.constant 0 : index
    %72 = vector.load %arg3[%c7, %c0_87, %c0_88] : memref<9x32x128xbf16, #tpu.memory_space<vmem>>, vector<1x32x128xbf16>
    %73 = vector.shape_cast %72 : vector<1x32x128xbf16> to vector<32x128xbf16>
    %c0_89 = arith.constant 0 : index
    %c0_90 = arith.constant 0 : index
    %74 = vector.load %arg8[%c0_89, %c0_90] : memref<256x128xf32, #tpu.memory_space<vmem>>, vector<256x128xf32>
    %cst_91 = arith.constant dense<0.000000e+00> : vector<256x128xf32>
    %75 = tpu.matmul %71, %73, %cst_91 {dimension_numbers = #tpu.dot_dimension_numbers<[1], [0], [0], [1], [0, 0, 1, 1], [], []>} : vector<256x32xbf16>, vector<32x128xbf16>, vector<256x128xf32> -> vector<256x128xf32>
    %76 = arith.addf %74, %75 : vector<256x128xf32>
    %c0_92 = arith.constant 0 : index
    %c0_93 = arith.constant 0 : index
    %77 = vector.load %arg8[%c0_92, %c0_93] : memref<256x128xf32, #tpu.memory_space<vmem>>, vector<256x128xf32>
    tpu.vector_store %arg8[%c0_92, %c0_93], %76 {strides = array<i32>} : memref<256x128xf32, #tpu.memory_space<vmem>>, vector<256x128xf32>,
    %c0_94 = arith.constant 0 : index
    %c2_95 = arith.constant 2 : index
    %c2_96 = arith.constant 2 : index
    %c0_97 = arith.constant 0 : index
    %78 = vector.load %arg6[%c0_94, %c2_95, %c2_96, %c0_97] : memref<1x18x18x32xbf16, #tpu.memory_space<vmem>>, vector<1x16x16x32xbf16>
    %79 = vector.shape_cast %78 : vector<1x16x16x32xbf16> to vector<16x16x32xbf16>
    %80 = vector.shape_cast %79 : vector<16x16x32xbf16> to vector<256x32xbf16>
    %c8 = arith.constant 8 : index
    %c0_98 = arith.constant 0 : index
    %c0_99 = arith.constant 0 : index
    %81 = vector.load %arg3[%c8, %c0_98, %c0_99] : memref<9x32x128xbf16, #tpu.memory_space<vmem>>, vector<1x32x128xbf16>
    %82 = vector.shape_cast %81 : vector<1x32x128xbf16> to vector<32x128xbf16>
    %c0_100 = arith.constant 0 : index
    %c0_101 = arith.constant 0 : index
    %83 = vector.load %arg8[%c0_100, %c0_101] : memref<256x128xf32, #tpu.memory_space<vmem>>, vector<256x128xf32>
    %cst_102 = arith.constant dense<0.000000e+00> : vector<256x128xf32>
    %84 = tpu.matmul %80, %82, %cst_102 {dimension_numbers = #tpu.dot_dimension_numbers<[1], [0], [0], [1], [0, 0, 1, 1], [], []>} : vector<256x32xbf16>, vector<32x128xbf16>, vector<256x128xf32> -> vector<256x128xf32>
    %85 = arith.addf %83, %84 : vector<256x128xf32>
    %c0_103 = arith.constant 0 : index
    %c0_104 = arith.constant 0 : index
    %86 = vector.load %arg8[%c0_103, %c0_104] : memref<256x128xf32, #tpu.memory_space<vmem>>, vector<256x128xf32>
    tpu.vector_store %arg8[%c0_103, %c0_104], %85 {strides = array<i32>} : memref<256x128xf32, #tpu.memory_space<vmem>>, vector<256x128xf32>,
    %c0_105 = arith.constant 0 : index
    %c0_106 = arith.constant 0 : index
    %87 = vector.load %arg8[%c0_105, %c0_106] : memref<256x128xf32, #tpu.memory_space<vmem>>, vector<256x128xf32>
    %88 = vector.extract_strided_slice %87 {offsets = [0, 0], sizes = [256, 32], strides = [1, 1]} : vector<256x128xf32> to vector<256x32xf32>
    %89 = vector.extract_strided_slice %87 {offsets = [0, 32], sizes = [256, 32], strides = [1, 1]} : vector<256x128xf32> to vector<256x32xf32>
    %90 = vector.extract_strided_slice %87 {offsets = [0, 64], sizes = [256, 32], strides = [1, 1]} : vector<256x128xf32> to vector<256x32xf32>
    %91 = vector.extract_strided_slice %87 {offsets = [0, 96], sizes = [256, 32], strides = [1, 1]} : vector<256x128xf32> to vector<256x32xf32>
    %92 = arith.negf %88 : vector<256x32xf32>
    %93 = math.exp %92 : vector<256x32xf32>
    %cst_107 = arith.constant 1.000000e+00 : f32
    %94 = vector.broadcast %cst_107 : f32 to vector<256x32xf32>
    %95 = arith.addf %94, %93 : vector<256x32xf32>
    %96 = arith.divf %94, %95 : vector<256x32xf32>
    %97 = arith.negf %89 : vector<256x32xf32>
    %98 = math.exp %97 : vector<256x32xf32>
    %cst_108 = arith.constant 1.000000e+00 : f32
    %99 = vector.broadcast %cst_108 : f32 to vector<256x32xf32>
    %100 = arith.addf %99, %98 : vector<256x32xf32>
    %101 = arith.divf %99, %100 : vector<256x32xf32>
    %102 = arith.negf %90 : vector<256x32xf32>
    %103 = math.exp %102 : vector<256x32xf32>
    %cst_109 = arith.constant 1.000000e+00 : f32
    %104 = vector.broadcast %cst_109 : f32 to vector<256x32xf32>
    %105 = arith.addf %104, %103 : vector<256x32xf32>
    %106 = arith.divf %104, %105 : vector<256x32xf32>
    %107 = math.tanh %91 : vector<256x32xf32>
    %c0_110 = arith.constant 0 : index
    %c0_111 = arith.constant 0 : index
    %108 = vector.load %arg7[%c0_110, %c0_111] : memref<256x32xf32, #tpu.memory_space<vmem>>, vector<256x32xf32>
    %109 = arith.mulf %101, %108 : vector<256x32xf32>
    %110 = arith.mulf %96, %107 : vector<256x32xf32>
    %111 = arith.addf %109, %110 : vector<256x32xf32>
    %112 = math.tanh %111 : vector<256x32xf32>
    %113 = arith.mulf %106, %112 : vector<256x32xf32>
    %c0_112 = arith.constant 0 : index
    %c0_113 = arith.constant 0 : index
    %114 = vector.load %arg7[%c0_112, %c0_113] : memref<256x32xf32, #tpu.memory_space<vmem>>, vector<256x32xf32>
    tpu.vector_store %arg7[%c0_112, %c0_113], %111 {strides = array<i32>} : memref<256x32xf32, #tpu.memory_space<vmem>>, vector<256x32xf32>,
    %115 = vector.shape_cast %113 : vector<256x32xf32> to vector<16x16x32xf32>
    %116 = arith.truncf %115 : vector<16x16x32xf32> to vector<16x16x32xbf16>
    %c0_114 = arith.constant 0 : index
    %c1_115 = arith.constant 1 : index
    %c1_116 = arith.constant 1 : index
    %c0_117 = arith.constant 0 : index
    %117 = vector.load %arg6[%c0_114, %c1_115, %c1_116, %c0_117] : memref<1x18x18x32xbf16, #tpu.memory_space<vmem>>, vector<1x16x16x32xbf16>
    %118 = vector.shape_cast %117 : vector<1x16x16x32xbf16> to vector<16x16x32xbf16>
    %119 = vector.shape_cast %116 : vector<16x16x32xbf16> to vector<1x16x16x32xbf16>
    tpu.vector_store %arg6[%c0_114, %c1_115, %c1_116, %c0_117], %119 {strides = array<i32>} : memref<1x18x18x32xbf16, #tpu.memory_space<vmem>>, vector<1x16x16x32xbf16>,
    %c0_118 = arith.constant 0 : index
    %c0_119 = arith.constant 0 : index
    %c0_120 = arith.constant 0 : index
    %c0_121 = arith.constant 0 : index
    %c0_122 = arith.constant 0 : index
    %120 = vector.load %arg4[%c0_118, %c0_119, %c0_120, %c0_121, %c0_122] : memref<1x1x16x16x32xf32, #tpu.memory_space<vmem>>, vector<1x1x16x16x32xf32>
    %121 = vector.shape_cast %120 : vector<1x1x16x16x32xf32> to vector<16x16x32xf32>
    %122 = vector.shape_cast %115 : vector<16x16x32xf32> to vector<1x1x16x16x32xf32>
    tpu.vector_store %arg4[%c0_118, %c0_119, %c0_120, %c0_121, %c0_122], %122 {strides = array<i32>} : memref<1x1x16x16x32xf32, #tpu.memory_space<vmem>>, vector<1x1x16x16x32xf32>,
    %123 = vector.shape_cast %111 : vector<256x32xf32> to vector<16x16x32xf32>
    %c0_123 = arith.constant 0 : index
    %c0_124 = arith.constant 0 : index
    %c0_125 = arith.constant 0 : index
    %c0_126 = arith.constant 0 : index
    %124 = vector.load %arg5[%c0_123, %c0_124, %c0_125, %c0_126] : memref<1x16x16x32xf32, #tpu.memory_space<vmem>>, vector<1x16x16x32xf32>
    %125 = vector.shape_cast %124 : vector<1x16x16x32xf32> to vector<16x16x32xf32>
    %126 = vector.shape_cast %123 : vector<16x16x32xf32> to vector<1x16x16x32xf32>
    tpu.vector_store %arg5[%c0_123, %c0_124, %c0_125, %c0_126], %126 {strides = array<i32>} : memref<1x16x16x32xf32, #tpu.memory_space<vmem>>, vector<1x16x16x32xf32>,
    return
  }
  func.func @transform_0(%arg0: i32, %arg1: i32) -> (i32, i32, i32, i32) {
    %c0_i32 = arith.constant 0 : i32
    %c0_i32_0 = arith.constant 0 : i32
    %c0_i32_1 = arith.constant 0 : i32
    return %arg1, %arg0, %c0_i32, %c0_i32_0 : i32, i32, i32, i32
  }
  func.func @transform_1(%arg0: i32, %arg1: i32) -> (i32, i32, i32) {
    %c0_i32 = arith.constant 0 : i32
    %c0_i32_0 = arith.constant 0 : i32
    %c0_i32_1 = arith.constant 0 : i32
    %c0_i32_2 = arith.constant 0 : i32
    return %c0_i32, %c0_i32_0, %c0_i32_1 : i32, i32, i32
  }
  func.func @transform_2(%arg0: i32, %arg1: i32) -> (i32, i32, i32, i32, i32) {
    %c0_i32 = arith.constant 0 : i32
    %c0_i32_0 = arith.constant 0 : i32
    %c0_i32_1 = arith.constant 0 : i32
    %c0_i32_2 = arith.constant 0 : i32
    return %arg1, %arg0, %c0_i32, %c0_i32_0, %c0_i32_1 : i32, i32, i32, i32, i32
  }
  func.func @transform_3(%arg0: i32, %arg1: i32) -> (i32, i32, i32, i32) {
    %c0_i32 = arith.constant 0 : i32
    %c0_i32_0 = arith.constant 0 : i32
    %c0_i32_1 = arith.constant 0 : i32
    %c0_i32_2 = arith.constant 0 : i32
    return %arg0, %c0_i32, %c0_i32_0, %c0_i32_1 : i32, i32, i32, i32
  }
}

</mosaic_0001>

<bundles_post_ra>
// kernel: convlstm_layer_forward.2
= control target key start
LH: loop header
LB: loop body
LE: loop exit
PB: predicated region body
PF: predicated region fallthrough
CT: control target
= control target key end

     0   :  { %s842_s12 = smov 0   ;;  %s844_s13 = smov 0   ;;  %s1011_s0 = inlined_call_operand.vmem [shape: bf16[8,2,256,36], index: 0, kind: input, shape index: {}]   ;;  %s1012_s1 = inlined_call_operand.vmem [shape: bf16[36,128], index: 1, kind: input, shape index: {}]   ;;  %s1013_s2 = inlined_call_operand.vmem [shape: f32[1,128], index: 2, kind: input, shape index: {}]   ;;  %s1014_s3 = inlined_call_operand.vmem [shape: f32[8,2,256,128], index: 3, kind: output, shape index: {}]  }
   0x1   :  { %s846_s14 = smov 0   ;;  %s848_s15 = smov 0  }
   0x2   :  { %s850_s16 = smov 0  }
   0x3 LB: > { %s22_s17 = sadd.s32 1, %s812_s14  ;;  %s25_s18 = sadd.s32 1, %s816_s15  ;;  %s820_s16 = sphi %s850_s16, %s13_s16   ;;  %s816_s15 = sphi %s848_s15, %s1018_s15   ;;  %s812_s14 = sphi %s846_s14, %s1017_s14   ;;  %s808_s13 = sphi %s844_s13, %s1016_s13   ;;  %s804_s12 = sphi %s842_s12, %s1015_s12  }
   0x4   : > { %p23_p0 = scmp.ge.s32.totalorder %s22_s17, 2  ;;  %p617_p1 = scmp.ge.s32.totalorder %s820_s16, 1 }
   0x5   : > { %p157_p2 = scmp.lt.s32.totalorder %s820_s16, 17 }
   0x6   : > { %s1020_s17 = smov (%p23_p0, %s22_s17), 0  ;;  %s1022_s18 = smov (!%p23_p0, %s25_s18), %s816_s15 }
   0x7   : > { %p158_p3 = pnand %p617_p1, %p157_p2  ;;  %p27_p4 = scmp.ge.s32.totalorder %s1022_s18, 8 }
   0x8   : > { %p189_p5 = scmp.lt.s32.totalorder (!%p158_p3), %s808_s13, 7  ;;  %p191_p6 = scmp.lt.s32.totalorder (!%p158_p3), %s804_s12, 1 }
   0x9   : > { %s1024_s18 = smov (%p27_p4, %s1022_s18), 0  ;;  %161 = sbr.rel (%p158_p3) target bundleno = 224 (0xe0), region = 32 }
   0xe   : > { %v244_v0 = vld [vmem:[%s1012_s1 + $0x10] sm:$0x3]  ;;  %vm393_vm0 = vcmask 1041408   ;;  %s1026_s13 = smov (!%p189_p5, %s808_s13), 7  ;;  %s1028_s12 = smov (!%p191_p6, %s804_s12), 1  ;;  %v731_v4 = vld [vmem:[%s1012_s1 + $0x8] sm:$0xff] }
   0xf   : > { %v338_v1 = vunpack.c.l.b16 %v244_v0  ;;  %s619_s21 = sshll.u32 %s1026_s13, 6  ;;  %s618_s22 = sshll.u32 %s1028_s12, 5  ;;  %v730_v5 = vld [vmem:[%s1012_s1] sm:$0xff]  ;;  %vm344_vm1 = vcmask 293888  }
  0x10   : > { %s878_s25 = sadd.s32 %s619_s21, %s618_s22  ;;  %v925_v22 = vld [vmem:[%s1013_s2] ss:$0 sm:$0xff] }
  0x11   : > { %v341_v2 = vpack.c.b16 %v338_v1, %v338_v1  ;;  %s620_s26 = sshll.u32 %s878_s25, 2  ;;  %s623_s5 = sshll.u32 %s878_s25, 3 }
  0x12   : > { %s887_s4 = scalar_lea.vmem %s1011_s0, %s620_s26  ;;  %s930_s10 = scalar_lea.vmem %s1014_s3, %s623_s5 }
  0x13   : > { %v395_v3 = vsel %vm393_vm0, %v341_v2, 0  ;;  %v714_v6 = vld [vmem:[%s887_s4] sm:$0xff]  ;;  %v715_v10 = vld [vmem:[%s887_s4 + $0x8] sm:$0xff]  ;;  %v716_v14 = vld [vmem:[%s887_s4 + $0x10] sm:$0xff] }
  0x14   : > { %402 = vmatpush.bf16.msra.mxu0 %v395_v3  ;;  %732 = vmatpush.bf16.msra.mxu1 %v395_v3  ;;  %v718_v7 = vld [vmem:[%s887_s4 + $0x20] sm:$0xff]  ;;  %v719_v11 = vld [vmem:[%s887_s4 + $0x28] sm:$0xff]  ;;  %v720_v15 = vld [vmem:[%s887_s4 + $0x30] sm:$0xff] }
  0x15   : > { %733 = vmatpush.bf16.msra.mxu2 %v395_v3  ;;  %734 = vmatpush.bf16.msra.mxu3 %v395_v3  ;;  %v722_v8 = vld [vmem:[%s887_s4 + $0x40] sm:$0xff]  ;;  %v723_v12 = vld [vmem:[%s887_s4 + $0x48] sm:$0xff]  ;;  %v724_v16 = vld [vmem:[%s887_s4 + $0x50] sm:$0xff] }
  0x16   : > { %v726_v9 = vld [vmem:[%s887_s4 + $0x60] sm:$0xff]  ;;  %v727_v13 = vld [vmem:[%s887_s4 + $0x68] sm:$0xff]  ;;  %v728_v17 = vld [vmem:[%s887_s4 + $0x70] sm:$0xff] }
  0x17   : > { %v717_v18 = vld [vmem:[%s887_s4 + $0x18] sm:$0xff] }
  0x18   : > { %403 = vmatpush.bf16.msra.mxu0 %v731_v4  ;;  %735 = vmatpush.bf16.msra.mxu1 %v731_v4  ;;  %v721_v19 = vld [vmem:[%s887_s4 + $0x38] sm:$0xff] }
  0x19   : > { %736 = vmatpush.bf16.msra.mxu2 %v731_v4  ;;  %737 = vmatpush.bf16.msra.mxu3 %v731_v4  ;;  %v725_v20 = vld [vmem:[%s887_s4 + $0x58] sm:$0xff] }
  0x1a   : > { %v729_v21 = vld [vmem:[%s887_s4 + $0x78] sm:$0xff] }
  0x1c   : > { %404 = vmatpush.bf16.msra.mxu0 %v730_v5  ;;  %738 = vmatpush.bf16.msra.mxu1 %v730_v5 }
  0x1d   : > { %739 = vmatpush.bf16.msra.mxu2 %v730_v5  ;;  %740 = vmatpush.bf16.msra.mxu3 %v730_v5 }
  0x1f   : > { %696 = vmatmul.msk.bf16.vlgmr.msra.gmra.mxu0 %vm344_vm1, %v714_v6  ;;  %700 = vmatmul.msk.bf16.vlgmr.msra.gmra.mxu1 %vm344_vm1, %v718_v7 }
  0x20   : > { %704 = vmatmul.msk.bf16.vlgmr.msra.gmra.mxu2 %vm344_vm1, %v722_v8  ;;  %708 = vmatmul.msk.bf16.vlgmr.msra.gmra.mxu3 %vm344_vm1, %v726_v9 }
  0x2f   : > { %697 = vmatmul.msk.bf16.gmra.mxu0 %vm344_vm1, %v715_v10  ;;  %701 = vmatmul.msk.bf16.gmra.mxu1 %vm344_vm1, %v719_v11 }
  0x30   : > { %705 = vmatmul.msk.bf16.gmra.mxu2 %vm344_vm1, %v723_v12  ;;  %709 = vmatmul.msk.bf16.gmra.mxu3 %vm344_vm1, %v727_v13 }
  0x3f   : > { %698 = vmatmul.msk.bf16.gmra.mxu0 %vm344_vm1, %v716_v14  ;;  %702 = vmatmul.msk.bf16.gmra.mxu1 %vm344_vm1, %v720_v15 }
  0x40   : > { %706 = vmatmul.msk.bf16.gmra.mxu2 %vm344_vm1, %v724_v16  ;;  %710 = vmatmul.msk.bf16.gmra.mxu3 %vm344_vm1, %v728_v17 }
  0x4f   : > { %699 = vmatmul.msk.bf16.gmra.mxu0 %vm344_vm1, %v717_v18  ;;  %703 = vmatmul.msk.bf16.gmra.mxu1 %vm344_vm1, %v721_v19 }
  0x50   : > { %707 = vmatmul.msk.bf16.gmra.mxu2 %vm344_vm1, %v725_v20  ;;  %711 = vmatmul.msk.bf16.gmra.mxu3 %vm344_vm1, %v729_v21 }
  0x9c   : > { %v406_v23 = vpop.f32.mrf.mxu0  ;;  %v426_v24 = vpop.f32.mrf.mxu1 }
  0x9d   : > { %v407_v25 = vadd.f32 %v925_v22, %v406_v23  ;;  %v427_v26 = vadd.f32 %v925_v22, %v426_v24 }
  0x9f   : > { %486 = vst [vmem:[%s930_s10] sm:$0xff] %v407_v25 }
  0xa0   : > { %494 = vst [vmem:[%s930_s10 + $0x40] sm:$0xff] %v427_v26 }
  0xa3   : > { %v446_v27 = vpop.f32.mrf.mxu2  ;;  %v466_v28 = vpop.f32.mrf.mxu3 }
  0xa4   : > { %v447_v29 = vadd.f32 %v925_v22, %v446_v27  ;;  %v467_v30 = vadd.f32 %v925_v22, %v466_v28  ;;  %v408_v31 = vpop.f32.mrf.mxu0  ;;  %v428_v32 = vpop.f32.mrf.mxu1 }
  0xa5   : > { %v409_v33 = vadd.f32 %v925_v22, %v408_v31  ;;  %v429_v34 = vadd.f32 %v925_v22, %v428_v32 }
  0xa6   : > { %502 = vst [vmem:[%s930_s10 + $0x80] sm:$0xff] %v447_v29 }
  0xa7   : > { %510 = vst [vmem:[%s930_s10 + $0xc0] sm:$0xff] %v467_v30 }
  0xa8   : > { %487 = vst [vmem:[%s930_s10 + $0x8] sm:$0xff] %v409_v33 }
  0xa9   : > { %495 = vst [vmem:[%s930_s10 + $0x48] sm:$0xff] %v429_v34 }
  0xab   : > { %v448_v35 = vpop.f32.mrf.mxu2  ;;  %v468_v36 = vpop.f32.mrf.mxu3 }
  0xac   : > { %v449_v37 = vadd.f32 %v925_v22, %v448_v35  ;;  %v469_v38 = vadd.f32 %v925_v22, %v468_v36  ;;  %v411_v39 = vpop.f32.mrf.mxu0  ;;  %v431_v40 = vpop.f32.mrf.mxu1 }
  0xad   : > { %v412_v41 = vadd.f32 %v925_v22, %v411_v39  ;;  %v432_v42 = vadd.f32 %v925_v22, %v431_v40 }
  0xae   : > { %503 = vst [vmem:[%s930_s10 + $0x88] sm:$0xff] %v449_v37 }
  0xaf   : > { %511 = vst [vmem:[%s930_s10 + $0xc8] sm:$0xff] %v469_v38 }
  0xb0   : > { %488 = vst [vmem:[%s930_s10 + $0x10] sm:$0xff] %v412_v41 }
  0xb1   : > { %496 = vst [vmem:[%s930_s10 + $0x50] sm:$0xff] %v432_v42 }
  0xb3   : > { %v451_v43 = vpop.f32.mrf.mxu2  ;;  %v471_v44 = vpop.f32.mrf.mxu3 }
  0xb4   : > { %v452_v45 = vadd.f32 %v925_v22, %v451_v43  ;;  %v472_v46 = vadd.f32 %v925_v22, %v471_v44  ;;  %v413_v47 = vpop.f32.mrf.mxu0  ;;  %v433_v48 = vpop.f32.mrf.mxu1 }
  0xb5   : > { %v414_v49 = vadd.f32 %v925_v22, %v413_v47  ;;  %v434_v50 = vadd.f32 %v925_v22, %v433_v48 }
  0xb6   : > { %504 = vst [vmem:[%s930_s10 + $0x90] sm:$0xff] %v452_v45 }
  0xb7   : > { %512 = vst [vmem:[%s930_s10 + $0xd0] sm:$0xff] %v472_v46 }
  0xb8   : > { %489 = vst [vmem:[%s930_s10 + $0x18] sm:$0xff] %v414_v49 }
  0xb9   : > { %497 = vst [vmem:[%s930_s10 + $0x58] sm:$0xff] %v434_v50 }
  0xbb   : > { %v453_v51 = vpop.f32.mrf.mxu2  ;;  %v473_v52 = vpop.f32.mrf.mxu3 }
  0xbc   : > { %v454_v53 = vadd.f32 %v925_v22, %v453_v51  ;;  %v474_v54 = vadd.f32 %v925_v22, %v473_v52  ;;  %v416_v55 = vpop.f32.mrf.mxu0  ;;  %v436_v56 = vpop.f32.mrf.mxu1 }
  0xbd   : > { %v417_v57 = vadd.f32 %v925_v22, %v416_v55  ;;  %v437_v58 = vadd.f32 %v925_v22, %v436_v56 }
  0xbe   : > { %505 = vst [vmem:[%s930_s10 + $0x98] sm:$0xff] %v454_v53 }
  0xbf   : > { %513 = vst [vmem:[%s930_s10 + $0xd8] sm:$0xff] %v474_v54 }
  0xc0   : > { %490 = vst [vmem:[%s930_s10 + $0x20] sm:$0xff] %v417_v57 }
  0xc1   : > { %498 = vst [vmem:[%s930_s10 + $0x60] sm:$0xff] %v437_v58 }
  0xc3   : > { %v456_v59 = vpop.f32.mrf.mxu2  ;;  %v476_v60 = vpop.f32.mrf.mxu3 }
  0xc4   : > { %v457_v61 = vadd.f32 %v925_v22, %v456_v59  ;;  %v477_v62 = vadd.f32 %v925_v22, %v476_v60  ;;  %v418_v63 = vpop.f32.mrf.mxu0  ;;  %v438_v0 = vpop.f32.mrf.mxu1 }
  0xc5   : > { %v419_v1 = vadd.f32 %v925_v22, %v418_v63  ;;  %v439_v2 = vadd.f32 %v925_v22, %v438_v0 }
  0xc6   : > { %506 = vst [vmem:[%s930_s10 + $0xa0] sm:$0xff] %v457_v61 }
  0xc7   : > { %514 = vst [vmem:[%s930_s10 + $0xe0] sm:$0xff] %v477_v62 }
  0xc8   : > { %491 = vst [vmem:[%s930_s10 + $0x28] sm:$0xff] %v419_v1 }
  0xc9   : > { %499 = vst [vmem:[%s930_s10 + $0x68] sm:$0xff] %v439_v2 }
  0xcb   : > { %v458_v3 = vpop.f32.mrf.mxu2  ;;  %v478_v4 = vpop.f32.mrf.mxu3 }
  0xcc   : > { %v459_v5 = vadd.f32 %v925_v22, %v458_v3  ;;  %v479_v6 = vadd.f32 %v925_v22, %v478_v4  ;;  %v421_v7 = vpop.f32.mrf.mxu0  ;;  %v441_v8 = vpop.f32.mrf.mxu1 }
  0xcd   : > { %v422_v9 = vadd.f32 %v925_v22, %v421_v7  ;;  %v442_v10 = vadd.f32 %v925_v22, %v441_v8 }
  0xce   : > { %507 = vst [vmem:[%s930_s10 + $0xa8] sm:$0xff] %v459_v5 }
  0xcf   : > { %515 = vst [vmem:[%s930_s10 + $0xe8] sm:$0xff] %v479_v6 }
  0xd0   : > { %492 = vst [vmem:[%s930_s10 + $0x30] sm:$0xff] %v422_v9 }
  0xd1   : > { %500 = vst [vmem:[%s930_s10 + $0x70] sm:$0xff] %v442_v10 }
  0xd3   : > { %v461_v11 = vpop.f32.mrf.mxu2  ;;  %v481_v12 = vpop.f32.mrf.mxu3 }
  0xd4   : > { %v462_v13 = vadd.f32 %v925_v22, %v461_v11  ;;  %v482_v14 = vadd.f32 %v925_v22, %v481_v12  ;;  %v423_v15 = vpop.f32.mrf.mxu0  ;;  %v443_v16 = vpop.f32.mrf.mxu1 }
  0xd5   : > { %v424_v17 = vadd.f32 %v925_v22, %v423_v15  ;;  %v444_v18 = vadd.f32 %v925_v22, %v443_v16 }
  0xd6   : > { %508 = vst [vmem:[%s930_s10 + $0xb0] sm:$0xff] %v462_v13 }
  0xd7   : > { %516 = vst [vmem:[%s930_s10 + $0xf0] sm:$0xff] %v482_v14 }
  0xd8   : > { %493 = vst [vmem:[%s930_s10 + $0x38] sm:$0xff] %v424_v17 }
  0xd9   : > { %501 = vst [vmem:[%s930_s10 + $0x78] sm:$0xff] %v444_v18 }
  0xdb   : > { %v463_v19 = vpop.f32.mrf.mxu2  ;;  %v483_v20 = vpop.f32.mrf.mxu3 }
  0xdc   : > { %v464_v21 = vadd.f32 %v925_v22, %v463_v19  ;;  %v484_v23 = vadd.f32 %v925_v22, %v483_v20 }
  0xde   : > { %509 = vst [vmem:[%s930_s10 + $0xb8] sm:$0xff] %v464_v21 }
  0xdf   : > { %517 = vst [vmem:[%s930_s10 + $0xf8] sm:$0xff] %v484_v23 }
  0xe0 PF: > { %s13_s16 = sadd.s32 1, %s820_s16   ;;  %s1015_s12 = smov %s812_s14 }
  0xe1   : > { %p10_p7 = scmp.ge.s32.totalorder %s13_s16, 18   ;;  %s1016_s13 = smov %s816_s15 }
  0xe2   : > { %s1017_s14 = smov %s1020_s17  ;;  %s1018_s15 = smov %s1024_s18 }
  0xe3   :  { %12 = sbr.rel (!%p10_p7) target bundleno = 3 (0x3), region = 62 }

// kernel: convlstm_layer_forward.3
= control target key start
LH: loop header
LB: loop body
LE: loop exit
PB: predicated region body
PF: predicated region fallthrough
CT: control target
= control target key end

     0   :  { %9 = vsyncpa [#allocation6], 0  ;;  %s11635_s0 = inlined_call_operand.vmem [shape: f32[8,2,256,128], index: 0, kind: input, shape index: {}]   ;;  %s11636_s1 = inlined_call_operand.vmem [shape: bf16[9,32,128], index: 1, kind: input, shape index: {}]   ;;  %s11637_s2 = inlined_call_operand.hbm [shape: f32[8,2,16,16,32], index: 2, kind: output, shape index: {0}]   ;;  %s11638_s3 = inlined_call_operand.hbm [shape: f32[2,16,16,32], index: 3, kind: output, shape index: {1}]  }
   0x1   :  { %11 = vsyncpa [#allocation6 + $0x1], 0 }
   0x2   :  { %12 = vsyncpa [#allocation8], 0 }
   0x3   :  { %14 = vsyncpa [#allocation8 + $0x1], 0  ;;  %s8778_s12 = smov 0   ;;  %s8780_s13 = smov 0  }
   0x4   :  { %s8782_s14 = smov 0   ;;  %s8784_s15 = smov 0  }
   0x5   :  { %s8786_s16 = smov 0   ;;  %s8788_s17 = smov 0  }
   0x6   :  { %s8790_s18 = smov 0   ;;  %s8792_s19 = smov 0  }
   0x7   :  { %s8794_s20 = smov 0   ;;  %s8796_s21 = smov 0  }
   0x8   :  { %s8798_s22 = smov 0  }
   0x9 LB: > { %11645 = sst [smem:[#allocation11_spill]] %s8729_s17  ;;  %s7623_s23 = sadd.s32 4294967295, %s8749_s22   ;;  %s8749_s22 = sphi %s8798_s22, %s20_s22   ;;  %s8745_s21 = sphi %s8796_s21, %s11763_s21   ;;  %s8741_s20 = sphi %s8794_s20, %s11762_s20   ;;  %s8737_s19 = sphi %s8792_s19, %s11761_s19   ;;  %s8733_s18 = sphi %s8790_s18, %s11760_s18   ;;  %s8729_s17 = sphi %s8788_s17, %s11759_s17   ;;  %s8725_s16 = sphi %s8786_s16, %s11768_s16   ;;  %s8721_s15 = sphi %s8784_s15, %s11767_s15   ;;  %s8717_s14 = sphi %s8782_s14, %s11766_s14   ;;  %s8713_s13 = sphi %s8780_s13, %s11765_s13   ;;  %s8709_s12 = sphi %s8778_s12, %s11764_s12  }
   0xa   : > { %11646 = sst [smem:[#allocation12_spill]] %s8741_s20  ;;  %s7624_s24 = sadd.s32 4294967294, %s8749_s22  }
   0xb   : > { %11647 = sst [smem:[#allocation13_spill]] %s8745_s21  ;;  %s29_s25 = sadd.s32 1, %s8741_s20 }
   0xc   : > { %s32_s26 = sadd.s32 1, %s8745_s21  ;;  %p30_p0 = scmp.ge.s32.totalorder %s29_s25, 8 }
   0xd   : > { %s90_s27 = sadd.s32 1, %s8729_s17  ;;  %p100_p1 = scmp.ne.s32.totalorder %s8729_s17, %s8725_s16 }
   0xe   : > { %p8840_p2 = scmp.eq.s32.totalorder %s7623_s23, 15  ;;  %s11770_s25 = smov (%p30_p0, %s29_s25), 0 }
   0xf   : > { %11649 = sst [smem:[#allocation14_spill]] %s11770_s25  ;;  %s11772_s26 = smov (!%p30_p0, %s32_s26), %s8745_s21 }
  0x10   : > { %s85_s29 = ssub.s32 %s8741_s20, %s11770_s25  ;;  %p8851_p3 = por %p8840_p2, %p100_p1 }
  0x11   : > { %p34_p4 = scmp.ge.s32.totalorder %s11772_s26, 2  ;;  %p106_p5 = scmp.ne.s32.totalorder %s8725_s16, %s8721_s15 }
  0x12   : > { %p8857_p6 = scmp.eq.s32.totalorder %s7624_s24, 15  ;;  %s116_s5 = sadd.s32 1, %s8717_s14 }
  0x13   : > { %s11774_s26 = smov (%p34_p4, %s11772_s26), 0  ;;  %p126_p8 = scmp.ne.s32.totalorder %s8717_s14, %s8713_s13 }
  0x14   : > { %11652 = sst [smem:[#allocation15_spill]] %s11774_s26  ;;  %p8866_p7 = por %p8857_p6, %p106_p5 }
  0x15   : > { %s86_s7 = ssub.s32 %s8745_s21, %s11774_s26  ;;  %p132_p9 = scmp.ne.s32.totalorder %s8713_s13, %s8709_s12 }
  0x16   : > { %s87_s8 = sor.u32 %s86_s7, %s85_s29  ;;  %p114_p10 = scmp.eq.s32.totalorder %s86_s7, 0 }
  0x17   : > { %p88_p11 = scmp.eq.s32.totalorder %s87_s8, 0  ;;  %p8878_p12 = por %p126_p8, %p8840_p2 }
  0x18   : > { %s8883_s10 = scalar_select %p114_p10, %s8717_s14, %s116_s5  }
  0x19   : > { %s8886_s11 = scalar_select %p88_p11, %s8729_s17, %s90_s27  }
  0x1a   : > { %11655 = sst [smem:[#allocation16_spill]] %s8883_s10  ;;  %p8890_p13 = por %p132_p9, %p8857_p6 }
  0x1b   : > { %11656 = sst [smem:[#allocation17_spill]] %s8886_s11  ;;  %p7627_p0 = scmp.ge.s32.totalorder %s8749_s22, 1 }
  0x1c   : > { %p166_p1 = scmp.lt.s32.totalorder %s8749_s22, 17 }
  0x1e   : > { %p167_p4 = pnand %p7627_p0, %p166_p1 }
  0x20   : > { %170 = sbr.rel (%p167_p4) target bundleno = 1422 (0x58e), region = 28 }
  0x25   : > { %s11644_s24 = sand.u32 1, %s8725_s16   ;;  %s196_s27 = sand.u32 1, %s8713_s13  }
  0x26   : > { %s7628_s28 = sshll.u32 %s11644_s24, 8  ;;  %s7629_s29 = sshll.u32 %s196_s27, 8 }
  0x27   : > { %p199_p2 = scmp.lt.s32.totalorder %s8733_s18, 7  ;;  %p201_p5 = scmp.lt.s32.totalorder %s8737_s19, 1 }
  0x28   : > { %s8911_s17 = scalar_lea.vmem [#allocation5], %s7628_s28  ;;  %s8913_s10 = scalar_lea.vmem [#allocation7], %s7629_s29 }
  0x29   : > { %s200_s4 = scalar_select %p199_p2, %s8733_s18, 7 }
  0x2a   : > { %s202_s5 = scalar_select %p201_p5, %s8737_s19, 1 }
  0x2b   : > { %s7631_s7 = sshll.u32 %s200_s4, 6  ;;  %p7633_p6 = scmp.ne.s32.totalorder %s8733_s18, 0 }
  0x2c   : > { %s7630_s8 = sshll.u32 %s202_s5, 5 }
  0x2d   : > { %s205_s26 = sadd.s32 %s7631_s7, %s7630_s8  ;;  %212 = sbr.rel (%p7633_p6) target bundleno = 137 (0x89), region = 32 }
  0x2e   : > { %s7632_s25 = sshll.u32 %s205_s26, 3 }
  0x2f   : > { %s8909_s11 = scalar_lea.vmem %s11635_s0, %s7632_s25 }
  0x32   : > { %vm213_vm0 = vcmask 257024   ;;  %v8751_v0 = vmov 0   ;;  %vm216_vm1 = vcmask 253952   ;;  %vm269_vm2 = vcmask 261120  }
  0x33   : > { %214 = vst.msk [vmem:[#allocation2] sm:$0xf] %vm213_vm0, %v8751_v0  ;;  %v8752_v1 = vmov 0.0  }
  0x34   : > { %215 = vst.msk [vmem:[#allocation2 + $0x4] sm:$0xf] %vm213_vm0, %v8751_v0 }
  0x35   : > { %218 = vst.msk [vmem:[#allocation2 + $0xc] sm:$0xf] %vm213_vm0, %v8751_v0 }
  0x36   : > { %219 = vst.msk [vmem:[#allocation2 + $0x10] sm:$0xf] %vm213_vm0, %v8751_v0 }
  0x37   : > { %221 = vst.msk [vmem:[#allocation2 + $0x18] sm:$0xf] %vm213_vm0, %v8751_v0 }
  0x38   : > { %222 = vst.msk [vmem:[#allocation2 + $0x1c] sm:$0xf] %vm213_vm0, %v8751_v0 }
  0x39   : > { %224 = vst.msk [vmem:[#allocation2 + $0x24] sm:$0xf] %vm213_vm0, %v8751_v0 }
  0x3a   : > { %225 = vst.msk [vmem:[#allocation2 + $0x28] sm:$0xf] %vm213_vm0, %v8751_v0 }
  0x3b   : > { %227 = vst.msk [vmem:[#allocation2 + $0x30] sm:$0xf] %vm213_vm0, %v8751_v0 }
  0x3c   : > { %228 = vst.msk [vmem:[#allocation2 + $0x34] sm:$0xf] %vm213_vm0, %v8751_v0 }
  0x3d   : > { %230 = vst.msk [vmem:[#allocation2 + $0x3c] sm:$0xf] %vm213_vm0, %v8751_v0 }
  0x3e   : > { %231 = vst.msk [vmem:[#allocation2 + $0x40] sm:$0xf] %vm213_vm0, %v8751_v0 }
  0x3f   : > { %233 = vst.msk [vmem:[#allocation2 + $0x48] sm:$0xf] %vm213_vm0, %v8751_v0 }
  0x40   : > { %234 = vst.msk [vmem:[#allocation2 + $0x4c] sm:$0xf] %vm213_vm0, %v8751_v0 }
  0x41   : > { %236 = vst.msk [vmem:[#allocation2 + $0x54] sm:$0xf] %vm213_vm0, %v8751_v0 }
  0x42   : > { %237 = vst.msk [vmem:[#allocation2 + $0x58] sm:$0xf] %vm213_vm0, %v8751_v0 }
  0x43   : > { %239 = vst.msk [vmem:[#allocation2 + $0x60] sm:$0xf] %vm213_vm0, %v8751_v0 }
  0x44   : > { %240 = vst.msk [vmem:[#allocation2 + $0x64] sm:$0xf] %vm213_vm0, %v8751_v0 }
  0x45   : > { %242 = vst.msk [vmem:[#allocation2 + $0x6c] sm:$0xf] %vm213_vm0, %v8751_v0 }
  0x46   : > { %243 = vst.msk [vmem:[#allocation2 + $0x70] sm:$0xf] %vm213_vm0, %v8751_v0 }
  0x47   : > { %245 = vst.msk [vmem:[#allocation2 + $0x78] sm:$0xf] %vm213_vm0, %v8751_v0 }
  0x48   : > { %246 = vst.msk [vmem:[#allocation2 + $0x7c] sm:$0xf] %vm213_vm0, %v8751_v0 }
  0x49   : > { %248 = vst.msk [vmem:[#allocation2 + $0x84] sm:$0xf] %vm213_vm0, %v8751_v0 }
  0x4a   : > { %249 = vst.msk [vmem:[#allocation2 + $0x88] sm:$0xf] %vm213_vm0, %v8751_v0 }
  0x4b   : > { %251 = vst.msk [vmem:[#allocation2 + $0x90] sm:$0xf] %vm213_vm0, %v8751_v0 }
  0x4c   : > { %252 = vst.msk [vmem:[#allocation2 + $0x94] sm:$0xf] %vm213_vm0, %v8751_v0 }
  0x4d   : > { %254 = vst.msk [vmem:[#allocation2 + $0x9c] sm:$0xf] %vm213_vm0, %v8751_v0 }
  0x4e   : > { %255 = vst.msk [vmem:[#allocation2 + $0xa0] sm:$0xf] %vm213_vm0, %v8751_v0 }
  0x4f   : > { %257 = vst.msk [vmem:[#allocation2 + $0xa8] sm:$0xf] %vm213_vm0, %v8751_v0 }
  0x50   : > { %258 = vst.msk [vmem:[#allocation2 + $0xac] sm:$0xf] %vm213_vm0, %v8751_v0 }
  0x51   : > { %260 = vst.msk [vmem:[#allocation2 + $0xb4] sm:$0xf] %vm213_vm0, %v8751_v0 }
  0x52   : > { %261 = vst.msk [vmem:[#allocation2 + $0xb8] sm:$0xf] %vm213_vm0, %v8751_v0 }
  0x53   : > { %263 = vst.msk [vmem:[#allocation2 + $0xc0] sm:$0xf] %vm213_vm0, %v8751_v0 }
  0x54   : > { %264 = vst.msk [vmem:[#allocation2 + $0xc4] sm:$0xf] %vm213_vm0, %v8751_v0 }
  0x55   : > { %266 = vst.msk [vmem:[#allocation2 + $0xcc] sm:$0xf] %vm213_vm0, %v8751_v0 }
  0x56   : > { %267 = vst.msk [vmem:[#allocation2 + $0xd0] sm:$0xf] %vm213_vm0, %v8751_v0 }
  0x57   : > { %217 = vst.msk [vmem:[#allocation2 + $0x8] sm:$0x1] %vm216_vm1, %v8751_v0 }
  0x58   : > { %220 = vst.msk [vmem:[#allocation2 + $0x14] sm:$0x1] %vm216_vm1, %v8751_v0 }
  0x59   : > { %223 = vst.msk [vmem:[#allocation2 + $0x20] sm:$0x1] %vm216_vm1, %v8751_v0 }
  0x5a   : > { %226 = vst.msk [vmem:[#allocation2 + $0x2c] sm:$0x1] %vm216_vm1, %v8751_v0 }
  0x5b   : > { %229 = vst.msk [vmem:[#allocation2 + $0x38] sm:$0x1] %vm216_vm1, %v8751_v0 }
  0x5c   : > { %232 = vst.msk [vmem:[#allocation2 + $0x44] sm:$0x1] %vm216_vm1, %v8751_v0 }
  0x5d   : > { %235 = vst.msk [vmem:[#allocation2 + $0x50] sm:$0x1] %vm216_vm1, %v8751_v0 }
  0x5e   : > { %238 = vst.msk [vmem:[#allocation2 + $0x5c] sm:$0x1] %vm216_vm1, %v8751_v0 }
  0x5f   : > { %241 = vst.msk [vmem:[#allocation2 + $0x68] sm:$0x1] %vm216_vm1, %v8751_v0 }
  0x60   : > { %244 = vst.msk [vmem:[#allocation2 + $0x74] sm:$0x1] %vm216_vm1, %v8751_v0 }
  0x61   : > { %247 = vst.msk [vmem:[#allocation2 + $0x80] sm:$0x1] %vm216_vm1, %v8751_v0 }
  0x62   : > { %250 = vst.msk [vmem:[#allocation2 + $0x8c] sm:$0x1] %vm216_vm1, %v8751_v0 }
  0x63   : > { %253 = vst.msk [vmem:[#allocation2 + $0x98] sm:$0x1] %vm216_vm1, %v8751_v0 }
  0x64   : > { %256 = vst.msk [vmem:[#allocation2 + $0xa4] sm:$0x1] %vm216_vm1, %v8751_v0 }
  0x65   : > { %259 = vst.msk [vmem:[#allocation2 + $0xb0] sm:$0x1] %vm216_vm1, %v8751_v0 }
  0x66   : > { %262 = vst.msk [vmem:[#allocation2 + $0xbc] sm:$0x1] %vm216_vm1, %v8751_v0 }
  0x67   : > { %265 = vst.msk [vmem:[#allocation2 + $0xc8] sm:$0x1] %vm216_vm1, %v8751_v0 }
  0x68   : > { %268 = vst.msk [vmem:[#allocation2 + $0xd4] sm:$0x1] %vm216_vm1, %v8751_v0 }
  0x69   : > { %270 = vst.msk [vmem:[#allocation3] sm:$0xff] %vm269_vm2, %v8752_v1 }
  0x6a   : > { %271 = vst.msk [vmem:[#allocation3 + $0x8] sm:$0xff] %vm269_vm2, %v8752_v1 }
  0x6b   : > { %272 = vst.msk [vmem:[#allocation3 + $0x10] sm:$0xff] %vm269_vm2, %v8752_v1 }
  0x6c   : > { %273 = vst.msk [vmem:[#allocation3 + $0x18] sm:$0xff] %vm269_vm2, %v8752_v1 }
  0x6d   : > { %274 = vst.msk [vmem:[#allocation3 + $0x20] sm:$0xff] %vm269_vm2, %v8752_v1 }
  0x6e   : > { %275 = vst.msk [vmem:[#allocation3 + $0x28] sm:$0xff] %vm269_vm2, %v8752_v1 }
  0x6f   : > { %276 = vst.msk [vmem:[#allocation3 + $0x30] sm:$0xff] %vm269_vm2, %v8752_v1 }
  0x70   : > { %277 = vst.msk [vmem:[#allocation3 + $0x38] sm:$0xff] %vm269_vm2, %v8752_v1 }
  0x71   : > { %278 = vst.msk [vmem:[#allocation3 + $0x40] sm:$0xff] %vm269_vm2, %v8752_v1 }
  0x72   : > { %279 = vst.msk [vmem:[#allocation3 + $0x48] sm:$0xff] %vm269_vm2, %v8752_v1 }
  0x73   : > { %280 = vst.msk [vmem:[#allocation3 + $0x50] sm:$0xff] %vm269_vm2, %v8752_v1 }
  0x74   : > { %281 = vst.msk [vmem:[#allocation3 + $0x58] sm:$0xff] %vm269_vm2, %v8752_v1 }
  0x75   : > { %282 = vst.msk [vmem:[#allocation3 + $0x60] sm:$0xff] %vm269_vm2, %v8752_v1 }
  0x76   : > { %283 = vst.msk [vmem:[#allocation3 + $0x68] sm:$0xff] %vm269_vm2, %v8752_v1 }
  0x77   : > { %284 = vst.msk [vmem:[#allocation3 + $0x70] sm:$0xff] %vm269_vm2, %v8752_v1 }
  0x78   : > { %285 = vst.msk [vmem:[#allocation3 + $0x78] sm:$0xff] %vm269_vm2, %v8752_v1 }
  0x79   : > { %286 = vst.msk [vmem:[#allocation3 + $0x80] sm:$0xff] %vm269_vm2, %v8752_v1 }
  0x7a   : > { %287 = vst.msk [vmem:[#allocation3 + $0x88] sm:$0xff] %vm269_vm2, %v8752_v1 }
  0x7b   : > { %288 = vst.msk [vmem:[#allocation3 + $0x90] sm:$0xff] %vm269_vm2, %v8752_v1 }
  0x7c   : > { %289 = vst.msk [vmem:[#allocation3 + $0x98] sm:$0xff] %vm269_vm2, %v8752_v1 }
  0x7d   : > { %290 = vst.msk [vmem:[#allocation3 + $0xa0] sm:$0xff] %vm269_vm2, %v8752_v1 }
  0x7e   : > { %291 = vst.msk [vmem:[#allocation3 + $0xa8] sm:$0xff] %vm269_vm2, %v8752_v1 }
  0x7f   : > { %292 = vst.msk [vmem:[#allocation3 + $0xb0] sm:$0xff] %vm269_vm2, %v8752_v1 }
  0x80   : > { %293 = vst.msk [vmem:[#allocation3 + $0xb8] sm:$0xff] %vm269_vm2, %v8752_v1 }
  0x81   : > { %294 = vst.msk [vmem:[#allocation3 + $0xc0] sm:$0xff] %vm269_vm2, %v8752_v1 }
  0x82   : > { %295 = vst.msk [vmem:[#allocation3 + $0xc8] sm:$0xff] %vm269_vm2, %v8752_v1 }
  0x83   : > { %296 = vst.msk [vmem:[#allocation3 + $0xd0] sm:$0xff] %vm269_vm2, %v8752_v1 }
  0x84   : > { %297 = vst.msk [vmem:[#allocation3 + $0xd8] sm:$0xff] %vm269_vm2, %v8752_v1 }
  0x85   : > { %298 = vst.msk [vmem:[#allocation3 + $0xe0] sm:$0xff] %vm269_vm2, %v8752_v1 }
  0x86   : > { %299 = vst.msk [vmem:[#allocation3 + $0xe8] sm:$0xff] %vm269_vm2, %v8752_v1 }
  0x87   : > { %300 = vst.msk [vmem:[#allocation3 + $0xf0] sm:$0xff] %vm269_vm2, %v8752_v1 }
  0x88   : > { %301 = vst.msk [vmem:[#allocation3 + $0xf8] sm:$0xff] %vm269_vm2, %v8752_v1 }
  0x89 PF: > { %v8180_v2 = vld [vmem:[%s11636_s1 + $0x8] sm:$0xff]  ;;  %v8179_v3 = vld [vmem:[%s11636_s1] sm:$0xff]  ;;  %v8202_v5 = vld [vmem:[%s11636_s1 + $0x38] sm:$0xff]  ;;  %vm526_vm3 = vcmask 261120   ;;  %vm776_vm4 = vsmask.f32 3328 }
  0x8a   : > { %8230 = vmatpush.bf16.msra.mxu1 %v8180_v2  ;;  %8231 = vmatpush.bf16.msra.mxu2 %v8180_v2  ;;  %v8184_v4 = vld [vmem:[%s11636_s1 + $0x28] sm:$0xff]  ;;  %v8167_v6 = vld [vmem:[#allocation2 + $0x30] sm:$0xff]  ;;  %v8171_v7 = vld [vmem:[#allocation2 + $0x60] sm:$0xff]  ;;  %vm777_vm5 = vsmask.f32 7440  ;;  %vm1557_vm6 = vcmask 1042432  }
  0x8b   : > { %8232 = vmatpush.bf16.msra.mxu3 %v8180_v2  ;;  %581 = vmatpush.bf16.msra.mxu0 %v8180_v2  ;;  %v8175_v8 = vld [vmem:[#allocation2 + $0x90] sm:$0xff]  ;;  %v8163_v9 = vld [vmem:[#allocation2] sm:$0xff]  ;;  %v8182_v10 = vld [vmem:[%s11636_s1 + $0x18] sm:$0xff]  ;;  %vm1558_vm7 = vcmask 1046532   ;;  %s8753_s4 = smov 32   ;;  %s8755_s5 = smov 64  }
  0x8c   : > { %v8204_v11 = vld [vmem:[%s11636_s1 + $0x48] sm:$0xff]  ;;  %v8183_v12 = vld [vmem:[%s11636_s1 + $0x20] sm:$0xff]  ;;  %v8201_v13 = vld [vmem:[%s11636_s1 + $0x30] sm:$0xff]  ;;  %s8229_s7 = sshll.u32 %s8737_s19, 8  ;;  %s7502_s25 = sshll.u32 %s8913_s10, 4  ;;  %s7503_s25 = int_to_ptr.vmem [resolvable:$true] %s7502_s25 }
  0x8d   : > { %v8181_v14 = vld [vmem:[%s11636_s1 + $0x10] sm:$0xff]  ;;  %v8203_v15 = vld [vmem:[%s11636_s1 + $0x40] sm:$0xff]  ;;  %v8169_v20 = vld [vmem:[#allocation2 + $0x48] sm:$0xff]  ;;  %s7501_s21 = scalar_lea.hbm %s11638_s3, %s8229_s7  ;;  %s7471_s28 = scalar_lea.sflag [#allocation8], %s196_s27 }
  0x8e   : > { %8233 = vmatpush.bf16.msra.mxu1 %v8179_v3  ;;  %8234 = vmatpush.bf16.msra.mxu2 %v8179_v3  ;;  %v8168_v16 = vld [vmem:[#allocation2 + $0x3c] sm:$0xff]  ;;  %v8172_v17 = vld [vmem:[#allocation2 + $0x6c] sm:$0xff]  ;;  %v729_v25 = vld [vmem:[#allocation2 + $0x4] sm:$0xf]  ;;  %s7504_s26 = sshll.u32 %s7501_s21, 4  ;;  %s8619_s7 = scalar_lea.hbm %s11638_s3, 512  ;;  %s7505_s26 = int_to_ptr.hbm [resolvable:$true] %s7504_s26 }
  0x8f   : > { %8235 = vmatpush.bf16.msra.mxu3 %v8179_v3  ;;  %582 = vmatpush.bf16.msra.mxu0 %v8179_v3  ;;  %v8176_v18 = vld [vmem:[#allocation2 + $0x9c] sm:$0xff]  ;;  %v8164_v19 = vld [vmem:[#allocation2 + $0xc] sm:$0xff]  ;;  %v789_v28 = vshll.u32 %v729_v25, 16  ;;  %v793_v29 = vshrl.u32 %v729_v25, 16  ;;  %v730_v36 = vld [vmem:[#allocation2 + $0x8] sm:$0x1] }
  0x90   : > { %v8173_v21 = vld [vmem:[#allocation2 + $0x78] sm:$0xff]  ;;  %v8177_v22 = vld [vmem:[#allocation2 + $0xa8] sm:$0xff]  ;;  %v728_v24 = vld [vmem:[#allocation2] sm:$0xf]  ;;  %v799_v46 = vshll.u32 %v730_v36, 16  ;;  %s8613_s29 = sshra.s32 %s7505_s26, 4  ;;  %s8614_s29 = int_to_ptr.hbm [resolvable:$true] %s8613_s29 }
  0x91   : > { %7710 = vmatmul.msk.bf16.vlgmr.msra.gmra.mxu1 %vm526_vm3, %v8167_v6  ;;  %7714 = vmatmul.msk.bf16.vlgmr.msra.gmra.mxu2 %vm526_vm3, %v8171_v7  ;;  %v8165_v23 = vld [vmem:[#allocation2 + $0x18] sm:$0xff]  ;;  %v780_v26 = vshrl.u32 %v728_v24, 16  ;;  %v783_v27 = vshll.u32 %v728_v24, 16  ;;  %v8224_v30 = vld [vmem:[%s11636_s1 + $0x68] sm:$0xff]  ;;  %v2334_v35 = vld [vmem:[#allocation2 + $0x10] sm:$0xf]  ;;  %p8620_p11 = scmp.lt.s32.totalorder %s8614_s29, %s11638_s3 }
  0x92   : > { %1823 = vmatpush.bf16.msrb.mxu2 %v8184_v4  ;;  %7718 = vmatmul.msk.bf16.vlgmr.msra.gmra.mxu3 %vm526_vm3, %v8175_v8  ;;  %v8226_v31 = vld [vmem:[%s11636_s1 + $0x78] sm:$0xff]  ;;  %v8228_v33 = vld [vmem:[%s11636_s1 + $0x88] sm:$0xff]  ;;  %v791_v39 = vrot.slane %v789_v28, 5  ;;  %v795_v40 = vrot.slane %v793_v29, 4  ;;  %v1462_v41 = vld [vmem:[#allocation2 + $0x4] sm:$0xf] }
  0x93   : > { %2186 = vmatpush.bf16.msrb.mxu3 %v8202_v5  ;;  %7706 = vmatmul.msk.bf16.vlgmr.msra.gmra.mxu0 %vm526_vm3, %v8163_v9  ;;  %v8206_v32 = vld [vmem:[%s11636_s1 + $0x58] sm:$0xff]  ;;  %v2333_v34 = vld [vmem:[#allocation2 + $0xc] sm:$0xf]  ;;  %v782_v37 = vrot.slane %v780_v26, 4  ;;  %v785_v38 = vrot.slane %v783_v27, 5  ;;  %v2391_v44 = vshll.u32 %v2334_v35, 16  ;;  %vm9058_vm8 = vmor %vm776_vm4, %vm777_vm5 }
  0x94   : > { %1314 = vmatpush.bf16.msrb.mxu1 %v8182_v10  ;;  %2916 = vmatpush.bf16.msrb.mxu0 %v8204_v11  ;;  %v2382_v42 = vshrl.u32 %v2333_v34, 16  ;;  %v2385_v43 = vshll.u32 %v2333_v34, 16  ;;  %v2395_v45 = vshrl.u32 %v2334_v35, 16  ;;  %v796_v48 = vor.u32 %v795_v40, %v791_v39  ;;  %v1461_v50 = vld [vmem:[#allocation2] sm:$0xe]  ;;  %v8170_v57 = vld [vmem:[#allocation2 + $0x54] sm:$0xff]  ;;  %vm9062_vm9 = vmor %vm1557_vm6, %vm1558_vm7 }
  0x95   : > { %v786_v47 = vor.u32 %v785_v38, %v782_v37  ;;  %v1562_v49 = vrot.slane %v1462_v41, 5  ;;  %v2393_v53 = vrot.slane %v2391_v44, 5  ;;  %v1463_v55 = vld [vmem:[#allocation2 + $0x8] sm:$0x1]  ;;  %v2335_v56 = vld [vmem:[#allocation2 + $0x14] sm:$0x1] }
  0x96   : > { %1824 = vmatpush.bf16.msrb.mxu2 %v8183_v12  ;;  %v2384_v51 = vrot.slane %v2382_v42, 4  ;;  %v2387_v52 = vrot.slane %v2385_v43, 5  ;;  %v2397_v54 = vrot.slane %v2395_v45, 4  ;;  %v8174_v58 = vld [vmem:[#allocation2 + $0x84] sm:$0xff]  ;;  %v801_v59 = vrot.slane %v799_v46, 5  ;;  %v8178_v60 = vld [vmem:[#allocation2 + $0xb4] sm:$0xff] }
  0x97   : > { %2187 = vmatpush.bf16.msrb.mxu3 %v8201_v13  ;;  %v8166_v61 = vld [vmem:[#allocation2 + $0x24] sm:$0xff]  ;;  %v787_v63 = vrot.slane %v786_v47, 4  ;;  %v797_v0 = vrot.slane %v796_v48, 4  ;;  %v7750_v1 = vrot.slane %v1461_v50, 9  ;;  %v1564_v2 = vrot.slane %v1562_v49, 4 }
  0x98   : > { %1315 = vmatpush.bf16.msrb.mxu1 %v8181_v14  ;;  %2917 = vmatpush.bf16.msrb.mxu0 %v8203_v15  ;;  %v1565_v4 = vrot.slane %v1463_v55, 5  ;;  %v2388_v5 = vor.u32 %v2387_v52, %v2384_v51  ;;  %v2398_v6 = vor.u32 %v2397_v54, %v2393_v53  ;;  %v2401_v7 = vshll.u32 %v2335_v56, 16  ;;  %v731_v8 = vld [vmem:[#allocation2 + $0xc] sm:$0xf]  ;;  %v732_v9 = vld [vmem:[#allocation2 + $0x10] sm:$0xf] }
  0x99   : > { %v792_v10 = vsel %vm9058_vm8, %v787_v63, %v791_v39  ;;  %v802_v11 = vsel %vm9058_vm8, %v797_v0, %v801_v59  ;;  %v1563_v12 = vsel %vm9062_vm9, %v7750_v1, %v1562_v49  ;;  %v2336_v13 = vld [vmem:[#allocation2 + $0x18] sm:$0xf]  ;;  %v2337_v14 = vld [vmem:[#allocation2 + $0x1c] sm:$0xf]  ;;  %v1465_v38 = vld [vmem:[#allocation2 + $0x10] sm:$0xf] }
  0x9a   : > { %3785 = vmatpush.bf16.msra.mxu2 %v8224_v30  ;;  %v1566_v15 = vsel %vm9062_vm9, %v1564_v2, %v1565_v4  ;;  %v2409_v24 = vshll.u32 %v2336_v13, 16  ;;  %v2415_v25 = vshll.u32 %v2337_v14, 16  ;;  %v2419_v26 = vshrl.u32 %v2337_v14, 16  ;;  %v2338_v45 = vld [vmem:[#allocation2 + $0x20] sm:$0x1]  ;;  %v8185_v56 = vld [vmem:[#allocation2 + $0xc] sm:$0xff] }
  0x9b   : > { %4515 = vmatpush.bf16.msra.mxu3 %v8226_v31  ;;  %v1200_v27 = vunpack.c.l.b16 %v792_v10  ;;  %v1201_v28 = vunpack.c.l.b16 %v802_v11  ;;  %v1709_v29 = vunpack.c.l.b16 %v1563_v12  ;;  %v1710_v30 = vunpack.c.l.b16 %v1566_v15  ;;  %v1464_v52 = vld [vmem:[#allocation2 + $0xc] sm:$0xe]  ;;  %v2339_v14 = vld [vmem:[#allocation2 + $0x24] sm:$0xf]  ;;  %v2340_v15 = vld [vmem:[#allocation2 + $0x28] sm:$0xf] }
  0x9c   : > { %3422 = vmatpush.bf16.msra.mxu1 %v8206_v32  ;;  %5021 = vmatpush.bf16.msra.mxu0 %v8228_v33  ;;  %v733_v33 = vld [vmem:[#allocation2 + $0x14] sm:$0x1]  ;;  %v2411_v40 = vrot.slane %v2409_v24, 5  ;;  %v2417_v41 = vrot.slane %v2415_v25, 5  ;;  %v2421_v42 = vrot.slane %v2419_v26, 4  ;;  %v1569_v50 = vrot.slane %v1465_v38, 5 }
  0x9d   : > { %v823_v46 = vshll.u32 %v733_v33, 16  ;;  %v1232_v47 = vpack.c.b16 %v1201_v28, %v1200_v27  ;;  %v1741_v51 = vpack.c.b16 %v1710_v30, %v1709_v29  ;;  %v2425_v55 = vshll.u32 %v2338_v45, 16  ;;  %v736_v24 = vld [vmem:[#allocation2 + $0x20] sm:$0x1]  ;;  %v1468_v38 = vld [vmem:[#allocation2 + $0x1c] sm:$0xf] }
  0x9e   : > { %v2422_v54 = vor.u32 %v2421_v42, %v2417_v41  ;;  %v7751_v1 = vrot.slane %v1464_v52, 9  ;;  %v1571_v2 = vrot.slane %v1569_v50, 4  ;;  %v2430_v25 = vshrl.u32 %v2339_v14, 16  ;;  %v1467_v52 = vld [vmem:[#allocation2 + $0x18] sm:$0xe] }
  0x9f   : > { %v825_v59 = vrot.slane %v823_v46, 5  ;;  %v2433_v26 = vshll.u32 %v2339_v14, 16  ;;  %v2439_v27 = vshll.u32 %v2340_v15, 16  ;;  %v2443_v28 = vshrl.u32 %v2340_v15, 16  ;;  %v8186_v46 = vld [vmem:[#allocation2 + $0x18] sm:$0xff] }
  0xa1   : > { %7711 = vmatmul.msk.bf16.gmra.mxu1 %vm526_vm3, %v8168_v16  ;;  %7715 = vmatmul.msk.bf16.gmra.mxu2 %vm526_vm3, %v8172_v17  ;;  %v2389_v16 = vrot.slane %v2388_v5, 4  ;;  %v2399_v17 = vrot.slane %v2398_v6, 4  ;;  %v2423_v6 = vrot.slane %v2422_v54, 4  ;;  %v2445_v42 = vrot.slane %v2443_v28, 4 }
  0xa2   : > { %7719 = vmatmul.msk.bf16.gmra.mxu3 %vm526_vm3, %v8176_v18  ;;  %v2403_v18 = vrot.slane %v2401_v7, 5  ;;  %v2427_v7 = vrot.slane %v2425_v55, 5 }
  0xa3   : > { %7707 = vmatmul.msk.bf16.gmra.mxu0 %vm526_vm3, %v8164_v19  ;;  %v804_v19 = vshrl.u32 %v731_v8, 16  ;;  %v2394_v31 = vsel %vm9058_vm8, %v2389_v16, %v2393_v53  ;;  %v1570_v16 = vsel %vm9062_vm9, %v7751_v1, %v1569_v50  ;;  %v1576_v50 = vrot.slane %v1468_v38, 5 }
  0xa4   : > { %v2404_v32 = vsel %vm9058_vm8, %v2399_v17, %v2403_v18  ;;  %v2802_v43 = vunpack.c.l.b16 %v2394_v31  ;;  %v1711_v31 = vunpack.c.l.b16 %v1570_v16 }
  0xa5   : > { %v806_v34 = vrot.slane %v804_v19, 4  ;;  %v2803_v44 = vunpack.c.l.b16 %v2404_v32  ;;  %v2428_v19 = vsel %vm9058_vm8, %v2423_v6, %v2427_v7  ;;  %v2343_v6 = vld [vmem:[#allocation2 + $0x34] sm:$0xf] }
  0xa6   : > { %v2463_v15 = vshll.u32 %v2343_v6, 16  ;;  %v2467_v16 = vshrl.u32 %v2343_v6, 16 }
  0xb1   : > { %7712 = vmatmul.msk.bf16.gmra.mxu1 %vm526_vm3, %v8169_v20  ;;  %7716 = vmatmul.msk.bf16.gmra.mxu2 %vm526_vm3, %v8173_v21  ;;  %v807_v20 = vshll.u32 %v731_v8, 16  ;;  %v813_v21 = vshll.u32 %v732_v9, 16 }
  0xb2   : > { %7720 = vmatmul.msk.bf16.gmra.mxu3 %vm526_vm3, %v8177_v22  ;;  %v817_v22 = vshrl.u32 %v732_v9, 16 }
  0xb3   : > { %7708 = vmatmul.msk.bf16.gmra.mxu0 %vm526_vm3, %v8165_v23  ;;  %v2406_v23 = vshrl.u32 %v2336_v13, 16  ;;  %v809_v35 = vrot.slane %v807_v20, 5  ;;  %v815_v36 = vrot.slane %v813_v21, 5 }
  0xb4   : > { %v819_v37 = vrot.slane %v817_v22, 4 }
  0xb5   : > { %v2408_v39 = vrot.slane %v2406_v23, 4  ;;  %v810_v48 = vor.u32 %v809_v35, %v806_v34  ;;  %v2805_v34 = vunpack.c.l.b16 %v2428_v19 }
  0xb6   : > { %v820_v49 = vor.u32 %v819_v37, %v815_v36  ;;  %v847_v37 = vshll.u32 %v736_v24, 16 }
  0xb7   : > { %v2412_v53 = vor.u32 %v2411_v40, %v2408_v39  ;;  %v811_v63 = vrot.slane %v810_v48, 4  ;;  %v2432_v39 = vrot.slane %v2430_v25, 4  ;;  %v2435_v40 = vrot.slane %v2433_v26, 5 }
  0xb8   : > { %v821_v0 = vrot.slane %v820_v49, 4  ;;  %v849_v49 = vrot.slane %v847_v37, 5 }
  0xb9   : > { %v2413_v5 = vrot.slane %v2412_v53, 4  ;;  %v816_v12 = vsel %vm9058_vm8, %v811_v63, %v815_v36  ;;  %v1469_v53 = vld [vmem:[#allocation2 + $0x20] sm:$0x1]  ;;  %v2436_v54 = vor.u32 %v2435_v40, %v2432_v39 }
  0xba   : > { %v826_v13 = vsel %vm9058_vm8, %v821_v0, %v825_v59  ;;  %v1202_v29 = vunpack.c.l.b16 %v816_v12  ;;  %v1579_v63 = vrot.slane %v1469_v53, 5  ;;  %v2342_v0 = vld [vmem:[#allocation2 + $0x30] sm:$0xf] }
  0xbb   : > { %v2418_v18 = vsel %vm9058_vm8, %v2413_v5, %v2417_v41  ;;  %v1203_v30 = vunpack.c.l.b16 %v826_v13  ;;  %v2441_v41 = vrot.slane %v2439_v27, 5  ;;  %v2457_v12 = vshll.u32 %v2342_v0, 16  ;;  %v739_v27 = vld [vmem:[#allocation2 + $0x2c] sm:$0x1] }
  0xbc   : > { %v2804_v33 = vunpack.c.l.b16 %v2418_v18  ;;  %v871_v38 = vshll.u32 %v739_v27, 16  ;;  %v1473_v27 = vld [vmem:[#allocation2 + $0x30] sm:$0xe] }
  0xbd   : > { %v2446_v55 = vor.u32 %v2445_v42, %v2441_v41 }
  0xc1   : > { %7713 = vmatmul.msk.bf16.gmra.mxu1 %vm526_vm3, %v8170_v57  ;;  %7717 = vmatmul.msk.bf16.gmra.mxu2 %vm526_vm3, %v8174_v58  ;;  %v2834_v57 = vpack.c.b16 %v2803_v44, %v2802_v43  ;;  %v1466_v58 = vld [vmem:[#allocation2 + $0x14] sm:$0x1]  ;;  %v2341_v43 = vld [vmem:[#allocation2 + $0x2c] sm:$0x1]  ;;  %v1233_v44 = vpack.c.b16 %v1203_v30, %v1202_v29  ;;  %v2459_v29 = vrot.slane %v2457_v12, 5 }
  0xc2   : > { %7721 = vmatmul.msk.bf16.gmra.mxu3 %vm526_vm3, %v8178_v60  ;;  %v734_v60 = vld [vmem:[#allocation2 + $0x18] sm:$0xf]  ;;  %v1572_v4 = vrot.slane %v1466_v58, 5  ;;  %v738_v58 = vld [vmem:[#allocation2 + $0x28] sm:$0xf] }
  0xc3   : > { %7709 = vmatmul.msk.bf16.gmra.mxu0 %vm526_vm3, %v8166_v61  ;;  %v735_v61 = vld [vmem:[#allocation2 + $0x1c] sm:$0xf]  ;;  %v828_v8 = vshrl.u32 %v734_v60, 16  ;;  %v831_v9 = vshll.u32 %v734_v60, 16  ;;  %v7752_v60 = vrot.slane %v1467_v52, 9  ;;  %v873_v52 = vrot.slane %v871_v38, 5 }
  0xc4   : > { %v837_v10 = vshll.u32 %v735_v61, 16  ;;  %v841_v11 = vshrl.u32 %v735_v61, 16  ;;  %v1573_v17 = vsel %vm9062_vm9, %v1571_v2, %v1572_v4  ;;  %v1578_v61 = vrot.slane %v1576_v50, 4  ;;  %v1475_v38 = vld [vmem:[#allocation2 + $0x38] sm:$0x1] }
  0xc5   : > { %v830_v20 = vrot.slane %v828_v8, 4  ;;  %v833_v21 = vrot.slane %v831_v9, 5  ;;  %v1712_v32 = vunpack.c.l.b16 %v1573_v17  ;;  %v2437_v2 = vrot.slane %v2436_v54, 4 }
  0xc6   : > { %v839_v22 = vrot.slane %v837_v10, 5  ;;  %v843_v23 = vrot.slane %v841_v11, 4  ;;  %v2447_v4 = vrot.slane %v2446_v55, 4  ;;  %v861_v9 = vshll.u32 %v738_v58, 16 }
  0xc7   : > { %v834_v35 = vor.u32 %v833_v21, %v830_v20  ;;  %v1742_v45 = vpack.c.b16 %v1712_v32, %v1711_v31  ;;  %v865_v10 = vshrl.u32 %v738_v58, 16  ;;  %v2454_v11 = vshrl.u32 %v2342_v0, 16  ;;  %v1471_v32 = vld [vmem:[#allocation2 + $0x28] sm:$0xf] }
  0xc8   : > { %v844_v36 = vor.u32 %v843_v23, %v839_v22  ;;  %v1577_v13 = vsel %vm9062_vm9, %v7752_v60, %v1576_v50  ;;  %v1580_v14 = vsel %vm9062_vm9, %v1578_v61, %v1579_v63  ;;  %v2442_v19 = vsel %vm9058_vm8, %v2437_v2, %v2441_v41  ;;  %v2346_v2 = vld [vmem:[#allocation2 + $0x40] sm:$0xf] }
  0xc9   : > { %v835_v48 = vrot.slane %v834_v35, 4  ;;  %v863_v23 = vrot.slane %v861_v9, 5  ;;  %v867_v24 = vrot.slane %v865_v10, 4  ;;  %v1713_v25 = vunpack.c.l.b16 %v1577_v13  ;;  %v2344_v35 = vld [vmem:[#allocation2 + $0x38] sm:$0x1] }
  0xca   : > { %v1714_v26 = vunpack.c.l.b16 %v1580_v14  ;;  %v2456_v28 = vrot.slane %v2454_v11, 4  ;;  %v2806_v30 = vunpack.c.l.b16 %v2442_v19  ;;  %v1583_v41 = vrot.slane %v1471_v32, 5 }
  0xcb   : > { %v840_v59 = vsel %vm9058_vm8, %v835_v48, %v839_v22  ;;  %v868_v37 = vor.u32 %v867_v24, %v863_v23  ;;  %v2473_v48 = vshll.u32 %v2344_v35, 16  ;;  %v2487_v14 = vshll.u32 %v2346_v2, 16 }
  0xcc   : > { %v1204_v17 = vunpack.c.l.b16 %v840_v59  ;;  %v1743_v40 = vpack.c.b16 %v1714_v26, %v1713_v25  ;;  %v2460_v42 = vor.u32 %v2459_v29, %v2456_v28  ;;  %v1585_v54 = vrot.slane %v1583_v41, 4  ;;  %v2347_v28 = vld [vmem:[#allocation2 + $0x44] sm:$0x1] }
  0xcd   : > { %v2475_v59 = vrot.slane %v2473_v48, 5 }
  0xd1   : > { %7734 = vmatmul.msk.bf16.vlgmr.msrb.gmra.mxu1 %vm526_vm3, %v1232_v47  ;;  %7778 = vmatmul.msk.bf16.vlgmr.msrb.gmra.mxu2 %vm526_vm3, %v1741_v51  ;;  %v2835_v47 = vpack.c.b16 %v2805_v34, %v2804_v33  ;;  %v845_v51 = vrot.slane %v844_v36, 4  ;;  %v2465_v33 = vrot.slane %v2463_v15, 5  ;;  %v2469_v34 = vrot.slane %v2467_v16, 4 }
  0xd2   : > { %7870 = vmatmul.msk.bf16.vlgmr.msrb.gmra.mxu3 %vm526_vm3, %v8185_v56  ;;  %v2449_v56 = vshll.u32 %v2341_v43, 16  ;;  %v8187_v43 = vld [vmem:[#allocation2 + $0x24] sm:$0xff]  ;;  %v2491_v15 = vshrl.u32 %v2346_v2, 16 }
  0xd3   : > { %7898 = vmatmul.msk.bf16.vlgmr.msrb.gmra.mxu0 %vm526_vm3, %v2834_v57  ;;  %v737_v57 = vld [vmem:[#allocation2 + $0x24] sm:$0xf]  ;;  %v850_v1 = vsel %vm9058_vm8, %v845_v51, %v849_v49  ;;  %v740_v49 = vld [vmem:[#allocation2 + $0x30] sm:$0xf]  ;;  %v869_v51 = vrot.slane %v868_v37, 4 }
  0xd4   : > { %v2451_v5 = vrot.slane %v2449_v56, 5  ;;  %v852_v7 = vshrl.u32 %v737_v57, 16  ;;  %v855_v8 = vshll.u32 %v737_v57, 16  ;;  %v1205_v18 = vunpack.c.l.b16 %v850_v1  ;;  %v741_v57 = vld [vmem:[#allocation2 + $0x34] sm:$0xf] }
  0xd5   : > { %v2461_v56 = vrot.slane %v2460_v42, 4  ;;  %v876_v60 = vshrl.u32 %v740_v49, 16  ;;  %v879_v61 = vshll.u32 %v740_v49, 16  ;;  %v885_v63 = vshll.u32 %v741_v57, 16  ;;  %v2345_v1 = vld [vmem:[#allocation2 + $0x3c] sm:$0xf] }
  0xd6   : > { %v2452_v20 = vsel %vm9058_vm8, %v2447_v4, %v2451_v5  ;;  %v854_v21 = vrot.slane %v852_v7, 4  ;;  %v857_v22 = vrot.slane %v855_v8, 5  ;;  %v1234_v39 = vpack.c.b16 %v1205_v18, %v1204_v17 }
  0xd7   : > { %v2807_v31 = vunpack.c.l.b16 %v2452_v20  ;;  %v889_v0 = vshrl.u32 %v741_v57, 16  ;;  %v874_v5 = vsel %vm9058_vm8, %v869_v51, %v873_v52  ;;  %v2466_v8 = vsel %vm9058_vm8, %v2461_v56, %v2465_v33  ;;  %v744_v51 = vld [vmem:[#allocation2 + $0x40] sm:$0xf]  ;;  %v2349_v56 = vld [vmem:[#allocation2 + $0x4c] sm:$0xf] }
  0xd8   : > { %v858_v36 = vor.u32 %v857_v22, %v854_v21  ;;  %v878_v10 = vrot.slane %v876_v60, 4  ;;  %v881_v11 = vrot.slane %v879_v61, 5  ;;  %v2478_v12 = vshrl.u32 %v2345_v1, 16  ;;  %v742_v22 = vld [vmem:[#allocation2 + $0x38] sm:$0x1] }
  0xd9   : > { %v2481_v13 = vshll.u32 %v2345_v1, 16  ;;  %v887_v16 = vrot.slane %v885_v63, 5  ;;  %v891_v17 = vrot.slane %v889_v0, 4  ;;  %v1207_v19 = vunpack.c.l.b16 %v874_v5 }
  0xda   : > { %v859_v50 = vrot.slane %v858_v36, 4  ;;  %v2808_v24 = vunpack.c.l.b16 %v2466_v8  ;;  %v882_v26 = vor.u32 %v881_v11, %v878_v10  ;;  %v2480_v29 = vrot.slane %v2478_v12, 4 }
  0xdb   : > { %v2493_v32 = vrot.slane %v2491_v15, 4  ;;  %v7754_v42 = vrot.slane %v1473_v27, 9  ;;  %v1593_v49 = vrot.slane %v1475_v38, 5  ;;  %v909_v0 = vshll.u32 %v744_v51, 16  ;;  %v745_v15 = vld [vmem:[#allocation2 + $0x44] sm:$0x1] }
  0xdc   : > { %v864_v4 = vsel %vm9058_vm8, %v859_v50, %v863_v23  ;;  %v1474_v23 = vld [vmem:[#allocation2 + $0x34] sm:$0xf]  ;;  %v743_v50 = vld [vmem:[#allocation2 + $0x3c] sm:$0xf]  ;;  %v913_v1 = vshrl.u32 %v744_v51, 16  ;;  %v2511_v5 = vshll.u32 %v2349_v56, 16 }
  0xdd   : > { %v1206_v18 = vunpack.c.l.b16 %v864_v4  ;;  %v1590_v35 = vrot.slane %v1474_v23, 5  ;;  %v903_v60 = vshll.u32 %v743_v50, 16  ;;  %v8189_v38 = vld [vmem:[#allocation2 + $0x3c] sm:$0xff]  ;;  %v747_v51 = vld [vmem:[#allocation2 + $0x4c] sm:$0xf] }
  0xdf   : > { %v1235_v36 = vpack.c.b16 %v1207_v19, %v1206_v18  ;;  %v1592_v48 = vrot.slane %v1590_v35, 4  ;;  %v905_v12 = vrot.slane %v903_v60, 5  ;;  %v1477_v18 = vld [vmem:[#allocation2 + $0x40] sm:$0xf] }
  0xe1   : > { %7735 = vmatmul.msk.bf16.gmra.mxu1 %vm526_vm3, %v1233_v44  ;;  %7779 = vmatmul.msk.bf16.gmra.mxu2 %vm526_vm3, %v1742_v45  ;;  %v2836_v44 = vpack.c.b16 %v2807_v31, %v2806_v30  ;;  %v1470_v45 = vld [vmem:[#allocation2 + $0x24] sm:$0xe]  ;;  %v2483_v30 = vrot.slane %v2481_v13, 5  ;;  %v2489_v31 = vrot.slane %v2487_v14, 5  ;;  %v1594_v63 = vsel %vm9062_vm9, %v1592_v48, %v1593_v49 }
  0xe2   : > { %7871 = vmatmul.msk.bf16.gmra.mxu3 %vm526_vm3, %v8186_v46  ;;  %v1472_v46 = vld [vmem:[#allocation2 + $0x2c] sm:$0x1]  ;;  %v7753_v53 = vrot.slane %v1470_v45, 9  ;;  %v1718_v14 = vunpack.c.l.b16 %v1594_v63 }
  0xe3   : > { %7899 = vmatmul.msk.bf16.gmra.mxu0 %vm526_vm3, %v2835_v47  ;;  %v2470_v47 = vor.u32 %v2469_v34, %v2465_v33  ;;  %v1586_v55 = vrot.slane %v1472_v46, 5  ;;  %v892_v33 = vor.u32 %v891_v17, %v887_v16  ;;  %v895_v34 = vshll.u32 %v742_v22, 16 }
  0xe4   : > { %v1584_v6 = vsel %vm9062_vm9, %v7753_v53, %v1583_v41  ;;  %v883_v41 = vrot.slane %v882_v26, 4  ;;  %v2494_v45 = vor.u32 %v2493_v32, %v2489_v31  ;;  %v1591_v53 = vsel %vm9062_vm9, %v7754_v42, %v1590_v35 }
  0xe5   : > { %v2471_v58 = vrot.slane %v2470_v47, 4  ;;  %v1587_v7 = vsel %vm9062_vm9, %v1585_v54, %v1586_v55  ;;  %v1715_v20 = vunpack.c.l.b16 %v1584_v6  ;;  %v893_v46 = vrot.slane %v892_v33, 4  ;;  %v2348_v55 = vld [vmem:[#allocation2 + $0x48] sm:$0xf]  ;;  %v1478_v33 = vld [vmem:[#allocation2 + $0x44] sm:$0x1] }
  0xe6   : > { %v1716_v21 = vunpack.c.l.b16 %v1587_v7  ;;  %v897_v47 = vrot.slane %v895_v34, 5  ;;  %v888_v52 = vsel %vm9058_vm8, %v883_v41, %v887_v16  ;;  %v2502_v2 = vshrl.u32 %v2348_v55, 16 }
  0xe7   : > { %v2476_v9 = vsel %vm9058_vm8, %v2471_v58, %v2475_v59  ;;  %v2495_v58 = vrot.slane %v2494_v45, 4  ;;  %v900_v59 = vshrl.u32 %v743_v50, 16  ;;  %v2505_v4 = vshll.u32 %v2348_v55, 16  ;;  %v746_v50 = vld [vmem:[#allocation2 + $0x48] sm:$0xf] }
  0xe8   : > { %v2809_v25 = vunpack.c.l.b16 %v2476_v9  ;;  %v1744_v37 = vpack.c.b16 %v1716_v21, %v1715_v20  ;;  %v898_v61 = vsel %vm9058_vm8, %v893_v46, %v897_v47  ;;  %v2515_v6 = vshrl.u32 %v2349_v56, 16  ;;  %v2352_v55 = vld [vmem:[#allocation2 + $0x58] sm:$0xf] }
  0xe9   : > { %v1208_v7 = vunpack.c.l.b16 %v888_v52  ;;  %v1717_v8 = vunpack.c.l.b16 %v1591_v53  ;;  %v902_v11 = vrot.slane %v900_v59, 4  ;;  %v1209_v13 = vunpack.c.l.b16 %v898_v61 }
  0xea   : > { %v911_v16 = vrot.slane %v909_v0, 5  ;;  %v915_v17 = vrot.slane %v913_v1, 4  ;;  %v2504_v19 = vrot.slane %v2502_v2, 4  ;;  %v2507_v20 = vrot.slane %v2505_v4, 5 }
  0xeb   : > { %v2513_v21 = vrot.slane %v2511_v5, 5  ;;  %v2517_v22 = vrot.slane %v2515_v6, 4  ;;  %v906_v26 = vor.u32 %v905_v12, %v902_v11  ;;  %v1236_v27 = vpack.c.b16 %v1209_v13, %v1208_v7 }
  0xec   : > { %v1745_v32 = vpack.c.b16 %v1718_v14, %v1717_v8  ;;  %v2508_v34 = vor.u32 %v2507_v20, %v2504_v19  ;;  %v1600_v46 = vrot.slane %v1478_v33, 5  ;;  %v924_v59 = vshrl.u32 %v746_v50, 16 }
  0xed   : > { %v2518_v35 = vor.u32 %v2517_v22, %v2513_v21  ;;  %v907_v41 = vrot.slane %v906_v26, 4  ;;  %v927_v60 = vshll.u32 %v746_v50, 16  ;;  %v933_v1 = vshll.u32 %v747_v51, 16  ;;  %v2353_v26 = vld [vmem:[#allocation2 + $0x5c] sm:$0x1] }
  0xee   : > { %v2509_v47 = vrot.slane %v2508_v34, 4  ;;  %v937_v2 = vshrl.u32 %v747_v51, 16  ;;  %v2535_v7 = vshll.u32 %v2352_v55, 16  ;;  %v2539_v8 = vshrl.u32 %v2352_v55, 16 }
  0xef   : > { %v2519_v48 = vrot.slane %v2518_v35, 4  ;;  %v912_v52 = vsel %vm9058_vm8, %v907_v41, %v911_v16  ;;  %v926_v14 = vrot.slane %v924_v59, 4  ;;  %v9174_v19 = vrot.slane %v933_v1, 5  ;;  %v2354_v1 = vld [vmem:[#allocation2 + $0x60] sm:$0xf] }
  0xf0   : > { %v2514_v63 = vsel %vm9058_vm8, %v2509_v47, %v2513_v21  ;;  %v939_v20 = vrot.slane %v937_v2, 4  ;;  %v1480_v21 = vld [vmem:[#allocation2 + $0x4c] sm:$0xf]  ;;  %v749_v47 = vld [vmem:[#allocation2 + $0x54] sm:$0xf] }
  0xf1   : > { %7736 = vmatmul.msk.bf16.gmra.mxu1 %vm526_vm3, %v1234_v39  ;;  %7780 = vmatmul.msk.bf16.gmra.mxu2 %vm526_vm3, %v1743_v40  ;;  %v8188_v39 = vld [vmem:[#allocation2 + $0x30] sm:$0xff]  ;;  %v2837_v40 = vpack.c.b16 %v2809_v25, %v2808_v24  ;;  %v1604_v34 = vrot.slane %v1480_v21, 5  ;;  %v951_v59 = vshll.u32 %v749_v47, 16  ;;  %v2355_v2 = vld [vmem:[#allocation2 + $0x64] sm:$0xf] }
  0xf2   : > { %7872 = vmatmul.msk.bf16.gmra.mxu3 %vm526_vm3, %v8187_v43  ;;  %v2497_v43 = vshll.u32 %v2347_v28, 16  ;;  %v2350_v25 = vld [vmem:[#allocation2 + $0x50] sm:$0x1]  ;;  %v916_v28 = vor.u32 %v915_v17, %v911_v16  ;;  %v2812_v16 = vunpack.c.l.b16 %v2514_v63 }
  0xf3   : > { %7900 = vmatmul.msk.bf16.gmra.mxu0 %vm526_vm3, %v2836_v44  ;;  %v2484_v44 = vor.u32 %v2483_v30, %v2480_v29  ;;  %v919_v29 = vshll.u32 %v745_v15, 16  ;;  %v1476_v30 = vld [vmem:[#allocation2 + $0x3c] sm:$0xe]  ;;  %v929_v15 = vrot.slane %v927_v60, 5  ;;  %v1606_v51 = vrot.slane %v1604_v34, 4 }
  0xf4   : > { %v2499_v54 = vrot.slane %v2497_v43, 5  ;;  %v7755_v42 = vrot.slane %v1476_v30, 9  ;;  %v917_v43 = vrot.slane %v916_v28, 4  ;;  %v953_v21 = vrot.slane %v951_v59, 5 }
  0xf5   : > { %v2485_v57 = vrot.slane %v2484_v44, 4  ;;  %v921_v44 = vrot.slane %v919_v29, 5  ;;  %v930_v29 = vor.u32 %v929_v15, %v926_v14  ;;  %v751_v15 = vld [vmem:[#allocation2 + $0x5c] sm:$0x1] }
  0xf6   : > { %v2500_v10 = vsel %vm9058_vm8, %v2495_v58, %v2499_v54  ;;  %v2351_v54 = vld [vmem:[#allocation2 + $0x54] sm:$0xf] }
  0xf7   : > { %v2490_v9 = vsel %vm9058_vm8, %v2485_v57, %v2489_v31  ;;  %v2811_v24 = vunpack.c.l.b16 %v2500_v10  ;;  %v1597_v31 = vrot.slane %v1477_v18, 5  ;;  %v922_v57 = vsel %vm9058_vm8, %v917_v43, %v921_v44  ;;  %v748_v18 = vld [vmem:[#allocation2 + $0x50] sm:$0x1] }
  0xf8   : > { %v2810_v23 = vunpack.c.l.b16 %v2490_v9  ;;  %v2526_v5 = vshrl.u32 %v2351_v54, 16  ;;  %v2529_v6 = vshll.u32 %v2351_v54, 16  ;;  %v1210_v10 = vunpack.c.l.b16 %v912_v52  ;;  %v750_v52 = vld [vmem:[#allocation2 + $0x58] sm:$0xf] }
  0xf9   : > { %v1599_v45 = vrot.slane %v1597_v31, 4  ;;  %v1598_v53 = vsel %vm9062_vm9, %v7755_v42, %v1597_v31  ;;  %v1211_v12 = vunpack.c.l.b16 %v922_v57  ;;  %v943_v33 = vshll.u32 %v748_v18, 16 }
  0xfa   : > { %v1719_v11 = vunpack.c.l.b16 %v1598_v53  ;;  %v2528_v22 = vrot.slane %v2526_v5, 4  ;;  %v2545_v43 = vshll.u32 %v2353_v26, 16  ;;  %v957_v63 = vshll.u32 %v750_v52, 16 }
  0xfb   : > { %v1601_v58 = vsel %vm9062_vm9, %v1599_v45, %v1600_v46  ;;  %v1237_v28 = vpack.c.b16 %v1211_v12, %v1210_v10  ;;  %v1481_v45 = vld [vmem:[#allocation2 + $0x50] sm:$0x1]  ;;  %v931_v46 = vrot.slane %v930_v29, 4  ;;  %v2559_v18 = vshll.u32 %v2355_v2, 16 }
  0xfc   : > { %v1720_v13 = vunpack.c.l.b16 %v1601_v58  ;;  %v1607_v53 = vrot.slane %v1481_v45, 5  ;;  %v2547_v57 = vrot.slane %v2545_v43, 5  ;;  %v948_v58 = vshrl.u32 %v749_v47, 16  ;;  %v1482_v45 = vld [vmem:[#allocation2 + $0x54] sm:$0xe] }
  0xfd   : > { %v2356_v47 = vld [vmem:[#allocation2 + $0x68] sm:$0x1] }
  0xfe   : > { %v1746_v31 = vpack.c.b16 %v1720_v13, %v1719_v11  ;;  %v1608_v11 = vsel %vm9062_vm9, %v1606_v51, %v1607_v53  ;;  %v1484_v51 = vld [vmem:[#allocation2 + $0x5c] sm:$0x1]  ;;  %v8191_v53 = vld [vmem:[#allocation2 + $0x54] sm:$0xff] }
  0xff   : > { %v1722_v29 = vunpack.c.l.b16 %v1608_v11  ;;  %v753_v11 = vld [vmem:[#allocation2 + $0x64] sm:$0xf] }
 0x101   : > { %7737 = vmatmul.msk.bf16.gmra.mxu1 %vm526_vm3, %v1235_v36  ;;  %7781 = vmatmul.msk.bf16.gmra.mxu2 %vm526_vm3, %v1744_v37  ;;  %v2521_v36 = vshll.u32 %v2350_v25, 16  ;;  %v2541_v25 = vrot.slane %v2539_v8, 4 }
 0x102   : > { %7873 = vmatmul.msk.bf16.gmra.mxu3 %vm526_vm3, %v8188_v39  ;;  %v2838_v39 = vpack.c.b16 %v2811_v24, %v2810_v23  ;;  %v2531_v23 = vrot.slane %v2529_v6, 5  ;;  %v9176_v24 = vrot.slane %v2535_v7, 5  ;;  %v936_v6 = vsel %vm9058_vm8, %v931_v46, %v9174_v19 }
 0x103   : > { %7901 = vmatmul.msk.bf16.gmra.mxu0 %vm526_vm3, %v2837_v40  ;;  %v2523_v49 = vrot.slane %v2521_v36, 5  ;;  %v8190_v36 = vld [vmem:[#allocation2 + $0x48] sm:$0xff] }
 0x104   : > { %v2532_v41 = vor.u32 %v2531_v23, %v2528_v22  ;;  %v2542_v42 = vor.u32 %v2541_v25, %v9176_v24  ;;  %v9214_v22 = vrot.slane %v957_v63, 5  ;;  %v1212_v25 = vunpack.c.l.b16 %v936_v6 }
 0x105   : > { %v2524_v0 = vsel %vm9058_vm8, %v2519_v48, %v2523_v49  ;;  %v945_v49 = vrot.slane %v943_v33, 5  ;;  %v967_v33 = vshll.u32 %v751_v15, 16 }
 0x106   : > { %v2813_v17 = vunpack.c.l.b16 %v2524_v0  ;;  %v2533_v54 = vrot.slane %v2532_v41, 4  ;;  %v2543_v55 = vrot.slane %v2542_v42, 4  ;;  %v961_v0 = vshrl.u32 %v750_v52, 16 }
 0x108   : > { %v2538_v12 = vsel %vm9058_vm8, %v2533_v54, %v9176_v24  ;;  %v2548_v13 = vsel %vm9058_vm8, %v2543_v55, %v2547_v57  ;;  %v963_v23 = vrot.slane %v961_v0, 4  ;;  %v1483_v24 = vld [vmem:[#allocation2 + $0x58] sm:$0xf]  ;;  %v969_v55 = vrot.slane %v967_v33, 5 }
 0x109   : > { %v1611_v46 = vrot.slane %v1483_v24, 5  ;;  %v2569_v0 = vshll.u32 %v2356_v47, 16  ;;  %v8227_v47 = vld [vmem:[%s11636_s1 + $0x80] sm:$0xff] }
 0x10a   : > { %v964_v43 = vor.u32 %v963_v23, %v9214_v22  ;;  %5022 = vmatpush.bf16.msra.mxu0 %v8227_v47 }
 0x10b   : > { %v1613_v6 = vrot.slane %v1611_v46, 4 }
 0x10e   : > { %v9146_v37 = vpop.f32.mrf.mxu1 }
 0x110   : > { %v9148_v40 = vpop.f32.mrf.mxu0 }
 0x111   : > { %7738 = vmatmul.msk.bf16.gmra.mxu1 %vm526_vm3, %v1236_v27  ;;  %7782 = vmatmul.msk.bf16.gmra.mxu2 %vm526_vm3, %v1745_v32  ;;  %v940_v32 = vor.u32 %v939_v20, %v9174_v19  ;;  %v2563_v19 = vshrl.u32 %v2355_v2, 16  ;;  %v950_v20 = vrot.slane %v948_v58, 4  ;;  %v7757_v58 = vrot.slane %v1482_v45, 9 }
 0x112   : > { %7874 = vmatmul.msk.bf16.gmra.mxu3 %vm526_vm3, %v8189_v38  ;;  %v2839_v38 = vpack.c.b16 %v2813_v17, %v2812_v16  ;;  %v2550_v16 = vshrl.u32 %v2354_v1, 16  ;;  %v2553_v17 = vshll.u32 %v2354_v1, 16  ;;  %v965_v2 = vrot.slane %v964_v43, 4 }
 0x113   : > { %7902 = vmatmul.msk.bf16.gmra.mxu0 %vm526_vm3, %v2838_v39  ;;  %v1479_v39 = vld [vmem:[#allocation2 + $0x48] sm:$0xe]  ;;  %v941_v48 = vrot.slane %v940_v32, 4  ;;  %v2815_v32 = vunpack.c.l.b16 %v2548_v13  ;;  %v954_v42 = vor.u32 %v953_v21, %v950_v20  ;;  %v8225_v13 = vld [vmem:[%s11636_s1 + $0x70] sm:$0xff]  ;;  %v1612_v15 = vsel %vm9062_vm9, %v7757_v58, %v1611_v46 }
 0x114   : > { %v9158_v56 = vpop.f32.mrf.mxu2  ;;  %v7756_v50 = vrot.slane %v1479_v39, 9  ;;  %v2565_v39 = vrot.slane %v2563_v19, 4  ;;  %v2357_v19 = vld [vmem:[#allocation2 + $0x6c] sm:$0xf]  ;;  %v970_v23 = vsel %vm9058_vm8, %v965_v2, %v969_v55  ;;  %4516 = vmatpush.bf16.msra.mxu3 %v8225_v13  ;;  %v8205_v46 = vld [vmem:[%s11636_s1 + $0x50] sm:$0xff] }
 0x115   : > { %v9164_v61 = vpop.f32.mrf.mxu3  ;;  %v946_v10 = vsel %vm9058_vm8, %v941_v48, %v945_v49  ;;  %v955_v1 = vrot.slane %v954_v42, 4  ;;  %3423 = vmatpush.bf16.msra.mxu1 %v8205_v46  ;;  %v2359_v13 = vld [vmem:[#allocation2 + $0x74] sm:$0x1] }
 0x116   : > { %v9170_v4 = vpop.f32.mrf.mxu1  ;;  %v1605_v7 = vsel %vm9062_vm9, %v7756_v50, %v1604_v34  ;;  %v1213_v26 = vunpack.c.l.b16 %v946_v10  ;;  %v2552_v34 = vrot.slane %v2550_v16, 4  ;;  %v752_v10 = vld [vmem:[#allocation2 + $0x60] sm:$0xf] }
 0x117   : > { %v960_v21 = vsel %vm9058_vm8, %v955_v1, %v9214_v22  ;;  %v975_v24 = vshll.u32 %v752_v10, 16 }
 0x118   : > { %v9172_v9 = vpop.f32.mrf.mxu0  ;;  %v1238_v49 = vpack.c.b16 %v1213_v26, %v1212_v25  ;;  %v2358_v26 = vld [vmem:[#allocation2 + $0x70] sm:$0xf] }
 0x119   : > { %v2583_v43 = vshll.u32 %v2358_v26, 16  ;;  %v2587_v45 = vshrl.u32 %v2358_v26, 16  ;;  %v977_v55 = vrot.slane %v975_v24, 5 }
 0x11c   : > { %v9178_v27 = vpop.f32.mrf.mxu2 }
 0x11d   : > { %v9180_v30 = vpop.f32.mrf.mxu3 }
 0x11e   : > { %v9183_v35 = vpop.f32.mrf.mxu1 }
 0x120   : > { %v9186_v44 = vpop.f32.mrf.mxu0 }
 0x121   : > { %7739 = vmatmul.msk.bf16.gmra.mxu1 %vm526_vm3, %v1237_v28  ;;  %7783 = vmatmul.msk.bf16.gmra.mxu2 %vm526_vm3, %v1746_v31  ;;  %v1721_v28 = vunpack.c.l.b16 %v1605_v7  ;;  %v2814_v31 = vunpack.c.l.b16 %v2538_v12  ;;  %v1614_v7 = vrot.slane %v1484_v51, 5  ;;  %v8223_v12 = vld [vmem:[%s11636_s1 + $0x60] sm:$0xff]  ;;  %v1723_v51 = vunpack.c.l.b16 %v1612_v15 }
 0x122   : > { %7875 = vmatmul.msk.bf16.gmra.mxu3 %vm526_vm3, %v8190_v36  ;;  %v2555_v36 = vrot.slane %v2553_v17, 5  ;;  %3786 = vmatpush.bf16.msra.mxu2 %v8223_v12 }
 0x123   : > { %7903 = vmatmul.msk.bf16.gmra.mxu0 %vm526_vm3, %v2839_v38  ;;  %v9216_v38 = vrot.slane %v2559_v18, 5  ;;  %v1747_v50 = vpack.c.b16 %v1722_v29, %v1721_v28  ;;  %v2840_v54 = vpack.c.b16 %v2815_v32, %v2814_v31  ;;  %v2571_v18 = vrot.slane %v2569_v0, 5  ;;  %v754_v0 = vld [vmem:[#allocation2 + $0x68] sm:$0x1] }
 0x124   : > { %v9192_v60 = vpop.f32.mrf.mxu2  ;;  %v2556_v59 = vor.u32 %v2555_v36, %v2552_v34  ;;  %v1615_v25 = vsel %vm9062_vm9, %v1613_v6, %v1614_v7  ;;  %v972_v29 = vshrl.u32 %v752_v10, 16  ;;  %v981_v31 = vshll.u32 %v753_v11, 16  ;;  %v1486_v6 = vld [vmem:[#allocation2 + $0x64] sm:$0xf] }
 0x125   : > { %v9194_v5 = vpop.f32.mrf.mxu3  ;;  %v2566_v63 = vor.u32 %v2565_v39, %v9216_v38  ;;  %v985_v32 = vshrl.u32 %v753_v11, 16  ;;  %v2574_v34 = vshrl.u32 %v2357_v19, 16  ;;  %v2577_v36 = vshll.u32 %v2357_v19, 16 }
 0x126   : > { %11662 = vst [vmem:[#allocation18_spill] sm:$0xff] %v9194_v5  ;;  %v9201_v8 = vpop.f32.mrf.mxu1  ;;  %v2557_v16 = vrot.slane %v2556_v59, 4  ;;  %v9268_v7 = vrot.slane %v2583_v43, 5  ;;  %v2589_v10 = vrot.slane %v2587_v45, 4  ;;  %v991_v19 = vshll.u32 %v754_v0, 16 }
 0x127   : > { %v2567_v17 = vrot.slane %v2566_v63, 4  ;;  %v987_v58 = vrot.slane %v985_v32, 4  ;;  %v2576_v1 = vrot.slane %v2574_v34, 4  ;;  %v2579_v2 = vrot.slane %v2577_v36, 5  ;;  %v1485_v32 = vld [vmem:[#allocation2 + $0x60] sm:$0xe] }
 0x128   : > { %v9212_v14 = vpop.f32.mrf.mxu0  ;;  %v2562_v39 = vsel %vm9058_vm8, %v2557_v16, %v9216_v38  ;;  %v9266_v38 = vrot.slane %v981_v31, 5  ;;  %v1487_v34 = vld [vmem:[#allocation2 + $0x68] sm:$0x1]  ;;  %v2590_v36 = vor.u32 %v2589_v10, %v9268_v7 }
 0x129   : > { %v2572_v42 = vsel %vm9058_vm8, %v2567_v17, %v2571_v18  ;;  %v2816_v59 = vunpack.c.l.b16 %v2562_v39  ;;  %v2580_v24 = vor.u32 %v2579_v2, %v2576_v1  ;;  %v2593_v39 = vshll.u32 %v2359_v13, 16  ;;  %v2361_v1 = vld [vmem:[#allocation2 + $0x7c] sm:$0xf] }
 0x12a   : > { %v2817_v63 = vunpack.c.l.b16 %v2572_v42  ;;  %v988_v18 = vor.u32 %v987_v58, %v9266_v38  ;;  %v756_v42 = vld [vmem:[#allocation2 + $0x70] sm:$0xf]  ;;  %v2591_v58 = vrot.slane %v2590_v36, 4 }
 0x12b   : > { %v1009_v0 = vshrl.u32 %v756_v42, 16 }
 0x12c   : > { %v9218_v41 = vpop.f32.mrf.mxu2  ;;  %v2841_v26 = vpack.c.b16 %v2817_v63, %v2816_v59  ;;  %v989_v47 = vrot.slane %v988_v18, 4  ;;  %v2595_v59 = vrot.slane %v2593_v39, 5  ;;  %v1005_v63 = vshll.u32 %v756_v42, 16 }
 0x12d   : > { %v9221_v48 = vpop.f32.mrf.mxu3  ;;  %v1011_v39 = vrot.slane %v1009_v0, 4  ;;  %v1488_v0 = vld [vmem:[#allocation2 + $0x6c] sm:$0xe] }
 0x12e   : > { %11663 = vst [vmem:[#allocation19_spill] sm:$0xff] %v9221_v48  ;;  %v9223_v52 = vpop.f32.mrf.mxu1  ;;  %v1007_v36 = vrot.slane %v1005_v63, 5  ;;  %v303_v48 = vld [vmem:[%s8909_s11 + $0x8] sm:$0xff] }
 0x130   : > { %v9225_v57 = vpop.f32.mrf.mxu0 }
 0x131   : > { %7740 = vmatmul.msk.bf16.gmra.mxu1 %vm526_vm3, %v1238_v49  ;;  %7784 = vmatmul.msk.bf16.gmra.mxu2 %vm526_vm3, %v1747_v50  ;;  %v1214_v49 = vunpack.c.l.b16 %v960_v21  ;;  %v1215_v50 = vunpack.c.l.b16 %v970_v23  ;;  %v755_v21 = vld [vmem:[#allocation2 + $0x6c] sm:$0xf] }
 0x132   : > { %7876 = vmatmul.msk.bf16.gmra.mxu3 %vm526_vm3, %v8191_v53  ;;  %v1724_v53 = vunpack.c.l.b16 %v1615_v25  ;;  %v8192_v25 = vld [vmem:[#allocation2 + $0x60] sm:$0xff]  ;;  %v996_v43 = vshrl.u32 %v755_v21, 16  ;;  %v999_v45 = vshll.u32 %v755_v21, 16 }
 0x133   : > { %7904 = vmatmul.msk.bf16.gmra.mxu0 %vm526_vm3, %v2840_v54  ;;  %v974_v54 = vrot.slane %v972_v29, 4  ;;  %v1239_v12 = vpack.c.b16 %v1215_v50, %v1214_v49  ;;  %v1618_v29 = vrot.slane %v1486_v6, 5  ;;  %v993_v49 = vrot.slane %v991_v19, 5 }
 0x134   : > { %v9240_v20 = vpop.f32.mrf.mxu2  ;;  %v1748_v16 = vpack.c.b16 %v1724_v53, %v1723_v51  ;;  %v7758_v50 = vrot.slane %v1485_v32, 9  ;;  %v1621_v53 = vrot.slane %v1487_v34, 5  ;;  %v998_v6 = vrot.slane %v996_v43, 4 }
 0x135   : > { %v9249_v28 = vpop.f32.mrf.mxu3  ;;  %v978_v17 = vor.u32 %v977_v55, %v974_v54  ;;  %v1620_v51 = vrot.slane %v1618_v29, 4  ;;  %v2581_v54 = vrot.slane %v2580_v24, 4  ;;  %v2360_v55 = vld [vmem:[#allocation2 + $0x78] sm:$0xf]  ;;  %v1001_v10 = vrot.slane %v999_v45, 5 }
 0x136   : > { %11664 = vst [vmem:[#allocation20_spill] sm:$0xff] %v9249_v28  ;;  %v9251_v33 = vpop.f32.mrf.mxu1  ;;  %v2601_v18 = vshll.u32 %v2360_v55, 16  ;;  %v1619_v21 = vsel %vm9062_vm9, %v7758_v50, %v1618_v29  ;;  %v2611_v24 = vshrl.u32 %v2361_v1, 16  ;;  %v2596_v34 = vsel %vm9058_vm8, %v2591_v58, %v2595_v59  ;;  %v757_v29 = vld [vmem:[#allocation2 + $0x74] sm:$0x1] }
 0x137   : > { %v979_v46 = vrot.slane %v978_v17, 4  ;;  %v2598_v17 = vshrl.u32 %v2360_v55, 16  ;;  %v1002_v45 = vor.u32 %v1001_v10, %v998_v6  ;;  %v2362_v58 = vld [vmem:[#allocation2 + $0x80] sm:$0x1] }
 0x138   : > { %v9253_v22 = vpop.f32.mrf.mxu0 }
 0x139   : > { %v984_v13 = vsel %vm9058_vm8, %v979_v46, %v9266_v38  ;;  %v2586_v38 = vsel %vm9058_vm8, %v2581_v54, %v9268_v7  ;;  %v1725_v46 = vunpack.c.l.b16 %v1619_v21  ;;  %v2600_v50 = vrot.slane %v2598_v17, 4 }
 0x13a   : > { %v1216_v42 = vunpack.c.l.b16 %v984_v13  ;;  %v2818_v55 = vunpack.c.l.b16 %v2586_v38  ;;  %v2613_v7 = vrot.slane %v2611_v24, 4  ;;  %v1012_v54 = vor.u32 %v1011_v39, %v1007_v36  ;;  %v1490_v24 = vld [vmem:[#allocation2 + $0x74] sm:$0x1] }
 0x13b   : > { %v1003_v63 = vrot.slane %v1002_v45, 4 }
 0x13c   : > { %v9270_v11 = vpop.f32.mrf.mxu2  ;;  %v1013_v45 = vrot.slane %v1012_v54, 4  ;;  %v2364_v54 = vld [vmem:[#allocation2 + $0x88] sm:$0xf] }
 0x13d   : > { %v9272_v15 = vpop.f32.mrf.mxu3 }
 0x13e   : > { %11665 = vst [vmem:[#allocation21_spill] sm:$0xff] %v9272_v15  ;;  %v9275_v23 = vpop.f32.mrf.mxu1  ;;  %v1015_v15 = vshll.u32 %v757_v29, 16 }
 0x140   : > { %v9277_v31 = vpop.f32.mrf.mxu0  ;;  %v1017_v28 = vrot.slane %v1015_v15, 5 }
 0x141   : > { %7741 = vmatmul.msk.bf16.gmra.mxu1 %vm526_vm3, %v1239_v12  ;;  %7785 = vmatmul.msk.bf16.gmra.mxu2 %vm526_vm3, %v1748_v16  ;;  %v994_v16 = vsel %vm9058_vm8, %v989_v47, %v993_v49  ;;  %v1489_v49 = vld [vmem:[#allocation2 + $0x70] sm:$0xf] }
 0x142   : > { %7877 = vmatmul.msk.bf16.gmra.mxu3 %vm526_vm3, %v8192_v25  ;;  %v1622_v25 = vsel %vm9062_vm9, %v1620_v51, %v1621_v53  ;;  %v1217_v43 = vunpack.c.l.b16 %v994_v16  ;;  %v2603_v51 = vrot.slane %v2601_v18, 5  ;;  %v302_v53 = vld [vmem:[%s8909_s11] sm:$0xff]  ;;  %v1625_v13 = vrot.slane %v1489_v49, 5 }
 0x143   : > { %7905 = vmatmul.msk.bf16.gmra.mxu0 %vm526_vm3, %v2841_v26  ;;  %v2607_v26 = vshll.u32 %v2361_v1, 16  ;;  %v1726_v47 = vunpack.c.l.b16 %v1622_v25  ;;  %v2819_v1 = vunpack.c.l.b16 %v2596_v34  ;;  %v664_v6 = vadd.f32 %v9148_v40, %v302_v53  ;;  %v8193_v25 = vld [vmem:[#allocation2 + $0x6c] sm:$0xff] }
 0x144   : > { %v9284_v2 = vpop.f32.mrf.mxu2  ;;  %v1240_v16 = vpack.c.b16 %v1217_v43, %v1216_v42  ;;  %v2604_v18 = vor.u32 %v2603_v51, %v2600_v50  ;;  %v2617_v34 = vshll.u32 %v2362_v58, 16  ;;  %v7759_v49 = vrot.slane %v1488_v0, 9  ;;  %v2363_v51 = vld [vmem:[#allocation2 + $0x84] sm:$0xf] }
 0x145   : > { %v9286_v12 = vpop.f32.mrf.mxu3  ;;  %v1749_v17 = vpack.c.b16 %v1726_v47, %v1725_v46  ;;  %v1008_v40 = vsel %vm9058_vm8, %v1003_v63, %v1007_v36  ;;  %v1627_v53 = vrot.slane %v1625_v13, 4  ;;  %v1628_v42 = vrot.slane %v1490_v24, 5  ;;  %v758_v46 = vld [vmem:[#allocation2 + $0x78] sm:$0xf]  ;;  %v759_v47 = vld [vmem:[#allocation2 + $0x7c] sm:$0xf] }
 0x146   : > { %11666 = vst [vmem:[#allocation22_spill] sm:$0xff] %v9286_v12  ;;  %v9293_v19 = vpop.f32.mrf.mxu1  ;;  %v9307_v12 = vrot.slane %v2607_v26, 5  ;;  %v2842_v26 = vpack.c.b16 %v2819_v1, %v2818_v55  ;;  %v2605_v43 = vrot.slane %v2604_v18, 4  ;;  %v2619_v15 = vrot.slane %v2617_v34, 5 }
 0x147   : > { %v665_v55 = vadd.f32 %v9172_v9, %v303_v48  ;;  %v1018_v36 = vsel %vm9058_vm8, %v1013_v45, %v1017_v28  ;;  %v9325_v1 = vunpack.c.l.b16 %v1008_v40  ;;  %v1020_v63 = vshrl.u32 %v758_v46, 16  ;;  %v760_v40 = vld [vmem:[#allocation2 + $0x80] sm:$0x1] }
 0x148   : > { %v9299_v32 = vpop.f32.mrf.mxu0  ;;  %v2614_v38 = vor.u32 %v2613_v7, %v9307_v12  ;;  %v1626_v7 = vsel %vm9062_vm9, %v7759_v49, %v1625_v13  ;;  %v1023_v0 = vshll.u32 %v758_v46, 16  ;;  %v2610_v9 = vsel %vm9058_vm8, %v2605_v43, %v9307_v12  ;;  %v304_v43 = vld [vmem:[%s8909_s11 + $0x10] sm:$0xff] }
 0x149   : > { %v2622_v48 = vshrl.u32 %v2363_v51, 16  ;;  %v2635_v24 = vshrl.u32 %v2364_v54, 16  ;;  %v1219_v45 = vunpack.c.l.b16 %v1018_v36  ;;  %v1727_v49 = vunpack.c.l.b16 %v1626_v7  ;;  %v2365_v7 = vld [vmem:[#allocation2 + $0x8c] sm:$0x1] }
 0x14a   : > { %v2615_v50 = vrot.slane %v2614_v38, 4  ;;  %v1039_v36 = vshll.u32 %v760_v40, 16  ;;  %v2641_v40 = vshll.u32 %v2365_v7, 16 }
 0x14b   : > { %v2624_v5 = vrot.slane %v2622_v48, 4 }
 0x14c   : > { %v9309_v59 = vpop.f32.mrf.mxu2  ;;  %v2620_v13 = vsel %vm9058_vm8, %v2615_v50, %v2619_v15  ;;  %v1492_v50 = vld [vmem:[#allocation2 + $0x7c] sm:$0xf] }
 0x14d   : > { %v9312_v10 = vpop.f32.mrf.mxu3 }
 0x14e   : > { %11667 = vst [vmem:[#allocation23_spill] sm:$0xff] %v9312_v10  ;;  %v1317_v21 = vpop.f32.mrf.mxu1  ;;  %v2821_v10 = vunpack.c.l.b16 %v2620_v13  ;;  %v761_v13 = vld [vmem:[#allocation2 + $0x84] sm:$0xf] }
 0x14f   : > { %v1397_v39 = vadd.f32 %v1317_v21, %v664_v6  ;;  %v1029_v6 = vshll.u32 %v759_v47, 16  ;;  %v1629_v21 = vsel %vm9062_vm9, %v1627_v53, %v1628_v42  ;;  %v1022_v53 = vrot.slane %v1020_v63, 4 }
 0x150   : > { %v2919_v29 = vpop.f32.mrf.mxu0  ;;  %v1025_v42 = vrot.slane %v1023_v0, 5  ;;  %v666_v63 = vadd.f32 %v9186_v44, %v304_v43 }
 0x151   : > { %7742 = vmatmul.msk.bf16.gmra.mxu1 %vm526_vm3, %v1240_v16  ;;  %7786 = vmatmul.msk.bf16.gmra.mxu2 %vm526_vm3, %v1749_v17  ;;  %v1033_v16 = vshrl.u32 %v759_v47, 16  ;;  %v9336_v46 = vrot.slane %v1029_v6, 5  ;;  %v1728_v47 = vunpack.c.l.b16 %v1629_v21 }
 0x152   : > { %7878 = vmatmul.msk.bf16.gmra.mxu3 %vm526_vm3, %v8193_v25  ;;  %v2625_v25 = vshll.u32 %v2363_v51, 16  ;;  %v1026_v6 = vor.u32 %v1025_v42, %v1022_v53  ;;  %v305_v53 = vld [vmem:[%s8909_s11 + $0x18] sm:$0xff] }
 0x153   : > { %7906 = vmatmul.msk.bf16.gmra.mxu0 %vm526_vm3, %v2842_v26  ;;  %v2631_v26 = vshll.u32 %v2364_v54, 16  ;;  %v1035_v12 = vrot.slane %v1033_v16, 4  ;;  %v2637_v54 = vrot.slane %v2635_v24, 4  ;;  %v1750_v48 = vpack.c.b16 %v1728_v47, %v1727_v49  ;;  %v1493_v24 = vld [vmem:[#allocation2 + $0x80] sm:$0x1] }
 0x154   : > { %v1826_v58 = vpop.f32.mrf.mxu2  ;;  %v2627_v15 = vrot.slane %v2625_v25, 5  ;;  %v1044_v49 = vshrl.u32 %v761_v13, 16  ;;  %v1047_v47 = vshll.u32 %v761_v13, 16  ;;  %v667_v7 = vadd.f32 %v9212_v14, %v305_v53 }
 0x155   : > { %v1906_v17 = vadd.f32 %v1826_v58, %v1397_v39  ;;  %v2189_v18 = vpop.f32.mrf.mxu3  ;;  %v2820_v58 = vunpack.c.l.b16 %v2610_v9  ;;  %v9339_v51 = vrot.slane %v2631_v26, 5  ;;  %v1036_v16 = vor.u32 %v1035_v12, %v9336_v46 }
 0x156   : > { %v1319_v28 = vpop.f32.mrf.mxu1  ;;  %v1241_v9 = vpack.c.b16 %v1219_v45, %v9325_v1  ;;  %v762_v45 = vld [vmem:[#allocation2 + $0x88] sm:$0xf] }
 0x157   : > { %v2269_v38 = vadd.f32 %v2189_v18, %v1906_v17  ;;  %v1398_v34 = vadd.f32 %v1319_v28, %v665_v55  ;;  %v1491_v17 = vld [vmem:[#allocation2 + $0x78] sm:$0xe]  ;;  %v1632_v28 = vrot.slane %v1492_v50, 5  ;;  %v2843_v26 = vpack.c.b16 %v2821_v10, %v2820_v58 }
 0x158   : > { %v2921_v39 = vpop.f32.mrf.mxu0  ;;  %v2638_v44 = vor.u32 %v2637_v54, %v9339_v51  ;;  %v1037_v1 = vrot.slane %v1036_v16, 4  ;;  %v1635_v10 = vrot.slane %v1493_v24, 5  ;;  %v2643_v54 = vrot.slane %v2641_v40, 5 }
 0x159   : > { %v9341_v55 = vadd.f32 %v2919_v29, %v2269_v38  ;;  %v8194_v29 = vld [vmem:[#allocation2 + $0x78] sm:$0xff]  ;;  %v2628_v38 = vor.u32 %v2627_v15, %v2624_v5  ;;  %v1634_v5 = vrot.slane %v1632_v28, 4  ;;  %v1057_v16 = vshrl.u32 %v762_v45, 16 }
 0x15a   : > { %v2639_v15 = vrot.slane %v2638_v44, 4 }
 0x15b   : > { %11668 = vst [vmem:[#allocation24_spill] sm:$0xff] %v9341_v55  ;;  %v1027_v55 = vrot.slane %v1026_v6, 4  ;;  %v2629_v50 = vrot.slane %v2628_v38, 4  ;;  %v1053_v6 = vshll.u32 %v762_v45, 16  ;;  %v1636_v14 = vsel %vm9062_vm9, %v1634_v5, %v1635_v10 }
 0x15c   : > { %v1828_v0 = vpop.f32.mrf.mxu2  ;;  %v1730_v5 = vunpack.c.l.b16 %v1636_v14 }
 0x15d   : > { %v1907_v18 = vadd.f32 %v1828_v0, %v1398_v34  ;;  %v2191_v21 = vpop.f32.mrf.mxu3  ;;  %v1041_v34 = vrot.slane %v1039_v36, 5  ;;  %v7760_v0 = vrot.slane %v1491_v17, 9  ;;  %v2366_v36 = vld [vmem:[#allocation2 + $0x90] sm:$0xf]  ;;  %v2367_v17 = vld [vmem:[#allocation2 + $0x94] sm:$0xf]  ;;  %v2634_v24 = vsel %vm9058_vm8, %v2629_v50, %v9339_v51 }
 0x15e   : > { %v1322_v25 = vpop.f32.mrf.mxu1  ;;  %v2659_v38 = vshrl.u32 %v2367_v17, 16  ;;  %v2822_v10 = vunpack.c.l.b16 %v2634_v24 }
 0x15f   : > { %v2270_v42 = vadd.f32 %v2191_v21, %v1907_v18  ;;  %v1399_v43 = vadd.f32 %v1322_v25, %v666_v63  ;;  %v1633_v63 = vsel %vm9062_vm9, %v7760_v0, %v1632_v28  ;;  %v1042_v21 = vsel %vm9058_vm8, %v1037_v1, %v1041_v34 }
 0x160   : > { %v9348_v12 = vpop.f32.mrf.mxu0  ;;  %v2649_v28 = vshll.u32 %v2366_v36, 16  ;;  %v1059_v34 = vrot.slane %v1057_v16, 4  ;;  %v1221_v1 = vunpack.c.l.b16 %v1042_v21  ;;  %v1729_v45 = vunpack.c.l.b16 %v1633_v63  ;;  %v1494_v21 = vld [vmem:[#allocation2 + $0x84] sm:$0xe] }
 0x161   : > { %7743 = vmatmul.msk.bf16.gmra.mxu1 %vm526_vm3, %v1241_v9  ;;  %7787 = vmatmul.msk.bf16.gmra.mxu2 %vm526_vm3, %v1750_v48  ;;  %v9352_v58 = vadd.f32 %v2921_v39, %v2270_v42  ;;  %v1032_v39 = vsel %vm9058_vm8, %v1027_v55, %v9336_v46  ;;  %v1046_v9 = vrot.slane %v1044_v49, 4  ;;  %v1049_v48 = vrot.slane %v1047_v47, 5  ;;  %v763_v42 = vld [vmem:[#allocation2 + $0x8c] sm:$0x1]  ;;  %v306_v47 = vld [vmem:[%s8909_s11 + $0x20] sm:$0xff] }
 0x162   : > { %7879 = vmatmul.msk.bf16.gmra.mxu3 %vm526_vm3, %v8194_v29  ;;  %v2646_v29 = vshrl.u32 %v2366_v36, 16  ;;  %v2644_v46 = vsel %vm9058_vm8, %v2639_v15, %v2643_v54  ;;  %v2655_v55 = vshll.u32 %v2367_v17, 16  ;;  %v1220_v0 = vunpack.c.l.b16 %v1032_v39  ;;  %v1495_v36 = vld [vmem:[#allocation2 + $0x88] sm:$0xf] }
 0x163   : > { %11669 = vst [vmem:[#allocation25_spill] sm:$0xff] %v9352_v58  ;;  %7907 = vmatmul.msk.bf16.gmra.mxu0 %vm526_vm3, %v2843_v26  ;;  %v1050_v49 = vor.u32 %v1049_v48, %v1046_v9  ;;  %v2651_v50 = vrot.slane %v2649_v28, 5  ;;  %v1063_v15 = vshll.u32 %v763_v42, 16  ;;  %v2661_v17 = vrot.slane %v2659_v38, 4 }
 0x164   : > { %v1831_v18 = vpop.f32.mrf.mxu2  ;;  %v2648_v51 = vrot.slane %v2646_v29, 4  ;;  %v9372_v54 = vrot.slane %v2655_v55, 5  ;;  %v1639_v63 = vrot.slane %v1495_v36, 5  ;;  %v1751_v14 = vpack.c.b16 %v1730_v5, %v1729_v45  ;;  %v1496_v55 = vld [vmem:[#allocation2 + $0x8c] sm:$0x1] }
 0x165   : > { %v1908_v13 = vadd.f32 %v1831_v18, %v1399_v43  ;;  %v2194_v25 = vpop.f32.mrf.mxu3  ;;  %v1055_v43 = vrot.slane %v1053_v6, 5  ;;  %v2823_v18 = vunpack.c.l.b16 %v2644_v46  ;;  %v668_v6 = vadd.f32 %v9225_v57, %v306_v47  ;;  %v307_v36 = vld [vmem:[%s8909_s11 + $0x28] sm:$0xff]  ;;  %v764_v5 = vld [vmem:[#allocation2 + $0x90] sm:$0xf] }
 0x166   : > { %v1324_v26 = vpop.f32.mrf.mxu1  ;;  %v1051_v39 = vrot.slane %v1050_v49, 4  ;;  %v2652_v29 = vor.u32 %v2651_v50, %v2648_v51  ;;  %v1065_v46 = vrot.slane %v1063_v15, 5  ;;  %v2662_v38 = vor.u32 %v2661_v17, %v9372_v54  ;;  %v2369_v15 = vld [vmem:[#allocation2 + $0x9c] sm:$0xf] }
 0x167   : > { %v2271_v44 = vadd.f32 %v2194_v25, %v1908_v13  ;;  %v1400_v40 = vadd.f32 %v1324_v26, %v667_v7  ;;  %v1060_v7 = vor.u32 %v1059_v34, %v1055_v43  ;;  %v2368_v13 = vld [vmem:[#allocation2 + $0x98] sm:$0x1]  ;;  %v1242_v25 = vpack.c.b16 %v1221_v1, %v1220_v0  ;;  %v8195_v26 = vld [vmem:[#allocation2 + $0x84] sm:$0xff] }
 0x168   : > { %v2926_v53 = vpop.f32.mrf.mxu0  ;;  %v2844_v24 = vpack.c.b16 %v2823_v18, %v2822_v10  ;;  %v2665_v42 = vshll.u32 %v2368_v13, 16  ;;  %v7761_v58 = vrot.slane %v1494_v21, 9  ;;  %v1641_v0 = vrot.slane %v1639_v63, 4  ;;  %v765_v10 = vld [vmem:[#allocation2 + $0x94] sm:$0xf] }
 0x169   : > { %v1061_v49 = vrot.slane %v1060_v7, 4  ;;  %v1642_v1 = vrot.slane %v1496_v55, 5  ;;  %v2653_v45 = vrot.slane %v2652_v29, 4  ;;  %v9382_v51 = vadd.f32 %v9348_v12, %v2271_v44  ;;  %v2370_v44 = vld [vmem:[#allocation2 + $0xa0] sm:$0xf] }
 0x16a   : > { %v2663_v18 = vrot.slane %v2662_v38, 4  ;;  %v669_v17 = vadd.f32 %v9253_v22, %v307_v36  ;;  %v1640_v12 = vsel %vm9062_vm9, %v7761_v58, %v1639_v63  ;;  %v1081_v21 = vshrl.u32 %v765_v10, 16 }
 0x16b   : > { %v1066_v7 = vsel %vm9058_vm8, %v1061_v49, %v1065_v46  ;;  %v2658_v22 = vsel %vm9058_vm8, %v2653_v45, %v9372_v54  ;;  %v2673_v63 = vshll.u32 %v2369_v15, 16 }
 0x16c   : > { %v1833_v16 = vpop.f32.mrf.mxu2  ;;  %v1223_v38 = vunpack.c.l.b16 %v1066_v7  ;;  %v1083_v54 = vrot.slane %v1081_v21, 4 }
 0x16d   : > { %v1909_v9 = vadd.f32 %v1833_v16, %v1400_v40  ;;  %v2196_v48 = vpop.f32.mrf.mxu3  ;;  %v1056_v40 = vsel %vm9058_vm8, %v1051_v39, %v1055_v43  ;;  %v2667_v43 = vrot.slane %v2665_v42, 5  ;;  %v1071_v16 = vshll.u32 %v764_v5, 16 }
 0x16e   : > { %v1327_v28 = vpop.f32.mrf.mxu1  ;;  %v9391_v13 = vunpack.c.l.b16 %v1056_v40  ;;  %v1077_v39 = vshll.u32 %v765_v10, 16  ;;  %v1731_v42 = vunpack.c.l.b16 %v1640_v12  ;;  %v308_v40 = vld [vmem:[%s8909_s11 + $0x30] sm:$0xff]  ;;  %v2371_v12 = vld [vmem:[#allocation2 + $0xa4] sm:$0x1] }
 0x16f   : > { %v2272_v34 = vadd.f32 %v2196_v48, %v1909_v9  ;;  %v1401_v57 = vadd.f32 %v1327_v28, %v668_v6  ;;  %v1068_v6 = vshrl.u32 %v764_v5, 16  ;;  %v2668_v58 = vsel %vm9058_vm8, %v2663_v18, %v2667_v43  ;;  %v1498_v10 = vld [vmem:[#allocation2 + $0x94] sm:$0xf] }
 0x170   : > { %v2929_v47 = vpop.f32.mrf.mxu0  ;;  %v2679_v28 = vshll.u32 %v2370_v44, 16  ;;  %v1073_v49 = vrot.slane %v1071_v16, 5  ;;  %v9402_v36 = vrot.slane %v1077_v39, 5  ;;  %v2825_v45 = vunpack.c.l.b16 %v2668_v58  ;;  %v1497_v39 = vld [vmem:[#allocation2 + $0x90] sm:$0xe] }
 0x171   : > { %7744 = vmatmul.msk.bf16.gmra.mxu1 %vm526_vm3, %v1242_v25  ;;  %7788 = vmatmul.msk.bf16.gmra.mxu2 %vm526_vm3, %v1751_v14  ;;  %v9384_v50 = vadd.f32 %v2926_v53, %v2272_v34  ;;  %v1643_v25 = vsel %vm9062_vm9, %v1641_v0, %v1642_v1  ;;  %v2670_v14 = vshrl.u32 %v2369_v15, 16  ;;  %v766_v34 = vld [vmem:[#allocation2 + $0x98] sm:$0x1]  ;;  %v2824_v1 = vunpack.c.l.b16 %v2658_v22 }
 0x172   : > { %7880 = vmatmul.msk.bf16.gmra.mxu3 %vm526_vm3, %v8195_v26  ;;  %v2683_v26 = vshrl.u32 %v2370_v44, 16  ;;  %v1732_v0 = vunpack.c.l.b16 %v1643_v25  ;;  %v2675_v18 = vrot.slane %v2673_v63, 5  ;;  %v9405_v43 = vrot.slane %v2679_v28, 5  ;;  %v1499_v63 = vld [vmem:[#allocation2 + $0x98] sm:$0x1] }
 0x173   : > { %7908 = vmatmul.msk.bf16.gmra.mxu0 %vm526_vm3, %v2844_v24  ;;  %v2672_v5 = vrot.slane %v2670_v14, 4  ;;  %v1087_v7 = vshll.u32 %v766_v34, 16  ;;  %v670_v44 = vadd.f32 %v9277_v31, %v308_v40  ;;  %v1084_v16 = vor.u32 %v1083_v54, %v9402_v36  ;;  %v767_v14 = vld [vmem:[#allocation2 + $0x9c] sm:$0xf] }
 0x174   : > { %v1836_v53 = vpop.f32.mrf.mxu2  ;;  %v2685_v15 = vrot.slane %v2683_v26, 4  ;;  %v1752_v25 = vpack.c.b16 %v1732_v0, %v1731_v42  ;;  %v1646_v22 = vrot.slane %v1498_v10, 5  ;;  %v2845_v58 = vpack.c.b16 %v2825_v45, %v2824_v1 }
 0x175   : > { %v1910_v9 = vadd.f32 %v1836_v53, %v1401_v57  ;;  %v2199_v48 = vpop.f32.mrf.mxu3  ;;  %v1070_v57 = vrot.slane %v1068_v6, 4  ;;  %v2676_v28 = vor.u32 %v2675_v18, %v2672_v5  ;;  %v2689_v26 = vshll.u32 %v2371_v12, 16 }
 0x176   : > { %v1329_v29 = vpop.f32.mrf.mxu1  ;;  %v2686_v31 = vor.u32 %v2685_v15, %v9405_v43  ;;  %v7762_v54 = vrot.slane %v1497_v39, 9  ;;  %v1092_v42 = vshrl.u32 %v767_v14, 16  ;;  %v1095_v0 = vshll.u32 %v767_v14, 16 }
 0x177   : > { %v2273_v24 = vadd.f32 %v2199_v48, %v1910_v9  ;;  %v1402_v46 = vadd.f32 %v1329_v29, %v669_v17  ;;  %v1074_v6 = vor.u32 %v1073_v49, %v1070_v57  ;;  %v1243_v48 = vpack.c.b16 %v1223_v38, %v9391_v13  ;;  %v768_v38 = vld [vmem:[#allocation2 + $0xa0] sm:$0xf] }
 0x178   : > { %v2931_v55 = vpop.f32.mrf.mxu0  ;;  %v1085_v13 = vrot.slane %v1084_v16, 4  ;;  %v1648_v1 = vrot.slane %v1646_v22, 4  ;;  %v1649_v45 = vrot.slane %v1499_v63, 5  ;;  %v2677_v10 = vrot.slane %v2676_v28, 4  ;;  %v2373_v16 = vld [vmem:[#allocation2 + $0xac] sm:$0xf] }
 0x179   : > { %v9407_v17 = vadd.f32 %v2929_v47, %v2273_v24  ;;  %v8196_v47 = vld [vmem:[#allocation2 + $0x90] sm:$0xff]  ;;  %v309_v24 = vld [vmem:[%s8909_s11 + $0x38] sm:$0xff]  ;;  %v1075_v40 = vrot.slane %v1074_v6, 4  ;;  %v2687_v18 = vrot.slane %v2686_v31, 4  ;;  %v2691_v15 = vrot.slane %v2689_v26, 5 }
 0x17a   : > { %v671_v12 = vadd.f32 %v9299_v32, %v309_v24  ;;  %v1105_v6 = vshrl.u32 %v768_v38, 16  ;;  %v1650_v32 = vsel %vm9062_vm9, %v1648_v1, %v1649_v45  ;;  %v2703_v63 = vshll.u32 %v2373_v16, 16  ;;  %v1501_v45 = vld [vmem:[#allocation2 + $0xa0] sm:$0xf] }
 0x17b   : > { %v2707_v28 = vshrl.u32 %v2373_v16, 16 }
 0x17c   : > { %v1838_v53 = vpop.f32.mrf.mxu2 }
 0x17d   : > { %v1911_v21 = vadd.f32 %v1838_v53, %v1402_v46  ;;  %v2201_v9 = vpop.f32.mrf.mxu3  ;;  %v1089_v46 = vrot.slane %v1087_v7, 5  ;;  %v2372_v7 = vld [vmem:[#allocation2 + $0xa8] sm:$0xf]  ;;  %v1101_v53 = vshll.u32 %v768_v38, 16  ;;  %v2709_v16 = vrot.slane %v2707_v28, 4 }
 0x17e   : > { %v1332_v29 = vpop.f32.mrf.mxu1 }
 0x17f   : > { %v2274_v34 = vadd.f32 %v2201_v9, %v1911_v21  ;;  %v1403_v57 = vadd.f32 %v1332_v29, %v670_v44  ;;  %v1647_v44 = vsel %vm9062_vm9, %v7762_v54, %v1646_v22  ;;  %v1090_v21 = vsel %vm9058_vm8, %v1085_v13, %v1089_v46 }
 0x180   : > { %v9414_v49 = vpop.f32.mrf.mxu0  ;;  %v1094_v9 = vrot.slane %v1092_v42, 4  ;;  %v2694_v29 = vshrl.u32 %v2372_v7, 16  ;;  %v2697_v22 = vshll.u32 %v2372_v7, 16  ;;  %v1107_v46 = vrot.slane %v1105_v6, 4  ;;  %v310_v42 = vld [vmem:[%s8909_s11 + $0x40] sm:$0xff] }
 0x181   : > { %7745 = vmatmul.msk.bf16.gmra.mxu1 %vm526_vm3, %v1243_v48  ;;  %7789 = vmatmul.msk.bf16.gmra.mxu2 %vm526_vm3, %v1752_v25  ;;  %v9418_v5 = vadd.f32 %v2931_v55, %v2274_v34  ;;  %v1080_v55 = vsel %vm9058_vm8, %v1075_v40, %v9402_v36  ;;  %v1097_v48 = vrot.slane %v1095_v0, 5  ;;  %v2692_v36 = vsel %vm9058_vm8, %v2687_v18, %v2691_v15  ;;  %v769_v34 = vld [vmem:[#allocation2 + $0xa4] sm:$0x1] }
 0x182   : > { %7881 = vmatmul.msk.bf16.gmra.mxu3 %vm526_vm3, %v8196_v47  ;;  %v1224_v54 = vunpack.c.l.b16 %v1080_v55  ;;  %v1225_v40 = vunpack.c.l.b16 %v1090_v21  ;;  %v1733_v13 = vunpack.c.l.b16 %v1647_v44  ;;  %v1734_v0 = vunpack.c.l.b16 %v1650_v32  ;;  %v1500_v21 = vld [vmem:[#allocation2 + $0x9c] sm:$0xe] }
 0x183   : > { %7909 = vmatmul.msk.bf16.gmra.mxu0 %vm526_vm3, %v2845_v58  ;;  %v2682_v58 = vsel %vm9058_vm8, %v2677_v10, %v9405_v43  ;;  %v1098_v38 = vor.u32 %v1097_v48, %v1094_v9  ;;  %v2696_v43 = vrot.slane %v2694_v29, 4  ;;  %v2699_v10 = vrot.slane %v2697_v22, 5  ;;  %v8197_v22 = vld [vmem:[#allocation2 + $0x9c] sm:$0xff] }
 0x184   : > { %v1841_v39 = vpop.f32.mrf.mxu2  ;;  %v2826_v1 = vunpack.c.l.b16 %v2682_v58  ;;  %v2827_v7 = vunpack.c.l.b16 %v2692_v36  ;;  %v1111_v18 = vshll.u32 %v769_v34, 16  ;;  %v9438_v15 = vrot.slane %v2703_v63, 5  ;;  %v1502_v36 = vld [vmem:[#allocation2 + $0xa4] sm:$0x1] }
 0x185   : > { %v1912_v25 = vadd.f32 %v1841_v39, %v1403_v57  ;;  %v2204_v14 = vpop.f32.mrf.mxu3  ;;  %v1103_v57 = vrot.slane %v1101_v53, 5  ;;  %v2374_v39 = vld [vmem:[#allocation2 + $0xb0] sm:$0x1]  ;;  %v672_v53 = vadd.f32 %v9146_v37, %v310_v42  ;;  %v1099_v55 = vrot.slane %v1098_v38, 4 }
 0x186   : > { %v1334_v47 = vpop.f32.mrf.mxu1  ;;  %v1653_v44 = vrot.slane %v1501_v45, 5  ;;  %v2700_v32 = vor.u32 %v2699_v10, %v2696_v43  ;;  %v1113_v58 = vrot.slane %v1111_v18, 5  ;;  %v2710_v63 = vor.u32 %v2709_v16, %v9438_v15  ;;  %v311_v45 = vld [vmem:[%s8909_s11 + $0x48] sm:$0xff]  ;;  %v2375_v18 = vld [vmem:[#allocation2 + $0xb4] sm:$0xf] }
 0x187   : > { %v2275_v31 = vadd.f32 %v2204_v14, %v1912_v25  ;;  %v1404_v26 = vadd.f32 %v1334_v47, %v671_v12  ;;  %v1108_v12 = vor.u32 %v1107_v46, %v1103_v57  ;;  %v1244_v25 = vpack.c.b16 %v1225_v40, %v1224_v54 }
 0x188   : > { %v2936_v24 = vpop.f32.mrf.mxu0  ;;  %v1753_v14 = vpack.c.b16 %v1734_v0, %v1733_v13  ;;  %v2846_v47 = vpack.c.b16 %v2827_v7, %v2826_v1  ;;  %v2713_v28 = vshll.u32 %v2374_v39, 16  ;;  %v7763_v42 = vrot.slane %v1500_v21, 9  ;;  %v770_v0 = vld [vmem:[#allocation2 + $0xa8] sm:$0xf]  ;;  %v771_v1 = vld [vmem:[#allocation2 + $0xac] sm:$0xf] }
 0x189   : > { %v1109_v38 = vrot.slane %v1108_v12, 4  ;;  %v1655_v54 = vrot.slane %v1653_v44, 4  ;;  %v1656_v40 = vrot.slane %v1502_v36, 5  ;;  %v2701_v13 = vrot.slane %v2700_v32, 4 }
 0x18a   : > { %v9448_v43 = vadd.f32 %v9414_v49, %v2275_v31  ;;  %v2711_v7 = vrot.slane %v2710_v63, 4  ;;  %v673_v16 = vadd.f32 %v9170_v4, %v311_v45  ;;  %v1654_v49 = vsel %vm9062_vm9, %v7763_v42, %v1653_v44  ;;  %v2376_v31 = vld [vmem:[#allocation2 + $0xb8] sm:$0xf] }
 0x18b   : > { %v1114_v12 = vsel %vm9058_vm8, %v1109_v38, %v1113_v58  ;;  %v1129_v21 = vshrl.u32 %v771_v1, 16  ;;  %v2706_v4 = vsel %vm9058_vm8, %v2701_v13, %v9438_v15  ;;  %v312_v15 = vld [vmem:[%s8909_s11 + $0x50] sm:$0xff] }
 0x18c   : > { %v1843_v6 = vpop.f32.mrf.mxu2  ;;  %v772_v13 = vld [vmem:[#allocation2 + $0xb0] sm:$0x1] }
 0x18d   : > { %v1913_v9 = vadd.f32 %v1843_v6, %v1404_v26  ;;  %v2206_v48 = vpop.f32.mrf.mxu3  ;;  %v1104_v26 = vsel %vm9058_vm8, %v1099_v55, %v1103_v57  ;;  %v2715_v57 = vrot.slane %v2713_v28, 5  ;;  %v1119_v6 = vshll.u32 %v770_v0, 16 }
 0x18e   : > { %v1337_v29 = vpop.f32.mrf.mxu1  ;;  %v9457_v39 = vunpack.c.l.b16 %v1104_v26  ;;  %v1125_v55 = vshll.u32 %v771_v1, 16  ;;  %v1227_v28 = vunpack.c.l.b16 %v1114_v12  ;;  %v1131_v45 = vrot.slane %v1129_v21, 4  ;;  %v1504_v1 = vld [vmem:[#allocation2 + $0xac] sm:$0xf]  ;;  %v2377_v12 = vld [vmem:[#allocation2 + $0xbc] sm:$0x1] }
 0x18f   : > { %v2276_v34 = vadd.f32 %v2206_v48, %v1913_v9  ;;  %v1405_v37 = vadd.f32 %v1337_v29, %v672_v53  ;;  %v1116_v53 = vshrl.u32 %v770_v0, 16  ;;  %v2716_v44 = vsel %vm9058_vm8, %v2711_v7, %v2715_v57 }
 0x190   : > { %v2939_v46 = vpop.f32.mrf.mxu0  ;;  %v2721_v29 = vshll.u32 %v2375_v18, 16  ;;  %v1121_v38 = vrot.slane %v1119_v6, 5  ;;  %v9468_v42 = vrot.slane %v1125_v55, 5  ;;  %v1135_v6 = vshll.u32 %v772_v13, 16  ;;  %v1503_v55 = vld [vmem:[#allocation2 + $0xa8] sm:$0xe] }
 0x191   : > { %7746 = vmatmul.msk.bf16.gmra.mxu1 %vm526_vm3, %v1244_v25  ;;  %7790 = vmatmul.msk.bf16.gmra.mxu2 %vm526_vm3, %v1753_v14  ;;  %v9450_v10 = vadd.f32 %v2936_v24, %v2276_v34  ;;  %v1657_v25 = vsel %vm9062_vm9, %v1655_v54, %v1656_v40  ;;  %v2718_v14 = vshrl.u32 %v2375_v18, 16  ;;  %v1735_v34 = vunpack.c.l.b16 %v1654_v49 }
 0x192   : > { %7882 = vmatmul.msk.bf16.gmra.mxu3 %vm526_vm3, %v8197_v22  ;;  %v2727_v22 = vshll.u32 %v2376_v31, 16  ;;  %v1736_v26 = vunpack.c.l.b16 %v1657_v25  ;;  %v2828_v54 = vunpack.c.l.b16 %v2706_v4  ;;  %v2829_v40 = vunpack.c.l.b16 %v2716_v44  ;;  %v1505_v44 = vld [vmem:[#allocation2 + $0xb0] sm:$0x1] }
 0x193   : > { %7910 = vmatmul.msk.bf16.gmra.mxu0 %vm526_vm3, %v2846_v47  ;;  %v2731_v47 = vshrl.u32 %v2376_v31, 16  ;;  %v2720_v0 = vrot.slane %v2718_v14, 4  ;;  %v2723_v7 = vrot.slane %v2721_v29, 5  ;;  %v674_v49 = vadd.f32 %v9183_v35, %v312_v15 }
 0x194   : > { %v1846_v24 = vpop.f32.mrf.mxu2  ;;  %v9471_v57 = vrot.slane %v2727_v22, 5  ;;  %v1754_v25 = vpack.c.b16 %v1736_v26, %v1735_v34  ;;  %v1660_v4 = vrot.slane %v1504_v1, 5  ;;  %v2737_v22 = vshll.u32 %v2377_v12, 16  ;;  %v773_v34 = vld [vmem:[#allocation2 + $0xb4] sm:$0xf] }
 0x195   : > { %v1914_v9 = vadd.f32 %v1846_v24, %v1405_v37  ;;  %v2209_v48 = vpop.f32.mrf.mxu3  ;;  %v1118_v37 = vrot.slane %v1116_v53, 4  ;;  %v2733_v18 = vrot.slane %v2731_v47, 4  ;;  %v1132_v53 = vor.u32 %v1131_v45, %v9468_v42  ;;  %v313_v45 = vld [vmem:[%s8909_s11 + $0x58] sm:$0xff]  ;;  %v2378_v12 = vld [vmem:[#allocation2 + $0xc0] sm:$0xf] }
 0x196   : > { %v1339_v32 = vpop.f32.mrf.mxu1  ;;  %v2724_v29 = vor.u32 %v2723_v7, %v2720_v0  ;;  %v1137_v13 = vrot.slane %v1135_v6, 5  ;;  %v2739_v0 = vrot.slane %v2737_v22, 5  ;;  %v774_v1 = vld [vmem:[#allocation2 + $0xb8] sm:$0xf]  ;;  %v675_v7 = vadd.f32 %v9201_v8, %v313_v45  ;;  %v2379_v6 = vld [vmem:[#allocation2 + $0xc4] sm:$0xf] }
 0x197   : > { %v2277_v58 = vadd.f32 %v2209_v48, %v1914_v9  ;;  %v1406_v36 = vadd.f32 %v1339_v32, %v673_v16  ;;  %v1122_v24 = vor.u32 %v1121_v38, %v1118_v37  ;;  %v1245_v48 = vpack.c.b16 %v1227_v28, %v9457_v39  ;;  %v8198_v32 = vld [vmem:[#allocation2 + $0xa8] sm:$0xff] }
 0x198   : > { %v2941_v63 = vpop.f32.mrf.mxu0  ;;  %v2734_v35 = vor.u32 %v2733_v18, %v9471_v57  ;;  %v7764_v38 = vrot.slane %v1503_v55, 9  ;;  %v1133_v15 = vrot.slane %v1132_v53, 4  ;;  %v1662_v39 = vrot.slane %v1660_v4, 4 }
 0x199   : > { %v9473_v16 = vadd.f32 %v2939_v46, %v2277_v58  ;;  %v2847_v46 = vpack.c.b16 %v2829_v40, %v2828_v54  ;;  %v1663_v28 = vrot.slane %v1505_v44, 5  ;;  %v2725_v54 = vrot.slane %v2724_v29, 4 }
 0x19a   : > { %v2735_v40 = vrot.slane %v2734_v35, 4  ;;  %v1661_v18 = vsel %vm9062_vm9, %v7764_v38, %v1660_v4  ;;  %v1143_v53 = vshll.u32 %v773_v34, 16  ;;  %v2751_v35 = vshll.u32 %v2379_v6, 16 }
 0x19b   : > { %v1664_v8 = vsel %vm9062_vm9, %v1662_v39, %v1663_v28  ;;  %v2730_v4 = vsel %vm9058_vm8, %v2725_v54, %v9471_v57  ;;  %v2755_v22 = vshrl.u32 %v2379_v6, 16  ;;  %v775_v54 = vld [vmem:[#allocation2 + $0xbc] sm:$0x1] }
 0x19c   : > { %v1848_v31 = vpop.f32.mrf.mxu2  ;;  %v1145_v45 = vrot.slane %v1143_v53, 5  ;;  %v2830_v28 = vunpack.c.l.b16 %v2730_v4 }
 0x19d   : > { %v1915_v21 = vadd.f32 %v1848_v31, %v1406_v36  ;;  %v2211_v9 = vpop.f32.mrf.mxu3  ;;  %v1123_v36 = vrot.slane %v1122_v24, 4  ;;  %v1138_v31 = vsel %vm9058_vm8, %v1133_v15, %v1137_v13  ;;  %v1140_v24 = vshrl.u32 %v773_v34, 16 }
 0x19e   : > { %v1342_v14 = vpop.f32.mrf.mxu1  ;;  %v1737_v15 = vunpack.c.l.b16 %v1661_v18  ;;  %v1738_v13 = vunpack.c.l.b16 %v1664_v8 }
 0x19f   : > { %v2278_v47 = vadd.f32 %v2211_v9, %v1915_v21  ;;  %v1407_v58 = vadd.f32 %v1342_v14, %v674_v49  ;;  %v1149_v9 = vshll.u32 %v774_v1, 16  ;;  %v2742_v14 = vshrl.u32 %v2378_v12, 16 }
 0x1a0   : > { %v2944_v37 = vpop.f32.mrf.mxu0  ;;  %v1142_v38 = vrot.slane %v1140_v24, 4 }
 0x1a1   : > { %7747 = vmatmul.msk.bf16.gmra.mxu1 %vm526_vm3, %v1245_v48  ;;  %7791 = vmatmul.msk.bf16.gmra.mxu2 %vm526_vm3, %v1754_v25  ;;  %v9482_v26 = vadd.f32 %v2941_v63, %v2278_v47  ;;  %v1128_v63 = vsel %vm9058_vm8, %v1123_v36, %v9468_v42  ;;  %v1153_v48 = vshrl.u32 %v774_v1, 16  ;;  %v2740_v42 = vsel %vm9058_vm8, %v2735_v40, %v2739_v0  ;;  %v314_v36 = vld [vmem:[%s8909_s11 + $0x60] sm:$0xff]  ;;  %v1507_v40 = vld [vmem:[#allocation2 + $0xb8] sm:$0xf]  ;;  %v2380_v1 = vld [vmem:[#allocation2 + $0xc8] sm:$0x1] }
 0x1a2   : > { %7883 = vmatmul.msk.bf16.gmra.mxu3 %vm526_vm3, %v8198_v32  ;;  %v2745_v32 = vshll.u32 %v2378_v12, 16  ;;  %v1228_v47 = vunpack.c.l.b16 %v1128_v63  ;;  %v9502_v39 = vrot.slane %v1149_v9, 5  ;;  %v2831_v34 = vunpack.c.l.b16 %v2740_v42 }
 0x1a3   : > { %7911 = vmatmul.msk.bf16.gmra.mxu0 %vm526_vm3, %v2847_v46  ;;  %v1155_v57 = vrot.slane %v1153_v48, 4  ;;  %v2757_v63 = vrot.slane %v2755_v22, 4  ;;  %v1146_v53 = vor.u32 %v1145_v45, %v1142_v38  ;;  %v1159_v9 = vshll.u32 %v775_v54, 16  ;;  %v315_v38 = vld [vmem:[%s8909_s11 + $0x68] sm:$0xff] }
 0x1a4   : > { %v1851_v49 = vpop.f32.mrf.mxu2  ;;  %v2747_v12 = vrot.slane %v2745_v32, 5  ;;  %v2848_v4 = vpack.c.b16 %v2831_v34, %v2830_v28  ;;  %v1667_v42 = vrot.slane %v1507_v40, 5  ;;  %v3932_v28 = vld [vmem:[#allocation2 + $0x18] sm:$0xf] }
 0x1a5   : > { %v1916_v55 = vadd.f32 %v1851_v49, %v1407_v58  ;;  %v2214_v21 = vpop.f32.mrf.mxu3  ;;  %v1229_v58 = vunpack.c.l.b16 %v1138_v31  ;;  %v9506_v49 = vrot.slane %v2751_v35, 5  ;;  %v676_v31 = vadd.f32 %v9223_v52, %v314_v36  ;;  %v1508_v52 = vld [vmem:[#allocation2 + $0xbc] sm:$0x1] }
 0x1a6   : > { %v1344_v25 = vpop.f32.mrf.mxu1  ;;  %v1156_v8 = vor.u32 %v1155_v57, %v9502_v39  ;;  %v1161_v36 = vrot.slane %v1159_v9, 5  ;;  %v1670_v57 = vrot.slane %v1508_v52, 5  ;;  %v3064_v52 = vld [vmem:[#allocation2 + $0x10] sm:$0xf] }
 0x1a7   : > { %v2279_v46 = vadd.f32 %v2214_v21, %v1916_v55  ;;  %v1408_v44 = vadd.f32 %v1344_v25, %v675_v7  ;;  %v2744_v7 = vrot.slane %v2742_v14, 4  ;;  %v1246_v18 = vpack.c.b16 %v1229_v58, %v1228_v47  ;;  %v8199_v25 = vld [vmem:[#allocation2 + $0xb4] sm:$0xff] }
 0x1a8   : > { %v2946_v29 = vpop.f32.mrf.mxu0  ;;  %v1755_v21 = vpack.c.b16 %v1738_v13, %v1737_v15  ;;  %v2761_v14 = vshll.u32 %v2380_v1, 16  ;;  %v2758_v47 = vor.u32 %v2757_v63, %v9506_v49  ;;  %v1157_v45 = vrot.slane %v1156_v8, 4  ;;  %v3933_v1 = vld [vmem:[#allocation2 + $0x1c] sm:$0xf] }
 0x1a9   : > { %v9504_v0 = vadd.f32 %v2944_v37, %v2279_v46  ;;  %v1506_v37 = vld [vmem:[#allocation2 + $0xb4] sm:$0xe]  ;;  %v2748_v22 = vor.u32 %v2747_v12, %v2744_v7  ;;  %v1669_v13 = vrot.slane %v1667_v42, 4  ;;  %v677_v7 = vadd.f32 %v9251_v33, %v315_v38 }
 0x1aa   : > { %v7765_v58 = vrot.slane %v1506_v37, 9  ;;  %v2759_v54 = vrot.slane %v2758_v47, 4  ;;  %v2763_v40 = vrot.slane %v2761_v14, 5  ;;  %v3994_v8 = vshrl.u32 %v3933_v1, 16 }
 0x1ab   : > { %v2749_v34 = vrot.slane %v2748_v22, 4  ;;  %v1671_v33 = vsel %vm9062_vm9, %v1669_v13, %v1670_v57  ;;  %v3934_v13 = vld [vmem:[#allocation2 + $0x20] sm:$0x1] }
 0x1ac   : > { %v1853_v24 = vpop.f32.mrf.mxu2 }
 0x1ad   : > { %v1917_v6 = vadd.f32 %v1853_v24, %v1408_v44  ;;  %v2216_v55 = vpop.f32.mrf.mxu3  ;;  %v1147_v44 = vrot.slane %v1146_v53, 4  ;;  %v3981_v53 = vshrl.u32 %v3932_v28, 16 }
 0x1ae   : > { %v1347_v48 = vpop.f32.mrf.mxu1 }
 0x1af   : > { %v2280_v32 = vadd.f32 %v2216_v55, %v1917_v6  ;;  %v1409_v46 = vadd.f32 %v1347_v48, %v676_v31  ;;  %v1152_v63 = vsel %vm9058_vm8, %v1147_v44, %v9502_v39  ;;  %v3984_v6 = vshll.u32 %v3932_v28, 16  ;;  %v3063_v28 = vld [vmem:[#allocation2 + $0xc] sm:$0xe] }
 0x1b0   : > { %v2949_v35 = vpop.f32.mrf.mxu0  ;;  %v2754_v48 = vsel %vm9058_vm8, %v2749_v34, %v9506_v49  ;;  %v3983_v22 = vrot.slane %v3981_v53, 4  ;;  %v3161_v34 = vrot.slane %v3064_v52, 5  ;;  %v4000_v53 = vshll.u32 %v3934_v13, 16 }
 0x1b1   : > { %7748 = vmatmul.msk.bf16.gmra.mxu1 %vm526_vm3, %v1246_v18  ;;  %7792 = vmatmul.msk.bf16.gmra.mxu2 %vm526_vm3, %v1755_v21  ;;  %v9514_v15 = vadd.f32 %v2946_v29, %v2280_v32  ;;  %v1668_v29 = vsel %vm9062_vm9, %v7765_v58, %v1667_v42  ;;  %v1162_v18 = vsel %vm9058_vm8, %v1157_v45, %v1161_v36  ;;  %v3990_v21 = vshll.u32 %v3933_v1, 16  ;;  %v316_v32 = vld [vmem:[%s8909_s11 + $0x70] sm:$0xff] }
 0x1b2   : > { %7884 = vmatmul.msk.bf16.gmra.mxu3 %vm526_vm3, %v8199_v25  ;;  %v2764_v25 = vsel %vm9058_vm8, %v2759_v54, %v2763_v40  ;;  %v1231_v42 = vunpack.c.l.b16 %v1162_v18  ;;  %v1739_v14 = vunpack.c.l.b16 %v1668_v29  ;;  %v3986_v47 = vrot.slane %v3984_v6, 5  ;;  %v4663_v54 = vld [vmem:[#allocation2 + $0x1c] sm:$0xf] }
 0x1b3   : > { %7912 = vmatmul.msk.bf16.gmra.mxu0 %vm526_vm3, %v2848_v4  ;;  %v1230_v4 = vunpack.c.l.b16 %v1152_v63  ;;  %v2832_v58 = vunpack.c.l.b16 %v2754_v48  ;;  %v2833_v38 = vunpack.c.l.b16 %v2764_v25  ;;  %v3992_v45 = vrot.slane %v3990_v21, 5  ;;  %v3065_v63 = vld [vmem:[#allocation2 + $0x14] sm:$0x1]  ;;  %v4662_v48 = vld [vmem:[#allocation2 + $0x18] sm:$0xe] }
 0x1b4   : > { %v1856_v12 = vpop.f32.mrf.mxu2  ;;  %v3996_v36 = vrot.slane %v3994_v8, 4  ;;  %v678_v49 = vadd.f32 %v9275_v23, %v316_v32  ;;  %v3987_v29 = vor.u32 %v3986_v47, %v3983_v22  ;;  %v7914_v23 = vrot.slane %v3063_v28, 9  ;;  %v317_v25 = vld [vmem:[%s8909_s11 + $0x78] sm:$0xff] }
 0x1b5   : > { %v1918_v31 = vadd.f32 %v1856_v12, %v1409_v46  ;;  %v2219_v24 = vpop.f32.mrf.mxu3  ;;  %v1740_v46 = vunpack.c.l.b16 %v1671_v33  ;;  %v4760_v21 = vrot.slane %v4663_v54, 5  ;;  %v3163_v8 = vrot.slane %v3161_v34, 4 }
 0x1b6   : > { %v1349_v55 = vpop.f32.mrf.mxu1  ;;  %v3997_v18 = vor.u32 %v3996_v36, %v3992_v45  ;;  %v4002_v32 = vrot.slane %v4000_v53, 5  ;;  %v8078_v52 = vrot.slane %v4662_v48, 9  ;;  %v3162_v13 = vsel %vm9062_vm9, %v7914_v23, %v3161_v34 }
 0x1b7   : > { %v2281_v9 = vadd.f32 %v2219_v24, %v1918_v31  ;;  %v1410_v37 = vadd.f32 %v1349_v55, %v677_v7  ;;  %v1247_v7 = vpack.c.b16 %v1231_v42, %v1230_v4  ;;  %v1756_v12 = vpack.c.b16 %v1740_v46, %v1739_v14  ;;  %v8200_v31 = vld [vmem:[#allocation2 + $0xc0] sm:$0xff] }
 0x1b8   : > { %v2951_v39 = vpop.f32.mrf.mxu0  ;;  %v2849_v24 = vpack.c.b16 %v2833_v38, %v2832_v58  ;;  %v3988_v4 = vrot.slane %v3987_v29, 4  ;;  %v3998_v14 = vrot.slane %v3997_v18, 4  ;;  %v3935_v46 = vld [vmem:[#allocation2 + $0x24] sm:$0xf]  ;;  %v4762_v22 = vrot.slane %v4760_v21, 4 }
 0x1b9   : > { %v9534_v44 = vadd.f32 %v2949_v35, %v2281_v9  ;;  %v3164_v9 = vrot.slane %v3065_v63, 5  ;;  %v3936_v58 = vld [vmem:[#allocation2 + $0x28] sm:$0xf]  ;;  %v679_v38 = vadd.f32 %v9293_v19, %v317_v25  ;;  %v4005_v54 = vshrl.u32 %v3935_v46, 16 }
 0x1ba   : > { %v3993_v28 = vsel %vm9058_vm8, %v3988_v4, %v3992_v45  ;;  %v4014_v19 = vshll.u32 %v3936_v58, 16 }
 0x1bb   : > { %v4401_v18 = vunpack.c.l.b16 %v3993_v28 }
 0x1bc   : > { %v1858_v57 = vpop.f32.mrf.mxu2  ;;  %v4016_v25 = vrot.slane %v4014_v19, 5 }
 0x1bd   : > { %v1919_v40 = vadd.f32 %v1858_v57, %v1410_v37  ;;  %v2221_v1 = vpop.f32.mrf.mxu3  ;;  %v4664_v37 = vld [vmem:[#allocation2 + $0x20] sm:$0x1] }
 0x1be   : > { %v1352_v35 = vpop.f32.mrf.mxu1  ;;  %v4763_v47 = vrot.slane %v4664_v37, 5 }
 0x1bf   : > { %v2282_v6 = vadd.f32 %v2221_v1, %v1919_v40  ;;  %v1411_v55 = vadd.f32 %v1352_v35, %v678_v49  ;;  %v4008_v40 = vshll.u32 %v3935_v46, 16  ;;  %v4761_v35 = vsel %vm9062_vm9, %v8078_v52, %v4760_v21  ;;  %v3066_v21 = vld [vmem:[#allocation2 + $0x18] sm:$0xe]  ;;  %v4666_v52 = vld [vmem:[#allocation2 + $0x28] sm:$0xf] }
 0x1c0   : > { %v2954_v33 = vpop.f32.mrf.mxu0  ;;  %v4907_v48 = vunpack.c.l.b16 %v4761_v35  ;;  %v7915_v19 = vrot.slane %v3066_v21, 9 }
 0x1c1   : > { %7749 = vmatmul.msk.bf16.gmra.mxu1 %vm526_vm3, %v1247_v7  ;;  %7793 = vmatmul.msk.bf16.gmra.mxu2 %vm526_vm3, %v1756_v12  ;;  %v9540_v42 = vadd.f32 %v2951_v39, %v2282_v6  ;;  %v3165_v39 = vsel %vm9062_vm9, %v3163_v8, %v3164_v9  ;;  %v4003_v7 = vsel %vm9058_vm8, %v3998_v14, %v4002_v32  ;;  %v4018_v12 = vshrl.u32 %v3936_v58, 16  ;;  %v3067_v6 = vld [vmem:[#allocation2 + $0x1c] sm:$0xf]  ;;  %v318_v9 = vld [vmem:[%s8909_s11 + $0x80] sm:$0xff]  ;;  %v3937_v14 = vld [vmem:[#allocation2 + $0x2c] sm:$0x1] }
 0x1c2   : > { %7885 = vmatmul.msk.bf16.gmra.mxu3 %vm526_vm3, %v8200_v31  ;;  %v4764_v31 = vsel %vm9062_vm9, %v4762_v22, %v4763_v47  ;;  %v3309_v45 = vunpack.c.l.b16 %v3165_v39  ;;  %v4402_v53 = vunpack.c.l.b16 %v4003_v7  ;;  %v4010_v23 = vrot.slane %v4008_v40, 5 }
 0x1c3   : > { %7913 = vmatmul.msk.bf16.gmra.mxu0 %vm526_vm3, %v2849_v24  ;;  %v3308_v24 = vunpack.c.l.b16 %v3162_v13  ;;  %v4908_v37 = vunpack.c.l.b16 %v4764_v31  ;;  %v4020_v4 = vrot.slane %v4018_v12, 4  ;;  %v3168_v46 = vrot.slane %v3067_v6, 5  ;;  %v3068_v13 = vld [vmem:[#allocation2 + $0x20] sm:$0x1]  ;;  %v319_v31 = vld [vmem:[%s8909_s11 + $0x88] sm:$0xff] }
 0x1c4   : > { %v1861_v36 = vpop.f32.mrf.mxu2  ;;  %v680_v22 = vadd.f32 %v9158_v56, %v318_v9  ;;  %v4767_v12 = vrot.slane %v4666_v52, 5  ;;  %v3171_v35 = vrot.slane %v3068_v13, 5  ;;  %v4665_v56 = vld [vmem:[#allocation2 + $0x24] sm:$0xe]  ;;  %v3938_v6 = vld [vmem:[#allocation2 + $0x30] sm:$0xf] }
 0x1c5   : > { %v1920_v49 = vadd.f32 %v1861_v36, %v1411_v55  ;;  %v2224_v57 = vpop.f32.mrf.mxu3  ;;  %v4007_v55 = vrot.slane %v4005_v54, 4  ;;  %v8207_v36 = vld [vmem:[#allocation2 + $0x18] sm:$0xff]  ;;  %v4021_v28 = vor.u32 %v4020_v4, %v4016_v25  ;;  %v4024_v54 = vshll.u32 %v3937_v14, 16 }
 0x1c6   : > { %v1354_v1 = vpop.f32.mrf.mxu1  ;;  %v3169_v14 = vsel %vm9062_vm9, %v7915_v19, %v3168_v46 }
 0x1c7   : > { %v2283_v63 = vadd.f32 %v2224_v57, %v1920_v49  ;;  %v1412_v29 = vadd.f32 %v1354_v1, %v679_v38  ;;  %v3340_v38 = vpack.c.b16 %v3309_v45, %v3308_v24  ;;  %v4433_v49 = vpack.c.b16 %v4402_v53, %v4401_v18 }
 0x1c8   : > { %v2956_v34 = vpop.f32.mrf.mxu0  ;;  %v4939_v57 = vpack.c.b16 %v4908_v37, %v4907_v48  ;;  %v4022_v18 = vrot.slane %v4021_v28, 4  ;;  %v4026_v53 = vrot.slane %v4024_v54, 5  ;;  %v3939_v48 = vld [vmem:[#allocation2 + $0x34] sm:$0xf]  ;;  %v681_v37 = vadd.f32 %v9178_v27, %v319_v31 }
 0x1c9   : > { %v9557_v8 = vadd.f32 %v2954_v33, %v2283_v63  ;;  %v4011_v33 = vor.u32 %v4010_v23, %v4007_v55  ;;  %v3170_v63 = vrot.slane %v3168_v46, 4  ;;  %v8079_v55 = vrot.slane %v4665_v56, 9 }
 0x1ca   : > { %v4769_v23 = vrot.slane %v4767_v12, 4  ;;  %v4038_v27 = vshll.u32 %v3939_v48, 16 }
 0x1cb   : > { %v4012_v24 = vrot.slane %v4011_v33, 4 }
 0x1cc   : > { %v1863_v32 = vpop.f32.mrf.mxu2  ;;  %v9584_v31 = vrot.slane %v4038_v27, 5 }
 0x1cd   : > { %v1921_v47 = vadd.f32 %v1863_v32, %v1412_v29  ;;  %v2226_v58 = vpop.f32.mrf.mxu3  ;;  %v4667_v29 = vld [vmem:[#allocation2 + $0x2c] sm:$0x1]  ;;  %v4017_v52 = vsel %vm9058_vm8, %v4012_v24, %v4016_v25 }
 0x1ce   : > { %v1357_v39 = vpop.f32.mrf.mxu1  ;;  %v4770_v9 = vrot.slane %v4667_v29, 5  ;;  %v4403_v28 = vunpack.c.l.b16 %v4017_v52 }
 0x1cf   : > { %v2284_v40 = vadd.f32 %v2226_v58, %v1921_v47  ;;  %v1413_v1 = vadd.f32 %v1357_v39, %v680_v22  ;;  %v4029_v22 = vshrl.u32 %v3938_v6, 16  ;;  %v4032_v47 = vshll.u32 %v3938_v6, 16 }
 0x1d0   : > { %v2959_v7 = vpop.f32.mrf.mxu0  ;;  %v4768_v39 = vsel %vm9062_vm9, %v8079_v55, %v4767_v12  ;;  %v4669_v55 = vld [vmem:[#allocation2 + $0x34] sm:$0xf] }
 0x1d1   : > { %7942 = vmatmul.msk.bf16.vlgmr.msra.gmra.mxu1 %vm526_vm3, %v3340_v38  ;;  %8034 = vmatmul.msk.bf16.vlgmr.msra.gmra.mxu2 %vm526_vm3, %v8207_v36  ;;  %v9564_v45 = vadd.f32 %v2956_v34, %v2284_v40  ;;  %v3172_v34 = vsel %vm9062_vm9, %v3170_v63, %v3171_v35  ;;  %v4027_v38 = vsel %vm9058_vm8, %v4022_v18, %v4026_v53  ;;  %v4042_v36 = vshrl.u32 %v3939_v48, 16  ;;  %v3070_v40 = vld [vmem:[#allocation2 + $0x28] sm:$0xf]  ;;  %v320_v35 = vld [vmem:[%s8909_s11 + $0x90] sm:$0xff]  ;;  %v3940_v18 = vld [vmem:[#allocation2 + $0x38] sm:$0x1] }
 0x1d2   : > { %8062 = vmatmul.msk.bf16.vlgmr.msra.gmra.mxu3 %vm526_vm3, %v4433_v49  ;;  %v4771_v49 = vsel %vm9062_vm9, %v4769_v23, %v4770_v9  ;;  %v3311_v25 = vunpack.c.l.b16 %v3172_v34  ;;  %v4404_v54 = vunpack.c.l.b16 %v4027_v38  ;;  %v4034_v19 = vrot.slane %v4032_v47, 5  ;;  %v3069_v53 = vld [vmem:[#allocation2 + $0x24] sm:$0xe] }
 0x1d3   : > { %8106 = vmatmul.msk.bf16.vlgmr.msra.gmra.mxu0 %vm526_vm3, %v4939_v57  ;;  %v3310_v57 = vunpack.c.l.b16 %v3169_v14  ;;  %v4909_v56 = vunpack.c.l.b16 %v4768_v39  ;;  %v4910_v29 = vunpack.c.l.b16 %v4771_v49  ;;  %v4044_v24 = vrot.slane %v4042_v36, 4  ;;  %v3071_v14 = vld [vmem:[#allocation2 + $0x2c] sm:$0x1]  ;;  %v4670_v39 = vld [vmem:[#allocation2 + $0x38] sm:$0x1] }
 0x1d4   : > { %v1866_v4 = vpop.f32.mrf.mxu2  ;;  %v3175_v6 = vrot.slane %v3070_v40, 5  ;;  %v682_v23 = vadd.f32 %v9192_v60, %v320_v35  ;;  %v7916_v27 = vrot.slane %v3069_v53, 9  ;;  %v4774_v36 = vrot.slane %v4669_v55, 5  ;;  %v321_v49 = vld [vmem:[%s8909_s11 + $0x98] sm:$0xff] }
 0x1d5   : > { %v1922_v32 = vadd.f32 %v1866_v4, %v1413_v1  ;;  %v2229_v21 = vpop.f32.mrf.mxu3  ;;  %v4031_v1 = vrot.slane %v4029_v22, 4  ;;  %v8208_v4 = vld [vmem:[#allocation2 + $0x24] sm:$0xff]  ;;  %v4045_v52 = vor.u32 %v4044_v24, %v9584_v31  ;;  %v4048_v22 = vshll.u32 %v3940_v18, 16  ;;  %v3941_v40 = vld [vmem:[#allocation2 + $0x3c] sm:$0xf] }
 0x1d6   : > { %v1359_v58 = vpop.f32.mrf.mxu1  ;;  %v3178_v60 = vrot.slane %v3071_v14, 5  ;;  %v4776_v35 = vrot.slane %v4774_v36, 4  ;;  %v683_v24 = vadd.f32 %v9218_v41, %v321_v49 }
 0x1d7   : > { %v2285_v13 = vadd.f32 %v2229_v21, %v1922_v32  ;;  %v1414_v33 = vadd.f32 %v1359_v58, %v681_v37  ;;  %v3341_v37 = vpack.c.b16 %v3311_v25, %v3310_v57  ;;  %v4434_v32 = vpack.c.b16 %v4404_v54, %v4403_v28 }
 0x1d8   : > { %v2961_v46 = vpop.f32.mrf.mxu0  ;;  %v4940_v21 = vpack.c.b16 %v4910_v29, %v4909_v56  ;;  %v4046_v28 = vrot.slane %v4045_v52, 4  ;;  %v4050_v54 = vrot.slane %v4048_v22, 5  ;;  %v4777_v56 = vrot.slane %v4670_v39, 5  ;;  %v3942_v29 = vld [vmem:[#allocation2 + $0x40] sm:$0xf] }
 0x1d9   : > { %v9581_v63 = vadd.f32 %v2959_v7, %v2285_v13  ;;  %v4035_v7 = vor.u32 %v4034_v19, %v4031_v1  ;;  %v3177_v13 = vrot.slane %v3175_v6, 4  ;;  %v5840_v1 = vld [vmem:[#allocation3] sm:$0xff]  ;;  %v4062_v41 = vshll.u32 %v3942_v29, 16  ;;  %v322_v39 = vld [vmem:[%s8909_s11 + $0xa0] sm:$0xff] }
 0x1da   : > { %5904 = vrot.lane.b32.xlu0 %v5840_v1, %s8753_s4  ;;  %v4066_v14 = vshrl.u32 %v3942_v29, 16  ;;  %v3072_v1 = vld [vmem:[#allocation2 + $0x30] sm:$0xe] }
 0x1db   : > { %v4036_v57 = vrot.slane %v4035_v7, 4 }
 0x1dc   : > { %v1868_v12 = vpop.f32.mrf.mxu2 }
 0x1dd   : > { %v1923_v9 = vadd.f32 %v1868_v12, %v1414_v33  ;;  %v2231_v48 = vpop.f32.mrf.mxu3  ;;  %v4668_v33 = vld [vmem:[#allocation2 + $0x30] sm:$0xe]  ;;  %v3179_v12 = vsel %vm9062_vm9, %v3177_v13, %v3178_v60 }
 0x1de   : > { %v1362_v34 = vpop.f32.mrf.mxu1  ;;  %v8080_v19 = vrot.slane %v4668_v33, 9 }
 0x1df   : > { %v2286_v47 = vadd.f32 %v2231_v48, %v1923_v9  ;;  %v1415_v58 = vadd.f32 %v1362_v34, %v682_v23  ;;  %v4041_v23 = vsel %vm9058_vm8, %v4036_v57, %v9584_v31  ;;  %v4053_v9 = vshrl.u32 %v3941_v40, 16 }
 0x1e0   : > { %v2964_v38 = vpop.f32.mrf.mxu0  ;;  %v4056_v48 = vshll.u32 %v3941_v40, 16  ;;  %v3313_v31 = vunpack.c.l.b16 %v3179_v12  ;;  %v4405_v22 = vunpack.c.l.b16 %v4041_v23 }
 0x1e1   : > { %7943 = vmatmul.msk.bf16.gmra.mxu1 %vm526_vm3, %v3341_v37  ;;  %8035 = vmatmul.msk.bf16.gmra.mxu2 %vm526_vm3, %v8208_v4  ;;  %v9591_v25 = vadd.f32 %v2961_v46, %v2286_v47  ;;  %v3176_v46 = vsel %vm9062_vm9, %v7916_v27, %v3175_v6  ;;  %v4051_v4 = vsel %vm9058_vm8, %v4046_v28, %v4050_v54  ;;  %v5841_v47 = vld [vmem:[#allocation3 + $0x8] sm:$0xff]  ;;  %v3073_v27 = vld [vmem:[#allocation2 + $0x34] sm:$0xf]  ;;  %v4055_v13 = vrot.slane %v4053_v9, 4 }
 0x1e2   : > { %8063 = vmatmul.msk.bf16.gmra.mxu3 %vm526_vm3, %v4434_v32  ;;  %v4775_v32 = vsel %vm9062_vm9, %v8080_v19, %v4774_v36  ;;  %v3312_v52 = vunpack.c.l.b16 %v3176_v46  ;;  %v4058_v60 = vrot.slane %v4056_v48, 5  ;;  %v9613_v28 = vrot.slane %v4062_v41, 5  ;;  %v3943_v36 = vld [vmem:[#allocation2 + $0x44] sm:$0x1]  ;;  %5906 = vrot.lane.b32.xlu0 %v5841_v47, %s8753_s4  ;;  %v3074_v46 = vld [vmem:[#allocation2 + $0x38] sm:$0x1] }
 0x1e3   : > { %8107 = vmatmul.msk.bf16.gmra.mxu0 %vm526_vm3, %v4940_v21  ;;  %v4778_v21 = vsel %vm9062_vm9, %v4776_v35, %v4777_v56  ;;  %v4911_v49 = vunpack.c.l.b16 %v4775_v32  ;;  %v4068_v54 = vrot.slane %v4066_v14, 4  ;;  %v3182_v19 = vrot.slane %v3073_v27, 5  ;;  %v4672_v35 = vld [vmem:[#allocation2 + $0x40] sm:$0xf]  ;;  %v3944_v27 = vld [vmem:[#allocation2 + $0x48] sm:$0xf] }
 0x1e4   : > { %v1871_v18 = vpop.f32.mrf.mxu2  ;;  %v4912_v57 = vunpack.c.l.b16 %v4778_v21  ;;  %v684_v56 = vadd.f32 %v9240_v20, %v322_v39  ;;  %v4059_v12 = vor.u32 %v4058_v60, %v4055_v13  ;;  %v4072_v48 = vshll.u32 %v3943_v36, 16  ;;  %v4673_v21 = vld [vmem:[#allocation2 + $0x44] sm:$0x1]  ;;  %v5844_v13 = vld [vmem:[#allocation3 + $0x20] sm:$0xff]  ;;  %v5842_v60 = vld [vmem:[#allocation3 + $0x10] sm:$0xff] }
 0x1e5   : > { %v1924_v53 = vadd.f32 %v1871_v18, %v1415_v58  ;;  %v2234_v55 = vpop.f32.mrf.mxu3  ;;  %v4406_v58 = vunpack.c.l.b16 %v4051_v4  ;;  %v3342_v18 = vpack.c.b16 %v3313_v31, %v3312_v52  ;;  %v4069_v9 = vor.u32 %v4068_v54, %v9613_v28  ;;  %v323_v52 = vld [vmem:[%s8909_s11 + $0xa8] sm:$0xff]  ;;  %5912 = vrot.lane.b32.xlu2 %v5844_v13, %s8753_s4  ;;  %5908 = vrot.lane.b32.xlu1 %v5842_v60, %s8753_s4  ;;  %v3946_v13 = vld [vmem:[#allocation2 + $0x50] sm:$0x1] }
 0x1e6   : > { %v1364_v37 = vpop.f32.mrf.mxu1  ;;  %v4941_v23 = vpack.c.b16 %v4912_v57, %v4911_v49  ;;  %v7917_v14 = vrot.slane %v3072_v1, 9  ;;  %v3184_v32 = vrot.slane %v3182_v19, 4  ;;  %v3185_v20 = vrot.slane %v3074_v46, 5  ;;  %v3945_v54 = vld [vmem:[#allocation2 + $0x4c] sm:$0xf] }
 0x1e7   : > { %v2287_v7 = vadd.f32 %v2234_v55, %v1924_v53  ;;  %v1416_v6 = vadd.f32 %v1364_v37, %v683_v24  ;;  %v4435_v55 = vpack.c.b16 %v4406_v58, %v4405_v22  ;;  %v4060_v31 = vrot.slane %v4059_v12, 4 }
 0x1e8   : > { %v2966_v34 = vpop.f32.mrf.mxu0  ;;  %v4070_v47 = vrot.slane %v4069_v9, 4  ;;  %v4074_v58 = vrot.slane %v4072_v48, 5  ;;  %v4784_v57 = vrot.slane %v4673_v21, 5  ;;  %v3186_v1 = vsel %vm9062_vm9, %v3184_v32, %v3185_v20  ;;  %v324_v32 = vld [vmem:[%s8909_s11 + $0xb0] sm:$0xff] }
 0x1e9   : > { %v9610_v33 = vadd.f32 %v2964_v38, %v2287_v7  ;;  %v8209_v38 = vld [vmem:[#allocation2 + $0x30] sm:$0xff]  ;;  %v4781_v7 = vrot.slane %v4672_v35, 5  ;;  %v4086_v46 = vshll.u32 %v3945_v54, 16  ;;  %v4090_v12 = vshrl.u32 %v3945_v54, 16 }
 0x1ea   : > { %v3315_v48 = vunpack.c.l.b16 %v3186_v1  ;;  %v686_v60 = vadd.f32 %v9284_v2, %v324_v32 }
 0x1eb   : > { %v4783_v49 = vrot.slane %v4781_v7, 4 }
 0x1ec   : > { %v1873_v40 = vpop.f32.mrf.mxu2 }
 0x1ed   : > { %v1925_v29 = vadd.f32 %v1873_v40, %v1416_v6  ;;  %v2236_v24 = vpop.f32.mrf.mxu3  ;;  %v4671_v6 = vld [vmem:[#allocation2 + $0x3c] sm:$0xe]  ;;  %v3183_v40 = vsel %vm9062_vm9, %v7917_v14, %v3182_v19  ;;  %v4785_v9 = vsel %vm9062_vm9, %v4783_v49, %v4784_v57  ;;  %v5843_v14 = vld [vmem:[#allocation3 + $0x18] sm:$0xff]  ;;  %v4675_v49 = vld [vmem:[#allocation2 + $0x4c] sm:$0xf] }
 0x1ee   : > { %v1367_v53 = vpop.f32.mrf.mxu1  ;;  %v8081_v39 = vrot.slane %v4671_v6, 9  ;;  %5910 = vrot.lane.b32.xlu1 %v5843_v14, %s8753_s4 }
 0x1ef   : > { %v2288_v37 = vadd.f32 %v2236_v24, %v1925_v29  ;;  %v1417_v4 = vadd.f32 %v1367_v53, %v684_v56  ;;  %v4065_v29 = vsel %vm9058_vm8, %v4060_v31, %v9613_v28  ;;  %v4077_v24 = vshrl.u32 %v3944_v27, 16 }
 0x1f0   : > { %v2969_v41 = vpop.f32.mrf.mxu0  ;;  %v3314_v28 = vunpack.c.l.b16 %v3183_v40 }
 0x1f1   : > { %7944 = vmatmul.msk.bf16.gmra.mxu1 %vm526_vm3, %v3342_v18  ;;  %8036 = vmatmul.msk.bf16.gmra.mxu2 %vm526_vm3, %v8209_v38  ;;  %v9621_v22 = vadd.f32 %v2966_v34, %v2288_v37  ;;  %v685_v34 = vadd.f32 %v9270_v11, %v323_v52  ;;  %v4080_v18 = vshll.u32 %v3944_v27, 16  ;;  %v4075_v11 = vsel %vm9058_vm8, %v4070_v47, %v4074_v58  ;;  %v3076_v58 = vld [vmem:[#allocation2 + $0x40] sm:$0xf] }
 0x1f2   : > { %8064 = vmatmul.msk.bf16.gmra.mxu3 %vm526_vm3, %v4435_v55  ;;  %v4407_v37 = vunpack.c.l.b16 %v4065_v29  ;;  %v4408_v20 = vunpack.c.l.b16 %v4075_v11  ;;  %v4079_v6 = vrot.slane %v4077_v24, 4  ;;  %v4914_v47 = vunpack.c.l.b16 %v4785_v9  ;;  %v3075_v29 = vld [vmem:[#allocation2 + $0x3c] sm:$0xe]  ;;  %v3077_v24 = vld [vmem:[#allocation2 + $0x44] sm:$0x1] }
 0x1f3   : > { %8108 = vmatmul.msk.bf16.gmra.mxu0 %vm526_vm3, %v4941_v23  ;;  %v4782_v23 = vsel %vm9062_vm9, %v8081_v39, %v4781_v7  ;;  %v4082_v21 = vrot.slane %v4080_v18, 5  ;;  %v9646_v27 = vrot.slane %v4086_v46, 5  ;;  %v4092_v7 = vrot.slane %v4090_v12, 4 }
 0x1f4   : > { %v1876_v36 = vpop.f32.mrf.mxu2  ;;  %v4913_v31 = vunpack.c.l.b16 %v4782_v23  ;;  %v4788_v12 = vrot.slane %v4675_v49, 5  ;;  %v4676_v23 = vld [vmem:[#allocation2 + $0x50] sm:$0x1]  ;;  %v7918_v9 = vrot.slane %v3075_v29, 9 }
 0x1f5   : > { %v1926_v35 = vadd.f32 %v1876_v36, %v1417_v4  ;;  %v2239_v56 = vpop.f32.mrf.mxu3  ;;  %v5845_v4 = vld [vmem:[#allocation3 + $0x28] sm:$0xff]  ;;  %v3189_v36 = vrot.slane %v3076_v58, 5  ;;  %v4083_v40 = vor.u32 %v4082_v21, %v4079_v6  ;;  %v4093_v18 = vor.u32 %v4092_v7, %v9646_v27  ;;  %v5848_v6 = vld [vmem:[#allocation3 + $0x40] sm:$0xff]  ;;  %v5846_v21 = vld [vmem:[#allocation3 + $0x30] sm:$0xff] }
 0x1f6   : > { %v1369_v38 = vpop.f32.mrf.mxu1  ;;  %5914 = vrot.lane.b32.xlu2 %v5845_v4, %s8753_s4  ;;  %v3947_v4 = vld [vmem:[#allocation2 + $0x54] sm:$0xf]  ;;  %v4791_v58 = vrot.slane %v4676_v23, 5  ;;  %5916 = vrot.lane.b32.xlu0 %v5846_v21, %s8753_s4  ;;  %v4678_v21 = vld [vmem:[#allocation2 + $0x58] sm:$0xf] }
 0x1f7   : > { %v2289_v53 = vadd.f32 %v2239_v56, %v1926_v35  ;;  %v1418_v19 = vadd.f32 %v1369_v38, %v685_v34  ;;  %v8210_v34 = vld [vmem:[#allocation2 + $0x3c] sm:$0xff]  ;;  %v4436_v35 = vpack.c.b16 %v4408_v20, %v4407_v37  ;;  %v4942_v56 = vpack.c.b16 %v4914_v47, %v4913_v31  ;;  %v3948_v20 = vld [vmem:[#allocation2 + $0x58] sm:$0xf]  ;;  %v5851_v23 = vld [vmem:[#allocation3 + $0x58] sm:$0xff] }
 0x1f8   : > { %v9637_v55 = vpop.f32.mrf.mxu0  ;;  %v4096_v38 = vshll.u32 %v3946_v13, 16  ;;  %v4084_v37 = vrot.slane %v4083_v40, 4  ;;  %v4094_v14 = vrot.slane %v4093_v18, 4  ;;  %v4790_v47 = vrot.slane %v4788_v12, 4 }
 0x1f9   : > { %v9644_v52 = vadd.f32 %v2969_v41, %v2289_v53  ;;  %v3343_v41 = vpack.c.b16 %v3315_v48, %v3314_v28  ;;  %v325_v53 = vld [vmem:[%s8909_s11 + $0xb8] sm:$0xff]  ;;  %v3191_v28 = vrot.slane %v3189_v36, 4  ;;  %v3192_v48 = vrot.slane %v3077_v24, 5 }
 0x1fa   : > { %v4098_v32 = vrot.slane %v4096_v38, 5  ;;  %v4101_v13 = vshrl.u32 %v3947_v4, 16  ;;  %v3190_v40 = vsel %vm9062_vm9, %v7918_v9, %v3189_v36  ;;  %v4792_v36 = vsel %vm9062_vm9, %v4790_v47, %v4791_v58  ;;  %v5847_v38 = vld [vmem:[#allocation3 + $0x38] sm:$0xff]  ;;  %v3078_v58 = vld [vmem:[#allocation2 + $0x48] sm:$0xe] }
 0x1fb   : > { %5918 = vrot.lane.b32.xlu1 %v5847_v38, %s8753_s4  ;;  %v3316_v9 = vunpack.c.l.b16 %v3190_v40  ;;  %v4795_v40 = vrot.slane %v4678_v21, 5  ;;  %v3951_v21 = vld [vmem:[#allocation2 + $0x64] sm:$0xf] }
 0x1fc   : > { %v1878_v39 = vpop.f32.mrf.mxu2 }
 0x1fd   : > { %v1927_v57 = vadd.f32 %v1878_v39, %v1418_v19  ;;  %v2241_v54 = vpop.f32.mrf.mxu3  ;;  %v4674_v19 = vld [vmem:[#allocation2 + $0x48] sm:$0xe]  ;;  %v687_v39 = vadd.f32 %v9309_v59, %v325_v53  ;;  %v4103_v53 = vrot.slane %v4101_v13, 4 }
 0x1fe   : > { %v1372_v1 = vpop.f32.mrf.mxu1  ;;  %v8082_v31 = vrot.slane %v4674_v19, 9  ;;  %5920 = vrot.lane.b32.xlu2 %v5848_v6, %s8753_s4  ;;  %v4916_v6 = vunpack.c.l.b16 %v4792_v36  ;;  %v4679_v36 = vld [vmem:[#allocation2 + $0x5c] sm:$0x1] }
 0x1ff   : > { %v9652_v11 = vadd.f32 %v2241_v54, %v1927_v57  ;;  %v1419_v2 = vadd.f32 %v1372_v1, %v686_v60  ;;  %v4104_v60 = vshll.u32 %v3947_v4, 16  ;;  %v4110_v54 = vshll.u32 %v3948_v20, 16 }
 0x200   : > { %v9654_v46 = vpop.f32.mrf.mxu0  ;;  %v3193_v1 = vsel %vm9062_vm9, %v3191_v28, %v3192_v48  ;;  %v4789_v18 = vsel %vm9062_vm9, %v8082_v31, %v4788_v12  ;;  %v3079_v48 = vld [vmem:[#allocation2 + $0x4c] sm:$0xf] }
 0x201   : > { %7945 = vmatmul.msk.bf16.gmra.mxu1 %vm526_vm3, %v3343_v41  ;;  %8037 = vmatmul.msk.bf16.gmra.mxu2 %vm526_vm3, %v8210_v34  ;;  %v4114_v41 = vshrl.u32 %v3948_v20, 16  ;;  %v4106_v19 = vrot.slane %v4104_v60, 5  ;;  %v3317_v28 = vunpack.c.l.b16 %v3193_v1  ;;  %v9683_v4 = vrot.slane %v4110_v54, 5  ;;  %v8211_v54 = vld [vmem:[#allocation2 + $0x48] sm:$0xff] }
 0x202   : > { %8065 = vmatmul.msk.bf16.gmra.mxu3 %vm526_vm3, %v4436_v35  ;;  %v4089_v35 = vsel %vm9058_vm8, %v4084_v37, %v9646_v27  ;;  %v5849_v27 = vld [vmem:[#allocation3 + $0x48] sm:$0xff]  ;;  %v3949_v37 = vld [vmem:[#allocation2 + $0x5c] sm:$0x1]  ;;  %v4915_v20 = vunpack.c.l.b16 %v4789_v18  ;;  %v4677_v18 = vld [vmem:[#allocation2 + $0x54] sm:$0xe] }
 0x203   : > { %8109 = vmatmul.msk.bf16.gmra.mxu0 %vm526_vm3, %v4942_v56  ;;  %v4099_v56 = vsel %vm9058_vm8, %v4094_v14, %v4098_v32  ;;  %v4116_v14 = vrot.slane %v4114_v41, 4  ;;  %v4409_v32 = vunpack.c.l.b16 %v4089_v35  ;;  %5922 = vrot.lane.b32.xlu0 %v5849_v27, %s8753_s4  ;;  %v4107_v13 = vor.u32 %v4106_v19, %v4103_v53  ;;  %v3080_v41 = vld [vmem:[#allocation2 + $0x50] sm:$0x1] }
 0x204   : > { %v1881_v7 = vpop.f32.mrf.mxu2  ;;  %v4410_v12 = vunpack.c.l.b16 %v4099_v56  ;;  %v4120_v60 = vshll.u32 %v3949_v37, 16  ;;  %v4943_v56 = vpack.c.b16 %v4916_v6, %v4915_v20  ;;  %v7919_v53 = vrot.slane %v3078_v58, 9  ;;  %v5852_v20 = vld [vmem:[#allocation3 + $0x60] sm:$0xff]  ;;  %v3950_v6 = vld [vmem:[#allocation2 + $0x60] sm:$0xf] }
 0x205   : > { %v1928_v49 = vadd.f32 %v1881_v7, %v1419_v2  ;;  %v2244_v57 = vpop.f32.mrf.mxu3  ;;  %v326_v2 = vld [vmem:[%s8909_s11 + $0xc0] sm:$0xff]  ;;  %v3196_v7 = vrot.slane %v3079_v48, 5  ;;  %v3199_v19 = vrot.slane %v3080_v41, 5  ;;  %v8083_v48 = vrot.slane %v4677_v18, 9 }
 0x206   : > { %v1374_v34 = vpop.f32.mrf.mxu1  ;;  %5926 = vrot.lane.b32.xlu2 %v5851_v23, %s8753_s4  ;;  %v688_v31 = vadd.f32 %v9164_v61, %v326_v2  ;;  %v4437_v35 = vpack.c.b16 %v4410_v12, %v4409_v32  ;;  %v4108_v23 = vrot.slane %v4107_v13, 4  ;;  %v4122_v27 = vrot.slane %v4120_v60, 5  ;;  %v5854_v32 = vld [vmem:[#allocation3 + $0x70] sm:$0xff] }
 0x207   : > { %v9673_v59 = vadd.f32 %v2244_v57, %v1928_v49  ;;  %v1420_v29 = vadd.f32 %v1374_v34, %v687_v39  ;;  %v3344_v57 = vpack.c.b16 %v3317_v28, %v3316_v9  ;;  %v4117_v34 = vor.u32 %v4116_v14, %v9683_v4  ;;  %v327_v9 = vld [vmem:[%s8909_s11 + $0xc8] sm:$0xff] }
 0x208   : > { %v9675_v24 = vpop.f32.mrf.mxu0  ;;  %v4797_v37 = vrot.slane %v4795_v40, 4  ;;  %v4798_v14 = vrot.slane %v4679_v36, 5  ;;  %v5850_v12 = vld [vmem:[#allocation3 + $0x50] sm:$0xff]  ;;  %v3197_v58 = vsel %vm9062_vm9, %v7919_v53, %v3196_v7  ;;  %v4113_v60 = vsel %vm9058_vm8, %v4108_v23, %v9683_v4  ;;  %v5857_v53 = vld [vmem:[#allocation3 + $0x88] sm:$0xff] }
 0x209   : > { %v4118_v28 = vrot.slane %v4117_v34, 4  ;;  %5924 = vrot.lane.b32.xlu1 %v5850_v12, %s8753_s4  ;;  %v4125_v41 = vshrl.u32 %v3950_v6, 16  ;;  %v4128_v34 = vshll.u32 %v3950_v6, 16  ;;  %v3318_v36 = vunpack.c.l.b16 %v3197_v58  ;;  %v3952_v6 = vld [vmem:[#allocation2 + $0x68] sm:$0x1] }
 0x20a   : > { %v4411_v23 = vunpack.c.l.b16 %v4113_v60  ;;  %v8212_v60 = vld [vmem:[#allocation2 + $0x54] sm:$0xff] }
 0x20b   : > { %5928 = vrot.lane.b32.xlu0 %v5852_v20, %s8753_s4 }
 0x20c   : > { %v1883_v47 = vpop.f32.mrf.mxu2 }
 0x20d   : > { %v1929_v39 = vadd.f32 %v1883_v47, %v1420_v29  ;;  %v2246_v49 = vpop.f32.mrf.mxu3  ;;  %v3198_v29 = vrot.slane %v3196_v7, 4  ;;  %v4799_v7 = vsel %vm9062_vm9, %v4797_v37, %v4798_v14  ;;  %v3082_v37 = vld [vmem:[#allocation2 + $0x58] sm:$0xf]  ;;  %v4127_v14 = vrot.slane %v4125_v41, 4 }
 0x20e   : > { %v1377_v1 = vpop.f32.mrf.mxu1  ;;  %5932 = vrot.lane.b32.xlu2 %v5854_v32, %s8753_s4  ;;  %v4130_v32 = vrot.slane %v4128_v34, 5 }
 0x20f   : > { %v9689_v61 = vadd.f32 %v2246_v49, %v1929_v39  ;;  %v1421_v38 = vadd.f32 %v1377_v1, %v688_v31  ;;  %v689_v31 = vadd.f32 %v9180_v30, %v327_v9  ;;  %v3200_v13 = vsel %vm9062_vm9, %v3198_v29, %v3199_v19  ;;  %v5853_v29 = vld [vmem:[#allocation3 + $0x68] sm:$0xff]  ;;  %v328_v19 = vld [vmem:[%s8909_s11 + $0xd0] sm:$0xff] }
 0x210   : > { %v9691_v2 = vpop.f32.mrf.mxu0  ;;  %v4796_v30 = vsel %vm9062_vm9, %v8083_v48, %v4795_v40  ;;  %v4134_v1 = vshll.u32 %v3951_v21, 16  ;;  %v9721_v40 = vadd.f32 %v9637_v55, %v9652_v11  ;;  %v5855_v48 = vld [vmem:[#allocation3 + $0x78] sm:$0xff]  ;;  %v4131_v41 = vor.u32 %v4130_v32, %v4127_v14 }
 0x211   : > { %7946 = vmatmul.msk.bf16.gmra.mxu1 %vm526_vm3, %v3344_v57  ;;  %8038 = vmatmul.msk.bf16.gmra.mxu2 %vm526_vm3, %v8211_v54  ;;  %v4123_v57 = vsel %vm9058_vm8, %v4118_v28, %v4122_v27  ;;  %v4917_v9 = vunpack.c.l.b16 %v4796_v30  ;;  %v4918_v28 = vunpack.c.l.b16 %v4799_v7 }
 0x212   : > { %8066 = vmatmul.msk.bf16.gmra.mxu3 %vm526_vm3, %v4437_v35  ;;  %v4138_v35 = vshrl.u32 %v3951_v21, 16  ;;  %v4412_v27 = vunpack.c.l.b16 %v4123_v57  ;;  %v9724_v12 = vrot.slane %v4134_v1, 5  ;;  %5930 = vrot.lane.b32.xlu1 %v5853_v29, %s8753_s4  ;;  %v11670_v21 = vld [vmem:[#allocation18_spill] sm:$0xff]  ;;  %v3203_v57 = vrot.slane %v3082_v37, 5 }
 0x213   : > { %8110 = vmatmul.msk.bf16.gmra.mxu0 %vm526_vm3, %v4943_v56  ;;  %v690_v55 = vadd.f32 %v11670_v21, %v328_v19  ;;  %5934 = vrot.lane.b32.xlu0 %v5855_v48, %s8753_s4  ;;  %v4944_v7 = vpack.c.b16 %v4918_v28, %v4917_v9  ;;  %v4144_v1 = vshll.u32 %v3952_v6, 16  ;;  %v3953_v28 = vld [vmem:[#allocation2 + $0x6c] sm:$0xf]  ;;  %v9740_v48 = vadd.f32 %v9654_v46, %v9673_v59  ;;  %v5856_v6 = vld [vmem:[#allocation3 + $0x80] sm:$0xff]  ;;  %v11671_v46 = vld [vmem:[#allocation19_spill] sm:$0xff] }
 0x214   : > { %v1886_v47 = vpop.f32.mrf.mxu2  ;;  %v4140_v20 = vrot.slane %v4138_v35, 4  ;;  %v4132_v37 = vrot.slane %v4131_v41, 4  ;;  %v5858_v21 = vld [vmem:[#allocation3 + $0x90] sm:$0xff] }
 0x215   : > { %v1930_v39 = vadd.f32 %v1886_v47, %v1421_v38  ;;  %v2249_v49 = vpop.f32.mrf.mxu3  ;;  %v3319_v38 = vunpack.c.l.b16 %v3200_v13  ;;  %v4146_v32 = vrot.slane %v4144_v1, 5 }
 0x216   : > { %v1379_v54 = vpop.f32.mrf.mxu1  ;;  %5938 = vrot.lane.b32.xlu2 %v5857_v53, %s8753_s4  ;;  %v4141_v34 = vor.u32 %v4140_v20, %v9724_v12  ;;  %v5860_v20 = vld [vmem:[#allocation3 + $0xa0] sm:$0xff]  ;;  %v4137_v41 = vsel %vm9058_vm8, %v4132_v37, %v9724_v12  ;;  %v5863_v12 = vld [vmem:[#allocation3 + $0xb8] sm:$0xff]  ;;  %v9767_v37 = vadd.f32 %v9675_v24, %v9689_v61 }
 0x217   : > { %v9715_v4 = vadd.f32 %v2249_v49, %v1930_v39  ;;  %v1422_v56 = vadd.f32 %v1379_v54, %v689_v31  ;;  %v4681_v31 = vld [vmem:[#allocation2 + $0x64] sm:$0xf]  ;;  %v3345_v13 = vpack.c.b16 %v3319_v38, %v3318_v36  ;;  %v4438_v39 = vpack.c.b16 %v4412_v27, %v4411_v23  ;;  %v3081_v49 = vld [vmem:[#allocation2 + $0x54] sm:$0xe]  ;;  %v3083_v54 = vld [vmem:[#allocation2 + $0x5c] sm:$0x1] }
 0x218   : > { %v9717_v18 = vpop.f32.mrf.mxu0  ;;  %v7920_v19 = vrot.slane %v3081_v49, 9  ;;  %v4680_v36 = vld [vmem:[#allocation2 + $0x60] sm:$0xe]  ;;  %v4682_v38 = vld [vmem:[#allocation2 + $0x68] sm:$0x1]  ;;  %v329_v23 = vld [vmem:[%s8909_s11 + $0xd8] sm:$0xff] }
 0x219   : > { %v3205_v27 = vrot.slane %v3203_v57, 4  ;;  %v3206_v9 = vrot.slane %v3083_v54, 5  ;;  %v4142_v14 = vrot.slane %v4141_v34, 4  ;;  %v691_v59 = vadd.f32 %v11671_v46, %v329_v23  ;;  %11672 = vst [vmem:[#allocation18_spill] sm:$0xff] %v9767_v37  ;;  %v330_v46 = vld [vmem:[%s8909_s11 + $0xe0] sm:$0xff]  ;;  %v331_v37 = vld [vmem:[%s8909_s11 + $0xe8] sm:$0xff] }
 0x21a   : > { %5936 = vrot.lane.b32.xlu1 %v5856_v6, %s8753_s4  ;;  %v4684_v61 = vld [vmem:[#allocation2 + $0x70] sm:$0xf] }
 0x21b   : > { %5940 = vrot.lane.b32.xlu0 %v5858_v21, %s8753_s4  ;;  %v3207_v49 = vsel %vm9062_vm9, %v3205_v27, %v3206_v9  ;;  %v4147_v34 = vsel %vm9058_vm8, %v4142_v14, %v4146_v32  ;;  %v4413_v14 = vunpack.c.l.b16 %v4137_v41  ;;  %v3086_v41 = vld [vmem:[#allocation2 + $0x68] sm:$0x1] }
 0x21c   : > { %v1888_v11 = vpop.f32.mrf.mxu2  ;;  %v3321_v9 = vunpack.c.l.b16 %v3207_v49  ;;  %v4414_v32 = vunpack.c.l.b16 %v4147_v34 }
 0x21d   : > { %v1931_v47 = vadd.f32 %v1888_v11, %v1422_v56  ;;  %v2251_v58 = vpop.f32.mrf.mxu3  ;;  %v4802_v56 = vrot.slane %v4681_v31, 5  ;;  %v4805_v31 = vrot.slane %v4682_v38, 5 }
 0x21e   : > { %v1382_v30 = vpop.f32.mrf.mxu1  ;;  %5944 = vrot.lane.b32.xlu2 %v5860_v20, %s8753_s4  ;;  %v3085_v20 = vld [vmem:[#allocation2 + $0x64] sm:$0xf] }
 0x21f   : > { %v9731_v35 = vadd.f32 %v2251_v58, %v1931_v47  ;;  %v1423_v53 = vadd.f32 %v1382_v30, %v690_v55  ;;  %v8084_v55 = vrot.slane %v4680_v36, 9  ;;  %v4804_v11 = vrot.slane %v4802_v56, 4  ;;  %v3954_v47 = vld [vmem:[#allocation2 + $0x70] sm:$0xf] }
 0x220   : > { %v9733_v29 = vpop.f32.mrf.mxu0  ;;  %v4149_v30 = vshrl.u32 %v3953_v28, 16  ;;  %v4158_v1 = vshll.u32 %v3954_v47, 16  ;;  %v4162_v36 = vshrl.u32 %v3954_v47, 16  ;;  %v5861_v47 = vld [vmem:[#allocation3 + $0xa8] sm:$0xff]  ;;  %v3210_v24 = vrot.slane %v3085_v20, 5 }
 0x221   : > { %7947 = vmatmul.msk.bf16.gmra.mxu1 %vm526_vm3, %v3345_v13  ;;  %8039 = vmatmul.msk.bf16.gmra.mxu2 %vm526_vm3, %v8212_v60  ;;  %v3204_v13 = vsel %vm9062_vm9, %v7920_v19, %v3203_v57  ;;  %v4803_v38 = vsel %vm9062_vm9, %v8084_v55, %v4802_v56  ;;  %v4806_v23 = vsel %vm9062_vm9, %v4804_v11, %v4805_v31  ;;  %v3955_v31 = vld [vmem:[#allocation2 + $0x74] sm:$0x1] }
 0x222   : > { %8067 = vmatmul.msk.bf16.gmra.mxu3 %vm526_vm3, %v4438_v39  ;;  %v3320_v27 = vunpack.c.l.b16 %v3204_v13  ;;  %v4151_v6 = vrot.slane %v4149_v30, 4  ;;  %v4920_v56 = vunpack.c.l.b16 %v4806_v23  ;;  %v9770_v55 = vrot.slane %v4158_v1, 5  ;;  %v11673_v13 = vld [vmem:[#allocation20_spill] sm:$0xff] }
 0x223   : > { %8111 = vmatmul.msk.bf16.gmra.mxu0 %vm526_vm3, %v4944_v7  ;;  %v4152_v7 = vshll.u32 %v3953_v28, 16  ;;  %v5859_v28 = vld [vmem:[#allocation3 + $0x98] sm:$0xff]  ;;  %v4164_v11 = vrot.slane %v4162_v36, 4  ;;  %5946 = vrot.lane.b32.xlu0 %v5861_v47, %s8753_s4  ;;  %v4439_v36 = vpack.c.b16 %v4414_v32, %v4413_v14  ;;  %v3956_v32 = vld [vmem:[#allocation2 + $0x78] sm:$0xf] }
 0x224   : > { %v1891_v58 = vpop.f32.mrf.mxu2  ;;  %5942 = vrot.lane.b32.xlu1 %v5859_v28, %s8753_s4  ;;  %v3346_v30 = vpack.c.b16 %v3321_v9, %v3320_v27  ;;  %v3212_v27 = vrot.slane %v3210_v24, 4  ;;  %v3213_v9 = vrot.slane %v3086_v41, 5  ;;  %v4173_v41 = vshrl.u32 %v3956_v32, 16 }
 0x225   : > { %v1932_v60 = vadd.f32 %v1891_v58, %v1423_v53  ;;  %v2254_v39 = vpop.f32.mrf.mxu3  ;;  %v4154_v21 = vrot.slane %v4152_v7, 5  ;;  %v8213_v7 = vld [vmem:[#allocation2 + $0x60] sm:$0xff]  ;;  %v4165_v23 = vor.u32 %v4164_v11, %v9770_v55 }
 0x226   : > { %v1384_v54 = vpop.f32.mrf.mxu1  ;;  %5950 = vrot.lane.b32.xlu2 %v5863_v12, %s8753_s4  ;;  %v4168_v12 = vshll.u32 %v3955_v31, 16  ;;  %v5866_v31 = vld [vmem:[#allocation3 + $0xd0] sm:$0xff] }
 0x227   : > { %v9757_v57 = vadd.f32 %v2254_v39, %v1932_v60  ;;  %v1424_v53 = vadd.f32 %v1384_v54, %v691_v59  ;;  %v4919_v59 = vunpack.c.l.b16 %v4803_v38  ;;  %v692_v60 = vadd.f32 %v11673_v13, %v330_v46  ;;  %v3084_v54 = vld [vmem:[#allocation2 + $0x60] sm:$0xe]  ;;  %v4683_v46 = vld [vmem:[#allocation2 + $0x6c] sm:$0xe]  ;;  %v4685_v13 = vld [vmem:[#allocation2 + $0x74] sm:$0x1] }
 0x228   : > { %v9759_v19 = vpop.f32.mrf.mxu0  ;;  %v4155_v34 = vor.u32 %v4154_v21, %v4151_v6  ;;  %v3957_v6 = vld [vmem:[#allocation2 + $0x7c] sm:$0xf]  ;;  %v9786_v21 = vadd.f32 %v9691_v2, %v9715_v4  ;;  %v8085_v11 = vrot.slane %v4683_v46, 9 }
 0x229   : > { %v4945_v38 = vpack.c.b16 %v4920_v56, %v4919_v59  ;;  %v4166_v59 = vrot.slane %v4165_v23, 4  ;;  %v4170_v56 = vrot.slane %v4168_v12, 5  ;;  %v4186_v23 = vshrl.u32 %v3957_v6, 16 }
 0x22a   : > { %v4156_v14 = vrot.slane %v4155_v34, 4 }
 0x22c   : > { %v1893_v58 = vpop.f32.mrf.mxu2 }
 0x22d   : > { %v1933_v39 = vadd.f32 %v1893_v58, %v1424_v53  ;;  %v2256_v49 = vpop.f32.mrf.mxu3  ;;  %v4809_v53 = vrot.slane %v4684_v61, 5  ;;  %v7921_v58 = vrot.slane %v3084_v54, 9  ;;  %v5862_v61 = vld [vmem:[#allocation3 + $0xb0] sm:$0xff]  ;;  %v3214_v54 = vsel %vm9062_vm9, %v3212_v27, %v3213_v9 }
 0x22e   : > { %v1387_v1 = vpop.f32.mrf.mxu1  ;;  %5956 = vrot.lane.b32.xlu2 %v5866_v31, %s8753_s4  ;;  %5948 = vrot.lane.b32.xlu1 %v5862_v61, %s8753_s4 }
 0x22f   : > { %v9777_v28 = vadd.f32 %v2256_v49, %v1933_v39  ;;  %v1425_v20 = vadd.f32 %v1387_v1, %v692_v60  ;;  %v5864_v60 = vld [vmem:[#allocation3 + $0xc0] sm:$0xff]  ;;  %v4811_v39 = vrot.slane %v4809_v53, 4  ;;  %v4812_v49 = vrot.slane %v4685_v13, 5 }
 0x230   : > { %v9779_v47 = vpop.f32.mrf.mxu0  ;;  %v3211_v4 = vsel %vm9062_vm9, %v7921_v58, %v3210_v24  ;;  %5952 = vrot.lane.b32.xlu0 %v5864_v60, %s8753_s4  ;;  %v4171_v24 = vsel %vm9058_vm8, %v4166_v59, %v4170_v56  ;;  %v4810_v46 = vsel %vm9062_vm9, %v8085_v11, %v4809_v53  ;;  %v9813_v13 = vadd.f32 %v9717_v18, %v9731_v35  ;;  %v3958_v59 = vld [vmem:[#allocation2 + $0x80] sm:$0x1]  ;;  %v11676_v18 = vld [vmem:[#allocation22_spill] sm:$0xff] }
 0x231   : > { %7948 = vmatmul.msk.bf16.gmra.mxu1 %vm526_vm3, %v3346_v30  ;;  %8040 = vmatmul.msk.bf16.gmra.mxu2 %vm526_vm3, %v8213_v7  ;;  %v11674_v30 = vld [vmem:[#allocation21_spill] sm:$0xff]  ;;  %v4175_v56 = vrot.slane %v4173_v41, 4  ;;  %v4188_v11 = vrot.slane %v4186_v23, 4  ;;  %v4416_v60 = vunpack.c.l.b16 %v4171_v24  ;;  %v3087_v23 = vld [vmem:[#allocation2 + $0x6c] sm:$0xe] }
 0x232   : > { %8068 = vmatmul.msk.bf16.gmra.mxu3 %vm526_vm3, %v4439_v36  ;;  %v693_v7 = vadd.f32 %v11674_v30, %v331_v37  ;;  %v4176_v36 = vshll.u32 %v3956_v32, 16  ;;  %v4161_v37 = vsel %vm9058_vm8, %v4156_v14, %v9770_v55  ;;  %11675 = vst [vmem:[#allocation19_spill] sm:$0xff] %v9813_v13  ;;  %v332_v32 = vld [vmem:[%s8909_s11 + $0xf0] sm:$0xff]  ;;  %v3322_v55 = vunpack.c.l.b16 %v3211_v4  ;;  %v4686_v13 = vld [vmem:[#allocation2 + $0x78] sm:$0xe] }
 0x233   : > { %8112 = vmatmul.msk.bf16.gmra.mxu0 %vm526_vm3, %v4945_v38  ;;  %v4182_v38 = vshll.u32 %v3957_v6, 16  ;;  %v3323_v14 = vunpack.c.l.b16 %v3214_v54  ;;  %v3088_v6 = vld [vmem:[#allocation2 + $0x70] sm:$0xf]  ;;  %v4415_v61 = vunpack.c.l.b16 %v4161_v37  ;;  %v4921_v30 = vunpack.c.l.b16 %v4810_v46 }
 0x234   : > { %v1896_v2 = vpop.f32.mrf.mxu2  ;;  %v4178_v31 = vrot.slane %v4176_v36, 5  ;;  %v694_v35 = vadd.f32 %v11676_v18, %v332_v32  ;;  %v3217_v41 = vrot.slane %v3088_v6, 5  ;;  %v4192_v46 = vshll.u32 %v3958_v59, 16 }
 0x235   : > { %v1934_v34 = vadd.f32 %v1896_v2, %v1425_v20  ;;  %v2259_v1 = vpop.f32.mrf.mxu3  ;;  %v4813_v20 = vsel %vm9062_vm9, %v4811_v39, %v4812_v49  ;;  %v9816_v53 = vrot.slane %v4182_v38, 5  ;;  %v5869_v2 = vld [vmem:[#allocation3 + $0xe8] sm:$0xff]  ;;  %v5867_v49 = vld [vmem:[#allocation3 + $0xd8] sm:$0xff]  ;;  %v3347_v54 = vpack.c.b16 %v3323_v14, %v3322_v55 }
 0x236   : > { %v1389_v12 = vpop.f32.mrf.mxu1  ;;  %v5865_v39 = vld [vmem:[#allocation3 + $0xc8] sm:$0xff]  ;;  %5962 = vrot.lane.b32.xlu2 %v5869_v2, %s8753_s4  ;;  %v8214_v38 = vld [vmem:[#allocation2 + $0x6c] sm:$0xff]  ;;  %v4179_v37 = vor.u32 %v4178_v31, %v4175_v56  ;;  %v4440_v2 = vpack.c.b16 %v4416_v60, %v4415_v61  ;;  %v9829_v6 = vadd.f32 %v9733_v29, %v9757_v57  ;;  %v7922_v56 = vrot.slane %v3087_v23, 9  ;;  %v3960_v57 = vld [vmem:[#allocation2 + $0x88] sm:$0xf] }
 0x237   : > { %v9805_v58 = vadd.f32 %v2259_v1, %v1934_v34  ;;  %v1426_v27 = vadd.f32 %v1389_v12, %v693_v7  ;;  %v4922_v7 = vunpack.c.l.b16 %v4813_v20  ;;  %v4687_v34 = vld [vmem:[#allocation2 + $0x7c] sm:$0xf]  ;;  %5954 = vrot.lane.b32.xlu1 %v5865_v39, %s8753_s4  ;;  %v3089_v12 = vld [vmem:[#allocation2 + $0x74] sm:$0x1]  ;;  %v4189_v24 = vor.u32 %v4188_v11, %v9816_v53  ;;  %v3959_v29 = vld [vmem:[#allocation2 + $0x84] sm:$0xf] }
 0x238   : > { %v9807_v9 = vpop.f32.mrf.mxu0  ;;  %5958 = vrot.lane.b32.xlu0 %v5867_v49, %s8753_s4  ;;  %v4816_v32 = vrot.slane %v4687_v34, 5  ;;  %v3219_v31 = vrot.slane %v3217_v41, 4  ;;  %v3220_v49 = vrot.slane %v3089_v12, 5  ;;  %v333_v11 = vld [vmem:[%s8909_s11 + $0xf8] sm:$0xff]  ;;  %v4180_v59 = vrot.slane %v4179_v37, 4  ;;  %s8754_s11 = smov 96  }
 0x239   : > { %v4946_v39 = vpack.c.b16 %v4922_v7, %v4921_v30  ;;  %v4190_v61 = vrot.slane %v4189_v24, 4  ;;  %v4194_v60 = vrot.slane %v4192_v46, 5  ;;  %v8086_v30 = vrot.slane %v4686_v13, 9 }
 0x23a   : > { %v4818_v7 = vrot.slane %v4816_v32, 4  ;;  %v4185_v13 = vsel %vm9058_vm8, %v4180_v59, %v9816_v53  ;;  %v9856_v53 = vadd.f32 %v9759_v19, %v9777_v28  ;;  %v5868_v59 = vld [vmem:[#allocation3 + $0xe0] sm:$0xff]  ;;  %v3961_v28 = vld [vmem:[#allocation2 + $0x8c] sm:$0x1] }
 0x23b   : > { %v4195_v12 = vsel %vm9058_vm8, %v4190_v61, %v4194_v60  ;;  %v4817_v37 = vsel %vm9062_vm9, %v8086_v30, %v4816_v32  ;;  %v4417_v32 = vunpack.c.l.b16 %v4185_v13  ;;  %v5870_v61 = vld [vmem:[#allocation3 + $0xf0] sm:$0xff] }
 0x23c   : > { %v1898_v4 = vpop.f32.mrf.mxu2  ;;  %v4923_v60 = vunpack.c.l.b16 %v4817_v37  ;;  %v3090_v37 = vld [vmem:[#allocation2 + $0x78] sm:$0xe] }
 0x23d   : > { %v1935_v1 = vadd.f32 %v1898_v4, %v1426_v27  ;;  %v2261_v36 = vpop.f32.mrf.mxu3  ;;  %v4688_v27 = vld [vmem:[#allocation2 + $0x80] sm:$0x1] }
 0x23e   : > { %v1392_v20 = vpop.f32.mrf.mxu1  ;;  %v4819_v34 = vrot.slane %v4688_v27, 5 }
 0x23f   : > { %v9823_v18 = vadd.f32 %v2261_v36, %v1935_v1  ;;  %v1427_v55 = vadd.f32 %v1392_v20, %v694_v35  ;;  %v11677_v35 = vld [vmem:[#allocation23_spill] sm:$0xff]  ;;  %v3221_v36 = vsel %vm9062_vm9, %v3219_v31, %v3220_v49  ;;  %v4200_v20 = vshll.u32 %v3959_v29, 16  ;;  %5960 = vrot.lane.b32.xlu1 %v5868_v59, %s8753_s4 }
 0x240   : > { %v9825_v14 = vpop.f32.mrf.mxu0  ;;  %v695_v4 = vadd.f32 %v11677_v35, %v333_v11  ;;  %v4820_v46 = vsel %vm9062_vm9, %v4818_v7, %v4819_v34  ;;  %v3325_v49 = vunpack.c.l.b16 %v3221_v36  ;;  %v4418_v11 = vunpack.c.l.b16 %v4195_v12  ;;  %5964 = vrot.lane.b32.xlu0 %v5870_v61, %s8753_s4  ;;  %v8215_v36 = vld [vmem:[#allocation2 + $0x78] sm:$0xff]  ;;  %v3092_v59 = vld [vmem:[#allocation2 + $0x80] sm:$0x1]  ;;  %v5871_v61 = vld [vmem:[#allocation3 + $0xf8] sm:$0xff] }
 0x241   : > { %7949 = vmatmul.msk.bf16.gmra.mxu1 %vm526_vm3, %v3347_v54  ;;  %8041 = vmatmul.msk.bf16.gmra.mxu2 %vm526_vm3, %v8214_v38  ;;  %v3218_v54 = vsel %vm9062_vm9, %v7922_v56, %v3217_v41  ;;  %v4197_v41 = vshrl.u32 %v3959_v29, 16  ;;  %v4210_v56 = vshrl.u32 %v3960_v57, 16  ;;  %v4924_v30 = vunpack.c.l.b16 %v4820_v46  ;;  %v3091_v29 = vld [vmem:[#allocation2 + $0x7c] sm:$0xf] }
 0x242   : > { %8069 = vmatmul.msk.bf16.gmra.mxu3 %vm526_vm3, %v4440_v2  ;;  %v4206_v2 = vshll.u32 %v3960_v57, 16  ;;  %v3324_v31 = vunpack.c.l.b16 %v3218_v54  ;;  %v4202_v34 = vrot.slane %v4200_v20, 5  ;;  %v4441_v13 = vpack.c.b16 %v4418_v11, %v4417_v32  ;;  %v4689_v32 = vld [vmem:[#allocation2 + $0x84] sm:$0xe]  ;;  %v4691_v11 = vld [vmem:[#allocation2 + $0x8c] sm:$0x1] }
 0x243   : > { %8113 = vmatmul.msk.bf16.gmra.mxu0 %vm526_vm3, %v4946_v39  ;;  %v4199_v7 = vrot.slane %v4197_v41, 4  ;;  %v4212_v35 = vrot.slane %v4210_v56, 4  ;;  %v4947_v12 = vpack.c.b16 %v4924_v30, %v4923_v60  ;;  %v4216_v56 = vshll.u32 %v3961_v28, 16 }
 0x244   : > { %v1901_v1 = vpop.f32.mrf.mxu2  ;;  %v9860_v57 = vrot.slane %v4206_v2, 5  ;;  %v3348_v54 = vpack.c.b16 %v3325_v49, %v3324_v31  ;;  %v7923_v49 = vrot.slane %v3090_v37, 9  ;;  %v3227_v30 = vrot.slane %v3092_v59, 5 }
 0x245   : > { %v1936_v38 = vadd.f32 %v1901_v1, %v1427_v55  ;;  %v2264_v23 = vpop.f32.mrf.mxu3  ;;  %v4203_v46 = vor.u32 %v4202_v34, %v4199_v7  ;;  %v3962_v7 = vld [vmem:[#allocation2 + $0x90] sm:$0xf]  ;;  %v11679_v34 = vld [vmem:[#allocation24_spill] sm:$0xff] }
 0x246   : > { %v1394_v24 = vpop.f32.mrf.mxu1  ;;  %v4213_v2 = vor.u32 %v4212_v35, %v9860_v57  ;;  %v4218_v35 = vrot.slane %v4216_v56, 5  ;;  %v4224_v37 = vshll.u32 %v3962_v7, 16 }
 0x247   : > { %v9850_v39 = vadd.f32 %v2264_v23, %v1936_v38  ;;  %v1428_v55 = vadd.f32 %v1394_v24, %v695_v4  ;;  %v4690_v38 = vld [vmem:[#allocation2 + $0x88] sm:$0xf]  ;;  %v3224_v24 = vrot.slane %v3091_v29, 5  ;;  %5966 = vrot.lane.b32.xlu1 %v5871_v61, %s8753_s4 }
 0x248   : > { %v9852_v27 = vpop.f32.mrf.mxu0  ;;  %v4823_v31 = vrot.slane %v4690_v38, 5 }
 0x249   : > { %v3226_v60 = vrot.slane %v3224_v24, 4 }
 0x24c   : > { %v1903_v19 = vpop.f32.mrf.mxu2 }
 0x24d   : > { %v1937_v4 = vadd.f32 %v1903_v19, %v1428_v55  ;;  %v2266_v1 = vpop.f32.mrf.mxu3  ;;  %v9867_v55 = vadd.f32 %v9779_v47, %v9805_v58  ;;  %v4204_v47 = vrot.slane %v4203_v46, 4  ;;  %v4214_v58 = vrot.slane %v4213_v2, 4  ;;  %v3963_v19 = vld [vmem:[#allocation2 + $0x94] sm:$0xf] }
 0x24e   : > { %v3425_v23 = vpop.f32.mrf.mxu1  ;;  %v4230_v46 = vshll.u32 %v3963_v19, 16  ;;  %v4234_v2 = vshrl.u32 %v3963_v19, 16  ;;  %v4226_v19 = vrot.slane %v4224_v37, 5  ;;  %v3093_v37 = vld [vmem:[#allocation2 + $0x84] sm:$0xe] }
 0x24f   : > { %v9862_v41 = vadd.f32 %v2266_v1, %v1937_v4  ;;  %11678 = vst [vmem:[#allocation20_spill] sm:$0xff] %v9867_v55  ;;  %v3505_v29 = vadd.f32 %v3425_v23, %v11679_v34  ;;  %v8087_v4 = vrot.slane %v4689_v32, 9  ;;  %v4825_v1 = vrot.slane %v4823_v31, 4 }
 0x250   : > { %v5024_v20 = vpop.f32.mrf.mxu0  ;;  %v3228_v23 = vsel %vm9062_vm9, %v3226_v60, %v3227_v30  ;;  %v4209_v32 = vsel %vm9058_vm8, %v4204_v47, %v9860_v57 }
 0x251   : > { %7950 = vmatmul.msk.bf16.gmra.mxu1 %vm526_vm3, %v3348_v54  ;;  %8042 = vmatmul.msk.bf16.gmra.mxu2 %vm526_vm3, %v8215_v36  ;;  %v4826_v54 = vrot.slane %v4691_v11, 5  ;;  %v4219_v11 = vsel %vm9058_vm8, %v4214_v58, %v4218_v35  ;;  %v3327_v34 = vunpack.c.l.b16 %v3228_v23  ;;  %v4419_v57 = vunpack.c.l.b16 %v4209_v32 }
 0x252   : > { %8070 = vmatmul.msk.bf16.gmra.mxu3 %vm526_vm3, %v4441_v13  ;;  %v3225_v13 = vsel %vm9062_vm9, %v7923_v49, %v3224_v24  ;;  %v9886_v24 = vadd.f32 %v9807_v9, %v9823_v18  ;;  %v4420_v47 = vunpack.c.l.b16 %v4219_v11  ;;  %v9894_v58 = vrot.slane %v4230_v46, 5  ;;  %v11681_v9 = vld [vmem:[#allocation25_spill] sm:$0xff]  ;;  %v3095_v11 = vld [vmem:[#allocation2 + $0x8c] sm:$0x1] }
 0x253   : > { %8114 = vmatmul.msk.bf16.gmra.mxu0 %vm526_vm3, %v4947_v12  ;;  %v4221_v12 = vshrl.u32 %v3962_v7, 16  ;;  %v3326_v49 = vunpack.c.l.b16 %v3225_v13  ;;  %v4824_v7 = vsel %vm9062_vm9, %v8087_v4, %v4823_v31  ;;  %v4827_v60 = vsel %vm9062_vm9, %v4825_v1, %v4826_v54  ;;  %v3964_v4 = vld [vmem:[#allocation2 + $0x98] sm:$0x1]  ;;  %v4693_v1 = vld [vmem:[#allocation2 + $0x94] sm:$0xf] }
 0x254   : > { %v3788_v28 = vpop.f32.mrf.mxu2  ;;  %11680 = vst [vmem:[#allocation21_spill] sm:$0xff] %v9886_v24  ;;  %v4236_v35 = vrot.slane %v4234_v2, 4  ;;  %v4926_v31 = vunpack.c.l.b16 %v4827_v60  ;;  %v4442_v46 = vpack.c.b16 %v4420_v47, %v4419_v57  ;;  %v4240_v24 = vshll.u32 %v3964_v4, 16  ;;  %v4692_v60 = vld [vmem:[#allocation2 + $0x90] sm:$0xe] }
 0x255   : > { %v3868_v36 = vadd.f32 %v3788_v28, %v3505_v29  ;;  %v4518_v38 = vpop.f32.mrf.mxu3  ;;  %v4223_v29 = vrot.slane %v4221_v12, 4  ;;  %v3094_v28 = vld [vmem:[#allocation2 + $0x88] sm:$0xf]  ;;  %v3349_v13 = vpack.c.b16 %v3327_v34, %v3326_v49  ;;  %v7924_v49 = vrot.slane %v3093_v37, 9  ;;  %v4694_v34 = vld [vmem:[#allocation2 + $0x98] sm:$0x1] }
 0x256   : > { %v3427_v59 = vpop.f32.mrf.mxu1  ;;  %v8216_v12 = vld [vmem:[#allocation2 + $0x84] sm:$0xff]  ;;  %v3231_v23 = vrot.slane %v3094_v28, 5  ;;  %v4237_v2 = vor.u32 %v4236_v35, %v9894_v58  ;;  %v4242_v35 = vrot.slane %v4240_v24, 5  ;;  %v3966_v4 = vld [vmem:[#allocation2 + $0xa0] sm:$0xf] }
 0x257   : > { %v4598_v56 = vadd.f32 %v4518_v38, %v3868_v36  ;;  %v3506_v18 = vadd.f32 %v3427_v59, %v11681_v9  ;;  %v4925_v36 = vunpack.c.l.b16 %v4824_v7  ;;  %v4830_v9 = vrot.slane %v4693_v1, 5 }
 0x258   : > { %v5026_v61 = vpop.f32.mrf.mxu0  ;;  %v4238_v47 = vrot.slane %v4237_v2, 4  ;;  %v4254_v2 = vshll.u32 %v3966_v4, 16 }
 0x259   : > { %v9892_v30 = vadd.f32 %v5024_v20, %v4598_v56  ;;  %v4227_v56 = vor.u32 %v4226_v19, %v4223_v29  ;;  %v4948_v7 = vpack.c.b16 %v4926_v31, %v4925_v36  ;;  %v3233_v29 = vrot.slane %v3231_v23, 4  ;;  %v3965_v36 = vld [vmem:[#allocation2 + $0x9c] sm:$0xf] }
 0x25a   : > { %v3234_v19 = vrot.slane %v3095_v11, 5 }
 0x25b   : > { %8343 = vtanh.f32 %v9892_v30  ;;  %v4228_v57 = vrot.slane %v4227_v56, 4  ;;  %v4245_v56 = vshrl.u32 %v3965_v36, 16 }
 0x25c   : > { %v3790_v38 = vpop.f32.mrf.mxu2  ;;  %v3235_v24 = vsel %vm9062_vm9, %v3233_v29, %v3234_v19 }
 0x25d   : > { %v3869_v20 = vadd.f32 %v3790_v38, %v3506_v18  ;;  %v4520_v54 = vpop.f32.mrf.mxu3  ;;  %v9901_v18 = vadd.f32 %v9825_v14, %v9850_v39  ;;  %v8088_v14 = vrot.slane %v4692_v60, 9 }
 0x25e   : > { %v3430_v32 = vpop.f32.mrf.mxu1 }
 0x25f   : > { %v4599_v55 = vadd.f32 %v4520_v54, %v3869_v20  ;;  %v3507_v39 = vadd.f32 %v3430_v32, %v9382_v51  ;;  %v3232_v54 = vsel %vm9062_vm9, %v7924_v49, %v3231_v23  ;;  %v4831_v37 = vsel %vm9062_vm9, %v8088_v14, %v4830_v9 }
 0x260   : > { %v5029_v59 = vpop.f32.mrf.mxu0  ;;  %v4248_v32 = vshll.u32 %v3965_v36, 16  ;;  %v3328_v60 = vunpack.c.l.b16 %v3232_v54  ;;  %v3329_v49 = vunpack.c.l.b16 %v3235_v24  ;;  %v4927_v19 = vunpack.c.l.b16 %v4831_v37  ;;  %v3967_v36 = vld [vmem:[#allocation2 + $0xa4] sm:$0x1]  ;;  %v4696_v54 = vld [vmem:[#allocation2 + $0xa0] sm:$0xf] }
 0x261   : > { %v8344_v38 = vpop.eup %8343  ;;  %v9903_v28 = vadd.f32 %v5026_v61, %v4599_v55  ;;  %7951 = vmatmul.msk.bf16.gmra.mxu1 %vm526_vm3, %v3349_v13  ;;  %8043 = vmatmul.msk.bf16.gmra.mxu2 %vm526_vm3, %v8216_v12  ;;  %v4832_v55 = vrot.slane %v4830_v9, 4  ;;  %v4833_v61 = vrot.slane %v4694_v34, 5  ;;  %v4233_v13 = vsel %vm9058_vm8, %v4228_v57, %v9894_v58 }
 0x262   : > { %8071 = vmatmul.msk.bf16.gmra.mxu3 %vm526_vm3, %v4442_v46  ;;  %6064 = vrot.lane.b32.xlu2 %v8344_v38, %s8753_s4  ;;  %v4243_v12 = vsel %vm9058_vm8, %v4238_v47, %v4242_v35  ;;  %v4421_v38 = vunpack.c.l.b16 %v4233_v13  ;;  %v4247_v57 = vrot.slane %v4245_v56, 4  ;;  %v4250_v47 = vrot.slane %v4248_v32, 5 }
 0x263   : > { %8345 = vtanh.f32 %v9903_v28  ;;  %8115 = vmatmul.msk.bf16.gmra.mxu0 %vm526_vm3, %v4948_v7  ;;  %v4834_v23 = vsel %vm9062_vm9, %v4832_v55, %v4833_v61  ;;  %v4258_v7 = vshrl.u32 %v3966_v4, 16  ;;  %v4422_v29 = vunpack.c.l.b16 %v4243_v12  ;;  %v3096_v12 = vld [vmem:[#allocation2 + $0x90] sm:$0xe] }
 0x264   : > { %v3793_v31 = vpop.f32.mrf.mxu2  ;;  %v4928_v9 = vunpack.c.l.b16 %v4834_v23  ;;  %v9930_v35 = vadd.f32 %v9852_v27, %v9862_v41  ;;  %v9934_v55 = vrot.slane %v4254_v2, 5  ;;  %v4251_v41 = vor.u32 %v4250_v47, %v4247_v57 }
 0x265   : > { %v3870_v1 = vadd.f32 %v3793_v31, %v3507_v39  ;;  %v4523_v20 = vpop.f32.mrf.mxu3  ;;  %v3097_v39 = vld [vmem:[#allocation2 + $0x94] sm:$0xf]  ;;  %v4443_v13 = vpack.c.b16 %v4422_v29, %v4421_v38  ;;  %v4837_v23 = vrot.slane %v4696_v54, 5  ;;  %v4695_v38 = vld [vmem:[#allocation2 + $0x9c] sm:$0xe] }
 0x266   : > { %v3432_v51 = vpop.f32.mrf.mxu1  ;;  %11682 = vst [vmem:[#allocation22_spill] sm:$0xff] %v9930_v35  ;;  %v3238_v27 = vrot.slane %v3097_v39, 5  ;;  %v4949_v32 = vpack.c.b16 %v4928_v9, %v4927_v19  ;;  %v4697_v29 = vld [vmem:[#allocation2 + $0xa4] sm:$0x1]  ;;  %v4252_v57 = vrot.slane %v4251_v41, 4 }
 0x267   : > { %v4600_v46 = vadd.f32 %v4523_v20, %v3870_v1  ;;  %v3508_v14 = vadd.f32 %v3432_v51, %v9384_v50  ;;  %v3350_v1 = vpack.c.b16 %v3329_v49, %v3328_v60  ;;  %v8217_v20 = vld [vmem:[#allocation2 + $0x90] sm:$0xff]  ;;  %v3098_v50 = vld [vmem:[#allocation2 + $0x98] sm:$0x1]  ;;  %v9943_v60 = vpop.permute.xlu0 %5904  ;;  %v7925_v49 = vrot.slane %v3096_v12, 9  ;;  %v3968_v39 = vld [vmem:[#allocation2 + $0xa8] sm:$0xf] }
 0x268   : > { %v5031_v11 = vpop.f32.mrf.mxu0  ;;  %v3240_v19 = vrot.slane %v3238_v27, 4  ;;  %v3241_v9 = vrot.slane %v3098_v50, 5  ;;  %v3969_v54 = vld [vmem:[#allocation2 + $0xac] sm:$0xf]  ;;  %v4272_v41 = vshll.u32 %v3968_v39, 16 }
 0x269   : > { %v8346_v34 = vpop.eup %8345  ;;  %v9925_v58 = vadd.f32 %v5029_v59, %v4600_v46  ;;  %v4260_v59 = vrot.slane %v4258_v7, 4  ;;  %v4264_v46 = vshll.u32 %v3967_v36, 16  ;;  %v9937_v7 = vpop.permute.xlu2 %5912  ;;  %v4839_v36 = vrot.slane %v4837_v23, 4 }
 0x26a   : > { %6066 = vrot.lane.b32.xlu0 %v8346_v34, %s8753_s4  ;;  %11683 = vst [vmem:[#allocation23_spill] sm:$0xff] %v9937_v7  ;;  %v3242_v12 = vsel %vm9062_vm9, %v3240_v19, %v3241_v9  ;;  %v9965_v19 = vpop.permute.xlu1 %5908  ;;  %v3099_v7 = vld [vmem:[#allocation2 + $0x9c] sm:$0xe] }
 0x26b   : > { %8347 = vtanh.f32 %v9925_v58  ;;  %v4261_v51 = vor.u32 %v4260_v59, %v9934_v55  ;;  %11684 = vst [vmem:[#allocation24_spill] sm:$0xff] %v9965_v19 }
 0x26c   : > { %v3795_v61 = vpop.f32.mrf.mxu2 }
 0x26d   : > { %v3871_v31 = vadd.f32 %v3795_v61, %v3508_v14  ;;  %v4525_v4 = vpop.f32.mrf.mxu3  ;;  %v4262_v47 = vrot.slane %v4261_v51, 4  ;;  %v4266_v14 = vrot.slane %v4264_v46, 5  ;;  %v8089_v61 = vrot.slane %v4695_v38, 9 }
 0x26e   : > { %v3435_v24 = vpop.f32.mrf.mxu1  ;;  %v4278_v46 = vshll.u32 %v3969_v54, 16 }
 0x26f   : > { %v4601_v37 = vadd.f32 %v4525_v4, %v3871_v31  ;;  %v4840_v31 = vrot.slane %v4697_v29, 5  ;;  %v4267_v50 = vsel %vm9058_vm8, %v4262_v47, %v4266_v14  ;;  %v4838_v51 = vsel %vm9062_vm9, %v8089_v61, %v4837_v23  ;;  %v3100_v61 = vld [vmem:[#allocation2 + $0xa0] sm:$0xf] }
 0x270   : > { %v5034_v56 = vpop.f32.mrf.mxu0  ;;  %v3331_v29 = vunpack.c.l.b16 %v3242_v12  ;;  %v4424_v9 = vunpack.c.l.b16 %v4267_v50  ;;  %v4282_v47 = vshrl.u32 %v3969_v54, 16 }
 0x271   : > { %v8348_v2 = vpop.eup %8347  ;;  %v9939_v34 = vadd.f32 %v5031_v11, %v4601_v37  ;;  %7952 = vmatmul.msk.bf16.gmra.mxu1 %vm526_vm3, %v3350_v1  ;;  %8044 = vmatmul.msk.bf16.gmra.mxu2 %vm526_vm3, %v8217_v20  ;;  %v3509_v11 = vadd.f32 %v3435_v24, %v9407_v17  ;;  %v3239_v20 = vsel %vm9062_vm9, %v7925_v49, %v3238_v27  ;;  %v4269_v24 = vshrl.u32 %v3968_v39, 16  ;;  %v9968_v14 = vpop.permute.xlu2 %5914 }
 0x272   : > { %8072 = vmatmul.msk.bf16.gmra.mxu3 %vm526_vm3, %v4443_v13  ;;  %6068 = vrot.lane.b32.xlu1 %v8348_v2, %s8753_s4  ;;  %v4257_v17 = vsel %vm9058_vm8, %v4252_v57, %v9934_v55  ;;  %v4841_v27 = vsel %vm9062_vm9, %v4839_v36, %v4840_v31  ;;  %v3330_v38 = vunpack.c.l.b16 %v3239_v20  ;;  %11685 = vst [vmem:[#allocation25_spill] sm:$0xff] %v9968_v14  ;;  %v9972_v39 = vpop.permute.xlu0 %5906  ;;  %v3970_v31 = vld [vmem:[#allocation2 + $0xb0] sm:$0x1] }
 0x273   : > { %8349 = vtanh.f32 %v9939_v34  ;;  %8116 = vmatmul.msk.bf16.gmra.mxu0 %vm526_vm3, %v4949_v32  ;;  %v4423_v55 = vunpack.c.l.b16 %v4257_v17  ;;  %v4271_v57 = vrot.slane %v4269_v24, 4  ;;  %11686 = vst [vmem:[#allocation26_spill] sm:$0xff] %v9972_v39  ;;  %v8218_v24 = vld [vmem:[#allocation2 + $0x9c] sm:$0xff] }
 0x274   : > { %v3798_v59 = vpop.f32.mrf.mxu2  ;;  %v3351_v17 = vpack.c.b16 %v3331_v29, %v3330_v38  ;;  %v4700_v38 = vld [vmem:[#allocation2 + $0xb0] sm:$0x1] }
 0x275   : > { %v3872_v4 = vadd.f32 %v3798_v59, %v3509_v11  ;;  %v4528_v1 = vpop.f32.mrf.mxu3  ;;  %v4274_v11 = vrot.slane %v4272_v41, 5  ;;  %v4930_v59 = vunpack.c.l.b16 %v4841_v27  ;;  %v4444_v41 = vpack.c.b16 %v4424_v9, %v4423_v55 }
 0x276   : > { %v3437_v13 = vpop.f32.mrf.mxu1  ;;  %v4288_v27 = vshll.u32 %v3970_v31, 16  ;;  %v7926_v55 = vrot.slane %v3099_v7, 9 }
 0x277   : > { %v4602_v37 = vadd.f32 %v4528_v1, %v3872_v4  ;;  %v3510_v23 = vadd.f32 %v3437_v13, %v9418_v5  ;;  %v4280_v4 = vrot.slane %v4278_v46, 5  ;;  %v4284_v1 = vrot.slane %v4282_v47, 4  ;;  %v4698_v46 = vld [vmem:[#allocation2 + $0xa8] sm:$0xe]  ;;  %v9983_v47 = vpop.permute.xlu1 %5910 }
 0x278   : > { %v5036_v32 = vpop.f32.mrf.mxu0  ;;  %v4275_v50 = vor.u32 %v4274_v11, %v4271_v57 }
 0x279   : > { %v8350_v2 = vpop.eup %8349  ;;  %v9963_v49 = vadd.f32 %v5034_v56, %v4602_v37  ;;  %v4929_v56 = vunpack.c.l.b16 %v4838_v51  ;;  %v3245_v37 = vrot.slane %v3100_v61, 5  ;;  %v3101_v51 = vld [vmem:[#allocation2 + $0xa4] sm:$0x1]  ;;  %v4285_v19 = vor.u32 %v4284_v1, %v4280_v4  ;;  %v9987_v7 = vpop.permute.xlu2 %5920 }
 0x27a   : > { %6070 = vrot.lane.b32.xlu2 %v8350_v2, %s8753_s4  ;;  %v4699_v2 = vld [vmem:[#allocation2 + $0xac] sm:$0xf]  ;;  %v3248_v57 = vrot.slane %v3101_v51, 5  ;;  %v4276_v11 = vrot.slane %v4275_v50, 4  ;;  %v8090_v61 = vrot.slane %v4698_v46, 9  ;;  %11687 = vst [vmem:[#allocation27_spill] sm:$0xff] %v9987_v7 }
 0x27b   : > { %8351 = vtanh.f32 %v9963_v49  ;;  %v4950_v13 = vpack.c.b16 %v4930_v59, %v4929_v56  ;;  %v4844_v29 = vrot.slane %v4699_v2, 5  ;;  %v3247_v9 = vrot.slane %v3245_v37, 4  ;;  %v9985_v56 = vpop.permute.xlu0 %5916 }
 0x27c   : > { %v3800_v36 = vpop.f32.mrf.mxu2 }
 0x27d   : > { %v3873_v20 = vadd.f32 %v3800_v36, %v3510_v23  ;;  %v4530_v12 = vpop.f32.mrf.mxu3  ;;  %v4290_v23 = vrot.slane %v4288_v27, 5  ;;  %v4846_v36 = vrot.slane %v4844_v29, 4  ;;  %v4845_v50 = vsel %vm9062_vm9, %v8090_v61, %v4844_v29 }
 0x27e   : > { %v3440_v54 = vpop.f32.mrf.mxu1 }
 0x27f   : > { %v4603_v14 = vadd.f32 %v4530_v12, %v3873_v20  ;;  %v3249_v12 = vsel %vm9062_vm9, %v3247_v9, %v3248_v57  ;;  %v4931_v57 = vunpack.c.l.b16 %v4845_v50 }
 0x280   : > { %v5039_v5 = vpop.f32.mrf.mxu0  ;;  %v3333_v27 = vunpack.c.l.b16 %v3249_v12 }
 0x281   : > { %v8352_v35 = vpop.eup %8351  ;;  %v9974_v39 = vadd.f32 %v5036_v32, %v4603_v14  ;;  %7953 = vmatmul.msk.bf16.gmra.mxu1 %vm526_vm3, %v3351_v17  ;;  %8045 = vmatmul.msk.bf16.gmra.mxu2 %vm526_vm3, %v8218_v24  ;;  %v3511_v32 = vadd.f32 %v3440_v54, %v9448_v43  ;;  %v4286_v14 = vrot.slane %v4285_v19, 4  ;;  %v3246_v43 = vsel %vm9062_vm9, %v7926_v55, %v3245_v37 }
 0x282   : > { %8073 = vmatmul.msk.bf16.gmra.mxu3 %vm526_vm3, %v4444_v41  ;;  %6072 = vrot.lane.b32.xlu0 %v8352_v35, %s8753_s4  ;;  %v4847_v35 = vrot.slane %v4700_v38, 5  ;;  %v4281_v24 = vsel %vm9058_vm8, %v4276_v11, %v4280_v4  ;;  %v3971_v41 = vld [vmem:[#allocation2 + $0xb4] sm:$0xf]  ;;  %v3332_v51 = vunpack.c.l.b16 %v3246_v43  ;;  %v10006_v11 = vpop.permute.xlu1 %5918  ;;  %v3973_v43 = vld [vmem:[#allocation2 + $0xbc] sm:$0x1] }
 0x283   : > { %8353 = vtanh.f32 %v9974_v39  ;;  %8117 = vmatmul.msk.bf16.gmra.mxu0 %vm526_vm3, %v4950_v13  ;;  %v4291_v54 = vsel %vm9058_vm8, %v4286_v14, %v4290_v23  ;;  %v4425_v46 = vunpack.c.l.b16 %v4281_v24  ;;  %v4293_v4 = vshrl.u32 %v3971_v41, 16  ;;  %v3972_v14 = vld [vmem:[#allocation2 + $0xb8] sm:$0xf] }
 0x284   : > { %v3803_v59 = vpop.f32.mrf.mxu2  ;;  %v4848_v2 = vsel %vm9062_vm9, %v4846_v36, %v4847_v35  ;;  %v4426_v38 = vunpack.c.l.b16 %v4291_v54  ;;  %v4296_v55 = vshll.u32 %v3971_v41, 16  ;;  %v3352_v36 = vpack.c.b16 %v3333_v27, %v3332_v51  ;;  %v8219_v35 = vld [vmem:[#allocation2 + $0xa8] sm:$0xff]  ;;  %v4702_v54 = vld [vmem:[#allocation2 + $0xb8] sm:$0xf]  ;;  %v10010_v41 = vpop.permute.xlu2 %5926  ;;  %v4701_v27 = vld [vmem:[#allocation2 + $0xb4] sm:$0xe] }
 0x285   : > { %v3874_v31 = vadd.f32 %v3803_v59, %v3511_v32  ;;  %v4533_v1 = vpop.f32.mrf.mxu3  ;;  %v4932_v29 = vunpack.c.l.b16 %v4848_v2  ;;  %v3103_v32 = vld [vmem:[#allocation2 + $0xac] sm:$0xf]  ;;  %v4295_v23 = vrot.slane %v4293_v4, 4  ;;  %11689 = vst [vmem:[#allocation29_spill] sm:$0xff] %v10010_v41  ;;  %v3104_v4 = vld [vmem:[#allocation2 + $0xb0] sm:$0x1] }
 0x286   : > { %v3442_v20 = vpop.f32.mrf.mxu1  ;;  %v3252_v24 = vrot.slane %v3103_v32, 5  ;;  %v4306_v51 = vshrl.u32 %v3972_v14, 16  ;;  %v4851_v32 = vrot.slane %v4702_v54, 5 }
 0x287   : > { %v4604_v17 = vadd.f32 %v4533_v1, %v3874_v31  ;;  %v3512_v9 = vadd.f32 %v3442_v20, %v9450_v10  ;;  %v10008_v31 = vpop.permute.xlu0 %5922  ;;  %v3102_v1 = vld [vmem:[#allocation2 + $0xa8] sm:$0xe]  ;;  %v4298_v10 = vrot.slane %v4296_v55, 5  ;;  %v4302_v20 = vshll.u32 %v3972_v14, 16  ;;  %v4703_v55 = vld [vmem:[#allocation2 + $0xbc] sm:$0x1] }
 0x288   : > { %v5041_v19 = vpop.f32.mrf.mxu0  ;;  %11688 = vst [vmem:[#allocation28_spill] sm:$0xff] %v10008_v31 }
 0x289   : > { %v8354_v13 = vpop.eup %8353  ;;  %v10001_v37 = vadd.f32 %v5039_v5, %v4604_v17  ;;  %v4445_v17 = vpack.c.b16 %v4426_v38, %v4425_v46  ;;  %v7927_v46 = vrot.slane %v3102_v1, 9  ;;  %v4312_v38 = vshll.u32 %v3973_v43, 16 }
 0x28a   : > { %6074 = vrot.lane.b32.xlu1 %v8354_v13, %s8753_s4  ;;  %v4951_v13 = vpack.c.b16 %v4932_v29, %v4931_v57  ;;  %v3254_v57 = vrot.slane %v3252_v24, 4  ;;  %v3255_v29 = vrot.slane %v3104_v4, 5  ;;  %v4854_v1 = vrot.slane %v4703_v55, 5 }
 0x28b   : > { %8355 = vtanh.f32 %v10001_v37 }
 0x28c   : > { %v3805_v5 = vpop.f32.mrf.mxu2  ;;  %v10035_v55 = vpop.permute.xlu2 %5932 }
 0x28d   : > { %v3875_v59 = vadd.f32 %v3805_v5, %v3512_v9  ;;  %v4535_v61 = vpop.f32.mrf.mxu3  ;;  %v4299_v9 = vor.u32 %v4298_v10, %v4295_v23  ;;  %v4304_v5 = vrot.slane %v4302_v20, 5  ;;  %v4308_v23 = vrot.slane %v4306_v51, 4  ;;  %v10023_v20 = vpop.permute.xlu1 %5924  ;;  %11691 = vst [vmem:[#allocation31_spill] sm:$0xff] %v10035_v55 }
 0x28e   : > { %v3445_v12 = vpop.f32.mrf.mxu1 }
 0x28f   : > { %v4605_v50 = vadd.f32 %v4535_v61, %v3875_v59  ;;  %v4300_v14 = vrot.slane %v4299_v9, 4  ;;  %v4309_v61 = vor.u32 %v4308_v23, %v4304_v5  ;;  %v10029_v51 = vpop.permute.xlu0 %5928 }
 0x290   : > { %v5044_v2 = vpop.f32.mrf.mxu0  ;;  %11690 = vst [vmem:[#allocation30_spill] sm:$0xff] %v10029_v51 }
 0x291   : > { %v8356_v7 = vpop.eup %8355  ;;  %v10012_v31 = vadd.f32 %v5041_v19, %v4605_v50  ;;  %7954 = vmatmul.msk.bf16.gmra.mxu1 %vm526_vm3, %v3352_v36  ;;  %8046 = vmatmul.msk.bf16.gmra.mxu2 %vm526_vm3, %v8219_v35  ;;  %v3513_v19 = vadd.f32 %v3445_v12, %v9473_v16  ;;  %v8091_v36 = vrot.slane %v4701_v27, 9  ;;  %v4853_v35 = vrot.slane %v4851_v32, 4  ;;  %v3974_v12 = vld [vmem:[#allocation2 + $0xc0] sm:$0xf] }
 0x292   : > { %8074 = vmatmul.msk.bf16.gmra.mxu3 %vm526_vm3, %v4445_v17  ;;  %6076 = vrot.lane.b32.xlu2 %v8356_v7, %s8753_s4  ;;  %v3253_v7 = vsel %vm9062_vm9, %v7927_v46, %v3252_v24  ;;  %v4314_v17 = vrot.slane %v4312_v38, 5  ;;  %v3256_v16 = vsel %vm9062_vm9, %v3254_v57, %v3255_v29  ;;  %v4305_v4 = vsel %vm9058_vm8, %v4300_v14, %v4304_v5 }
 0x293   : > { %8357 = vtanh.f32 %v10012_v31  ;;  %8118 = vmatmul.msk.bf16.gmra.mxu0 %vm526_vm3, %v4951_v13  ;;  %v4310_v9 = vrot.slane %v4309_v61, 4  ;;  %v3334_v27 = vunpack.c.l.b16 %v3253_v7  ;;  %v4852_v24 = vsel %vm9062_vm9, %v8091_v36, %v4851_v32 }
 0x294   : > { %v3808_v59 = vpop.f32.mrf.mxu2  ;;  %v4855_v46 = vsel %vm9062_vm9, %v4853_v35, %v4854_v1  ;;  %v3335_v29 = vunpack.c.l.b16 %v3256_v16  ;;  %v4317_v5 = vshrl.u32 %v3974_v12, 16  ;;  %v4933_v61 = vunpack.c.l.b16 %v4852_v24  ;;  %v3106_v35 = vld [vmem:[#allocation2 + $0xb8] sm:$0xf] }
 0x295   : > { %v3876_v43 = vadd.f32 %v3808_v59, %v3513_v19  ;;  %v4538_v10 = vpop.f32.mrf.mxu3  ;;  %v4315_v23 = vsel %vm9058_vm8, %v4310_v9, %v4314_v17  ;;  %v4427_v19 = vunpack.c.l.b16 %v4305_v4  ;;  %v4320_v59 = vshll.u32 %v3974_v12, 16  ;;  %v8220_v17 = vld [vmem:[#allocation2 + $0xb4] sm:$0xff]  ;;  %v10044_v41 = vpop.permute.xlu1 %5930 }
 0x296   : > { %v3447_v54 = vpop.f32.mrf.mxu1  ;;  %v4428_v14 = vunpack.c.l.b16 %v4315_v23  ;;  %v4934_v36 = vunpack.c.l.b16 %v4855_v46  ;;  %v3353_v16 = vpack.c.b16 %v3335_v29, %v3334_v27  ;;  %v3105_v4 = vld [vmem:[#allocation2 + $0xb4] sm:$0xe]  ;;  %v3259_v23 = vrot.slane %v3106_v35, 5 }
 0x297   : > { %v4606_v50 = vadd.f32 %v4538_v10, %v3876_v43  ;;  %v3514_v32 = vadd.f32 %v3447_v54, %v9482_v26  ;;  %v4322_v43 = vrot.slane %v4320_v59, 5  ;;  %v3107_v26 = vld [vmem:[#allocation2 + $0xbc] sm:$0x1]  ;;  %v3976_v54 = vld [vmem:[#allocation2 + $0xc8] sm:$0x1]  ;;  %v10050_v27 = vpop.permute.xlu0 %5934  ;;  %v7928_v29 = vrot.slane %v3105_v4, 9 }
 0x298   : > { %v5046_v13 = vpop.f32.mrf.mxu0  ;;  %v4952_v51 = vpack.c.b16 %v4934_v36, %v4933_v61  ;;  %11692 = vst [vmem:[#allocation32_spill] sm:$0xff] %v10050_v27  ;;  %v3261_v61 = vrot.slane %v3259_v23, 4  ;;  %v3262_v36 = vrot.slane %v3107_v26, 5 }
 0x299   : > { %v8358_v38 = vpop.eup %8357  ;;  %v10037_v57 = vadd.f32 %v5044_v2, %v4606_v50  ;;  %v4319_v2 = vrot.slane %v4317_v5, 4  ;;  %v3975_v50 = vld [vmem:[#allocation2 + $0xc4] sm:$0xf]  ;;  %v3260_v4 = vsel %vm9062_vm9, %v7928_v29, %v3259_v23 }
 0x29a   : > { %6078 = vrot.lane.b32.xlu0 %v8358_v38, %s8753_s4  ;;  %v4446_v38 = vpack.c.b16 %v4428_v14, %v4427_v19  ;;  %v4326_v46 = vshll.u32 %v3975_v50, 16  ;;  %v4330_v19 = vshrl.u32 %v3975_v50, 16  ;;  %v4704_v14 = vld [vmem:[#allocation2 + $0xc0] sm:$0xe]  ;;  %v8122_v50 = vmul.f32 -1.442695, %v9892_v30 }
 0x29b   : > { %8359 = vtanh.f32 %v10037_v57  ;;  %v4323_v24 = vor.u32 %v4322_v43, %v4319_v2  ;;  %v3336_v23 = vunpack.c.l.b16 %v3260_v4  ;;  %v3109_v4 = vld [vmem:[#allocation2 + $0xc4] sm:$0xf] }
 0x29c   : > { %v3810_v1 = vpop.f32.mrf.mxu2  ;;  %v4328_v35 = vrot.slane %v4326_v46, 5  ;;  %v4332_v43 = vrot.slane %v4330_v19, 4 }
 0x29d   : > { %v3877_v10 = vadd.f32 %v3810_v1, %v3514_v32  ;;  %v4540_v7 = vpop.f32.mrf.mxu3  ;;  %v4705_v32 = vld [vmem:[#allocation2 + $0xc4] sm:$0xf]  ;;  %v4336_v1 = vshll.u32 %v3976_v54, 16  ;;  %v4324_v2 = vrot.slane %v4323_v24, 4  ;;  %v3263_v54 = vsel %vm9062_vm9, %v3261_v61, %v3262_v36  ;;  %v4706_v24 = vld [vmem:[#allocation2 + $0xc8] sm:$0x1] }
 0x29e   : > { %v3450_v9 = vpop.f32.mrf.mxu1  ;;  %v4333_v46 = vor.u32 %v4332_v43, %v4328_v35  ;;  %v3337_v29 = vunpack.c.l.b16 %v3263_v54  ;;  %v3977_v61 = vld [vmem:[#allocation2 + $0xcc] sm:$0xf] }
 0x29f   : > { %v4607_v12 = vadd.f32 %v4540_v7, %v3877_v10  ;;  %v3515_v10 = vadd.f32 %v3450_v9, %v9504_v0  ;;  %v4329_v0 = vsel %vm9058_vm8, %v4324_v2, %v4328_v35 }
 0x2a0   : > { %v5049_v55 = vpop.f32.mrf.mxu0  ;;  %v4334_v19 = vrot.slane %v4333_v46, 4 }
 0x2a1   : > { %v8360_v5 = vpop.eup %8359  ;;  %v10046_v59 = vadd.f32 %v5046_v13, %v4607_v12  ;;  %7955 = vmatmul.msk.bf16.gmra.mxu1 %vm526_vm3, %v3353_v16  ;;  %8047 = vmatmul.msk.bf16.gmra.mxu2 %vm526_vm3, %v8220_v17  ;;  %v10054_v13 = vpop.permute.xlu2 %5938  ;;  %v8092_v16 = vrot.slane %v4704_v14, 9  ;;  %v4858_v17 = vrot.slane %v4705_v32, 5 }
 0x2a2   : > { %8075 = vmatmul.msk.bf16.gmra.mxu3 %vm526_vm3, %v4446_v38  ;;  %6080 = vrot.lane.b32.xlu1 %v8360_v5, %s8753_s4  ;;  %11693 = vst [vmem:[#allocation33_spill] sm:$0xff] %v10054_v13  ;;  %v3979_v13 = vld [vmem:[#allocation2 + $0xd4] sm:$0x1] }
 0x2a3   : > { %8361 = vtanh.f32 %v10046_v59  ;;  %8119 = vmatmul.msk.bf16.gmra.mxu0 %vm526_vm3, %v4952_v51  ;;  %v4338_v51 = vrot.slane %v4336_v1, 5  ;;  %v4859_v30 = vsel %vm9062_vm9, %v8092_v16, %v4858_v17  ;;  %v4860_v14 = vrot.slane %v4858_v17, 4 }
 0x2a4   : > { %v3813_v7 = vpop.f32.mrf.mxu2  ;;  %8363 = vpow2.f32 %v8122_v50  ;;  %v4429_v1 = vunpack.c.l.b16 %v4329_v0  ;;  %v4935_v17 = vunpack.c.l.b16 %v4859_v30  ;;  %v8221_v0 = vld [vmem:[#allocation2 + $0xc0] sm:$0xff]  ;;  %v3978_v30 = vld [vmem:[#allocation2 + $0xd0] sm:$0xf] }
 0x2a5   : > { %v4543_v38 = vpop.f32.mrf.mxu3  ;;  %v3878_v12 = vadd.f32 %v3813_v7, %v3515_v10  ;;  %v4861_v10 = vrot.slane %v4706_v24, 5  ;;  %v10068_v7 = vpop.permute.xlu1 %5936  ;;  %v4339_v35 = vsel %vm9058_vm8, %v4334_v19, %v4338_v51  ;;  %v3354_v24 = vpack.c.b16 %v3337_v29, %v3336_v23  ;;  %v3110_v19 = vld [vmem:[#allocation2 + $0xc8] sm:$0x1] }
 0x2a6   : > { %v3452_v26 = vpop.f32.mrf.mxu1  ;;  %11694 = vst [vmem:[#allocation34_spill] sm:$0xff] %v10068_v7  ;;  %v4430_v43 = vunpack.c.l.b16 %v4339_v35  ;;  %v3269_v29 = vrot.slane %v3110_v19, 5 }
 0x2a7   : > { %v4608_v9 = vadd.f32 %v4543_v38, %v3878_v12  ;;  %v3516_v2 = vadd.f32 %v3452_v26, %v9514_v15  ;;  %v4862_v16 = vsel %vm9062_vm9, %v4860_v14, %v4861_v10  ;;  %v10078_v38 = vpop.permute.xlu0 %5940  ;;  %v4341_v12 = vshrl.u32 %v3977_v61, 16  ;;  %v3108_v15 = vld [vmem:[#allocation2 + $0xc0] sm:$0xe] }
 0x2a8   : > { %v5051_v5 = vpop.f32.mrf.mxu0  ;;  %11695 = vst [vmem:[#allocation35_spill] sm:$0xff] %v10078_v38  ;;  %v4936_v50 = vunpack.c.l.b16 %v4862_v16  ;;  %v3266_v14 = vrot.slane %v3109_v4, 5  ;;  %v4708_v16 = vld [vmem:[#allocation2 + $0xd0] sm:$0xf]  ;;  %v7929_v27 = vrot.slane %v3108_v15, 9 }
 0x2a9   : > { %v8362_v32 = vpop.eup %8361  ;;  %v10070_v36 = vadd.f32 %v5049_v55, %v4608_v9  ;;  %v10081_v54 = vpop.permute.xlu2 %5944  ;;  %v4447_v9 = vpack.c.b16 %v4430_v43, %v4429_v1  ;;  %v4350_v1 = vshll.u32 %v3978_v30, 16  ;;  %v4354_v43 = vshrl.u32 %v3978_v30, 16 }
 0x2aa   : > { %6082 = vrot.lane.b32.xlu2 %v8362_v32, %s8753_s4  ;;  %11696 = vst [vmem:[#allocation36_spill] sm:$0xff] %v10081_v54  ;;  %v8123_v32 = vmul.f32 -1.442695, %v9903_v28  ;;  %v4953_v38 = vpack.c.b16 %v4936_v50, %v4935_v17  ;;  %v8364_v7 = vpop.eup %8363  ;;  %v4343_v54 = vrot.slane %v4341_v12, 4  ;;  %v3268_v17 = vrot.slane %v3266_v14, 4 }
 0x2ab   : > { %8365 = vtanh.f32 %v10070_v36  ;;  %v4360_v50 = vshll.u32 %v3979_v13, 16  ;;  %v4352_v12 = vrot.slane %v4350_v1, 5  ;;  %v4356_v13 = vrot.slane %v4354_v43, 4 }
 0x2ac   : > { %v3815_v55 = vpop.f32.mrf.mxu2 }
 0x2ad   : > { %v3879_v46 = vadd.f32 %v3815_v55, %v3516_v2  ;;  %v4545_v51 = vpop.f32.mrf.mxu3  ;;  %v4344_v2 = vshll.u32 %v3977_v61, 16  ;;  %v4707_v55 = vld [vmem:[#allocation2 + $0xcc] sm:$0xe]  ;;  %v10093_v61 = vpop.permute.xlu1 %5942  ;;  %v4362_v1 = vrot.slane %v4360_v50, 5 }
 0x2ae   : > { %v3455_v26 = vpop.f32.mrf.mxu1 }
 0x2af   : > { %v4609_v10 = vadd.f32 %v4545_v51, %v3879_v46  ;;  %v4346_v4 = vrot.slane %v4344_v2, 5  ;;  %v4709_v46 = vld [vmem:[#allocation2 + $0xd4] sm:$0x1]  ;;  %v4865_v51 = vrot.slane %v4708_v16, 5  ;;  %v3270_v2 = vsel %vm9062_vm9, %v3268_v17, %v3269_v29 }
 0x2b0   : > { %v5054_v35 = vpop.f32.mrf.mxu0  ;;  %v4868_v16 = vrot.slane %v4709_v46, 5  ;;  %v8124_v29 = vmul.f32 -1.442695, %v9925_v58 }
 0x2b1   : > { %v10084_v23 = vadd.f32 %v5051_v5, %v4609_v10  ;;  %7956 = vmatmul.msk.bf16.gmra.mxu1 %vm526_vm3, %v3354_v24  ;;  %8048 = vmatmul.msk.bf16.gmra.mxu2 %vm526_vm3, %v8221_v0  ;;  %v8366_v28 = vpop.eup %8365  ;;  %v3517_v5 = vadd.f32 %v3455_v26, %v9534_v44  ;;  %v8093_v24 = vrot.slane %v4707_v55, 9  ;;  %v10095_v0 = vadd.f32 1.0, %v8364_v7  ;;  %v10097_v10 = vpop.permute.xlu0 %5946 }
 0x2b2   : > { %8076 = vmatmul.msk.bf16.gmra.mxu3 %vm526_vm3, %v4447_v9  ;;  %6084 = vrot.lane.b32.xlu0 %v8366_v28, %s8753_s4  ;;  %v4347_v9 = vor.u32 %v4346_v4, %v4343_v54  ;;  %v3267_v44 = vsel %vm9062_vm9, %v7929_v27, %v3266_v14  ;;  %v4867_v26 = vrot.slane %v4865_v51, 4  ;;  %v4357_v7 = vor.u32 %v4356_v13, %v4352_v12 }
 0x2b3   : > { %8367 = vtanh.f32 %v10084_v23  ;;  %8120 = vmatmul.msk.bf16.gmra.mxu0 %vm526_vm3, %v4953_v38  ;;  %v4866_v28 = vsel %vm9062_vm9, %v8093_v24, %v4865_v51  ;;  %v3338_v50 = vunpack.c.l.b16 %v3267_v44  ;;  %v8222_v44 = vld [vmem:[#allocation2 + $0xcc] sm:$0xff]  ;;  %vm5333_vm11 = vweird.f32 %v10095_v0 }
 0x2b4   : > { %8369 = vpow2.f32 %v8123_v32  ;;  %v3818_v15 = vpop.f32.mrf.mxu2  ;;  %v4348_v55 = vrot.slane %v4347_v9, 4  ;;  %v10103_v32 = vpop.permute.xlu2 %5950  ;;  %v4358_v27 = vrot.slane %v4357_v7, 4  ;;  %v4869_v14 = vsel %vm9062_vm9, %v4867_v26, %v4868_v16 }
 0x2b5   : > { %v3880_v19 = vadd.f32 %v3818_v15, %v3517_v5  ;;  %v4548_v30 = vpop.f32.mrf.mxu3  ;;  %v3339_v5 = vunpack.c.l.b16 %v3270_v2  ;;  %8371 = vrcp.f32 %v10095_v0  ;;  %v4937_v24 = vunpack.c.l.b16 %v4866_v28  ;;  %v10120_v26 = vpop.permute.xlu1 %5948 }
 0x2b6   : > { %v3457_v38 = vpop.f32.mrf.mxu1  ;;  %v4353_v4 = vsel %vm9058_vm8, %v4348_v55, %v4352_v12  ;;  %v4363_v51 = vsel %vm9058_vm8, %v4358_v27, %v4362_v1  ;;  %v4938_v58 = vunpack.c.l.b16 %v4869_v14  ;;  %v8125_v28 = vmul.f32 -1.442695, %v9939_v34 }
 0x2b7   : > { %v4610_v54 = vadd.f32 %v4548_v30, %v3880_v19  ;;  %v4431_v12 = vunpack.c.l.b16 %v4353_v4  ;;  %v3518_v3 = vadd.f32 %v3457_v38, %v9540_v42  ;;  %v4432_v9 = vunpack.c.l.b16 %v4363_v51 }
 0x2b8   : > { %v5056_v43 = vpop.f32.mrf.mxu0  ;;  %v3355_v30 = vpack.c.b16 %v3339_v5, %v3338_v50 }
 0x2b9   : > { %v8368_v46 = vpop.eup %8367  ;;  %v10112_v17 = vadd.f32 %v5054_v35, %v4610_v54  ;;  %v4448_v2 = vpack.c.b16 %v4432_v9, %v4431_v12  ;;  %v10124_v1 = vpop.permute.xlu0 %5952  ;;  %v4954_v54 = vpack.c.b16 %v4938_v58, %v4937_v24  ;;  %v8126_v58 = vmul.f32 -1.442695, %v9963_v49 }
 0x2ba   : > { %v8370_v15 = vpop.eup %8369  ;;  %6086 = vrot.lane.b32.xlu1 %v8368_v46, %s8753_s4 }
 0x2bb   : > { %8373 = vtanh.f32 %v10112_v17  ;;  %v10122_v16 = vadd.f32 1.0, %v8370_v15  ;;  %v10126_v42 = vpop.eup %8371 }
 0x2bc   : > { %v3820_v35 = vpop.f32.mrf.mxu2  ;;  %8375 = vpow2.f32 %v8124_v29  ;;  %v10129_v4 = vpop.permute.xlu2 %5956  ;;  %v5329_v34 = vmul.f32 %v10126_v42, %v10095_v0  ;;  %vm5334_vm10 = vweird.f32 %v10126_v42 }
 0x2bd   : > { %v3881_v13 = vadd.f32 %v3820_v35, %v3518_v3  ;;  %v4550_v19 = vpop.f32.mrf.mxu3  ;;  %11697 = vst [vmem:[#allocation37_spill] sm:$0xff] %v10129_v4  ;;  %8377 = vrcp.f32 %v10122_v16  ;;  %v10145_v24 = vpop.permute.xlu1 %5954  ;;  %vm10179_vm12 = vmor %vm5333_vm11, %vm5334_vm10  ;;  %vm5348_vm15 = vweird.f32 %v10122_v16 }
 0x2be   : > { %v3460_v62 = vpop.f32.mrf.mxu1  ;;  %11698 = vst [vmem:[#allocation38_spill] sm:$0xff] %v10145_v24  ;;  %v5330_v9 = vsub.f32 1.0, %v5329_v34 }
 0x2bf   : > { %v4611_v55 = vadd.f32 %v4550_v19, %v3881_v13  ;;  %v3519_v46 = vadd.f32 %v3460_v62, %v9557_v8 }
 0x2c0   : > { %v5059_v7 = vpop.f32.mrf.mxu0  ;;  %v5331_v62 = vmul.f32 %v10126_v42, %v5330_v9  ;;  %v5337_v9 = vand.u32 2147483647, %v10095_v0 }
 0x2c1   : > { %v8374_v38 = vpop.eup %8373  ;;  %v10131_v27 = vadd.f32 %v5056_v43, %v4611_v55  ;;  %7957 = vmatmul.msk.bf16.gmra.mxu1 %vm526_vm3, %v3355_v30  ;;  %8049 = vmatmul.msk.bf16.gmra.mxu2 %vm526_vm3, %v8222_v44  ;;  %v10152_v13 = vpop.permute.xlu0 %5958 }
 0x2c2   : > { %6088 = vrot.lane.b32.xlu2 %v8374_v38, %s8753_s4  ;;  %8077 = vmatmul.msk.bf16.gmra.mxu3 %vm526_vm3, %v4448_v2  ;;  %v8376_v14 = vpop.eup %8375  ;;  %11699 = vst [vmem:[#allocation39_spill] sm:$0xff] %v10152_v13  ;;  %v5332_v34 = vadd.f32 %v10126_v42, %v5331_v62  ;;  %vm5338_vm13 = vcmp.eq.f32.partialorder %v5337_v9, 8.507059e+37 }
 0x2c3   : > { %8379 = vtanh.f32 %v10131_v27  ;;  %8121 = vmatmul.msk.bf16.gmra.mxu0 %vm526_vm3, %v4954_v54  ;;  %v10143_v5 = vadd.f32 1.0, %v8376_v14  ;;  %v10147_v3 = vpop.eup %8377 }
 0x2c4   : > { %v3823_v43 = vpop.f32.mrf.mxu2  ;;  %8381 = vpow2.f32 %v8125_v28  ;;  %v10156_v30 = vpop.permute.xlu2 %5962  ;;  %v5344_v49 = vmul.f32 %v10147_v3, %v10122_v16  ;;  %vm5349_vm14 = vweird.f32 %v10147_v3 }
 0x2c5   : > { %v3882_v29 = vadd.f32 %v3823_v43, %v3519_v46  ;;  %v4553_v50 = vpop.f32.mrf.mxu3  ;;  %8383 = vrcp.f32 %v10143_v5  ;;  %11700 = vst [vmem:[#allocation40_spill] sm:$0xff] %v10156_v30  ;;  %vm10211_vm0 = vmor %vm5348_vm15, %vm5349_vm14  ;;  %vm5363_vm4 = vweird.f32 %v10143_v5 }
 0x2c6   : > { %v3462_v15 = vpop.f32.mrf.mxu1 }
 0x2c7   : > { %v4612_v51 = vadd.f32 %v4553_v50, %v3882_v29  ;;  %v3520_v44 = vadd.f32 %v3462_v15, %v9564_v45  ;;  %v5345_v45 = vsub.f32 1.0, %v5344_v49  ;;  %v5339_v29 = vand.u32 2147483648, %v10095_v0 }
 0x2c8   : > { %v5061_v12 = vpop.f32.mrf.mxu0  ;;  %v8127_v50 = vmul.f32 -1.442695, %v9974_v39 }
 0x2c9   : > { %v8380_v8 = vpop.eup %8379  ;;  %v10150_v35 = vadd.f32 %v5059_v7, %v4612_v51  ;;  %v10173_v51 = vpop.permute.xlu1 %5960  ;;  %v5340_v49 = vor.u32 1.1754944e-38, %v5339_v29 }
 0x2ca   : > { %6090 = vrot.lane.b32.xlu0 %v8380_v8, %s8753_s4  ;;  %v8382_v19 = vpop.eup %8381  ;;  %11701 = vst [vmem:[#allocation41_spill] sm:$0xff] %v10173_v51 }
 0x2cb   : > { %8385 = vtanh.f32 %v10150_v35  ;;  %v10163_v54 = vadd.f32 1.0, %v8382_v19  ;;  %v10165_v46 = vpop.eup %8383  ;;  %v5336_v19 = vsel %vm10179_vm12, %v10126_v42, %v5332_v34 }
 0x2cc   : > { %v3825_v2 = vpop.f32.mrf.mxu2  ;;  %8387 = vpow2.f32 %v8126_v58  ;;  %v5359_v0 = vmul.f32 %v10165_v46, %v10143_v5  ;;  %vm5364_vm2 = vweird.f32 %v10165_v46 }
 0x2cd   : > { %v3883_v55 = vadd.f32 %v3825_v2, %v3520_v44  ;;  %v4555_v7 = vpop.f32.mrf.mxu3  ;;  %8389 = vrcp.f32 %v10163_v54  ;;  %v5346_v44 = vmul.f32 %v10147_v3, %v5345_v45  ;;  %v6065_v2 = vpop.permute.xlu2 %6064  ;;  %vm10243_vm5 = vmor %vm5363_vm4, %vm5364_vm2  ;;  %vm5378_vm8 = vweird.f32 %v10163_v54 }
 0x2ce   : > { %v3465_v38 = vpop.f32.mrf.mxu1  ;;  %v5360_v45 = vsub.f32 1.0, %v5359_v0 }
 0x2cf   : > { %v4613_v28 = vadd.f32 %v4555_v7, %v3883_v55  ;;  %v3521_v39 = vadd.f32 %v3465_v38, %v9581_v63  ;;  %v10195_v38 = vsel %vm5338_vm13, %v5340_v49, %v5336_v19  ;;  %v5347_v34 = vadd.f32 %v10147_v3, %v5346_v44 }
 0x2d0   : > { %v5064_v14 = vpop.f32.mrf.mxu0  ;;  %v6160_v29 = vmul.f32 %v6065_v2, %v10195_v38  ;;  %v5352_v19 = vand.u32 2147483647, %v10122_v16 }
 0x2d1   : > { %v8386_v43 = vpop.eup %8385  ;;  %v10171_v15 = vadd.f32 %v5061_v12, %v4613_v28  ;;  %v10185_v12 = vpop.permute.xlu0 %5964 }
 0x2d2   : > { %6092 = vrot.lane.b32.xlu1 %v8386_v43, %s8753_s4  ;;  %v8388_v8 = vpop.eup %8387  ;;  %11704 = vst [vmem:[#allocation42_spill] sm:$0xff] %v10185_v12  ;;  %vm5353_vm1 = vcmp.eq.f32.partialorder %v5352_v19, 8.507059e+37 }
 0x2d3   : > { %8391 = vtanh.f32 %v10171_v15  ;;  %v10193_v28 = vadd.f32 1.0, %v8388_v8  ;;  %v10197_v42 = vpop.eup %8389  ;;  %v8128_v8 = vmul.f32 -1.442695, %v10001_v37 }
 0x2d4   : > { %v3828_v62 = vpop.f32.mrf.mxu2  ;;  %8393 = vpow2.f32 %v8127_v50  ;;  %v5374_v49 = vmul.f32 %v10197_v42, %v10163_v54  ;;  %vm5379_vm7 = vweird.f32 %v10197_v42 }
 0x2d5   : > { %v3884_v55 = vadd.f32 %v3828_v62, %v3521_v39  ;;  %v4558_v7 = vpop.f32.mrf.mxu3  ;;  %v5354_v39 = vand.u32 2147483648, %v10122_v16  ;;  %8395 = vrcp.f32 %v10193_v28  ;;  %v5351_v62 = vsel %vm10211_vm0, %v10147_v3, %v5347_v34  ;;  %vm10273_vm9 = vmor %vm5378_vm8, %vm5379_vm7 }
 0x2d6   : > { %v3467_v63 = vpop.f32.mrf.mxu1  ;;  %v5361_v16 = vmul.f32 %v10165_v46, %v5360_v45  ;;  %v5375_v34 = vsub.f32 1.0, %v5374_v49  ;;  %vm5393_vm12 = vweird.f32 %v10193_v28 }
 0x2d7   : > { %v4614_v43 = vadd.f32 %v4558_v7, %v3884_v55  ;;  %v3522_v37 = vadd.f32 %v3467_v63, %v9591_v25  ;;  %v5355_v55 = vor.u32 1.1754944e-38, %v5354_v39 }
 0x2d8   : > { %v5066_v58 = vpop.f32.mrf.mxu0  ;;  %v5362_v3 = vadd.f32 %v10165_v46, %v5361_v16 }
 0x2d9   : > { %v8392_v50 = vpop.eup %8391  ;;  %v10204_v9 = vadd.f32 %v5064_v14, %v4614_v43  ;;  %v10217_v14 = vpop.permute.xlu1 %5966  ;;  %v10227_v63 = vsel %vm5353_vm1, %v5355_v55, %v5351_v62  ;;  %v5367_v62 = vand.u32 2147483647, %v10143_v5 }
 0x2da   : > { %6094 = vrot.lane.b32.xlu2 %v8392_v50, %s8753_s4  ;;  %6224 = vrot.lane.b32.xlu1 %v6160_v29, %s8753_s4  ;;  %v8394_v44 = vpop.eup %8393  ;;  %11707 = vst [vmem:[#allocation43_spill] sm:$0xff] %v10217_v14 }
 0x2db   : > { %8397 = vtanh.f32 %v10204_v9  ;;  %v10225_v50 = vadd.f32 1.0, %v8394_v44  ;;  %v10229_v0 = vpop.eup %8395  ;;  %v8129_v44 = vmul.f32 -1.442695, %v10012_v31  ;;  %vm5368_vm6 = vcmp.eq.f32.partialorder %v5367_v62, 8.507059e+37 }
 0x2dc   : > { %v3830_v2 = vpop.f32.mrf.mxu2  ;;  %8399 = vpow2.f32 %v8128_v8  ;;  %v6067_v29 = vpop.permute.xlu0 %6066  ;;  %vm5394_vm11 = vweird.f32 %v10229_v0 }
 0x2dd   : > { %v3885_v7 = vadd.f32 %v3830_v2, %v3522_v37  ;;  %v4560_v43 = vpop.f32.mrf.mxu3  ;;  %v6161_v45 = vmul.f32 %v6067_v29, %v10227_v63  ;;  %v5369_v37 = vand.u32 2147483648, %v10143_v5  ;;  %8401 = vrcp.f32 %v10225_v50  ;;  %vm5395_vm13 = vmor %vm5393_vm12, %vm5394_vm11 }
 0x2de   : > { %v3470_v25 = vpop.f32.mrf.mxu1  ;;  %v5389_v2 = vmul.f32 %v10229_v0, %v10193_v28  ;;  %vm5408_vm0 = vweird.f32 %v10225_v50 }
 0x2df   : > { %v4615_v14 = vadd.f32 %v4560_v43, %v3885_v7  ;;  %v3523_v31 = vadd.f32 %v3470_v25, %v9610_v33  ;;  %v5370_v55 = vor.u32 1.1754944e-38, %v5369_v37 }
 0x2e0   : > { %v5069_v39 = vpop.f32.mrf.mxu0  ;;  %v5390_v37 = vsub.f32 1.0, %v5389_v2 }
 0x2e1   : > { %v8398_v8 = vpop.eup %8397  ;;  %v10236_v19 = vadd.f32 %v5066_v58, %v4615_v14  ;;  %v5366_v58 = vsel %vm10243_vm5, %v10165_v46, %v5362_v3  ;;  %v5376_v14 = vmul.f32 %v10197_v42, %v5375_v34 }
 0x2e2   : > { %6096 = vrot.lane.b32.xlu0 %v8398_v8, %s8753_s4  ;;  %6226 = vrot.lane.b32.xlu2 %v6161_v45, %s8753_s4  ;;  %v8400_v16 = vpop.eup %8399  ;;  %v10257_v33 = vsel %vm5368_vm6, %v5370_v55, %v5366_v58  ;;  %v5382_v58 = vand.u32 2147483647, %v10163_v54 }
 0x2e3   : > { %8403 = vtanh.f32 %v10236_v19  ;;  %v10255_v45 = vadd.f32 1.0, %v8400_v16  ;;  %v10259_v49 = vpop.eup %8401  ;;  %v5377_v46 = vadd.f32 %v10197_v42, %v5376_v14  ;;  %v8130_v16 = vmul.f32 -1.442695, %v10037_v57 }
 0x2e4   : > { %v3833_v5 = vpop.f32.mrf.mxu2  ;;  %8405 = vpow2.f32 %v8129_v44  ;;  %v6069_v29 = vpop.permute.xlu1 %6068  ;;  %v5404_v55 = vmul.f32 %v10259_v49, %v10225_v50  ;;  %vm5383_vm10 = vcmp.eq.f32.partialorder %v5382_v58, 8.507059e+37  ;;  %v5399_v58 = vand.u32 2147483648, %v10193_v28 }
 0x2e5   : > { %v3886_v7 = vadd.f32 %v3833_v5, %v3523_v31  ;;  %v4563_v43 = vpop.f32.mrf.mxu3  ;;  %v6162_v3 = vmul.f32 %v6069_v29, %v10257_v33  ;;  %v5384_v31 = vand.u32 2147483648, %v10163_v54  ;;  %8407 = vrcp.f32 %v10255_v45 }
 0x2e6   : > { %v3472_v8 = vpop.f32.mrf.mxu1  ;;  %v5391_v54 = vmul.f32 %v10229_v0, %v5390_v37  ;;  %vm5409_vm15 = vweird.f32 %v10259_v49  ;;  %vm5423_vm5 = vweird.f32 %v10255_v45 }
 0x2e7   : > { %v4616_v25 = vadd.f32 %v4563_v43, %v3886_v7  ;;  %v3524_v57 = vadd.f32 %v3472_v8, %v9621_v22  ;;  %v5385_v7 = vor.u32 1.1754944e-38, %v5384_v31  ;;  %v6071_v43 = vpop.permute.xlu2 %6070  ;;  %v5405_v31 = vsub.f32 1.0, %v5404_v55  ;;  %vm5410_vm1 = vmor %vm5408_vm0, %vm5409_vm15 }
 0x2e8   : > { %v5071_v34 = vpop.f32.mrf.mxu0  ;;  %v5392_v37 = vadd.f32 %v10229_v0, %v5391_v54 }
 0x2e9   : > { %v8404_v44 = vpop.eup %8403  ;;  %v10266_v62 = vadd.f32 %v5069_v39, %v4616_v25  ;;  %v5381_v39 = vsel %vm10273_vm9, %v10197_v42, %v5377_v46 }
 0x2ea   : > { %6228 = vrot.lane.b32.xlu0 %v6162_v3, %s8753_s4  ;;  %6098 = vrot.lane.b32.xlu1 %v8404_v44, %s8753_s4  ;;  %v8406_v14 = vpop.eup %8405  ;;  %v10287_v22 = vsel %vm5383_vm10, %v5385_v7, %v5381_v39  ;;  %v5397_v39 = vand.u32 2147483647, %v10193_v28  ;;  %v5396_v55 = vsel %vm5395_vm13, %v10229_v0, %v5392_v37  ;;  %v5406_v7 = vmul.f32 %v10259_v49, %v5405_v31 }
 0x2eb   : > { %8409 = vtanh.f32 %v10266_v62  ;;  %v10285_v3 = vadd.f32 1.0, %v8406_v14  ;;  %v10289_v5 = vpop.eup %8407  ;;  %v6163_v42 = vmul.f32 %v6071_v43, %v10287_v22 }
 0x2ec   : > { %v3835_v2 = vpop.f32.mrf.mxu2  ;;  %8411 = vpow2.f32 %v8130_v16  ;;  %vm5398_vm14 = vcmp.eq.f32.partialorder %v5397_v39, 8.507059e+37  ;;  %v5407_v37 = vadd.f32 %v10259_v49, %v5406_v7  ;;  %v5414_v39 = vand.u32 2147483648, %v10225_v50 }
 0x2ed   : > { %v3887_v29 = vadd.f32 %v3835_v2, %v3524_v57  ;;  %v4565_v25 = vpop.f32.mrf.mxu3  ;;  %v8131_v57 = vmul.f32 -1.442695, %v10046_v59  ;;  %8413 = vrcp.f32 %v10285_v3  ;;  %v5419_v59 = vmul.f32 %v10289_v5, %v10255_v45 }
 0x2ee   : > { %v3475_v44 = vpop.f32.mrf.mxu1  ;;  %vm5424_vm4 = vweird.f32 %v10289_v5  ;;  %vm5438_vm9 = vweird.f32 %v10285_v3 }
 0x2ef   : > { %v4617_v8 = vadd.f32 %v4565_v25, %v3887_v29  ;;  %v3525_v54 = vadd.f32 %v3475_v44, %v9644_v52  ;;  %v5400_v25 = vor.u32 1.1754944e-38, %v5399_v58  ;;  %v5420_v12 = vsub.f32 1.0, %v5419_v59  ;;  %vm10351_vm6 = vmor %vm5423_vm5, %vm5424_vm4 }
 0x2f0   : > { %v5074_v46 = vpop.f32.mrf.mxu0 }
 0x2f1   : > { %v8410_v16 = vpop.eup %8409  ;;  %v10295_v14 = vadd.f32 %v5071_v34, %v4617_v8  ;;  %v10311_v52 = vsel %vm5398_vm14, %v5400_v25, %v5396_v55  ;;  %v5411_v55 = vsel %vm5410_vm1, %v10259_v49, %v5407_v37 }
 0x2f2   : > { %6100 = vrot.lane.b32.xlu2 %v8410_v16, %s8753_s4  ;;  %6230 = vrot.lane.b32.xlu1 %v6163_v42, %s8753_s4  ;;  %v8412_v2 = vpop.eup %8411 }
 0x2f3   : > { %8415 = vtanh.f32 %v10295_v14  ;;  %v10309_v28 = vadd.f32 1.0, %v8412_v2  ;;  %v10313_v44 = vpop.eup %8413  ;;  %v5412_v2 = vand.u32 2147483647, %v10225_v50 }
 0x2f4   : > { %v3838_v34 = vpop.f32.mrf.mxu2  ;;  %8417 = vpow2.f32 %v8131_v57  ;;  %v6073_v8 = vpop.permute.xlu0 %6072  ;;  %v8132_v57 = vmul.f32 -1.442695, %v10070_v36  ;;  %v5421_v36 = vmul.f32 %v10289_v5, %v5420_v12  ;;  %vm5439_vm8 = vweird.f32 %v10313_v44 }
 0x2f5   : > { %v3888_v43 = vadd.f32 %v3838_v34, %v3525_v54  ;;  %v4568_v29 = vpop.f32.mrf.mxu3  ;;  %v6164_v30 = vmul.f32 %v6073_v8, %v10311_v52  ;;  %8419 = vrcp.f32 %v10309_v28  ;;  %vm5413_vm2 = vcmp.eq.f32.partialorder %v5412_v2, 8.507059e+37  ;;  %vm10381_vm10 = vmor %vm5438_vm9, %vm5439_vm8 }
 0x2f6   : > { %v3477_v42 = vpop.f32.mrf.mxu1  ;;  %v5422_v12 = vadd.f32 %v10289_v5, %v5421_v36  ;;  %v5442_v36 = vand.u32 2147483647, %v10285_v3  ;;  %vm5453_vm13 = vweird.f32 %v10309_v28 }
 0x2f7   : > { %v4618_v16 = vadd.f32 %v4568_v29, %v3888_v43  ;;  %v3526_v59 = vadd.f32 %v3477_v42, %v9721_v40  ;;  %v5415_v43 = vor.u32 1.1754944e-38, %v5414_v39  ;;  %v8133_v39 = vmul.f32 -1.442695, %v10084_v23 }
 0x2f8   : > { %v5076_v0 = vpop.f32.mrf.mxu0  ;;  %vm5443_vm11 = vcmp.eq.f32.partialorder %v5442_v36, 8.507059e+37 }
 0x2f9   : > { %v8416_v31 = vpop.eup %8415  ;;  %v10319_v58 = vadd.f32 %v5074_v46, %v4618_v16  ;;  %v5434_v46 = vmul.f32 %v10313_v44, %v10285_v3  ;;  %v10335_v40 = vsel %vm5413_vm2, %v5415_v43, %v5411_v55 }
 0x2fa   : > { %6102 = vrot.lane.b32.xlu0 %v8416_v31, %s8753_s4  ;;  %6232 = vrot.lane.b32.xlu2 %v6164_v30, %s8753_s4  ;;  %v8418_v54 = vpop.eup %8417 }
 0x2fb   : > { %8421 = vtanh.f32 %v10319_v58  ;;  %v10333_v50 = vadd.f32 1.0, %v8418_v54  ;;  %v10337_v42 = vpop.eup %8419  ;;  %v5435_v16 = vsub.f32 1.0, %v5434_v46  ;;  %v5427_v54 = vand.u32 2147483647, %v10255_v45 }
 0x2fc   : > { %v3840_v34 = vpop.f32.mrf.mxu2  ;;  %8423 = vpow2.f32 %v8132_v57  ;;  %v6075_v29 = vpop.permute.xlu1 %6074  ;;  %v5429_v57 = vand.u32 2147483648, %v10255_v45  ;;  %vm5454_vm12 = vweird.f32 %v10337_v42 }
 0x2fd   : > { %v3889_v30 = vadd.f32 %v3840_v34, %v3526_v59  ;;  %v4570_v7 = vpop.f32.mrf.mxu3  ;;  %v6165_v49 = vmul.f32 %v6075_v29, %v10335_v40  ;;  %8425 = vrcp.f32 %v10333_v50  ;;  %v5436_v45 = vmul.f32 %v10313_v44, %v5435_v16  ;;  %vm5455_vm14 = vmor %vm5453_vm13, %vm5454_vm12 }
 0x2fe   : > { %v3480_v25 = vpop.f32.mrf.mxu1  ;;  %v5449_v34 = vmul.f32 %v10337_v42, %v10309_v28  ;;  %v5430_v55 = vor.u32 1.1754944e-38, %v5429_v57  ;;  %vm5428_vm7 = vcmp.eq.f32.partialorder %v5427_v54, 8.507059e+37  ;;  %v8134_v54 = vmul.f32 -1.442695, %v10112_v17  ;;  %v11716_v17 = vld [vmem:[#allocation18_spill] sm:$0xff] }
 0x2ff   : > { %v4619_v8 = vadd.f32 %v4570_v7, %v3889_v30  ;;  %v3527_v23 = vadd.f32 %v3480_v25, %v9740_v48  ;;  %v6077_v30 = vpop.permute.xlu2 %6076  ;;  %vm5468_vm1 = vweird.f32 %v10333_v50 }
 0x300   : > { %v5079_v37 = vpop.f32.mrf.mxu0 }
 0x301   : > { %v8422_v31 = vpop.eup %8421  ;;  %v10344_v2 = vadd.f32 %v5076_v0, %v4619_v8  ;;  %v5426_v0 = vsel %vm10351_vm6, %v10289_v5, %v5422_v12  ;;  %v5437_v5 = vadd.f32 %v10313_v44, %v5436_v45 }
 0x302   : > { %6234 = vrot.lane.b32.xlu0 %v6165_v49, %s8753_s4  ;;  %6104 = vrot.lane.b32.xlu1 %v8422_v31, %s8753_s4  ;;  %v8424_v59 = vpop.eup %8423  ;;  %v10365_v48 = vsel %vm5428_vm7, %v5430_v55, %v5426_v0  ;;  %v5450_v31 = vsub.f32 1.0, %v5449_v34 }
 0x303   : > { %8427 = vtanh.f32 %v10344_v2  ;;  %v10363_v29 = vadd.f32 1.0, %v8424_v59  ;;  %v10367_v49 = vpop.eup %8425  ;;  %v6166_v12 = vmul.f32 %v6077_v30, %v10365_v48  ;;  %v5441_v45 = vsel %vm10381_vm10, %v10313_v44, %v5437_v5 }
 0x304   : > { %v3843_v46 = vpop.f32.mrf.mxu2  ;;  %8429 = vpow2.f32 %v8133_v39  ;;  %v5444_v39 = vand.u32 2147483648, %v10285_v3  ;;  %v5464_v3 = vmul.f32 %v10367_v49, %v10333_v50  ;;  %v5451_v34 = vmul.f32 %v10337_v42, %v5450_v31 }
 0x305   : > { %v3890_v7 = vadd.f32 %v3843_v46, %v3527_v23  ;;  %v4573_v43 = vpop.f32.mrf.mxu3  ;;  %8431 = vrcp.f32 %v10363_v29  ;;  %vm5469_vm0 = vweird.f32 %v10367_v49  ;;  %vm5483_vm6 = vweird.f32 %v10363_v29 }
 0x306   : > { %v3482_v8 = vpop.f32.mrf.mxu1  ;;  %v5445_v55 = vor.u32 1.1754944e-38, %v5444_v39  ;;  %v5465_v44 = vsub.f32 1.0, %v5464_v3  ;;  %v5452_v31 = vadd.f32 %v10337_v42, %v5451_v34  ;;  %vm10435_vm2 = vmor %vm5468_vm1, %vm5469_vm0 }
 0x307   : > { %v4620_v25 = vadd.f32 %v4573_v43, %v3890_v7 }
 0x308   : > { %v5081_v16 = vpop.f32.mrf.mxu0 }
 0x309   : > { %v8428_v57 = vpop.eup %8427  ;;  %v10374_v59 = vadd.f32 %v5079_v37, %v4620_v25  ;;  %v3528_v37 = vadd.f32 %v3482_v8, %v11716_v17  ;;  %v10395_v8 = vsel %vm5443_vm11, %v5445_v55, %v5441_v45 }
 0x30a   : > { %6106 = vrot.lane.b32.xlu2 %v8428_v57, %s8753_s4  ;;  %6236 = vrot.lane.b32.xlu1 %v6166_v12, %s8753_s4  ;;  %v8430_v23 = vpop.eup %8429 }
 0x30b   : > { %8433 = vtanh.f32 %v10374_v59  ;;  %v10393_v25 = vadd.f32 1.0, %v8430_v23  ;;  %v10397_v0 = vpop.eup %8431  ;;  %v5459_v23 = vand.u32 2147483648, %v10309_v28 }
 0x30c   : > { %v3845_v46 = vpop.f32.mrf.mxu2  ;;  %8435 = vpow2.f32 %v8134_v54  ;;  %v6079_v43 = vpop.permute.xlu0 %6078  ;;  %v8135_v54 = vmul.f32 -1.442695, %v10131_v27  ;;  %v5466_v27 = vmul.f32 %v10367_v49, %v5465_v44  ;;  %v5479_v34 = vmul.f32 %v10397_v0, %v10363_v29 }
 0x30d   : > { %v3891_v30 = vadd.f32 %v3845_v46, %v3528_v37  ;;  %v4575_v7 = vpop.f32.mrf.mxu3  ;;  %v6167_v5 = vmul.f32 %v6079_v43, %v10395_v8  ;;  %8437 = vrcp.f32 %v10393_v25  ;;  %v5457_v37 = vand.u32 2147483647, %v10309_v28 }
 0x30e   : > { %v3485_v12 = vpop.f32.mrf.mxu1  ;;  %v5456_v46 = vsel %vm5455_vm14, %v10337_v42, %v5452_v31  ;;  %v5467_v44 = vadd.f32 %v10367_v49, %v5466_v27  ;;  %vm5484_vm5 = vweird.f32 %v10397_v0  ;;  %vm5498_vm10 = vweird.f32 %v10393_v25 }
 0x30f   : > { %v4621_v57 = vadd.f32 %v4575_v7, %v3891_v30  ;;  %v3529_v3 = vadd.f32 %v3485_v12, %v9786_v21  ;;  %v5460_v7 = vor.u32 1.1754944e-38, %v5459_v23  ;;  %vm5458_vm15 = vcmp.eq.f32.partialorder %v5457_v37, 8.507059e+37  ;;  %vm5485_vm7 = vmor %vm5483_vm6, %vm5484_vm5 }
 0x310   : > { %v5084_v17 = vpop.f32.mrf.mxu0  ;;  %v8136_v23 = vmul.f32 -1.442695, %v10150_v35  ;;  %v11719_v35 = vld [vmem:[#allocation19_spill] sm:$0xff] }
 0x311   : > { %v8434_v39 = vpop.eup %8433  ;;  %v10403_v36 = vadd.f32 %v5081_v16, %v4621_v57  ;;  %v10419_v21 = vsel %vm5458_vm15, %v5460_v7, %v5456_v46  ;;  %v5471_v46 = vsel %vm10435_vm2, %v10367_v49, %v5467_v44  ;;  %v6083_v7 = vpop.permute.xlu2 %6082 }
 0x312   : > { %6108 = vrot.lane.b32.xlu0 %v8434_v39, %s8753_s4  ;;  %6238 = vrot.lane.b32.xlu2 %v6167_v5, %s8753_s4  ;;  %v8436_v45 = vpop.eup %8435  ;;  %v5480_v39 = vsub.f32 1.0, %v5479_v34 }
 0x313   : > { %8439 = vtanh.f32 %v10403_v36  ;;  %v10417_v28 = vadd.f32 1.0, %v8436_v45  ;;  %v10421_v12 = vpop.eup %8437  ;;  %v5474_v45 = vand.u32 2147483648, %v10333_v50 }
 0x314   : > { %v3848_v16 = vpop.f32.mrf.mxu2  ;;  %8441 = vpow2.f32 %v8135_v54  ;;  %v6081_v43 = vpop.permute.xlu1 %6080  ;;  %vm5499_vm9 = vweird.f32 %v10421_v12 }
 0x315   : > { %v3892_v55 = vadd.f32 %v3848_v16, %v3529_v3  ;;  %v4578_v30 = vpop.f32.mrf.mxu3  ;;  %v6168_v42 = vmul.f32 %v6081_v43, %v10419_v21  ;;  %8443 = vrcp.f32 %v10417_v28  ;;  %v5472_v3 = vand.u32 2147483647, %v10333_v50  ;;  %vm10492_vm11 = vmor %vm5498_vm10, %vm5499_vm9 }
 0x316   : > { %v3487_v57 = vpop.f32.mrf.mxu1  ;;  %v5481_v50 = vmul.f32 %v10397_v0, %v5480_v39  ;;  %vm5513_vm14 = vweird.f32 %v10417_v28 }
 0x317   : > { %v4622_v5 = vadd.f32 %v4578_v30, %v3892_v55  ;;  %v5494_v55 = vmul.f32 %v10421_v12, %v10393_v25  ;;  %v5475_v30 = vor.u32 1.1754944e-38, %v5474_v45  ;;  %vm5473_vm4 = vcmp.eq.f32.partialorder %v5472_v3, 8.507059e+37 }
 0x318   : > { %v5086_v31 = vpop.f32.mrf.mxu0  ;;  %v5482_v44 = vadd.f32 %v10397_v0, %v5481_v50  ;;  %v8137_v45 = vmul.f32 -1.442695, %v10171_v15  ;;  %v5489_v3 = vand.u32 2147483648, %v10363_v29 }
 0x319   : > { %v8440_v54 = vpop.eup %8439  ;;  %v10428_v37 = vadd.f32 %v5084_v17, %v4622_v5  ;;  %v3530_v17 = vadd.f32 %v3487_v57, %v11719_v35  ;;  %v10449_v57 = vsel %vm5473_vm4, %v5475_v30, %v5471_v46  ;;  %v5495_v39 = vsub.f32 1.0, %v5494_v55 }
 0x31a   : > { %6240 = vrot.lane.b32.xlu0 %v6168_v42, %s8753_s4  ;;  %6110 = vrot.lane.b32.xlu1 %v8440_v54, %s8753_s4  ;;  %v8442_v27 = vpop.eup %8441  ;;  %v6169_v49 = vmul.f32 %v6083_v7, %v10449_v57  ;;  %v5487_v46 = vand.u32 2147483647, %v10363_v29  ;;  %v5486_v55 = vsel %vm5485_vm7, %v10397_v0, %v5482_v44  ;;  %v5490_v29 = vor.u32 1.1754944e-38, %v5489_v3 }
 0x31b   : > { %8445 = vtanh.f32 %v10428_v37  ;;  %v10447_v42 = vadd.f32 1.0, %v8442_v27  ;;  %v10451_v16 = vpop.eup %8443  ;;  %v5496_v30 = vmul.f32 %v10421_v12, %v5495_v39  ;;  %v5502_v3 = vand.u32 2147483647, %v10393_v25 }
 0x31c   : > { %v3850_v34 = vpop.f32.mrf.mxu2  ;;  %8447 = vpow2.f32 %v8136_v23  ;;  %vm5488_vm8 = vcmp.eq.f32.partialorder %v5487_v46, 8.507059e+37  ;;  %vm5514_vm13 = vweird.f32 %v10451_v16 }
 0x31d   : > { %v3893_v43 = vadd.f32 %v3850_v34, %v3530_v17  ;;  %v4580_v5 = vpop.f32.mrf.mxu3  ;;  %8449 = vrcp.f32 %v10447_v42  ;;  %v5497_v0 = vadd.f32 %v10421_v12, %v5496_v30  ;;  %vm5503_vm12 = vcmp.eq.f32.partialorder %v5502_v3, 8.507059e+37  ;;  %vm10520_vm15 = vmor %vm5513_vm14, %vm5514_vm13 }
 0x31e   : > { %v3490_v54 = vpop.f32.mrf.mxu1  ;;  %v5534_v3 = vand.u32 2147483648, %v10447_v42  ;;  %vm5528_vm2 = vweird.f32 %v10447_v42 }
 0x31f   : > { %v4623_v35 = vadd.f32 %v4580_v5, %v3893_v43  ;;  %v3531_v15 = vadd.f32 %v3490_v54, %v9829_v6 }
 0x320   : > { %v5089_v27 = vpop.f32.mrf.mxu0 }
 0x321   : > { %v8446_v23 = vpop.eup %8445  ;;  %v10457_v17 = vadd.f32 %v5086_v31, %v4623_v35  ;;  %v5509_v31 = vmul.f32 %v10451_v16, %v10417_v28 }
 0x322   : > { %6112 = vrot.lane.b32.xlu2 %v8446_v23, %s8753_s4  ;;  %6242 = vrot.lane.b32.xlu1 %v6169_v49, %s8753_s4  ;;  %v8448_v34 = vpop.eup %8447  ;;  %v10475_v49 = vsel %vm5488_vm8, %v5490_v29, %v5486_v55 }
 0x323   : > { %8451 = vtanh.f32 %v10457_v17  ;;  %v10473_v35 = vadd.f32 1.0, %v8448_v34  ;;  %v10477_v23 = vpop.eup %8449  ;;  %v5510_v51 = vsub.f32 1.0, %v5509_v31 }
 0x324   : > { %v3853_v50 = vpop.f32.mrf.mxu2  ;;  %8453 = vpow2.f32 %v8137_v45  ;;  %v6085_v5 = vpop.permute.xlu0 %6084  ;;  %v5504_v45 = vand.u32 2147483648, %v10393_v25  ;;  %v5524_v25 = vmul.f32 %v10477_v23, %v10447_v42  ;;  %vm5529_vm1 = vweird.f32 %v10477_v23 }
 0x325   : > { %v3894_v7 = vadd.f32 %v3853_v50, %v3531_v15  ;;  %v4583_v43 = vpop.f32.mrf.mxu3  ;;  %v6170_v13 = vmul.f32 %v6085_v5, %v10475_v49  ;;  %8455 = vrcp.f32 %v10473_v35  ;;  %v5511_v15 = vmul.f32 %v10451_v16, %v5510_v51  ;;  %vm5530_vm4 = vmor %vm5528_vm2, %vm5529_vm1 }
 0x326   : > { %v3492_v6 = vpop.f32.mrf.mxu1  ;;  %v8138_v5 = vmul.f32 -1.442695, %v10204_v9  ;;  %v5517_v9 = vand.u32 2147483647, %v10417_v28  ;;  %vm5543_vm7 = vweird.f32 %v10473_v35 }
 0x327   : > { %v4624_v54 = vadd.f32 %v4583_v43, %v3894_v7  ;;  %v3532_v34 = vadd.f32 %v3492_v6, %v9856_v53  ;;  %v5505_v7 = vor.u32 1.1754944e-38, %v5504_v45 }
 0x328   : > { %v5091_v31 = vpop.f32.mrf.mxu0  ;;  %vm5518_vm0 = vcmp.eq.f32.partialorder %v5517_v9, 8.507059e+37 }
 0x329   : > { %v8452_v44 = vpop.eup %8451  ;;  %v10482_v39 = vadd.f32 %v5089_v27, %v4624_v54  ;;  %v11724_v27 = vld [vmem:[#allocation20_spill] sm:$0xff] }
 0x32a   : > { %6114 = vrot.lane.b32.xlu0 %v8452_v44, %s8753_s4  ;;  %6244 = vrot.lane.b32.xlu2 %v6170_v13, %s8753_s4  ;;  %v8454_v46 = vpop.eup %8453  ;;  %v5501_v13 = vsel %vm10492_vm11, %v10421_v12, %v5497_v0  ;;  %v5512_v12 = vadd.f32 %v10451_v16, %v5511_v15  ;;  %v5525_v44 = vsub.f32 1.0, %v5524_v25 }
 0x32b   : > { %8457 = vtanh.f32 %v10482_v39  ;;  %v10502_v53 = vadd.f32 1.0, %v8454_v46  ;;  %v10505_v6 = vsel %vm5503_vm12, %v5505_v7, %v5501_v13  ;;  %v10507_v54 = vpop.eup %8455  ;;  %v5519_v46 = vand.u32 2147483648, %v10417_v28 }
 0x32c   : > { %v3855_v50 = vpop.f32.mrf.mxu2  ;;  %v6087_v43 = vpop.permute.xlu1 %6086  ;;  %v5526_v28 = vmul.f32 %v10477_v23, %v5525_v44  ;;  %v5539_v13 = vmul.f32 %v10507_v54, %v10473_v35  ;;  %vm5544_vm6 = vweird.f32 %v10507_v54 }
 0x32d   : > { %v3895_v55 = vadd.f32 %v3855_v50, %v3532_v34  ;;  %v4585_v30 = vpop.f32.mrf.mxu3  ;;  %v6171_v0 = vmul.f32 %v6087_v43, %v10505_v6  ;;  %8459 = vrcp.f32 %v10502_v53  ;;  %v5520_v25 = vor.u32 1.1754944e-38, %v5519_v46  ;;  %vm5545_vm8 = vmor %vm5543_vm7, %vm5544_vm6 }
 0x32e   : > { %v3495_v29 = vpop.f32.mrf.mxu1  ;;  %v5540_v44 = vsub.f32 1.0, %v5539_v13  ;;  %vm5558_vm11 = vweird.f32 %v10502_v53 }
 0x32f   : > { %v4625_v51 = vadd.f32 %v4585_v30, %v3895_v55  ;;  %v3533_v15 = vadd.f32 %v3495_v29, %v11724_v27  ;;  %v6089_v55 = vpop.permute.xlu2 %6088  ;;  %v8140_v27 = vmul.f32 -1.442695, %v10266_v62 }
 0x330   : > { %v5094_v43 = vpop.f32.mrf.mxu0  ;;  %v5541_v62 = vmul.f32 %v10507_v54, %v5540_v44 }
 0x331   : > { %v8458_v45 = vpop.eup %8457  ;;  %v10513_v34 = vadd.f32 %v5091_v31, %v4625_v51  ;;  %v5516_v31 = vsel %vm10520_vm15, %v10451_v16, %v5512_v12  ;;  %v5527_v12 = vadd.f32 %v10477_v23, %v5526_v28 }
 0x332   : > { %6246 = vrot.lane.b32.xlu0 %v6171_v0, %s8753_s4  ;;  %6116 = vrot.lane.b32.xlu1 %v8458_v45, %s8753_s4  ;;  %v10532_v0 = vsel %vm5518_vm0, %v5520_v25, %v5516_v31  ;;  %v11725_v31 = vld [vmem:[#allocation21_spill] sm:$0xff] }
 0x333   : > { %8461 = vtanh.f32 %v10513_v34  ;;  %v6172_v16 = vmul.f32 %v6089_v55, %v10532_v0  ;;  %v5531_v25 = vsel %vm5530_vm4, %v10477_v23, %v5527_v12  ;;  %v5542_v12 = vadd.f32 %v10507_v54, %v5541_v62 }
 0x334   : > { %8463 = vpow2.f32 %v8138_v5  ;;  %v3858_v50 = vpop.f32.mrf.mxu2  ;;  %v10534_v5 = vpop.eup %8459 }
 0x335   : > { %v3896_v30 = vadd.f32 %v3858_v50, %v3533_v15  ;;  %v4588_v7 = vpop.f32.mrf.mxu3  ;;  %v5532_v15 = vand.u32 2147483647, %v10447_v42  ;;  %v5554_v28 = vmul.f32 %v10534_v5, %v10502_v53  ;;  %v8139_v42 = vmul.f32 -1.442695, %v10236_v19 }
 0x336   : > { %v3497_v51 = vpop.f32.mrf.mxu1  ;;  %v5549_v19 = vand.u32 2147483648, %v10473_v35  ;;  %vm5559_vm10 = vweird.f32 %v10534_v5 }
 0x337   : > { %v4626_v29 = vadd.f32 %v4588_v7, %v3896_v30  ;;  %v3534_v50 = vadd.f32 %v3497_v51, %v11725_v31  ;;  %v5535_v7 = vor.u32 1.1754944e-38, %v5534_v3  ;;  %vm5533_vm5 = vcmp.eq.f32.partialorder %v5532_v15, 8.507059e+37  ;;  %vm5560_vm12 = vmor %vm5558_vm11, %vm5559_vm10 }
 0x338   : > { %v5096_v31 = vpop.f32.mrf.mxu0 }
 0x339   : > { %v8462_v45 = vpop.eup %8461  ;;  %v10539_v46 = vadd.f32 %v5094_v43, %v4626_v29 }
 0x33a   : > { %v8464_v9 = vpop.eup %8463  ;;  %6118 = vrot.lane.b32.xlu2 %v8462_v45, %s8753_s4  ;;  %6248 = vrot.lane.b32.xlu1 %v6172_v16, %s8753_s4  ;;  %v10556_v16 = vsel %vm5533_vm5, %v5535_v7, %v5531_v25  ;;  %v5555_v45 = vsub.f32 1.0, %v5554_v28  ;;  %v5546_v25 = vsel %vm5545_vm8, %v10507_v54, %v5542_v12  ;;  %v5550_v7 = vor.u32 1.1754944e-38, %v5549_v19 }
 0x33b   : > { %8465 = vtanh.f32 %v10539_v46  ;;  %v10553_v55 = vadd.f32 1.0, %v8464_v9  ;;  %v6095_v9 = vpop.permute.xlu2 %6094  ;;  %v5562_v12 = vand.u32 2147483647, %v10502_v53 }
 0x33c   : > { %v3860_v13 = vpop.f32.mrf.mxu2  ;;  %v6091_v43 = vpop.permute.xlu0 %6090  ;;  %8467 = vpow2.f32 %v8140_v27  ;;  %v5547_v27 = vand.u32 2147483647, %v10473_v35  ;;  %v5556_v28 = vmul.f32 %v10534_v5, %v5555_v45 }
 0x33d   : > { %v3897_v30 = vadd.f32 %v3860_v13, %v3534_v50  ;;  %v4590_v29 = vpop.f32.mrf.mxu3  ;;  %v6173_v4 = vmul.f32 %v6091_v43, %v10556_v16  ;;  %8469 = vrcp.f32 %v10553_v55  ;;  %vm5563_vm13 = vcmp.eq.f32.partialorder %v5562_v12, 8.507059e+37 }
 0x33e   : > { %v3500_v23 = vpop.f32.mrf.mxu1  ;;  %8471 = vpow2.f32 %v8139_v42  ;;  %vm5548_vm9 = vcmp.eq.f32.partialorder %v5547_v27, 8.507059e+37  ;;  %v6000_v27 = vmul.f32 %v9943_v60, %v10195_v38  ;;  %vm5573_vm15 = vweird.f32 %v10553_v55 }
 0x33f   : > { %v4627_v51 = vadd.f32 %v4590_v29, %v3897_v30  ;;  %v3535_v15 = vadd.f32 %v3500_v23, %v9901_v18  ;;  %v10577_v35 = vsel %vm5548_vm9, %v5550_v7, %v5546_v25  ;;  %v8141_v18 = vmul.f32 -1.442695, %v10295_v14 }
 0x341   : > { %v8466_v44 = vpop.eup %8465  ;;  %v10562_v3 = vadd.f32 %v5096_v31, %v4627_v51  ;;  %v5557_v51 = vadd.f32 %v10534_v5, %v5556_v28  ;;  %v5564_v31 = vand.u32 2147483648, %v10502_v53 }
 0x342   : > { %6120 = vrot.lane.b32.xlu0 %v8466_v44, %s8753_s4  ;;  %6250 = vrot.lane.b32.xlu2 %v6173_v4, %s8753_s4  ;;  %v8468_v50 = vpop.eup %8467  ;;  %v5099_v44 = vpop.f32.mrf.mxu0 }
 0x343   : > { %8473 = vtanh.f32 %v10562_v3  ;;  %v10573_v43 = vpop.eup %8469  ;;  %v10575_v42 = vadd.f32 1.0, %v8468_v50  ;;  %v6227_v53 = vpop.permute.xlu2 %6226  ;;  %v11726_v50 = vld [vmem:[#allocation26_spill] sm:$0xff] }
 0x344   : > { %v3863_v13 = vpop.f32.mrf.mxu2  ;;  %v6093_v62 = vpop.permute.xlu1 %6092  ;;  %v5569_v14 = vmul.f32 %v10573_v43, %v10553_v55  ;;  %v6001_v28 = vmul.f32 %v11726_v50, %v10227_v63  ;;  %vm5574_vm14 = vweird.f32 %v10573_v43 }
 0x345   : > { %v3898_v30 = vadd.f32 %v3863_v13, %v3535_v15  ;;  %v4593_v4 = vpop.f32.mrf.mxu3  ;;  %v8472_v29 = vpop.eup %8471  ;;  %v6174_v54 = vmul.f32 %v6093_v62, %v10577_v35  ;;  %8475 = vrcp.f32 %v10575_v42  ;;  %v5561_v15 = vsel %vm5560_vm12, %v10534_v5, %v5557_v51  ;;  %vm5575_vm0 = vmor %vm5573_vm15, %vm5574_vm14 }
 0x346   : > { %v10590_v19 = vadd.f32 1.0, %v8472_v29  ;;  %8477 = vpow2.f32 %v8141_v18  ;;  %v5565_v13 = vor.u32 1.1754944e-38, %v5564_v31  ;;  %v5570_v7 = vsub.f32 1.0, %v5569_v14  ;;  %v3502_v60 = vpop.f32.mrf.mxu1  ;;  %v11727_v31 = vld [vmem:[#allocation22_spill] sm:$0xff] }
 0x347   : > { %v4628_v23 = vadd.f32 %v4593_v4, %v3898_v30  ;;  %v6321_v29 = vadd.f32 %v6227_v53, %v6001_v28  ;;  %vm5603_vm4 = vweird.f32 %v10575_v42 }
 0x348   : > { %8479 = vrcp.f32 %v10590_v19  ;;  %v10601_v4 = vsel %vm5563_vm13, %v5565_v13, %v5561_v15  ;;  %v5571_v12 = vmul.f32 %v10573_v43, %v5570_v7  ;;  %v8142_v13 = vmul.f32 -1.442695, %v10319_v58 }
 0x349   : > { %v8474_v45 = vpop.eup %8473  ;;  %v10598_v25 = vadd.f32 %v5099_v44, %v4628_v23  ;;  %v6175_v18 = vmul.f32 %v6095_v9, %v10601_v4  ;;  %v3536_v23 = vadd.f32 %v3502_v60, %v11727_v31  ;;  %v5577_v60 = vand.u32 2147483647, %v10553_v55  ;;  %v11728_v31 = vld [vmem:[#allocation24_spill] sm:$0xff] }
 0x34a   : > { %6252 = vrot.lane.b32.xlu0 %v6174_v54, %s8753_s4  ;;  %6122 = vrot.lane.b32.xlu1 %v8474_v45, %s8753_s4  ;;  %v8143_v45 = vmul.f32 -1.442695, %v10344_v2  ;;  %v5572_v2 = vadd.f32 %v10573_v43, %v5571_v12  ;;  %vm5588_vm8 = vweird.f32 %v10590_v19 }
 0x34b   : > { %v10605_v5 = vpop.eup %8475  ;;  %vm5578_vm1 = vcmp.eq.f32.partialorder %v5577_v60, 8.507059e+37 }
 0x34c   : > { %v6225_v62 = vpop.permute.xlu1 %6224  ;;  %v3865_v51 = vpop.f32.mrf.mxu2  ;;  %v5599_v44 = vmul.f32 %v10605_v5, %v10575_v42  ;;  %vm5604_vm2 = vweird.f32 %v10605_v5 }
 0x34d   : > { %v6320_v30 = vadd.f32 %v6225_v62, %v6000_v27  ;;  %v8478_v54 = vpop.eup %8477  ;;  %v3899_v9 = vadd.f32 %v3865_v51, %v3536_v23  ;;  %v4595_v53 = vpop.f32.mrf.mxu3  ;;  %v5579_v62 = vand.u32 2147483648, %v10553_v55  ;;  %v6002_v23 = vmul.f32 %v11728_v31, %v10257_v33  ;;  %vm5605_vm5 = vmor %vm5603_vm4, %vm5604_vm2 }
 0x34e   : > { %v10614_v27 = vpop.eup %8479  ;;  %v10616_v15 = vadd.f32 1.0, %v8478_v54  ;;  %v5101_v51 = vpop.f32.mrf.mxu0 }
 0x34f   : > { %8481 = vtanh.f32 %v6320_v30  ;;  %6576 = vrot.lane.b32.xlu2 %v6320_v30, %s8754_s11  ;;  %v5600_v30 = vsub.f32 1.0, %v5599_v44  ;;  %v4629_v7 = vadd.f32 %v4595_v53, %v3899_v9  ;;  %v5584_v58 = vmul.f32 %v10614_v27, %v10590_v19  ;;  %v6101_v54 = vpop.permute.xlu2 %6100 }
 0x350   : > { %8483 = vtanh.f32 %v10598_v25  ;;  %v5580_v55 = vor.u32 1.1754944e-38, %v5579_v62  ;;  %v8144_v62 = vmul.f32 -1.442695, %v10374_v59  ;;  %vm5589_vm6 = vweird.f32 %v10614_v27 }
 0x351   : > { %8485 = vtanh.f32 %v6321_v29  ;;  %v5601_v9 = vmul.f32 %v10605_v5, %v5600_v30  ;;  %v10634_v44 = vadd.f32 %v5101_v51, %v4629_v7  ;;  %v5585_v24 = vsub.f32 1.0, %v5584_v58  ;;  %vm5590_vm9 = vmor %vm5588_vm8, %vm5589_vm6 }
 0x352   : > { %6254 = vrot.lane.b32.xlu1 %v6175_v18, %s8753_s4  ;;  %8487 = vpow2.f32 %v8143_v45  ;;  %v5576_v45 = vsel %vm5575_vm0, %v10573_v43, %v5572_v2  ;;  %v5607_v51 = vand.u32 2147483647, %v10575_v42  ;;  %vm5618_vm12 = vweird.f32 %v10616_v15 }
 0x353   : > { %8489 = vrcp.f32 %v10616_v15  ;;  %v5602_v30 = vadd.f32 %v10605_v5, %v5601_v9  ;;  %v5586_v60 = vmul.f32 %v10614_v27, %v5585_v24  ;;  %v5594_v9 = vand.u32 2147483648, %v10590_v19 }
 0x354   : > { %v6097_v14 = vpop.permute.xlu0 %6096  ;;  %8491 = vpow2.f32 %v8142_v13  ;;  %vm5608_vm7 = vcmp.eq.f32.partialorder %v5607_v51, 8.507059e+37  ;;  %v6003_v51 = vmul.f32 %v9983_v47, %v10287_v22 }
 0x355   : > { %v8482_v50 = vpop.eup %8481  ;;  %v5606_v58 = vsel %vm5605_vm5, %v10605_v5, %v5602_v30  ;;  %v5592_v5 = vand.u32 2147483647, %v10590_v19  ;;  %v8146_v19 = vmul.f32 -1.442695, %v10428_v37 }
 0x356   : > { %v8484_v28 = vpop.eup %8483  ;;  %6416 = vrot.lane.b32.xlu0 %v8482_v50, %s8753_s4  ;;  %v10636_v50 = vsel %vm5578_vm1, %v5580_v55, %v5576_v45 }
 0x357   : > { %6124 = vrot.lane.b32.xlu2 %v8484_v28, %s8753_s4  ;;  %v8486_v18 = vpop.eup %8485  ;;  %v6176_v43 = vmul.f32 %v6097_v14, %v10636_v50  ;;  %v5609_v14 = vand.u32 2147483648, %v10575_v42  ;;  %v6233_v45 = vpop.permute.xlu2 %6232  ;;  %v5587_v42 = vadd.f32 %v10614_v27, %v5586_v60  ;;  %vm5593_vm10 = vcmp.eq.f32.partialorder %v5592_v5, 8.507059e+37 }
 0x358   : > { %v8488_v12 = vpop.eup %8487 }
 0x359   : > { %v10639_v2 = vpop.eup %8489  ;;  %v5610_v24 = vor.u32 1.1754944e-38, %v5609_v14 }
 0x35a   : > { %6418 = vrot.lane.b32.xlu1 %v8486_v18, %s8753_s4  ;;  %v10641_v18 = vadd.f32 1.0, %v8488_v12  ;;  %v8492_v7 = vpop.eup %8491  ;;  %v5614_v59 = vmul.f32 %v10639_v2, %v10616_v15  ;;  %vm5619_vm11 = vweird.f32 %v10639_v2 }
 0x35b   : > { %vm5620_vm13 = vmor %vm5618_vm12, %vm5619_vm11 }
 0x35c   : > { %v6229_v53 = vpop.permute.xlu0 %6228  ;;  %v6099_v13 = vpop.permute.xlu1 %6098  ;;  %vm5648_vm0 = vweird.f32 %v10641_v18 }
 0x35d   : > { %v6322_v28 = vadd.f32 %v6229_v53, %v6002_v23  ;;  %v11729_v23 = vld [vmem:[#allocation23_spill] sm:$0xff]  ;;  %v5615_v53 = vsub.f32 1.0, %v5614_v59  ;;  %v5595_v59 = vor.u32 1.1754944e-38, %v5594_v9  ;;  %v5622_v9 = vand.u32 2147483647, %v10616_v15 }
 0x35e   : > { %6578 = vrot.lane.b32.xlu0 %v6321_v29, %s8754_s11  ;;  %v10657_v29 = vadd.f32 1.0, %v8492_v7  ;;  %v6004_v55 = vmul.f32 %v11729_v23, %v10311_v52  ;;  %v5591_v7 = vsel %vm5590_vm9, %v10614_v27, %v5587_v42  ;;  %v5624_v42 = vand.u32 2147483648, %v10616_v15 }
 0x35f   : > { %8493 = vtanh.f32 %v6322_v28  ;;  %6256 = vrot.lane.b32.xlu2 %v6176_v43, %s8753_s4  ;;  %vm5623_vm14 = vcmp.eq.f32.partialorder %v5622_v9, 8.507059e+37  ;;  %v5654_v9 = vand.u32 2147483648, %v10641_v18 }
 0x360   : > { %8495 = vtanh.f32 %v10634_v44  ;;  %v10667_v43 = vadd.f32 %v6233_v45, %v6004_v55  ;;  %v8145_v55 = vmul.f32 -1.442695, %v10403_v36  ;;  %vm5633_vm5 = vweird.f32 %v10657_v29 }
 0x361   : > { %8497 = vrcp.f32 %v10641_v18 }
 0x362   : > { %6580 = vrot.lane.b32.xlu1 %v6322_v28, %s8754_s11  ;;  %8499 = vpow2.f32 %v8144_v62  ;;  %v10665_v28 = vsel %vm5608_vm7, %v5610_v24, %v5606_v58  ;;  %v5616_v58 = vmul.f32 %v10639_v2, %v5615_v53 }
 0x363   : > { %8501 = vrcp.f32 %v10657_v29  ;;  %v6178_v62 = vmul.f32 %v6101_v54, %v10665_v28  ;;  %v10684_v54 = vsel %vm5593_vm10, %v5595_v59, %v5591_v7  ;;  %v11730_v7 = vld [vmem:[#allocation25_spill] sm:$0xff] }
 0x364   : > { %v6231_v14 = vpop.permute.xlu1 %6230  ;;  %8503 = vtanh.f32 %v10667_v43  ;;  %v6177_v47 = vmul.f32 %v6099_v13, %v10684_v54  ;;  %v5617_v23 = vadd.f32 %v10639_v2, %v5616_v58  ;;  %v6107_v36 = vpop.permute.xlu2 %6106 }
 0x365   : > { %v8494_v31 = vpop.eup %8493  ;;  %v6323_v45 = vadd.f32 %v6231_v14, %v6003_v51  ;;  %8505 = vpow2.f32 %v8146_v19  ;;  %v6005_v14 = vmul.f32 %v11730_v7, %v10335_v40 }
 0x366   : > { %v8496_v12 = vpop.eup %8495  ;;  %v5621_v5 = vsel %vm5620_vm13, %v10639_v2, %v5617_v23 }
 0x367   : > { %6126 = vrot.lane.b32.xlu0 %v8496_v12, %s8753_s4  ;;  %6420 = vrot.lane.b32.xlu2 %v8494_v31, %s8753_s4  ;;  %v10675_v30 = vpop.eup %8497  ;;  %8507 = vtanh.f32 %v6323_v45 }
 0x368   : > { %v8500_v60 = vpop.eup %8499  ;;  %v5644_v27 = vmul.f32 %v10675_v30, %v10641_v18  ;;  %vm5649_vm15 = vweird.f32 %v10675_v30 }
 0x369   : > { %v10688_v24 = vadd.f32 1.0, %v8500_v60  ;;  %v10691_v37 = vpop.eup %8501  ;;  %vm5650_vm1 = vmor %vm5648_vm0, %vm5649_vm15 }
 0x36a   : > { %6260 = vrot.lane.b32.xlu1 %v6178_v62, %s8753_s4  ;;  %v5645_v12 = vsub.f32 1.0, %v5644_v27  ;;  %v8504_v13 = vpop.eup %8503  ;;  %v5629_v53 = vmul.f32 %v10691_v37, %v10657_v29  ;;  %v5625_v62 = vor.u32 1.1754944e-38, %v5624_v42  ;;  %vm5634_vm2 = vweird.f32 %v10691_v37 }
 0x36b   : > { %8509 = vrcp.f32 %v10688_v24  ;;  %v8506_v15 = vpop.eup %8505  ;;  %vm5635_vm6 = vmor %vm5633_vm5, %vm5634_vm2  ;;  %vm5663_vm9 = vweird.f32 %v10688_v24 }
 0x36c   : > { %v6103_v31 = vpop.permute.xlu0 %6102  ;;  %8511 = vpow2.f32 %v8145_v55  ;;  %v5646_v60 = vmul.f32 %v10675_v30, %v5645_v12  ;;  %v10709_v19 = vsel %vm5623_vm14, %v5625_v62, %v5621_v5  ;;  %v5630_v58 = vsub.f32 1.0, %v5629_v53  ;;  %v6239_v62 = vpop.permute.xlu2 %6238 }
 0x36d   : > { %v8508_v27 = vpop.eup %8507  ;;  %v8147_v55 = vmul.f32 -1.442695, %v10457_v17 }
 0x36e   : > { %v5647_v42 = vadd.f32 %v10675_v30, %v5646_v60  ;;  %v5639_v60 = vand.u32 2147483648, %v10657_v29 }
 0x36f   : > { %6258 = vrot.lane.b32.xlu0 %v6177_v47, %s8753_s4  ;;  %6582 = vrot.lane.b32.xlu2 %v6323_v45, %s8754_s11  ;;  %v6179_v45 = vmul.f32 %v6103_v31, %v10709_v19  ;;  %v10714_v47 = vadd.f32 1.0, %v8506_v15  ;;  %v5631_v31 = vmul.f32 %v10691_v37, %v5630_v58  ;;  %v5655_v15 = vor.u32 1.1754944e-38, %v5654_v9 }
 0x370   : > { %v5651_v5 = vsel %vm5650_vm1, %v10675_v30, %v5647_v42  ;;  %v5637_v30 = vand.u32 2147483647, %v10657_v29  ;;  %v8149_v29 = vmul.f32 -1.442695, %v10513_v34  ;;  %v5640_v9 = vor.u32 1.1754944e-38, %v5639_v60 }
 0x371   : > { %v10712_v2 = vpop.eup %8509  ;;  %vm5693_vm13 = vweird.f32 %v10714_v47 }
 0x372   : > { %6424 = vrot.lane.b32.xlu1 %v8504_v13, %s8753_s4  ;;  %v8512_v12 = vpop.eup %8511  ;;  %v5652_v13 = vand.u32 2147483647, %v10641_v18  ;;  %v5659_v17 = vmul.f32 %v10712_v2, %v10688_v24  ;;  %v5632_v18 = vadd.f32 %v10691_v37, %v5631_v31  ;;  %vm5638_vm7 = vcmp.eq.f32.partialorder %v5637_v30, 8.507059e+37  ;;  %v11731_v30 = vld [vmem:[#allocation27_spill] sm:$0xff] }
 0x373   : > { %v10729_v53 = vadd.f32 1.0, %v8512_v12  ;;  %v6006_v12 = vmul.f32 %v9985_v56, %v10365_v48  ;;  %vm5664_vm8 = vweird.f32 %v10712_v2 }
 0x374   : > { %v6235_v51 = vpop.permute.xlu0 %6234  ;;  %v6105_v23 = vpop.permute.xlu1 %6104  ;;  %vm5653_vm4 = vcmp.eq.f32.partialorder %v5652_v13, 8.507059e+37  ;;  %vm5665_vm10 = vmor %vm5663_vm9, %vm5664_vm8 }
 0x375   : > { %v6325_v59 = vadd.f32 %v6235_v51, %v6005_v14  ;;  %v6007_v14 = vmul.f32 %v10006_v11, %v10395_v8  ;;  %v5660_v51 = vsub.f32 1.0, %v5659_v17  ;;  %vm5678_vm1 = vweird.f32 %v10729_v53 }
 0x377   : > { %8513 = vtanh.f32 %v6325_v59  ;;  %6422 = vrot.lane.b32.xlu0 %v8508_v27, %s8753_s4  ;;  %6262 = vrot.lane.b32.xlu2 %v6179_v45, %s8753_s4  ;;  %v10739_v58 = vadd.f32 %v6239_v62, %v6007_v14  ;;  %v5636_v45 = vsel %vm5635_vm6, %v10691_v37, %v5632_v18  ;;  %v5669_v14 = vand.u32 2147483648, %v10688_v24 }
 0x378   : > { %8515 = vrcp.f32 %v10714_v47 }
 0x379   : > { %8517 = vpow2.f32 %v8147_v55 }
 0x37a   : > { %6586 = vrot.lane.b32.xlu1 %v6325_v59, %s8754_s11  ;;  %v10737_v59 = vsel %vm5653_vm4, %v5655_v15, %v5651_v5  ;;  %8519 = vrcp.f32 %v10729_v53 }
 0x37b   : > { %v6181_v11 = vmul.f32 %v6107_v36, %v10737_v59  ;;  %8521 = vtanh.f32 %v10739_v58  ;;  %v10757_v36 = vsel %vm5638_vm7, %v5640_v9, %v5636_v45 }
 0x37c   : > { %v6237_v55 = vpop.permute.xlu1 %6236  ;;  %v6180_v56 = vmul.f32 %v6105_v23, %v10757_v36  ;;  %8523 = vpow2.f32 %v8149_v29  ;;  %v10766_v5 = vpop.permute.xlu2 %6112  ;;  %v5667_v23 = vand.u32 2147483647, %v10688_v24 }
 0x37d   : > { %v8514_v7 = vpop.eup %8513  ;;  %v6326_v31 = vadd.f32 %v6237_v55, %v6006_v12 }
 0x37e   : > { %v10748_v27 = vpop.eup %8515  ;;  %vm5668_vm11 = vcmp.eq.f32.partialorder %v5667_v23, 8.507059e+37  ;;  %v5697_v23 = vand.u32 2147483647, %v10714_v47 }
 0x37f   : > { %6584 = vrot.lane.b32.xlu0 %v10667_v43, %s8754_s11  ;;  %6426 = vrot.lane.b32.xlu2 %v8514_v7, %s8753_s4  ;;  %v8518_v42 = vpop.eup %8517  ;;  %v5661_v43 = vmul.f32 %v10712_v2, %v5660_v51  ;;  %v5689_v37 = vmul.f32 %v10748_v27, %v10714_v47  ;;  %v8148_v7 = vmul.f32 -1.442695, %v10482_v39  ;;  %8525 = vtanh.f32 %v6326_v31 }
 0x380   : > { %v10761_v17 = vadd.f32 1.0, %v8518_v42  ;;  %v10764_v34 = vpop.eup %8519  ;;  %v5670_v51 = vor.u32 1.1754944e-38, %v5669_v14  ;;  %vm5694_vm12 = vweird.f32 %v10748_v27  ;;  %vm5698_vm0 = vcmp.eq.f32.partialorder %v5697_v23, 8.507059e+37 }
 0x381   : > { %v5662_v62 = vadd.f32 %v10712_v2, %v5661_v43  ;;  %v5690_v15 = vsub.f32 1.0, %v5689_v37  ;;  %v8522_v18 = vpop.eup %8521  ;;  %v5674_v60 = vmul.f32 %v10764_v34, %v10729_v53  ;;  %vm5695_vm14 = vmor %vm5693_vm13, %vm5694_vm12  ;;  %vm5679_vm15 = vweird.f32 %v10764_v34 }
 0x382   : > { %6266 = vrot.lane.b32.xlu1 %v6181_v11, %s8753_s4  ;;  %8527 = vrcp.f32 %v10761_v17  ;;  %v6008_v11 = vmul.f32 %v11731_v30, %v10419_v21  ;;  %v8524_v45 = vpop.eup %8523  ;;  %v6010_v30 = vmul.f32 %v10023_v20, %v10475_v49  ;;  %vm5680_vm2 = vmor %vm5678_vm1, %vm5679_vm15  ;;  %vm5708_vm6 = vweird.f32 %v10761_v17 }
 0x383   : > { %v5666_v39 = vsel %vm5665_vm10, %v10712_v2, %v5662_v62  ;;  %8529 = vpow2.f32 %v8148_v7  ;;  %v5691_v24 = vmul.f32 %v10748_v27, %v5690_v15  ;;  %v5675_v29 = vsub.f32 1.0, %v5674_v60 }
 0x384   : > { %v6109_v13 = vpop.permute.xlu0 %6108  ;;  %v10784_v42 = vsel %vm5668_vm11, %v5670_v51, %v5666_v39  ;;  %v10789_v37 = vadd.f32 1.0, %v8524_v45  ;;  %v6245_v7 = vpop.permute.xlu2 %6244 }
 0x385   : > { %v8526_v9 = vpop.eup %8525  ;;  %v6182_v43 = vmul.f32 %v6109_v13, %v10784_v42  ;;  %v5692_v62 = vadd.f32 %v10748_v27, %v5691_v24  ;;  %v5699_v13 = vand.u32 2147483648, %v10714_v47  ;;  %v5676_v15 = vmul.f32 %v10764_v34, %v5675_v29 }
 0x386   : > { %vm5738_vm10 = vweird.f32 %v10789_v37 }
 0x387   : > { %6264 = vrot.lane.b32.xlu0 %v6180_v56, %s8753_s4  ;;  %6588 = vrot.lane.b32.xlu2 %v6326_v31, %s8754_s11  ;;  %v8150_v56 = vmul.f32 -1.442695, %v10539_v46  ;;  %v5696_v60 = vsel %vm5695_vm14, %v10748_v27, %v5692_v62  ;;  %v5700_v51 = vor.u32 1.1754944e-38, %v5699_v13  ;;  %v5677_v47 = vadd.f32 %v10764_v34, %v5676_v15 }
 0x388   : > { %v10787_v2 = vpop.eup %8527  ;;  %v5682_v27 = vand.u32 2147483647, %v10729_v53 }
 0x389   : > { %v8530_v14 = vpop.eup %8529  ;;  %v5704_v46 = vmul.f32 %v10787_v2, %v10761_v17  ;;  %v10812_v24 = vsel %vm5698_vm0, %v5700_v51, %v5696_v60  ;;  %v8151_v60 = vmul.f32 -1.442695, %v10562_v3  ;;  %vm5709_vm5 = vweird.f32 %v10787_v2 }
 0x38a   : > { %6430 = vrot.lane.b32.xlu1 %v8522_v18, %s8753_s4  ;;  %v10804_v18 = vadd.f32 1.0, %v8530_v14  ;;  %v6184_v20 = vmul.f32 %v10766_v5, %v10812_v24  ;;  %vm5683_vm4 = vcmp.eq.f32.partialorder %v5682_v27, 8.507059e+37  ;;  %v5714_v51 = vand.u32 2147483648, %v10761_v17  ;;  %vm5710_vm7 = vmor %vm5708_vm6, %vm5709_vm5 }
 0x38b   : > { %v5705_v45 = vsub.f32 1.0, %v5704_v46 }
 0x38c   : > { %v6241_v55 = vpop.permute.xlu0 %6240  ;;  %v6111_v31 = vpop.permute.xlu1 %6110  ;;  %v5715_v27 = vor.u32 1.1754944e-38, %v5714_v51  ;;  %v5742_v51 = vand.u32 2147483647, %v10789_v37  ;;  %vm5723_vm14 = vweird.f32 %v10804_v18 }
 0x38d   : > { %v6328_v12 = vadd.f32 %v6241_v55, %v6008_v11  ;;  %v5684_v11 = vand.u32 2147483648, %v10729_v53  ;;  %v10814_v55 = vadd.f32 %v6245_v7, %v6010_v30  ;;  %v8152_v53 = vmul.f32 -1.442695, %v10598_v25 }
 0x38e   : > { %v5706_v5 = vmul.f32 %v10787_v2, %v5705_v45  ;;  %vm5743_vm13 = vcmp.eq.f32.partialorder %v5742_v51, 8.507059e+37 }
 0x38f   : > { %8531 = vtanh.f32 %v6328_v12  ;;  %6428 = vrot.lane.b32.xlu0 %v8526_v9, %s8753_s4  ;;  %6268 = vrot.lane.b32.xlu2 %v6182_v43, %s8753_s4  ;;  %v5681_v9 = vsel %vm5680_vm2, %v10764_v34, %v5677_v47  ;;  %v5685_v62 = vor.u32 1.1754944e-38, %v5684_v11  ;;  %v5712_v47 = vand.u32 2147483647, %v10761_v17 }
 0x390   : > { %8533 = vrcp.f32 %v10789_v37 }
 0x391   : > { %8535 = vpow2.f32 %v8150_v56  ;;  %v10835_v14 = vsel %vm5683_vm4, %v5685_v62, %v5681_v9  ;;  %vm5713_vm8 = vcmp.eq.f32.partialorder %v5712_v47, 8.507059e+37 }
 0x392   : > { %6592 = vrot.lane.b32.xlu1 %v6328_v12, %s8754_s11  ;;  %8537 = vrcp.f32 %v10804_v18  ;;  %v6183_v25 = vmul.f32 %v6111_v31, %v10835_v14 }
 0x393   : > { %8539 = vtanh.f32 %v10814_v55 }
 0x394   : > { %v10823_v12 = vpop.permute.xlu2 %6118  ;;  %v6243_v43 = vpop.permute.xlu1 %6242  ;;  %8541 = vpow2.f32 %v8152_v53 }
 0x395   : > { %v8532_v39 = vpop.eup %8531 }
 0x396   : > { %v10826_v29 = vpop.eup %8533 }
 0x397   : > { %6590 = vrot.lane.b32.xlu0 %v10739_v58, %s8754_s11  ;;  %6432 = vrot.lane.b32.xlu2 %v8532_v39, %s8753_s4  ;;  %v8536_v56 = vpop.eup %8535  ;;  %v11732_v58 = vld [vmem:[#allocation28_spill] sm:$0xff]  ;;  %v5734_v34 = vmul.f32 %v10826_v29, %v10789_v37  ;;  %v5707_v39 = vadd.f32 %v10787_v2, %v5706_v5  ;;  %vm5739_vm9 = vweird.f32 %v10826_v29 }
 0x398   : > { %v6009_v7 = vmul.f32 %v11732_v58, %v10449_v57  ;;  %v10839_v23 = vadd.f32 1.0, %v8536_v56  ;;  %v10842_v46 = vpop.eup %8537  ;;  %vm10881_vm11 = vmor %vm5738_vm10, %vm5739_vm9 }
 0x399   : > { %v5735_v30 = vsub.f32 1.0, %v5734_v34  ;;  %v8540_v31 = vpop.eup %8539  ;;  %v5719_v3 = vmul.f32 %v10842_v46, %v10804_v18  ;;  %v5711_v11 = vsel %vm5710_vm7, %v10787_v2, %v5707_v39  ;;  %v5744_v39 = vand.u32 2147483648, %v10789_v37 }
 0x39a   : > { %6272 = vrot.lane.b32.xlu1 %v6184_v20, %s8753_s4  ;;  %v6329_v13 = vadd.f32 %v6243_v43, %v6009_v7  ;;  %v11733_v20 = vld [vmem:[#allocation29_spill] sm:$0xff]  ;;  %v8542_v17 = vpop.eup %8541  ;;  %v10860_v53 = vsel %vm5713_vm8, %v5715_v27, %v5711_v11  ;;  %v8153_v11 = vmul.f32 -1.442695, %v10634_v44  ;;  %vm5724_vm12 = vweird.f32 %v10842_v46 }
 0x39b   : > { %v6011_v9 = vmul.f32 %v11733_v20, %v10505_v6  ;;  %v5736_v43 = vmul.f32 %v10826_v29, %v5735_v30  ;;  %v5720_v58 = vsub.f32 1.0, %v5719_v3  ;;  %v10865_v34 = vadd.f32 1.0, %v8542_v17  ;;  %vm5725_vm15 = vmor %vm5723_vm14, %vm5724_vm12 }
 0x39c   : > { %v6115_v15 = vpop.permute.xlu0 %6114  ;;  %8543 = vtanh.f32 %v6329_v13  ;;  %v6251_v45 = vpop.permute.xlu2 %6250  ;;  %v5745_v20 = vor.u32 1.1754944e-38, %v5744_v39  ;;  %v5729_v44 = vand.u32 2147483648, %v10804_v18  ;;  %vm5753_vm2 = vweird.f32 %v10839_v23 }
 0x39d   : > { %8545 = vrcp.f32 %v10839_v23  ;;  %v6185_v5 = vmul.f32 %v6115_v15, %v10860_v53  ;;  %v5721_v15 = vmul.f32 %v10842_v46, %v5720_v58  ;;  %vm5783_vm7 = vweird.f32 %v10865_v34 }
 0x39e   : > { %8547 = vpow2.f32 %v8151_v60  ;;  %v5737_v60 = vadd.f32 %v10826_v29, %v5736_v43 }
 0x39f   : > { %6270 = vrot.lane.b32.xlu0 %v6183_v25, %s8753_s4  ;;  %6594 = vrot.lane.b32.xlu2 %v6329_v13, %s8754_s11  ;;  %v5722_v17 = vadd.f32 %v10842_v46, %v5721_v15 }
 0x3a0   : > { %v5741_v37 = vsel %vm10881_vm11, %v10826_v29, %v5737_v60 }
 0x3a1   : > { %v10899_v29 = vsel %vm5743_vm13, %v5745_v20, %v5741_v37 }
 0x3a2   : > { %6436 = vrot.lane.b32.xlu1 %v8540_v31, %s8753_s4  ;;  %v8544_v7 = vpop.eup %8543 }
 0x3a3   : > { %v10863_v2 = vpop.eup %8545 }
 0x3a4   : > { %v6247_v56 = vpop.permute.xlu0 %6246  ;;  %v6117_v13 = vpop.permute.xlu1 %6116  ;;  %v5749_v47 = vmul.f32 %v10863_v2, %v10839_v23  ;;  %vm5754_vm1 = vweird.f32 %v10863_v2 }
 0x3a5   : > { %v6331_v62 = vadd.f32 %v6247_v56, %v6011_v9  ;;  %v8548_v25 = vpop.eup %8547  ;;  %v6013_v9 = vmul.f32 %v10044_v41, %v10556_v16  ;;  %v6187_v41 = vmul.f32 %v10823_v12, %v10899_v29  ;;  %vm5755_vm4 = vmor %vm5753_vm2, %vm5754_vm1  ;;  %vm6736_vm2 = vsmask.f32 256 }
 0x3a6   : > { %v10878_v31 = vadd.f32 1.0, %v8548_v25  ;;  %v5750_v43 = vsub.f32 1.0, %v5749_v47  ;;  %v5730_v25 = vor.u32 1.1754944e-38, %v5729_v44 }
 0x3a7   : > { %8549 = vtanh.f32 %v6331_v62  ;;  %6434 = vrot.lane.b32.xlu0 %v8544_v7, %s8753_s4  ;;  %6274 = vrot.lane.b32.xlu2 %v6185_v5, %s8753_s4  ;;  %v10901_v56 = vadd.f32 %v6251_v45, %v6013_v9  ;;  %v5726_v7 = vsel %vm5725_vm15, %v10842_v46, %v5722_v17  ;;  %v11736_v45 = vld [vmem:[#allocation30_spill] sm:$0xff] }
 0x3a8   : > { %8551 = vrcp.f32 %v10865_v34  ;;  %v6012_v60 = vmul.f32 %v11736_v45, %v10532_v0  ;;  %vm5768_vm11 = vweird.f32 %v10878_v31 }
 0x3a9   : > { %v6577_v30 = vpop.permute.xlu2 %6576  ;;  %8553 = vrcp.f32 %v10878_v31 }
 0x3aa   : > { %6598 = vrot.lane.b32.xlu1 %v6331_v62, %s8754_s11  ;;  %6672 = vst.msk [vmem:[#allocation3] sm:$0xff] %vm526_vm3, %v6577_v30  ;;  %v5727_v62 = vand.u32 2147483647, %v10804_v18  ;;  %8555 = vpow2.f32 %v8153_v11  ;;  %v5759_v11 = vand.u32 2147483648, %v10839_v23 }
 0x3ab   : > { %7433 = vst.msk [vmem:[%s8913_s10] sm:$0xff] %vm526_vm3, %v6577_v30  ;;  %8557 = vtanh.f32 %v10901_v56 }
 0x3ac   : > { %v6249_v5 = vpop.permute.xlu1 %6248  ;;  %vm5728_vm0 = vcmp.eq.f32.partialorder %v5727_v62, 8.507059e+37  ;;  %v11737_v62 = vld [vmem:[#allocation31_spill] sm:$0xff] }
 0x3ad   : > { %v8550_v27 = vpop.eup %8549  ;;  %v10919_v12 = vsel %vm5728_vm0, %v5730_v25, %v5726_v7  ;;  %v6332_v39 = vadd.f32 %v6249_v5, %v6012_v60 }
 0x3ae   : > { %v10909_v58 = vpop.eup %8551  ;;  %v6186_v30 = vmul.f32 %v6117_v13, %v10919_v12 }
 0x3af   : > { %6596 = vrot.lane.b32.xlu0 %v10814_v55, %s8754_s11  ;;  %6438 = vrot.lane.b32.xlu2 %v8550_v27, %s8753_s4  ;;  %v5751_v55 = vmul.f32 %v10863_v2, %v5750_v43  ;;  %v5779_v46 = vmul.f32 %v10909_v58, %v10865_v34  ;;  %v10923_v51 = vpop.eup %8553  ;;  %8559 = vtanh.f32 %v6332_v39  ;;  %v5757_v27 = vand.u32 2147483647, %v10839_v23 }
 0x3b0   : > { %v8556_v47 = vpop.eup %8555  ;;  %v5764_v13 = vmul.f32 %v10923_v51, %v10878_v31  ;;  %v5760_v43 = vor.u32 1.1754944e-38, %v5759_v11  ;;  %vm5784_vm6 = vweird.f32 %v10909_v58  ;;  %vm5769_vm9 = vweird.f32 %v10923_v51 }
 0x3b1   : > { %v10914_v18 = vpop.permute.xlu2 %6124  ;;  %v5752_v3 = vadd.f32 %v10863_v2, %v5751_v55  ;;  %v5780_v37 = vsub.f32 1.0, %v5779_v46  ;;  %v8558_v20 = vpop.eup %8557  ;;  %v10933_v9 = vadd.f32 1.0, %v8556_v47  ;;  %vm5758_vm5 = vcmp.eq.f32.partialorder %v5757_v27, 8.507059e+37  ;;  %vm5785_vm8 = vmor %vm5783_vm7, %vm5784_vm6 }
 0x3b2   : > { %6278 = vrot.lane.b32.xlu1 %v6187_v41, %s8753_s4  ;;  %v6014_v41 = vmul.f32 %v11737_v62, %v10577_v35  ;;  %v5765_v60 = vsub.f32 1.0, %v5764_v13  ;;  %v5789_v46 = vand.u32 2147483648, %v10865_v34  ;;  %v5787_v47 = vand.u32 2147483647, %v10865_v34  ;;  %vm5770_vm12 = vmor %vm5768_vm11, %vm5769_vm9 }
 0x3b3   : > { %v5756_v17 = vsel %vm5755_vm4, %v10863_v2, %v5752_v3  ;;  %v5781_v23 = vmul.f32 %v10909_v58, %v5780_v37  ;;  %8561 = vrcp.f32 %v10933_v9  ;;  %v5772_v62 = vand.u32 2147483647, %v10878_v31 }
 0x3b4   : > { %v6121_v15 = vpop.permute.xlu0 %6120  ;;  %v10945_v25 = vsel %vm5758_vm5, %v5760_v43, %v5756_v17  ;;  %vm5788_vm10 = vcmp.eq.f32.partialorder %v5787_v47, 8.507059e+37  ;;  %v5774_v17 = vand.u32 2147483648, %v10878_v31  ;;  %vm5798_vm15 = vweird.f32 %v10933_v9 }
 0x3b5   : > { %v8560_v2 = vpop.eup %8559  ;;  %v6188_v55 = vmul.f32 %v6121_v15, %v10945_v25  ;;  %vm5773_vm13 = vcmp.eq.f32.partialorder %v5772_v62, 8.507059e+37  ;;  %vm6737_vm4 = vsmask.f32 4368  ;;  %vm7155_vm6 = vcmask 257024  }
 0x3b6   : > { %vm11029_vm5 = vmor %vm6736_vm2, %vm6737_vm4  ;;  %vm7156_vm7 = vsmask.f32 7938  ;;  %vm7163_vm9 = vcmask 253952  }
 0x3b7   : > { %6276 = vrot.lane.b32.xlu0 %v6186_v30, %s8753_s4  ;;  %6600 = vrot.lane.b32.xlu2 %v6332_v39, %s8754_s11  ;;  %v5782_v39 = vadd.f32 %v10909_v58, %v5781_v23  ;;  %v5766_v30 = vmul.f32 %v10923_v51, %v5765_v60 }
 0x3b9   : > { %v10938_v44 = vpop.permute.xlu2 %6256  ;;  %v10959_v15 = vpop.eup %8561  ;;  %v5786_v11 = vsel %vm5785_vm8, %v10909_v58, %v5782_v39  ;;  %v5767_v13 = vadd.f32 %v10923_v51, %v5766_v30  ;;  %vm11186_vm8 = vmand %vm7155_vm6, %vm7156_vm7 }
 0x3ba   : > { %6442 = vrot.lane.b32.xlu1 %v8558_v20, %s8753_s4  ;;  %v5790_v20 = vor.u32 1.1754944e-38, %v5789_v46  ;;  %v5794_v34 = vmul.f32 %v10959_v15, %v10933_v9  ;;  %vm5799_vm14 = vweird.f32 %v10959_v15 }
 0x3bb   : > { %vm5800_vm0 = vmor %vm5798_vm15, %vm5799_vm14 }
 0x3bc   : > { %v6253_v7 = vpop.permute.xlu0 %6252  ;;  %v6123_v5 = vpop.permute.xlu1 %6122  ;;  %v10967_v43 = vsel %vm5788_vm10, %v5790_v20, %v5786_v11  ;;  %v5802_v20 = vand.u32 2147483647, %v10933_v9  ;;  %vm11214_vm10 = vmand %vm7163_vm9, %vm6736_vm2 }
 0x3bd   : > { %v6334_v45 = vadd.f32 %v6253_v7, %v6014_v41  ;;  %v6190_v58 = vmul.f32 %v10914_v18, %v10967_v43  ;;  %v5771_v41 = vsel %vm5770_vm12, %v10923_v51, %v5767_v13  ;;  %v5775_v7 = vor.u32 1.1754944e-38, %v5774_v17  ;;  %v11739_v17 = vld [vmem:[#allocation34_spill] sm:$0xff] }
 0x3be   : > { %vm5803_vm1 = vcmp.eq.f32.partialorder %v5802_v20, 8.507059e+37 }
 0x3bf   : > { %8563 = vtanh.f32 %v6334_v45  ;;  %6440 = vrot.lane.b32.xlu0 %v8560_v2, %s8753_s4  ;;  %6280 = vrot.lane.b32.xlu2 %v6188_v55, %s8753_s4  ;;  %v10982_v18 = vsel %vm5773_vm13, %v5775_v7, %v5771_v41 }
 0x3c0   : > { %v6189_v46 = vmul.f32 %v6123_v5, %v10982_v18  ;;  %v5804_v5 = vand.u32 2147483648, %v10933_v9 }
 0x3c1   : > { %v10956_v3 = vpop.permute.xlu2 %6420 }
 0x3c2   : > { %6604 = vrot.lane.b32.xlu1 %v6334_v45, %s8754_s11  ;;  %v11738_v45 = vld [vmem:[#allocation32_spill] sm:$0xff]  ;;  %v5805_v9 = vor.u32 1.1754944e-38, %v5804_v5 }
 0x3c3   : > { %v6015_v60 = vmul.f32 %v11738_v45, %v10601_v4 }
 0x3c4   : > { %v6255_v37 = vpop.permute.xlu1 %6254 }
 0x3c5   : > { %v8564_v27 = vpop.eup %8563  ;;  %v6335_v55 = vadd.f32 %v6255_v37, %v6015_v60 }
 0x3c7   : > { %6602 = vrot.lane.b32.xlu0 %v10901_v56, %s8754_s11  ;;  %6444 = vrot.lane.b32.xlu2 %v8564_v27, %s8753_s4  ;;  %v5795_v56 = vsub.f32 1.0, %v5794_v34  ;;  %8565 = vtanh.f32 %v6335_v55  ;;  %v6016_v34 = vmul.f32 %v11739_v17, %v10636_v50 }
 0x3c8   : > { %v6417_v23 = vpop.permute.xlu0 %6416 }
 0x3c9   : > { %v6512_v2 = vmul.f32 %v6417_v23, %v10195_v38  ;;  %v6583_v31 = vpop.permute.xlu2 %6582  ;;  %v5796_v30 = vmul.f32 %v10959_v15, %v5795_v56  ;;  %v6336_v7 = vadd.f32 %v10938_v44, %v6016_v34 }
 0x3ca   : > { %6284 = vrot.lane.b32.xlu1 %v6190_v58, %s8753_s4  ;;  %6675 = vst.msk [vmem:[#allocation3 + $0x18] sm:$0xff] %vm526_vm3, %v6583_v31 }
 0x3cb   : > { %v6704_v39 = vpack.c.bf16 %v6512_v2, %v6512_v2  ;;  %7436 = vst.msk [vmem:[%s8913_s10 + $0x18] sm:$0xff] %vm526_vm3, %v6583_v31  ;;  %v5797_v37 = vadd.f32 %v10959_v15, %v5796_v30  ;;  %8567 = vtanh.f32 %v6336_v7 }
 0x3cc   : > { %v6419_v51 = vpop.permute.xlu1 %6418 }
 0x3cd   : > { %v6740_v38 = vshrl.u32 %v6704_v39, 16  ;;  %v6513_v62 = vmul.f32 %v6419_v51, %v10227_v63  ;;  %v8566_v58 = vpop.eup %8565  ;;  %v6743_v41 = vshll.u32 %v6704_v39, 16  ;;  %v5801_v23 = vsel %vm5800_vm0, %v10959_v15, %v5797_v37 }
 0x3cf   : > { %6282 = vrot.lane.b32.xlu0 %v6189_v46, %s8753_s4  ;;  %6606 = vrot.lane.b32.xlu2 %v6335_v55, %s8754_s11  ;;  %v6742_v13 = vrot.slane %v6740_v38, 7  ;;  %v6705_v60 = vpack.c.bf16 %v6513_v62, %v6513_v62  ;;  %v6514_v55 = vmul.f32 %v10956_v3, %v10257_v33  ;;  %v11740_v33 = vld [vmem:[#allocation33_spill] sm:$0xff] }
 0x3d0   : > { %v6579_v47 = vpop.permute.xlu0 %6578  ;;  %v6017_v3 = vmul.f32 %v11740_v33, %v10684_v54 }
 0x3d1   : > { %6673 = vst.msk [vmem:[#allocation3 + $0x8] sm:$0xff] %vm526_vm3, %v6579_v47  ;;  %v10991_v11 = vpop.permute.xlu2 %6262  ;;  %v6745_v45 = vor.u32 %v6743_v41, %v6742_v13  ;;  %v6748_v15 = vshrl.u32 %v6705_v60, 16  ;;  %v8568_v39 = vpop.eup %8567  ;;  %v6706_v38 = vpack.c.bf16 %v6514_v55, %v6514_v55  ;;  %v6751_v37 = vshll.u32 %v6705_v60, 16  ;;  %v11743_v41 = vld [vmem:[#allocation35_spill] sm:$0xff] }
 0x3d2   : > { %7305 = vrot.lane.b32.xlu1 %v6512_v2, %s8755_s5  ;;  %7434 = vst.msk [vmem:[%s8913_s10 + $0x8] sm:$0xff] %vm526_vm3, %v6579_v47  ;;  %v11010_v2 = vsel %vm5803_vm1, %v5805_v9, %v5801_v23  ;;  %v6018_v23 = vmul.f32 %v11743_v41, %v10665_v28 }
 0x3d3   : > { %v6750_v46 = vrot.slane %v6748_v15, 7  ;;  %v6757_v20 = vshrl.u32 %v6706_v38, 16 }
 0x3d4   : > { %v6581_v27 = vpop.permute.xlu1 %6580 }
 0x3d5   : > { %6674 = vst.msk [vmem:[#allocation3 + $0x10] sm:$0xff] %vm526_vm3, %v6581_v27  ;;  %v6755_v5 = vrot.slane %v6750_v46, 4 }
 0x3d6   : > { %7435 = vst.msk [vmem:[%s8913_s10 + $0x10] sm:$0xff] %vm526_vm3, %v6581_v27  ;;  %v6753_v27 = vor.u32 %v6751_v37, %v6750_v46  ;;  %v6019_v46 = vmul.f32 %v10093_v61, %v10709_v19 }
 0x3d7   : > { %6446 = vrot.lane.b32.xlu0 %v8566_v58, %s8753_s4  ;;  %v6746_v58 = vrot.slane %v6742_v13, 4  ;;  %v6760_v13 = vshll.u32 %v6706_v38, 16 }
 0x3d8   : > { %v6339_v38 = vadd.f32 %v10991_v11, %v6019_v46 }
 0x3d9   : > { %v6127_v63 = vpop.permute.xlu0 %6126  ;;  %v11013_v56 = vpop.permute.xlu2 %6426  ;;  %v6754_v9 = vsel %vm11029_vm5, %v6746_v58, %v6753_v27 }
 0x3da   : > { %v6191_v31 = vmul.f32 %v6127_v63, %v11010_v2  ;;  %7011 = vrot.lane.b32.xlu1 %v6745_v45, %s8755_s5  ;;  %v6759_v63 = vrot.slane %v6757_v20, 7  ;;  %v6517_v41 = vmul.f32 %v11013_v56, %v10335_v40 }
 0x3dc   : > { %6286 = vrot.lane.b32.xlu2 %v6191_v31, %s8753_s4  ;;  %v6261_v44 = vpop.permute.xlu1 %6260  ;;  %v6762_v31 = vor.u32 %v6760_v13, %v6759_v63 }
 0x3dd   : > { %v6338_v45 = vadd.f32 %v6261_v44, %v6018_v23 }
 0x3df   : > { %6608 = vrot.lane.b32.xlu0 %v6336_v7, %s8754_s11 }
 0x3e1   : > { %v6259_v51 = vpop.permute.xlu0 %6258  ;;  %v6589_v30 = vpop.permute.xlu2 %6588 }
 0x3e2   : > { %6448 = vrot.lane.b32.xlu1 %v8568_v39, %s8753_s4  ;;  %6678 = vst.msk [vmem:[#allocation3 + $0x30] sm:$0xff] %vm526_vm3, %v6589_v30  ;;  %v6337_v17 = vadd.f32 %v6259_v51, %v6017_v3 }
 0x3e3   : > { %7439 = vst.msk [vmem:[%s8913_s10 + $0x30] sm:$0xff] %vm526_vm3, %v6589_v30 }
 0x3e4   : > { %7307 = vrot.lane.b32.xlu2 %v6513_v62, %s8755_s5  ;;  %v6425_v47 = vpop.permute.xlu1 %6424  ;;  %8569 = vtanh.f32 %v6337_v17 }
 0x3e5   : > { %8571 = vtanh.f32 %v6338_v45 }
 0x3e6   : > { %8573 = vtanh.f32 %v6339_v38 }
 0x3e7   : > { %7015 = vrot.lane.b32.xlu0 %v6755_v5, %s8755_s5 }
 0x3e9   : > { %v6423_v62 = vpop.permute.xlu0 %6422  ;;  %v11035_v7 = vpop.permute.xlu2 %6268 }
 0x3ea   : > { %6610 = vrot.lane.b32.xlu1 %v6337_v17, %s8754_s11  ;;  %v8570_v44 = vpop.eup %8569 }
 0x3eb   : > { %v8572_v30 = vpop.eup %8571 }
 0x3ec   : > { %7013 = vrot.lane.b32.xlu2 %v6754_v9, %s8755_s5  ;;  %v6587_v60 = vpop.permute.xlu1 %6586  ;;  %v8574_v11 = vpop.eup %8573 }
 0x3ed   : > { %6677 = vst.msk [vmem:[#allocation3 + $0x28] sm:$0xff] %vm526_vm3, %v6587_v60 }
 0x3ee   : > { %7438 = vst.msk [vmem:[%s8913_s10 + $0x28] sm:$0xff] %vm526_vm3, %v6587_v60 }
 0x3ef   : > { %7309 = vrot.lane.b32.xlu0 %v6514_v55, %s8755_s5  ;;  %v6515_v55 = vmul.f32 %v6423_v62, %v10287_v22  ;;  %v6516_v22 = vmul.f32 %v6425_v47, %v10311_v52  ;;  %v11744_v52 = vld [vmem:[#allocation36_spill] sm:$0xff] }
 0x3f0   : > { %v6020_v47 = vmul.f32 %v11744_v52, %v10757_v36 }
 0x3f1   : > { %v6585_v15 = vpop.permute.xlu0 %6584  ;;  %v11046_v39 = vpop.permute.xlu2 %6432  ;;  %v6707_v37 = vpack.c.bf16 %v6515_v55, %v6515_v55  ;;  %v6708_v62 = vpack.c.bf16 %v6516_v22, %v6516_v22 }
 0x3f2   : > { %6676 = vst.msk [vmem:[#allocation3 + $0x20] sm:$0xff] %vm526_vm3, %v6585_v15  ;;  %7017 = vrot.lane.b32.xlu1 %v6762_v31, %s8755_s5  ;;  %v6709_v31 = vpack.c.bf16 %v6517_v41, %v6517_v41 }
 0x3f3   : > { %7437 = vst.msk [vmem:[%s8913_s10 + $0x20] sm:$0xff] %vm526_vm3, %v6585_v15  ;;  %v6765_v3 = vshrl.u32 %v6707_v37, 16  ;;  %v6768_v23 = vshll.u32 %v6707_v37, 16  ;;  %v6774_v60 = vshrl.u32 %v6708_v62, 16 }
 0x3f4   : > { %6450 = vrot.lane.b32.xlu2 %v8570_v44, %s8753_s4  ;;  %v6267_v51 = vpop.permute.xlu1 %6266  ;;  %v6763_v44 = vrot.slane %v6759_v63, 4  ;;  %v6777_v63 = vshll.u32 %v6708_v62, 16 }
 0x3f5   : > { %v6767_v20 = vrot.slane %v6765_v3, 7  ;;  %v6776_v46 = vrot.slane %v6774_v60, 7  ;;  %v6021_v3 = vmul.f32 %v10097_v10, %v10737_v59  ;;  %v6785_v60 = vshll.u32 %v6709_v31, 16 }
 0x3f7   : > { %6452 = vrot.lane.b32.xlu0 %v8572_v30, %s8753_s4  ;;  %v6772_v9 = vrot.slane %v6767_v20, 4  ;;  %v6782_v30 = vshrl.u32 %v6709_v31, 16  ;;  %v6779_v37 = vor.u32 %v6777_v63, %v6776_v46  ;;  %v6520_v31 = vmul.f32 %v11046_v39, %v10419_v21 }
 0x3f8   : > { %v6023_v21 = vmul.f32 %v10103_v32, %v10835_v14 }
 0x3f9   : > { %v6265_v5 = vpop.permute.xlu0 %6264  ;;  %v6595_v33 = vpop.permute.xlu2 %6594 }
 0x3fa   : > { %7311 = vrot.lane.b32.xlu1 %v6515_v55, %s8755_s5  ;;  %6681 = vst.msk [vmem:[#allocation3 + $0x48] sm:$0xff] %vm526_vm3, %v6595_v33  ;;  %v6340_v13 = vadd.f32 %v6265_v5, %v6020_v47  ;;  %v6784_v5 = vrot.slane %v6782_v30, 7 }
 0x3fb   : > { %7442 = vst.msk [vmem:[%s8913_s10 + $0x48] sm:$0xff] %vm526_vm3, %v6595_v33 }
 0x3fc   : > { %6612 = vrot.lane.b32.xlu2 %v6338_v45, %s8754_s11  ;;  %v6431_v61 = vpop.permute.xlu1 %6430  ;;  %v6770_v45 = vor.u32 %v6768_v23, %v6767_v20  ;;  %8575 = vtanh.f32 %v6340_v13  ;;  %v6341_v20 = vadd.f32 %v6267_v51, %v6021_v3  ;;  %v6712_v3 = vpack.c.bf16 %v6520_v31, %v6520_v31 }
 0x3fd   : > { %v6519_v52 = vmul.f32 %v6431_v61, %v10395_v8 }
 0x3fe   : > { %v6771_v56 = vsel %vm11029_vm5, %v6763_v44, %v6770_v45  ;;  %8577 = vtanh.f32 %v6341_v20 }
 0x3ff   : > { %6614 = vrot.lane.b32.xlu0 %v6339_v38, %s8754_s11  ;;  %v6711_v30 = vpack.c.bf16 %v6519_v52, %v6519_v52 }
 0x401   : > { %v6429_v27 = vpop.permute.xlu0 %6428  ;;  %v11064_v17 = vpop.permute.xlu2 %6274  ;;  %v6799_v61 = vshrl.u32 %v6711_v30, 16  ;;  %v6802_v39 = vshll.u32 %v6711_v30, 16 }
 0x402   : > { %6454 = vrot.lane.b32.xlu1 %v8574_v11, %s8753_s4  ;;  %v6518_v38 = vmul.f32 %v6429_v27, %v10365_v48  ;;  %v8576_v11 = vpop.eup %8575  ;;  %v6789_v48 = vrot.slane %v6784_v5, 4 }
 0x404   : > { %7313 = vrot.lane.b32.xlu2 %v6516_v22, %s8755_s5  ;;  %v6593_v58 = vpop.permute.xlu1 %6592  ;;  %v8578_v47 = vpop.eup %8577 }
 0x405   : > { %6680 = vst.msk [vmem:[#allocation3 + $0x40] sm:$0xff] %vm526_vm3, %v6593_v58 }
 0x406   : > { %7441 = vst.msk [vmem:[%s8913_s10 + $0x40] sm:$0xff] %vm526_vm3, %v6593_v58  ;;  %v6710_v58 = vpack.c.bf16 %v6518_v38, %v6518_v38 }
 0x407   : > { %7021 = vrot.lane.b32.xlu0 %v6772_v9, %s8755_s5  ;;  %v6022_v9 = vmul.f32 %v10120_v26, %v10784_v42 }
 0x408   : > { %v6791_v10 = vshrl.u32 %v6710_v58, 16  ;;  %v6794_v45 = vshll.u32 %v6710_v58, 16  ;;  %v6808_v58 = vshrl.u32 %v6712_v3, 16 }
 0x409   : > { %v6591_v15 = vpop.permute.xlu0 %6590  ;;  %v11077_v40 = vpop.permute.xlu2 %6438 }
 0x40a   : > { %6679 = vst.msk [vmem:[#allocation3 + $0x38] sm:$0xff] %vm526_vm3, %v6591_v15  ;;  %6616 = vrot.lane.b32.xlu1 %v6340_v13, %s8754_s11  ;;  %v6793_v51 = vrot.slane %v6791_v10, 7  ;;  %v6342_v13 = vadd.f32 %v11035_v7, %v6022_v9  ;;  %v6024_v9 = vmul.f32 %v10124_v1, %v10812_v24 }
 0x40b   : > { %7440 = vst.msk [vmem:[%s8913_s10 + $0x38] sm:$0xff] %vm526_vm3, %v6591_v15  ;;  %v6780_v15 = vrot.slane %v6776_v46, 4 }
 0x40c   : > { %7019 = vrot.lane.b32.xlu2 %v6771_v56, %s8755_s5  ;;  %v11085_v55 = vpop.permute.xlu1 %6272  ;;  %v6796_v44 = vor.u32 %v6794_v45, %v6793_v51  ;;  %v6787_v56 = vor.u32 %v6785_v60, %v6784_v5  ;;  %8579 = vtanh.f32 %v6342_v13 }
 0x40d   : > { %v6344_v32 = vadd.f32 %v11085_v55, %v6024_v9 }
 0x40e   : > { %v6788_v8 = vsel %vm11029_vm5, %v6780_v15, %v6787_v56  ;;  %v11745_v15 = vld [vmem:[#allocation38_spill] sm:$0xff] }
 0x40f   : > { %7315 = vrot.lane.b32.xlu0 %v6517_v41, %s8755_s5 }
 0x411   : > { %v6271_v33 = vpop.permute.xlu0 %6270  ;;  %v6601_v22 = vpop.permute.xlu2 %6600 }
 0x412   : > { %7023 = vrot.lane.b32.xlu1 %v6779_v37, %s8755_s5  ;;  %6684 = vst.msk [vmem:[#allocation3 + $0x60] sm:$0xff] %vm526_vm3, %v6601_v22  ;;  %v8580_v46 = vpop.eup %8579 }
 0x413   : > { %7445 = vst.msk [vmem:[%s8913_s10 + $0x60] sm:$0xff] %vm526_vm3, %v6601_v22 }
 0x414   : > { %6456 = vrot.lane.b32.xlu2 %v8576_v11, %s8753_s4  ;;  %v11096_v62 = vpop.permute.xlu1 %6436 }
 0x417   : > { %7027 = vrot.lane.b32.xlu0 %v6789_v48, %s8755_s5  ;;  %v6343_v48 = vadd.f32 %v6271_v33, %v6023_v21  ;;  %v6811_v33 = vshll.u32 %v6712_v3, 16  ;;  %v7158_v21 = vld [vmem:[#allocation2 + $0xc] sm:$0xf] }
 0x419   : > { %v11099_v27 = vpop.permute.xlu0 %6434  ;;  %v11101_v41 = vpop.permute.xlu2 %6280  ;;  %8581 = vtanh.f32 %v6343_v48 }
 0x41a   : > { %7317 = vrot.lane.b32.xlu1 %v6518_v38, %s8755_s5  ;;  %v6801_v38 = vrot.slane %v6799_v61, 7  ;;  %8583 = vtanh.f32 %v6344_v32  ;;  %v6521_v56 = vmul.f32 %v11099_v27, %v10449_v57 }
 0x41c   : > { %6618 = vrot.lane.b32.xlu2 %v6341_v20, %s8754_s11  ;;  %v6599_v23 = vpop.permute.xlu1 %6598  ;;  %v6806_v11 = vrot.slane %v6801_v38, 4  ;;  %v6797_v20 = vrot.slane %v6793_v51, 4  ;;  %v6804_v10 = vor.u32 %v6802_v39, %v6801_v38  ;;  %v6713_v61 = vpack.c.bf16 %v6521_v56, %v6521_v56 }
 0x41d   : > { %6683 = vst.msk [vmem:[#allocation3 + $0x58] sm:$0xff] %vm526_vm3, %v6599_v23 }
 0x41e   : > { %7444 = vst.msk [vmem:[%s8913_s10 + $0x58] sm:$0xff] %vm526_vm3, %v6599_v23  ;;  %v6816_v38 = vshrl.u32 %v6713_v61, 16 }
 0x41f   : > { %6458 = vrot.lane.b32.xlu0 %v8578_v47, %s8753_s4  ;;  %v11146_v47 = vrot.slane %v6808_v58, 7  ;;  %v8582_v55 = vpop.eup %8581  ;;  %v6523_v58 = vmul.f32 %v11077_v40, %v10505_v6 }
 0x420   : > { %v8584_v30 = vpop.eup %8583 }
 0x421   : > { %v6597_v63 = vpop.permute.xlu0 %6596  ;;  %v11114_v26 = vpop.permute.xlu2 %6444  ;;  %v6813_v45 = vor.u32 %v6811_v33, %v11146_v47  ;;  %v6814_v6 = vrot.slane %v11146_v47, 4  ;;  %v6715_v40 = vpack.c.bf16 %v6523_v58, %v6523_v58 }
 0x422   : > { %6682 = vst.msk [vmem:[#allocation3 + $0x50] sm:$0xff] %vm526_vm3, %v6597_v63  ;;  %7029 = vrot.lane.b32.xlu1 %v6796_v44, %s8755_s5  ;;  %v6025_v44 = vmul.f32 %v11745_v15, %v10860_v53 }
 0x423   : > { %7443 = vst.msk [vmem:[%s8913_s10 + $0x50] sm:$0xff] %vm526_vm3, %v6597_v63 }
 0x424   : > { %7025 = vrot.lane.b32.xlu2 %v6788_v8, %s8755_s5  ;;  %v11122_v7 = vpop.permute.xlu1 %6278  ;;  %v6345_v8 = vadd.f32 %v11064_v17, %v6025_v44  ;;  %v6522_v17 = vmul.f32 %v11096_v62, %v10475_v49  ;;  %v6819_v49 = vshll.u32 %v6713_v61, 16 }
 0x426   : > { %8585 = vtanh.f32 %v6345_v8  ;;  %v6714_v39 = vpack.c.bf16 %v6522_v17, %v6522_v17 }
 0x427   : > { %6620 = vrot.lane.b32.xlu0 %v6342_v13, %s8754_s11 }
 0x428   : > { %v6828_v47 = vshll.u32 %v6714_v39, 16 }
 0x429   : > { %v11127_v37 = vpop.permute.xlu0 %6276  ;;  %v6607_v5 = vpop.permute.xlu2 %6606 }
 0x42a   : > { %6460 = vrot.lane.b32.xlu1 %v8580_v46, %s8753_s4  ;;  %6687 = vst.msk [vmem:[#allocation3 + $0x78] sm:$0xff] %vm526_vm3, %v6607_v5 }
 0x42b   : > { %7448 = vst.msk [vmem:[%s8913_s10 + $0x78] sm:$0xff] %vm526_vm3, %v6607_v5  ;;  %v6818_v5 = vrot.slane %v6816_v38, 7  ;;  %v11751_v38 = vld [vmem:[#allocation39_spill] sm:$0xff] }
 0x42c   : > { %7319 = vrot.lane.b32.xlu2 %v6519_v52, %s8755_s5  ;;  %v11134_v22 = vpop.permute.xlu1 %6442  ;;  %v6805_v52 = vsel %vm11029_vm5, %v6797_v20, %v6804_v10  ;;  %v8586_v27 = vpop.eup %8585  ;;  %v11748_v10 = vld [vmem:[#allocation37_spill] sm:$0xff] }
 0x42d   : > { %v6823_v62 = vrot.slane %v6818_v5, 4  ;;  %v6026_v9 = vmul.f32 %v11748_v10, %v10919_v12 }
 0x42f   : > { %7033 = vrot.lane.b32.xlu0 %v6806_v11, %s8755_s5  ;;  %v6346_v33 = vadd.f32 %v11127_v37, %v6026_v9  ;;  %v6833_v37 = vshrl.u32 %v6715_v40, 16  ;;  %v6525_v9 = vmul.f32 %v11134_v22, %v10556_v16 }
 0x431   : > { %v11139_v23 = vpop.permute.xlu0 %6440  ;;  %8587 = vtanh.f32 %v6346_v33  ;;  %v6835_v61 = vrot.slane %v6833_v37, 7 }
 0x432   : > { %6622 = vrot.lane.b32.xlu1 %v6343_v48, %s8754_s11 }
 0x434   : > { %7031 = vrot.lane.b32.xlu2 %v6805_v52, %s8755_s5  ;;  %v6605_v51 = vpop.permute.xlu1 %6604 }
 0x435   : > { %6686 = vst.msk [vmem:[#allocation3 + $0x70] sm:$0xff] %vm526_vm3, %v6605_v51 }
 0x436   : > { %7447 = vst.msk [vmem:[%s8913_s10 + $0x70] sm:$0xff] %vm526_vm3, %v6605_v51  ;;  %v11153_v1 = vpop.permute.xlu2 %6286  ;;  %v6825_v51 = vshrl.u32 %v6714_v39, 16 }
 0x437   : > { %7321 = vrot.lane.b32.xlu0 %v6520_v31, %s8755_s5 }
 0x439   : > { %v6603_v60 = vpop.permute.xlu0 %6602 }
 0x43a   : > { %6685 = vst.msk [vmem:[#allocation3 + $0x68] sm:$0xff] %vm526_vm3, %v6603_v60  ;;  %7035 = vrot.lane.b32.xlu1 %v6813_v45, %s8755_s5 }
 0x43b   : > { %7446 = vst.msk [vmem:[%s8913_s10 + $0x68] sm:$0xff] %vm526_vm3, %v6603_v60 }
 0x43c   : > { %6462 = vrot.lane.b32.xlu2 %v8582_v55, %s8753_s4  ;;  %v11162_v13 = vpop.permute.xlu1 %6284  ;;  %v6827_v55 = vrot.slane %v6825_v51, 7 }
 0x43e   : > { %v7308_v63 = vpop.permute.xlu2 %7307 }
 0x43f   : > { %7402 = vst.msk [vmem:[%s8911_s17 + $0x8] sm:$0xff] %vm526_vm3, %v7308_v63  ;;  %6464 = vrot.lane.b32.xlu0 %v8584_v30, %s8753_s4  ;;  %v7165_v30 = vld [vmem:[#allocation2 + $0x14] sm:$0x1]  ;;  %v6830_v63 = vor.u32 %v6828_v47, %v6827_v55 }
 0x441   : > { %v11172_v31 = vpop.permute.xlu0 %6282 }
 0x442   : > { %7323 = vrot.lane.b32.xlu1 %v6521_v56, %s8755_s5 }
 0x444   : > { %6624 = vrot.lane.b32.xlu2 %v6344_v32, %s8754_s11  ;;  %v7306_v46 = vpop.permute.xlu1 %7305  ;;  %v6821_v32 = vor.u32 %v6819_v49, %v6818_v5 }
 0x445   : > { %7401 = vst.msk [vmem:[%s8911_s17] sm:$0xff] %vm526_vm3, %v7306_v46 }
 0x446   : > { %v7014_v57 = vpop.permute.xlu2 %7013  ;;  %v6822_v60 = vsel %vm11029_vm5, %v6814_v6, %v6821_v32 }
 0x447   : > { %7162 = vst.msk [vmem:[#allocation2 + $0x10] sm:$0xf] %vm7155_vm6, %v7014_v57  ;;  %6626 = vrot.lane.b32.xlu0 %v6345_v8, %s8754_s11  ;;  %v6524_v8 = vmul.f32 %v11139_v23, %v10532_v0  ;;  %v6027_v57 = vmul.f32 %v11751_v38, %v10899_v29  ;;  %v6840_v23 = vrot.slane %v6835_v61, 4 }
 0x449   : > { %v11182_v3 = vpop.permute.xlu0 %6446  ;;  %v6347_v5 = vadd.f32 %v11122_v7, %v6027_v57  ;;  %v7168_v7 = vld [vmem:[#allocation2 + $0x18] sm:$0xf] }
 0x44a   : > { %6466 = vrot.lane.b32.xlu1 %v8586_v27, %s8753_s4  ;;  %v8588_v27 = vpop.eup %8587 }
 0x44b   : > { %8589 = vtanh.f32 %v6347_v5 }
 0x44c   : > { %7325 = vrot.lane.b32.xlu2 %v6522_v17, %s8755_s5  ;;  %v7012_v20 = vpop.permute.xlu1 %7011 }
 0x44d   : > { %v7159_v48 = vsel %vm11186_vm8, %v7012_v20, %v7158_v21  ;;  %v6716_v21 = vpack.c.bf16 %v6524_v8, %v6524_v8 }
 0x44e   : > { %7160 = vst [vmem:[#allocation2 + $0xc] sm:$0xf] %v7159_v48  ;;  %v11197_v52 = vpop.permute.xlu2 %6450  ;;  %v11752_v48 = vld [vmem:[#allocation41_spill] sm:$0xff] }
 0x44f   : > { %7039 = vrot.lane.b32.xlu0 %v6823_v62, %s8755_s5  ;;  %v6842_v20 = vshrl.u32 %v6716_v21, 16  ;;  %v6028_v10 = vmul.f32 %v11752_v48, %v10945_v25 }
 0x451   : > { %v6609_v45 = vpop.permute.xlu0 %6608  ;;  %v6844_v49 = vrot.slane %v6842_v20, 7  ;;  %v8590_v51 = vpop.eup %8589  ;;  %v6348_v37 = vadd.f32 %v11101_v41, %v6028_v10 }
 0x452   : > { %6688 = vst.msk [vmem:[#allocation3 + $0x80] sm:$0xff] %vm526_vm3, %v6609_v45  ;;  %6628 = vrot.lane.b32.xlu1 %v6346_v33, %s8754_s11  ;;  %v6845_v33 = vshll.u32 %v6716_v21, 16 }
 0x453   : > { %7449 = vst.msk [vmem:[%s8913_s10 + $0x80] sm:$0xff] %vm526_vm3, %v6609_v45  ;;  %v6836_v45 = vshll.u32 %v6715_v40, 16  ;;  %8591 = vtanh.f32 %v6348_v37  ;;  %v6848_v21 = vrot.slane %v6844_v49, 4 }
 0x454   : > { %7037 = vrot.lane.b32.xlu2 %v6822_v60, %s8755_s5  ;;  %v11209_v15 = vpop.permute.xlu1 %6448  ;;  %v6831_v60 = vrot.slane %v6827_v55, 4  ;;  %v6847_v47 = vor.u32 %v6845_v33, %v6844_v49 }
 0x456   : > { %v6613_v44 = vpop.permute.xlu2 %6612 }
 0x457   : > { %6690 = vst.msk [vmem:[#allocation3 + $0x90] sm:$0xff] %vm526_vm3, %v6613_v44  ;;  %7327 = vrot.lane.b32.xlu0 %v6523_v58, %s8755_s5 }
 0x458   : > { %7451 = vst.msk [vmem:[%s8913_s10 + $0x90] sm:$0xff] %vm526_vm3, %v6613_v44  ;;  %v6838_v44 = vor.u32 %v6836_v45, %v6835_v61 }
 0x459   : > { %v7016_v46 = vpop.permute.xlu0 %7015 }
 0x45a   : > { %v7166_v17 = vsel %vm11214_vm10, %v7016_v46, %v7165_v30  ;;  %7041 = vrot.lane.b32.xlu1 %v6830_v63, %s8755_s5  ;;  %v6717_v30 = vpack.c.bf16 %v6525_v9, %v6525_v9  ;;  %v6839_v22 = vsel %vm11029_vm5, %v6831_v60, %v6838_v44  ;;  %v6526_v63 = vmul.f32 %v11114_v26, %v10577_v35 }
 0x45b   : > { %7167 = vst [vmem:[#allocation2 + $0x14] sm:$0x1] %v7166_v17  ;;  %v6527_v44 = vmul.f32 %v11182_v3, %v10601_v4 }
 0x45c   : > { %6468 = vrot.lane.b32.xlu2 %v8588_v27, %s8753_s4  ;;  %v6611_v0 = vpop.permute.xlu1 %6610  ;;  %v6850_v41 = vshrl.u32 %v6717_v30, 16  ;;  %v6718_v38 = vpack.c.bf16 %v6526_v63, %v6526_v63  ;;  %v11753_v27 = vld [vmem:[#allocation40_spill] sm:$0xff]  ;;  %v6853_v26 = vshll.u32 %v6717_v30, 16 }
 0x45d   : > { %6689 = vst.msk [vmem:[#allocation3 + $0x88] sm:$0xff] %vm526_vm3, %v6611_v0 }
 0x45e   : > { %7450 = vst.msk [vmem:[%s8913_s10 + $0x88] sm:$0xff] %vm526_vm3, %v6611_v0  ;;  %v7314_v39 = vpop.permute.xlu2 %7313  ;;  %v6852_v61 = vrot.slane %v6850_v41, 7  ;;  %v7172_v0 = vld [vmem:[#allocation2 + $0x20] sm:$0x1] }
 0x45f   : > { %7405 = vst.msk [vmem:[%s8911_s17 + $0x20] sm:$0xff] %vm526_vm3, %v7314_v39  ;;  %7045 = vrot.lane.b32.xlu0 %v6840_v23, %s8755_s5  ;;  %v6859_v23 = vshrl.u32 %v6718_v38, 16 }
 0x460   : > { %v6857_v17 = vrot.slane %v6852_v61, 4  ;;  %v6855_v20 = vor.u32 %v6853_v26, %v6852_v61  ;;  %v6719_v61 = vpack.c.bf16 %v6527_v44, %v6527_v44  ;;  %v7182_v26 = vld [vmem:[#allocation2 + $0x30] sm:$0xf] }
 0x461   : > { %v7310_v58 = vpop.permute.xlu0 %7309  ;;  %v11282_v10 = vrot.slane %v6859_v23, 7 }
 0x462   : > { %7403 = vst.msk [vmem:[%s8911_s17 + $0x10] sm:$0xff] %vm526_vm3, %v7310_v58  ;;  %7329 = vrot.lane.b32.xlu1 %v6524_v8, %s8755_s5  ;;  %v8592_v8 = vpop.eup %8591  ;;  %v6856_v49 = vsel %vm11029_vm5, %v6848_v21, %v6855_v20  ;;  %v6870_v23 = vshll.u32 %v6719_v61, 16 }
 0x464   : > { %6630 = vrot.lane.b32.xlu2 %v6347_v5, %s8754_s11  ;;  %v7018_v62 = vpop.permute.xlu1 %7017  ;;  %v6029_v5 = vmul.f32 %v11753_v27, %v10982_v18 }
 0x465   : > { %v7169_v32 = vsel %vm11186_vm8, %v7018_v62, %v7168_v7  ;;  %v11754_v7 = vld [vmem:[#allocation42_spill] sm:$0xff] }
 0x466   : > { %7170 = vst [vmem:[#allocation2 + $0x18] sm:$0xf] %v7169_v32  ;;  %v7020_v6 = vpop.permute.xlu2 %7019  ;;  %v6349_v39 = vadd.f32 %v11172_v31, %v6029_v5  ;;  %v6030_v62 = vmul.f32 %v11754_v7, %v10967_v43  ;;  %v6862_v32 = vshll.u32 %v6718_v38, 16  ;;  %v6867_v38 = vshrl.u32 %v6719_v61, 16 }
 0x467   : > { %7171 = vst.msk [vmem:[#allocation2 + $0x1c] sm:$0xf] %vm7155_vm6, %v7020_v6  ;;  %6470 = vrot.lane.b32.xlu0 %v8590_v51, %s8753_s4  ;;  %v6529_v5 = vmul.f32 %v11197_v52, %v10684_v54 }
 0x468   : > { %v6350_v31 = vadd.f32 %v11162_v13, %v6030_v62  ;;  %8593 = vtanh.f32 %v6349_v39  ;;  %v6864_v33 = vor.u32 %v6862_v32, %v11282_v10  ;;  %v7175_v13 = vld [vmem:[#allocation2 + $0x24] sm:$0xf]  ;;  %v6869_v27 = vrot.slane %v6867_v38, 7 }
 0x469   : > { %v11248_v16 = vpop.permute.xlu0 %6452  ;;  %v6721_v20 = vpack.c.bf16 %v6529_v5, %v6529_v5 }
 0x46a   : > { %7047 = vrot.lane.b32.xlu1 %v6847_v47, %s8755_s5  ;;  %8595 = vtanh.f32 %v6350_v31  ;;  %v6872_v54 = vor.u32 %v6870_v23, %v6869_v27 }
 0x46c   : > { %7043 = vrot.lane.b32.xlu2 %v6839_v22, %s8755_s5  ;;  %v7312_v40 = vpop.permute.xlu1 %7311 }
 0x46d   : > { %7404 = vst.msk [vmem:[%s8911_s17 + $0x18] sm:$0xff] %vm526_vm3, %v7312_v40 }
 0x46e   : > { %v11256_v55 = vpop.permute.xlu2 %6456  ;;  %v8594_v45 = vpop.eup %8593 }
 0x46f   : > { %6632 = vrot.lane.b32.xlu0 %v6348_v37, %s8754_s11  ;;  %v11755_v37 = vld [vmem:[#allocation43_spill] sm:$0xff] }
 0x470   : > { %v6031_v47 = vmul.f32 %v11755_v37, %v11010_v2  ;;  %v8596_v22 = vpop.eup %8595  ;;  %v6532_v37 = vmul.f32 %v11256_v55, %v10757_v36 }
 0x471   : > { %v6615_v46 = vpop.permute.xlu0 %6614 }
 0x472   : > { %6691 = vst.msk [vmem:[#allocation3 + $0x98] sm:$0xff] %vm526_vm3, %v6615_v46  ;;  %6472 = vrot.lane.b32.xlu1 %v8592_v8, %s8753_s4  ;;  %v6351_v41 = vadd.f32 %v11153_v1, %v6031_v47  ;;  %v6528_v8 = vmul.f32 %v11209_v15, %v10636_v50 }
 0x473   : > { %7452 = vst.msk [vmem:[%s8913_s10 + $0x98] sm:$0xff] %vm526_vm3, %v6615_v46 }
 0x474   : > { %7331 = vrot.lane.b32.xlu2 %v6525_v9, %s8755_s5  ;;  %v11266_v57 = vpop.permute.xlu1 %6454  ;;  %8597 = vtanh.f32 %v6351_v41  ;;  %v6720_v3 = vpack.c.bf16 %v6528_v8, %v6528_v8 }
 0x476   : > { %v6619_v35 = vpop.permute.xlu2 %6618  ;;  %v6876_v50 = vshrl.u32 %v6720_v3, 16  ;;  %v6879_v7 = vshll.u32 %v6720_v3, 16 }
 0x477   : > { %6693 = vst.msk [vmem:[#allocation3 + $0xa8] sm:$0xff] %vm526_vm3, %v6619_v35  ;;  %7051 = vrot.lane.b32.xlu0 %v6857_v17, %s8755_s5 }
 0x478   : > { %7454 = vst.msk [vmem:[%s8913_s10 + $0xa8] sm:$0xff] %vm526_vm3, %v6619_v35  ;;  %v6878_v21 = vrot.slane %v6876_v50, 7 }
 0x479   : > { %v7022_v58 = vpop.permute.xlu0 %7021 }
 0x47a   : > { %v7173_v48 = vsel %vm11214_vm10, %v7022_v58, %v7172_v0  ;;  %6634 = vrot.lane.b32.xlu1 %v6349_v39, %s8754_s11  ;;  %v8598_v15 = vpop.eup %8597  ;;  %v6874_v39 = vrot.slane %v6869_v27, 4  ;;  %v6881_v52 = vor.u32 %v6879_v7, %v6878_v21 }
 0x47b   : > { %7174 = vst [vmem:[#allocation2 + $0x20] sm:$0x1] %v7173_v48  ;;  %v6530_v48 = vmul.f32 %v11248_v16, %v10665_v28  ;;  %v6531_v28 = vmul.f32 %v11266_v57, %v10709_v19 }
 0x47c   : > { %7049 = vrot.lane.b32.xlu2 %v6856_v49, %s8755_s5  ;;  %v6617_v9 = vpop.permute.xlu1 %6616  ;;  %v6865_v49 = vrot.slane %v11282_v10, 4  ;;  %v6887_v10 = vshll.u32 %v6721_v20, 16 }
 0x47d   : > { %6692 = vst.msk [vmem:[#allocation3 + $0xa0] sm:$0xff] %vm526_vm3, %v6617_v9 }
 0x47e   : > { %7453 = vst.msk [vmem:[%s8913_s10 + $0xa0] sm:$0xff] %vm526_vm3, %v6617_v9  ;;  %v7026_v51 = vpop.permute.xlu2 %7025  ;;  %v6873_v32 = vsel %vm11029_vm5, %v6865_v49, %v6872_v54 }
 0x47f   : > { %7178 = vst.msk [vmem:[#allocation2 + $0x28] sm:$0xf] %vm7155_vm6, %v7026_v51  ;;  %7333 = vrot.lane.b32.xlu0 %v6526_v63, %s8755_s5  ;;  %v7179_v63 = vld [vmem:[#allocation2 + $0x2c] sm:$0x1]  ;;  %v6722_v51 = vpack.c.bf16 %v6530_v48, %v6530_v48 }
 0x481   : > { %v7316_v6 = vpop.permute.xlu0 %7315 }
 0x482   : > { %7406 = vst.msk [vmem:[%s8911_s17 + $0x28] sm:$0xff] %vm526_vm3, %v7316_v6  ;;  %7053 = vrot.lane.b32.xlu1 %v6864_v33, %s8755_s5 }
 0x484   : > { %6474 = vrot.lane.b32.xlu2 %v8594_v45, %s8753_s4  ;;  %v7024_v60 = vpop.permute.xlu1 %7023  ;;  %v7186_v45 = vld [vmem:[#allocation2 + $0x38] sm:$0x1] }
 0x485   : > { %v7176_v30 = vsel %vm11186_vm8, %v7024_v60, %v7175_v13  ;;  %v6882_v13 = vrot.slane %v6878_v21, 4  ;;  %v6893_v60 = vshrl.u32 %v6722_v51, 16 }
 0x486   : > { %7177 = vst [vmem:[#allocation2 + $0x24] sm:$0xf] %v7176_v30  ;;  %v7320_v40 = vpop.permute.xlu2 %7319 }
 0x487   : > { %7408 = vst.msk [vmem:[%s8911_s17 + $0x38] sm:$0xff] %vm526_vm3, %v7320_v40  ;;  %6476 = vrot.lane.b32.xlu0 %v8596_v22, %s8753_s4  ;;  %v6895_v22 = vrot.slane %v6893_v60, 7  ;;  %v6724_v40 = vpack.c.bf16 %v6532_v37, %v6532_v37 }
 0x489   : > { %v7028_v46 = vpop.permute.xlu0 %7027 }
 0x48a   : > { %v7180_v4 = vsel %vm11214_vm10, %v7028_v46, %v7179_v63  ;;  %7335 = vrot.lane.b32.xlu1 %v6527_v44, %s8755_s5  ;;  %v6723_v44 = vpack.c.bf16 %v6531_v28, %v6531_v28  ;;  %v6896_v63 = vshll.u32 %v6722_v51, 16  ;;  %v6910_v46 = vshrl.u32 %v6724_v40, 16 }
 0x48b   : > { %7181 = vst [vmem:[#allocation2 + $0x2c] sm:$0x1] %v7180_v4 }
 0x48c   : > { %6636 = vrot.lane.b32.xlu2 %v6350_v31, %s8754_s11  ;;  %v7318_v1 = vpop.permute.xlu1 %7317  ;;  %v6884_v31 = vshrl.u32 %v6721_v20, 16  ;;  %v6898_v61 = vor.u32 %v6896_v63, %v6895_v22  ;;  %v6912_v38 = vrot.slane %v6910_v46, 7  ;;  %v6904_v50 = vshll.u32 %v6723_v44, 16 }
 0x48d   : > { %7407 = vst.msk [vmem:[%s8911_s17 + $0x30] sm:$0xff] %vm526_vm3, %v7318_v1  ;;  %v7189_v1 = vld [vmem:[#allocation2 + $0x3c] sm:$0xf]  ;;  %v6899_v20 = vrot.slane %v6895_v22, 4 }
 0x48e   : > { %v7032_v17 = vpop.permute.xlu2 %7031  ;;  %v6886_v6 = vrot.slane %v6884_v31, 7  ;;  %v6916_v60 = vrot.slane %v6912_v38, 4 }
 0x48f   : > { %7185 = vst.msk [vmem:[#allocation2 + $0x34] sm:$0xf] %vm7155_vm6, %v7032_v17  ;;  %6638 = vrot.lane.b32.xlu0 %v6351_v41, %s8754_s11  ;;  %v6901_v41 = vshrl.u32 %v6723_v44, 16 }
 0x490   : > { %v6889_v47 = vor.u32 %v6887_v10, %v6886_v6  ;;  %v6891_v55 = vrot.slane %v6886_v6, 4 }
 0x491   : > { %v11318_v35 = vpop.permute.xlu0 %6458  ;;  %v6903_v4 = vrot.slane %v6901_v41, 7 }
 0x492   : > { %6478 = vrot.lane.b32.xlu1 %v8598_v15, %s8753_s4  ;;  %v6890_v57 = vsel %vm11029_vm5, %v6882_v13, %v6889_v47  ;;  %v6533_v27 = vmul.f32 %v11318_v35, %v10737_v59  ;;  %s8615_s4 = scalar_lea.hbm %s8614_s29, 256 }
 0x493   : > { %v6908_v15 = vrot.slane %v6903_v4, 4  ;;  %p8616_p8 = scmp.ne.s32.totalorder %s8614_s29, %s8615_s4  ;;  %p8621_p0 = scmp.lt.s32.totalorder %s8619_s7, %s8615_s4 }
 0x494   : > { %7337 = vrot.lane.b32.xlu2 %v6528_v8, %s8755_s5  ;;  %v7030_v0 = vpop.permute.xlu1 %7029 }
 0x495   : > { %v7183_v58 = vsel %vm11186_vm8, %v7030_v0, %v7182_v26  ;;  %v6913_v26 = vshll.u32 %v6724_v40, 16  ;;  %v6906_v0 = vor.u32 %v6904_v50, %v6903_v4  ;;  %p8617_p9 = pnand %p8616_p8, %p8878_p12  ;;  %p8622_p1 = por %p8621_p0, %p8620_p11 }
 0x496   : > { %7184 = vst [vmem:[#allocation2 + $0x30] sm:$0xf] %v7183_v58  ;;  %v11324_v62 = vpop.permute.xlu2 %6462  ;;  %v6725_v58 = vpack.c.bf16 %v6533_v27, %v6533_v27 }
 0x497   : > { %7057 = vrot.lane.b32.xlu0 %v6874_v39, %s8755_s5  ;;  %v6915_v23 = vor.u32 %v6913_v26, %v6912_v38  ;;  %v6907_v59 = vsel %vm11029_vm5, %v6899_v20, %v6906_v0  ;;  %v6535_v31 = vmul.f32 %v11324_v62, %v10835_v14  ;;  %v7193_v14 = vld [vmem:[#allocation2 + $0x44] sm:$0x1]  ;;  %p8618_p10 = pneg %p8617_p9 }
 0x499   : > { %v6621_v9 = vpop.permute.xlu0 %6620  ;;  %p8623_p4 = pnand %p8622_p1, %p8618_p10 }
 0x49a   : > { %6694 = vst.msk [vmem:[#allocation3 + $0xb0] sm:$0xff] %vm526_vm3, %v6621_v9  ;;  %7059 = vrot.lane.b32.xlu1 %v6881_v52, %s8755_s5  ;;  %v6918_v52 = vshrl.u32 %v6725_v58, 16 }
 0x49b   : > { %7455 = vst.msk [vmem:[%s8913_s10 + $0xb0] sm:$0xff] %vm526_vm3, %v6621_v9 }
 0x49c   : > { %7055 = vrot.lane.b32.xlu2 %v6873_v32, %s8755_s5  ;;  %v6461_v33 = vpop.permute.xlu1 %6460  ;;  %v6920_v49 = vrot.slane %v6918_v52, 7 }
 0x49d   : > { %v6534_v39 = vmul.f32 %v6461_v33, %v10784_v42  ;;  %v6921_v33 = vshll.u32 %v6725_v58, 16 }
 0x49e   : > { %v6625_v16 = vpop.permute.xlu2 %6624  ;;  %v6925_v6 = vrot.slane %v6920_v49, 4 }
 0x49f   : > { %6696 = vst.msk [vmem:[#allocation3 + $0xc0] sm:$0xff] %vm526_vm3, %v6625_v16  ;;  %7339 = vrot.lane.b32.xlu0 %v6529_v5, %s8755_s5  ;;  %v6726_v35 = vpack.c.bf16 %v6534_v39, %v6534_v39  ;;  %v6923_v13 = vor.u32 %v6921_v33, %v6920_v49 }
 0x4a0   : > { %7457 = vst.msk [vmem:[%s8913_s10 + $0xc0] sm:$0xff] %vm526_vm3, %v6625_v16 }
 0x4a1   : > { %v7034_v30 = vpop.permute.xlu0 %7033  ;;  %v6927_v42 = vshrl.u32 %v6726_v35, 16  ;;  %v6930_v16 = vshll.u32 %v6726_v35, 16 }
 0x4a2   : > { %v7187_v19 = vsel %vm11214_vm10, %v7034_v30, %v7186_v45  ;;  %7341 = vrot.lane.b32.xlu1 %v6530_v48, %s8755_s5  ;;  %v6924_v30 = vsel %vm11029_vm5, %v6916_v60, %v6923_v13 }
 0x4a3   : > { %7188 = vst [vmem:[#allocation2 + $0x38] sm:$0x1] %v7187_v19  ;;  %v6929_v32 = vrot.slane %v6927_v42, 7 }
 0x4a4   : > { %7061 = vrot.lane.b32.xlu2 %v6890_v57, %s8755_s5  ;;  %v6623_v36 = vpop.permute.xlu1 %6622 }
 0x4a5   : > { %6695 = vst.msk [vmem:[#allocation3 + $0xb8] sm:$0xff] %vm526_vm3, %v6623_v36  ;;  %v6932_v62 = vor.u32 %v6930_v16, %v6929_v32 }
 0x4a6   : > { %7456 = vst.msk [vmem:[%s8913_s10 + $0xb8] sm:$0xff] %vm526_vm3, %v6623_v36  ;;  %v7326_v8 = vpop.permute.xlu2 %7325 }
 0x4a7   : > { %7411 = vst.msk [vmem:[%s8911_s17 + $0x50] sm:$0xff] %vm526_vm3, %v7326_v8  ;;  %7063 = vrot.lane.b32.xlu0 %v6891_v55, %s8755_s5  ;;  %v6933_v55 = vrot.slane %v6929_v32, 4 }
 0x4a9   : > { %v7322_v3 = vpop.permute.xlu0 %7321 }
 0x4aa   : > { %7409 = vst.msk [vmem:[%s8911_s17 + $0x40] sm:$0xff] %vm526_vm3, %v7322_v3  ;;  %7065 = vrot.lane.b32.xlu1 %v6898_v61, %s8755_s5 }
 0x4ac   : > { %7343 = vrot.lane.b32.xlu2 %v6531_v28, %s8755_s5  ;;  %v7036_v17 = vpop.permute.xlu1 %7035  ;;  %v6727_v28 = vpack.c.bf16 %v6535_v31, %v6535_v31 }
 0x4ad   : > { %v7190_v5 = vsel %vm11186_vm8, %v7036_v17, %v7189_v1 }
 0x4ae   : > { %7191 = vst [vmem:[#allocation2 + $0x3c] sm:$0xf] %v7190_v5  ;;  %v7038_v21 = vpop.permute.xlu2 %7037  ;;  %v6938_v36 = vshll.u32 %v6727_v28, 16  ;;  %v7200_v5 = vld [vmem:[#allocation2 + $0x50] sm:$0x1] }
 0x4af   : > { %7192 = vst.msk [vmem:[#allocation2 + $0x40] sm:$0xf] %vm7155_vm6, %v7038_v21  ;;  %7069 = vrot.lane.b32.xlu0 %v6908_v15, %s8755_s5 }
 0x4b1   : > { %v6465_v7 = vpop.permute.xlu0 %6464 }
 0x4b2   : > { %7071 = vrot.lane.b32.xlu1 %v6915_v23, %s8755_s5  ;;  %v6536_v45 = vmul.f32 %v6465_v7, %v10812_v24 }
 0x4b4   : > { %7067 = vrot.lane.b32.xlu2 %v6907_v59, %s8755_s5  ;;  %v7324_v54 = vpop.permute.xlu1 %7323  ;;  %v6728_v19 = vpack.c.bf16 %v6536_v45, %v6536_v45 }
 0x4b5   : > { %7410 = vst.msk [vmem:[%s8911_s17 + $0x48] sm:$0xff] %vm526_vm3, %v7324_v54 }
 0x4b6   : > { %v6469_v48 = vpop.permute.xlu2 %6468  ;;  %v6944_v41 = vshrl.u32 %v6728_v19, 16  ;;  %v6947_v15 = vshll.u32 %v6728_v19, 16 }
 0x4b7   : > { %7345 = vrot.lane.b32.xlu0 %v6532_v37, %s8755_s5  ;;  %v6935_v37 = vshrl.u32 %v6727_v28, 16  ;;  %v6538_v63 = vmul.f32 %v6469_v48, %v10919_v12 }
 0x4b8   : > { %v6946_v3 = vrot.slane %v6944_v41, 7 }
 0x4b9   : > { %v6627_v9 = vpop.permute.xlu0 %6626  ;;  %v6937_v24 = vrot.slane %v6935_v37, 7  ;;  %v6730_v1 = vpack.c.bf16 %v6538_v63, %v6538_v63 }
 0x4ba   : > { %6697 = vst.msk [vmem:[#allocation3 + $0xc8] sm:$0xff] %vm526_vm3, %v6627_v9  ;;  %7347 = vrot.lane.b32.xlu1 %v6533_v27, %s8755_s5  ;;  %v6949_v26 = vor.u32 %v6947_v15, %v6946_v3  ;;  %v6950_v42 = vrot.slane %v6946_v3, 4 }
 0x4bb   : > { %7458 = vst.msk [vmem:[%s8913_s10 + $0xc8] sm:$0xff] %vm526_vm3, %v6627_v9  ;;  %v6940_v8 = vor.u32 %v6938_v36, %v6937_v24  ;;  %v6942_v17 = vrot.slane %v6937_v24, 4  ;;  %v6961_v21 = vshrl.u32 %v6730_v1, 16  ;;  %v6964_v35 = vshll.u32 %v6730_v1, 16  ;;  %v7203_v9 = vld [vmem:[#allocation2 + $0x54] sm:$0xf] }
 0x4bc   : > { %7349 = vrot.lane.b32.xlu2 %v6534_v39, %s8755_s5  ;;  %v6467_v51 = vpop.permute.xlu1 %6466 }
 0x4bd   : > { %v6537_v22 = vmul.f32 %v6467_v51, %v10860_v53  ;;  %v7196_v53 = vld [vmem:[#allocation2 + $0x48] sm:$0xf]  ;;  %v6941_v4 = vsel %vm11029_vm5, %v6933_v55, %v6940_v8  ;;  %v11414_v20 = vrot.slane %v6961_v21, 7 }
 0x4be   : > { %v6631_v10 = vpop.permute.xlu2 %6630 }
 0x4bf   : > { %6699 = vst.msk [vmem:[#allocation3 + $0xd8] sm:$0xff] %vm526_vm3, %v6631_v10  ;;  %7075 = vrot.lane.b32.xlu0 %v6925_v6, %s8755_s5  ;;  %v6729_v61 = vpack.c.bf16 %v6537_v22, %v6537_v22  ;;  %v6966_v48 = vor.u32 %v6964_v35, %v11414_v20  ;;  %v6967_v41 = vrot.slane %v11414_v20, 4 }
 0x4c0   : > { %7460 = vst.msk [vmem:[%s8913_s10 + $0xd8] sm:$0xff] %vm526_vm3, %v6631_v10 }
 0x4c1   : > { %v7040_v47 = vpop.permute.xlu0 %7039  ;;  %v6952_v50 = vshrl.u32 %v6729_v61, 16  ;;  %v6955_v7 = vshll.u32 %v6729_v61, 16 }
 0x4c2   : > { %v7194_v44 = vsel %vm11214_vm10, %v7040_v47, %v7193_v14  ;;  %7077 = vrot.lane.b32.xlu1 %v6932_v62, %s8755_s5 }
 0x4c3   : > { %7195 = vst [vmem:[#allocation2 + $0x44] sm:$0x1] %v7194_v44  ;;  %v6954_v0 = vrot.slane %v6952_v50, 7  ;;  %v7207_v44 = vld [vmem:[#allocation2 + $0x5c] sm:$0x1] }
 0x4c4   : > { %7073 = vrot.lane.b32.xlu2 %v6924_v30, %s8755_s5  ;;  %v6629_v57 = vpop.permute.xlu1 %6628 }
 0x4c5   : > { %6698 = vst.msk [vmem:[#allocation3 + $0xd0] sm:$0xff] %vm526_vm3, %v6629_v57  ;;  %v6959_v59 = vrot.slane %v6954_v0, 4  ;;  %v6957_v52 = vor.u32 %v6955_v7, %v6954_v0 }
 0x4c6   : > { %7459 = vst.msk [vmem:[%s8913_s10 + $0xd0] sm:$0xff] %vm526_vm3, %v6629_v57  ;;  %v7044_v40 = vpop.permute.xlu2 %7043 }
 0x4c7   : > { %7199 = vst.msk [vmem:[#allocation2 + $0x4c] sm:$0xf] %vm7155_vm6, %v7044_v40  ;;  %7351 = vrot.lane.b32.xlu0 %v6535_v31, %s8755_s5  ;;  %v6958_v32 = vsel %vm11029_vm5, %v6950_v42, %v6957_v52  ;;  %v7214_v52 = vld [vmem:[#allocation2 + $0x68] sm:$0x1] }
 0x4c9   : > { %v7328_v46 = vpop.permute.xlu0 %7327 }
 0x4ca   : > { %7412 = vst.msk [vmem:[%s8911_s17 + $0x58] sm:$0xff] %vm526_vm3, %v7328_v46  ;;  %7353 = vrot.lane.b32.xlu1 %v6536_v45, %s8755_s5 }
 0x4cc   : > { %7079 = vrot.lane.b32.xlu2 %v6941_v4, %s8755_s5  ;;  %v7042_v38 = vpop.permute.xlu1 %7041  ;;  %v7210_v4 = vld [vmem:[#allocation2 + $0x60] sm:$0xf] }
 0x4cd   : > { %v7197_v12 = vsel %vm11186_vm8, %v7042_v38, %v7196_v53 }
 0x4ce   : > { %7198 = vst [vmem:[#allocation2 + $0x48] sm:$0xf] %v7197_v12  ;;  %v7332_v27 = vpop.permute.xlu2 %7331 }
 0x4cf   : > { %7414 = vst.msk [vmem:[%s8911_s17 + $0x68] sm:$0xff] %vm526_vm3, %v7332_v27  ;;  %7081 = vrot.lane.b32.xlu0 %v6942_v17, %s8755_s5 }
 0x4d1   : > { %v7046_v23 = vpop.permute.xlu0 %7045 }
 0x4d2   : > { %v7201_v39 = vsel %vm11214_vm10, %v7046_v23, %v7200_v5  ;;  %7083 = vrot.lane.b32.xlu1 %v6949_v26, %s8755_s5 }
 0x4d3   : > { %7202 = vst [vmem:[#allocation2 + $0x50] sm:$0x1] %v7201_v39 }
 0x4d4   : > { %7355 = vrot.lane.b32.xlu2 %v6537_v22, %s8755_s5  ;;  %v7330_v58 = vpop.permute.xlu1 %7329 }
 0x4d5   : > { %7413 = vst.msk [vmem:[%s8911_s17 + $0x60] sm:$0xff] %vm526_vm3, %v7330_v58 }
 0x4d6   : > { %v7050_v54 = vpop.permute.xlu2 %7049 }
 0x4d7   : > { %7206 = vst.msk [vmem:[#allocation2 + $0x58] sm:$0xf] %vm7155_vm6, %v7050_v54  ;;  %7087 = vrot.lane.b32.xlu0 %v6959_v59, %s8755_s5 }
 0x4d9   : > { %v6471_v49 = vpop.permute.xlu0 %6470 }
 0x4da   : > { %v6539_v31 = vmul.f32 %v6471_v49, %v10899_v29  ;;  %7089 = vrot.lane.b32.xlu1 %v6966_v48, %s8755_s5 }
 0x4dc   : > { %v6731_v51 = vpack.c.bf16 %v6539_v31, %v6539_v31  ;;  %7085 = vrot.lane.b32.xlu2 %v6958_v32, %s8755_s5  ;;  %v7048_v33 = vpop.permute.xlu1 %7047 }
 0x4dd   : > { %v7204_v6 = vsel %vm11186_vm8, %v7048_v33, %v7203_v9 }
 0x4de   : > { %v6969_v28 = vshrl.u32 %v6731_v51, 16  ;;  %7205 = vst [vmem:[#allocation2 + $0x54] sm:$0xf] %v7204_v6  ;;  %v6475_v16 = vpop.permute.xlu2 %6474  ;;  %v6972_v30 = vshll.u32 %v6731_v51, 16 }
 0x4df   : > { %v11430_v10 = vmul.f32 %v6475_v16, %v10982_v18  ;;  %7357 = vrot.lane.b32.xlu0 %v6538_v63, %s8755_s5 }
 0x4e0   : > { %v6971_v29 = vrot.slane %v6969_v28, 7 }
 0x4e1   : > { %v6733_v13 = vpack.c.bf16 %v11430_v10, %v11430_v10  ;;  %v6633_v14 = vpop.permute.xlu0 %6632 }
 0x4e2   : > { %6700 = vst.msk [vmem:[#allocation3 + $0xe0] sm:$0xff] %vm526_vm3, %v6633_v14  ;;  %7359 = vrot.lane.b32.xlu1 %v6539_v31, %s8755_s5  ;;  %v6976_v45 = vrot.slane %v6971_v29, 4  ;;  %v6974_v22 = vor.u32 %v6972_v30, %v6971_v29  ;;  %v7217_v31 = vld [vmem:[#allocation2 + $0x6c] sm:$0xf] }
 0x4e3   : > { %7461 = vst.msk [vmem:[%s8913_s10 + $0xe0] sm:$0xff] %vm526_vm3, %v6633_v14  ;;  %v6986_v60 = vshrl.u32 %v6733_v13, 16  ;;  %v6989_v3 = vshll.u32 %v6733_v13, 16 }
 0x4e4   : > { %v6473_v62 = vpop.permute.xlu1 %6472  ;;  %v6975_v46 = vsel %vm11029_vm5, %v6967_v41, %v6974_v22 }
 0x4e5   : > { %v6540_v18 = vmul.f32 %v6473_v62, %v10945_v25  ;;  %v6988_v19 = vrot.slane %v6986_v60, 7 }
 0x4e6   : > { %v6637_v37 = vpop.permute.xlu2 %6636 }
 0x4e7   : > { %v6732_v47 = vpack.c.bf16 %v6540_v18, %v6540_v18  ;;  %6702 = vst.msk [vmem:[#allocation3 + $0xf0] sm:$0xff] %vm526_vm3, %v6637_v37  ;;  %7093 = vrot.lane.b32.xlu0 %v6976_v45, %s8755_s5  ;;  %7361 = vrot.lane.b32.xlu2 %v6540_v18, %s8755_s5  ;;  %v6993_v63 = vrot.slane %v6988_v19, 4  ;;  %v6991_v17 = vor.u32 %v6989_v3, %v6988_v19 }
 0x4e8   : > { %7463 = vst.msk [vmem:[%s8913_s10 + $0xf0] sm:$0xff] %vm526_vm3, %v6637_v37 }
 0x4e9   : > { %v6978_v57 = vshrl.u32 %v6732_v47, 16  ;;  %v7052_v24 = vpop.permute.xlu0 %7051  ;;  %v6981_v36 = vshll.u32 %v6732_v47, 16 }
 0x4ea   : > { %v7208_v25 = vsel %vm11214_vm10, %v7052_v24, %v7207_v44 }
 0x4eb   : > { %v6980_v40 = vrot.slane %v6978_v57, 7  ;;  %7209 = vst [vmem:[#allocation2 + $0x5c] sm:$0x1] %v7208_v25 }
 0x4ec   : > { %v6635_v55 = vpop.permute.xlu1 %6634 }
 0x4ed   : > { %v6983_v8 = vor.u32 %v6981_v36, %v6980_v40  ;;  %6701 = vst.msk [vmem:[#allocation3 + $0xe8] sm:$0xff] %vm526_vm3, %v6635_v55  ;;  %v6984_v1 = vrot.slane %v6980_v40, 4 }
 0x4ee   : > { %7462 = vst.msk [vmem:[%s8913_s10 + $0xe8] sm:$0xff] %vm526_vm3, %v6635_v55  ;;  %v7338_v61 = vpop.permute.xlu2 %7337 }
 0x4ef   : > { %7417 = vst.msk [vmem:[%s8911_s17 + $0x80] sm:$0xff] %vm526_vm3, %v7338_v61  ;;  %7099 = vrot.lane.b32.xlu0 %v6993_v63, %s8755_s5  ;;  %7095 = vrot.lane.b32.xlu1 %v6983_v8, %s8755_s5  ;;  %v6992_v15 = vsel %vm11029_vm5, %v6984_v1, %v6991_v17 }
 0x4f0   : > { %7091 = vrot.lane.b32.xlu2 %v6975_v46, %s8755_s5 }
 0x4f1   : > { %v7334_v53 = vpop.permute.xlu0 %7333 }
 0x4f2   : > { %7415 = vst.msk [vmem:[%s8911_s17 + $0x70] sm:$0xff] %vm526_vm3, %v7334_v53 }
 0x4f4   : > { %v7054_v38 = vpop.permute.xlu1 %7053 }
 0x4f5   : > { %v7211_v50 = vsel %vm11186_vm8, %v7054_v38, %v7210_v4 }
 0x4f6   : > { %7212 = vst [vmem:[#allocation2 + $0x60] sm:$0xf] %v7211_v50  ;;  %v7056_v12 = vpop.permute.xlu2 %7055 }
 0x4f7   : > { %7213 = vst.msk [vmem:[#allocation2 + $0x64] sm:$0xf] %vm7155_vm6, %v7056_v12 }
 0x4f8   : > { %7097 = vrot.lane.b32.xlu2 %v6992_v15, %s8755_s5 }
 0x4f9   : > { %v6477_v27 = vpop.permute.xlu0 %6476 }
 0x4fa   : > { %v6542_v5 = vmul.f32 %v6477_v27, %v10967_v43 }
 0x4fc   : > { %v6734_v26 = vpack.c.bf16 %v6542_v5, %v6542_v5  ;;  %v7336_v21 = vpop.permute.xlu1 %7335 }
 0x4fd   : > { %7416 = vst.msk [vmem:[%s8911_s17 + $0x78] sm:$0xff] %vm526_vm3, %v7336_v21 }
 0x4fe   : > { %v6995_v0 = vshrl.u32 %v6734_v26, 16  ;;  %v7062_v23 = vpop.permute.xlu2 %7061  ;;  %v6998_v20 = vshll.u32 %v6734_v26, 16 }
 0x4ff   : > { %7220 = vst.msk [vmem:[#allocation2 + $0x70] sm:$0xf] %vm7155_vm6, %v7062_v23 }
 0x500   : > { %v6997_v39 = vrot.slane %v6995_v0, 7 }
 0x501   : > { %v6639_v58 = vpop.permute.xlu0 %6638 }
 0x502   : > { %v7000_v7 = vor.u32 %v6998_v20, %v6997_v39  ;;  %6703 = vst.msk [vmem:[#allocation3 + $0xf8] sm:$0xff] %vm526_vm3, %v6639_v58  ;;  %v7001_v51 = vrot.slane %v6997_v39, 4 }
 0x503   : > { %7464 = vst.msk [vmem:[%s8913_s10 + $0xf8] sm:$0xff] %vm526_vm3, %v6639_v58 }
 0x504   : > { %7101 = vrot.lane.b32.xlu1 %v7000_v7, %s8755_s5  ;;  %v6479_v43 = vpop.permute.xlu1 %6478 }
 0x505   : > { %v6543_v59 = vmul.f32 %v6479_v43, %v11010_v2 }
 0x506   : > { %v7344_v35 = vpop.permute.xlu2 %7343 }
 0x507   : > { %v6735_v54 = vpack.c.bf16 %v6543_v59, %v6543_v59  ;;  %7420 = vst.msk [vmem:[%s8911_s17 + $0x98] sm:$0xff] %vm526_vm3, %v7344_v35 }
 0x509   : > { %v7003_v48 = vshrl.u32 %v6735_v54, 16  ;;  %v7058_v42 = vpop.permute.xlu0 %7057  ;;  %v7006_v32 = vshll.u32 %v6735_v54, 16 }
 0x50a   : > { %v7215_v49 = vsel %vm11214_vm10, %v7058_v42, %v7214_v52 }
 0x50b   : > { %v7005_v9 = vrot.slane %v7003_v48, 7  ;;  %7216 = vst [vmem:[#allocation2 + $0x68] sm:$0x1] %v7215_v49 }
 0x50c   : > { %7365 = vrot.lane.b32.xlu1 %v6542_v5, %s8755_s5  ;;  %v7060_v2 = vpop.permute.xlu1 %7059 }
 0x50d   : > { %v7008_v33 = vor.u32 %v7006_v32, %v7005_v9  ;;  %v7010_v6 = vrot.slane %v7005_v9, 4  ;;  %v7218_v28 = vsel %vm11186_vm8, %v7060_v2, %v7217_v31 }
 0x50e   : > { %7219 = vst [vmem:[#allocation2 + $0x6c] sm:$0xf] %v7218_v28  ;;  %v7068_v16 = vpop.permute.xlu2 %7067 }
 0x50f   : > { %7227 = vst.msk [vmem:[#allocation2 + $0x7c] sm:$0xf] %vm7155_vm6, %v7068_v16  ;;  %7105 = vrot.lane.b32.xlu0 %v7010_v6, %s8755_s5  ;;  %v7009_v29 = vsel %vm11029_vm5, %v7001_v51, %v7008_v33 }
 0x510   : > { %7103 = vrot.lane.b32.xlu2 %v7009_v29, %s8755_s5 }
 0x511   : > { %v7340_v13 = vpop.permute.xlu0 %7339 }
 0x512   : > { %7418 = vst.msk [vmem:[%s8911_s17 + $0x88] sm:$0xff] %vm526_vm3, %v7340_v13 }
 0x514   : > { %v7342_v14 = vpop.permute.xlu1 %7341 }
 0x515   : > { %8626 = shalt.err (!%p8623_p4)
}
 0x516   : > { %s8756_s27 = smov 128   ;;  %s8757_s20 = smov 8   ;;  %7419 = vst.msk [vmem:[%s8911_s17 + $0x90] sm:$0xff] %vm526_vm3, %v7342_v14  ;;  %v7350_v34 = vpop.permute.xlu2 %7349  ;;  %v7221_v62 = vld [vmem:[#allocation2 + $0x74] sm:$0x1] }
 0x517   : > { %8237 = dma.vmem_to_hbm [thread:$0]  (%p8878_p12), %s7503_s25, 4096, %s7505_s26, %s7471_s28, %s8756_s27, %s8756_s27, %s8757_s20   ;;  %v7224_v18 = vld [vmem:[#allocation2 + $0x78] sm:$0xf]  ;;  %v7231_v57 = vld [vmem:[#allocation2 + $0x84] sm:$0xf] }
 0x518   : > { %7423 = vst.msk [vmem:[%s8911_s17 + $0xb0] sm:$0xff] %vm526_vm3, %v7350_v34  ;;  %7363 = vrot.lane.b32.xlu0 %v11430_v10, %s8755_s5  ;;  %7367 = vrot.lane.b32.xlu2 %v6543_v59, %s8755_s5  ;;  %v7228_v10 = vld [vmem:[#allocation2 + $0x80] sm:$0x1]  ;;  %v7235_v41 = vld [vmem:[#allocation2 + $0x8c] sm:$0x1]  ;;  %s8156_s9 = sshll.u32 %s8737_s19, 5 }
 0x519   : > { %v7064_v45 = vpop.permute.xlu0 %7063  ;;  %v7238_v61 = vld [vmem:[#allocation2 + $0x90] sm:$0xf]  ;;  %v7242_v38 = vld [vmem:[#allocation2 + $0x98] sm:$0x1]  ;;  %v7245_v15 = vld [vmem:[#allocation2 + $0x9c] sm:$0xf] }
 0x51a   : > { %v7222_v60 = vsel %vm11214_vm10, %v7064_v45, %v7221_v62  ;;  %v7249_v26 = vld [vmem:[#allocation2 + $0xa4] sm:$0x1]  ;;  %v7252_v39 = vld [vmem:[#allocation2 + $0xa8] sm:$0xf]  ;;  %v7256_v35 = vld [vmem:[#allocation2 + $0xb0] sm:$0x1] }
 0x51b   : > { %7223 = vst [vmem:[#allocation2 + $0x74] sm:$0x1] %v7222_v60  ;;  %v7263_v48 = vld [vmem:[#allocation2 + $0xbc] sm:$0x1]  ;;  %v7259_v42 = vld [vmem:[#allocation2 + $0xb4] sm:$0xf] }
 0x51c   : > { %v7066_v37 = vpop.permute.xlu1 %7065  ;;  %v7266_v33 = vld [vmem:[#allocation2 + $0xc0] sm:$0xf]  ;;  %s8157_s24 = sshll.u32 %s8733_s18, 6  ;;  %v7270_v29 = vld [vmem:[#allocation2 + $0xc8] sm:$0x1]  ;;  %s7485_s19 = sshll.u32 %s8911_s17, 4  ;;  %s7486_s19 = int_to_ptr.vmem [resolvable:$true] %s7485_s19 }
 0x51d   : > { %v7225_v47 = vsel %vm11186_vm8, %v7066_v37, %v7224_v18  ;;  %s7482_s5 = sadd.s32 %s8157_s24, %s8156_s9  ;;  %s11756_s18 = sand.u32 1, %s8725_s16  }
 0x51e   : > { %7226 = vst [vmem:[#allocation2 + $0x78] sm:$0xf] %v7225_v47  ;;  %v7074_v44 = vpop.permute.xlu2 %7073  ;;  %s8158_s21 = sshll.u32 %s7482_s5, 3  ;;  %s7466_s4 = scalar_lea.sflag [#allocation6], %s11756_s18 }
 0x51f   : > { %7234 = vst.msk [vmem:[#allocation2 + $0x88] sm:$0xf] %vm7155_vm6, %v7074_v44  ;;  %s7484_s28 = scalar_lea.hbm %s11637_s2, %s8158_s21  ;;  %s8647_s9 = scalar_lea.hbm %s11637_s2, 4096 }
 0x520   : > { %s7487_s29 = sshll.u32 %s7484_s28, 4  ;;  %s7488_s29 = int_to_ptr.hbm [resolvable:$true] %s7487_s29 }
 0x521   : > { %v7070_v30 = vpop.permute.xlu0 %7069  ;;  %s8641_s11 = sshra.s32 %s7488_s29, 4  ;;  %s8642_s11 = int_to_ptr.hbm [resolvable:$true] %s8641_s11 }
 0x522   : > { %v7229_v19 = vsel %vm11214_vm10, %v7070_v30, %v7228_v10  ;;  %s8643_s7 = scalar_lea.hbm %s8642_s11, 256  ;;  %p8648_p6 = scmp.lt.s32.totalorder %s8642_s11, %s11637_s2 }
 0x523   : > { %7230 = vst [vmem:[#allocation2 + $0x80] sm:$0x1] %v7229_v19  ;;  %p8644_p12 = scmp.ne.s32.totalorder %s8642_s11, %s8643_s7  ;;  %p8649_p8 = scmp.lt.s32.totalorder %s8647_s9, %s8643_s7 }
 0x524   : > { %v7072_v24 = vpop.permute.xlu1 %7071 }
 0x525   : > { %v7232_v25 = vsel %vm11186_vm8, %v7072_v24, %v7231_v57  ;;  %p8645_p2 = pnand %p8644_p12, %p8851_p3  ;;  %p8650_p9 = por %p8649_p8, %p8648_p6 }
 0x526   : > { %7233 = vst [vmem:[#allocation2 + $0x84] sm:$0xf] %v7232_v25  ;;  %v7080_v22 = vpop.permute.xlu2 %7079 }
 0x527   : > { %7241 = vst.msk [vmem:[#allocation2 + $0x94] sm:$0xf] %vm7155_vm6, %v7080_v22  ;;  %p8646_p5 = pneg %p8645_p2 }
 0x529   : > { %v7346_v40 = vpop.permute.xlu0 %7345  ;;  %p8651_p10 = pnand %p8650_p9, %p8646_p5 }
 0x52a   : > { %7421 = vst.msk [vmem:[%s8911_s17 + $0xa0] sm:$0xff] %vm526_vm3, %v7346_v40 }
 0x52c   : > { %v7348_v36 = vpop.permute.xlu1 %7347 }
 0x52d   : > { %7422 = vst.msk [vmem:[%s8911_s17 + $0xa8] sm:$0xff] %vm526_vm3, %v7348_v36 }
 0x52e   : > { %v7356_v55 = vpop.permute.xlu2 %7355 }
 0x52f   : > { %7426 = vst.msk [vmem:[%s8911_s17 + $0xc8] sm:$0xff] %vm526_vm3, %v7356_v55 }
 0x531   : > { %v7076_v63 = vpop.permute.xlu0 %7075 }
 0x532   : > { %v7236_v8 = vsel %vm11214_vm10, %v7076_v63, %v7235_v41 }
 0x533   : > { %7237 = vst [vmem:[#allocation2 + $0x8c] sm:$0x1] %v7236_v8 }
 0x534   : > { %v7078_v46 = vpop.permute.xlu1 %7077 }
 0x535   : > { %v7239_v53 = vsel %vm11186_vm8, %v7078_v46, %v7238_v61 }
 0x536   : > { %7240 = vst [vmem:[#allocation2 + $0x90] sm:$0xf] %v7239_v53  ;;  %v7086_v4 = vpop.permute.xlu2 %7085 }
 0x537   : > { %7248 = vst.msk [vmem:[#allocation2 + $0xa0] sm:$0xf] %vm7155_vm6, %v7086_v4 }
 0x539   : > { %v7352_v3 = vpop.permute.xlu0 %7351 }
 0x53a   : > { %7424 = vst.msk [vmem:[%s8911_s17 + $0xb8] sm:$0xff] %vm526_vm3, %v7352_v3 }
 0x53c   : > { %v7354_v1 = vpop.permute.xlu1 %7353 }
 0x53d   : > { %7425 = vst.msk [vmem:[%s8911_s17 + $0xc0] sm:$0xff] %vm526_vm3, %v7354_v1 }
 0x541   : > { %v7082_v17 = vpop.permute.xlu0 %7081  ;;  %v7362_v50 = vpop.permute.xlu2 %7361 }
 0x542   : > { %v7243_v12 = vsel %vm11214_vm10, %v7082_v17, %v7242_v38  ;;  %7429 = vst.msk [vmem:[%s8911_s17 + $0xe0] sm:$0xff] %vm526_vm3, %v7362_v50 }
 0x543   : > { %7244 = vst [vmem:[#allocation2 + $0x98] sm:$0x1] %v7243_v12 }
 0x544   : > { %v7084_v27 = vpop.permute.xlu1 %7083 }
 0x545   : > { %v7246_v5 = vsel %vm11186_vm8, %v7084_v27, %v7245_v15 }
 0x546   : > { %7247 = vst [vmem:[#allocation2 + $0x9c] sm:$0xf] %v7246_v5 }
 0x549   : > { %v7088_v21 = vpop.permute.xlu0 %7087 }
 0x54a   : > { %v7250_v0 = vsel %vm11214_vm10, %v7088_v21, %v7249_v26  ;;  %v7092_v23 = vpop.permute.xlu2 %7091 }
 0x54b   : > { %7251 = vst [vmem:[#allocation2 + $0xa4] sm:$0x1] %v7250_v0 }
 0x54c   : > { %7255 = vst.msk [vmem:[#allocation2 + $0xac] sm:$0xf] %vm7155_vm6, %v7092_v23  ;;  %v7090_v20 = vpop.permute.xlu1 %7089 }
 0x54d   : > { %v7253_v58 = vsel %vm11186_vm8, %v7090_v20, %v7252_v39 }
 0x54e   : > { %7254 = vst [vmem:[#allocation2 + $0xa8] sm:$0xf] %v7253_v58 }
 0x551   : > { %v7358_v7 = vpop.permute.xlu0 %7357 }
 0x552   : > { %7427 = vst.msk [vmem:[%s8911_s17 + $0xd0] sm:$0xff] %vm526_vm3, %v7358_v7  ;;  %v7098_v43 = vpop.permute.xlu2 %7097 }
 0x553   : > { %7262 = vst.msk [vmem:[#allocation2 + $0xb8] sm:$0xf] %vm7155_vm6, %v7098_v43 }
 0x554   : > { %v7360_v59 = vpop.permute.xlu1 %7359 }
 0x555   : > { %7428 = vst.msk [vmem:[%s8911_s17 + $0xd8] sm:$0xff] %vm526_vm3, %v7360_v59 }
 0x559   : > { %v7094_v54 = vpop.permute.xlu0 %7093 }
 0x55a   : > { %v7257_v52 = vsel %vm11214_vm10, %v7094_v54, %v7256_v35 }
 0x55b   : > { %7258 = vst [vmem:[#allocation2 + $0xb0] sm:$0x1] %v7257_v52 }
 0x561   : > { %v7100_v49 = vpop.permute.xlu0 %7099  ;;  %v7096_v31 = vpop.permute.xlu1 %7095 }
 0x562   : > { %v7264_v9 = vsel %vm11214_vm10, %v7100_v49, %v7263_v48  ;;  %v7260_v32 = vsel %vm11186_vm8, %v7096_v31, %v7259_v42 }
 0x563   : > { %7265 = vst [vmem:[#allocation2 + $0xbc] sm:$0x1] %v7264_v9 }
 0x564   : > { %7261 = vst [vmem:[#allocation2 + $0xb4] sm:$0xf] %v7260_v32 }
 0x56a   : > { %v7104_v2 = vpop.permute.xlu2 %7103 }
 0x56b   : > { %7269 = vst.msk [vmem:[#allocation2 + $0xc4] sm:$0xf] %vm7155_vm6, %v7104_v2 }
 0x572   : > { %v7368_v51 = vpop.permute.xlu2 %7367 }
 0x573   : > { %7432 = vst.msk [vmem:[%s8911_s17 + $0xf8] sm:$0xff] %vm526_vm3, %v7368_v51 }
 0x576   : > { %v7102_v6 = vpop.permute.xlu1 %7101 }
 0x577   : > { %v7267_v28 = vsel %vm11186_vm8, %v7102_v6, %v7266_v33 }
 0x578   : > { %7268 = vst [vmem:[#allocation2 + $0xc0] sm:$0xf] %v7267_v28 }
 0x57e   : > { %v7366_v16 = vpop.permute.xlu1 %7365 }
 0x57f   : > { %7431 = vst.msk [vmem:[%s8911_s17 + $0xf0] sm:$0xff] %vm526_vm3, %v7366_v16 }
 0x581   : > { %v7106_v13 = vpop.permute.xlu0 %7105 }
 0x582   : > { %v7271_v14 = vsel %vm11214_vm10, %v7106_v13, %v7270_v29 }
 0x583   : > { %7272 = vst [vmem:[#allocation2 + $0xc8] sm:$0x1] %v7271_v14 }
 0x58a   : > { %v7364_v11 = vpop.permute.xlu0 %7363 }
 0x58b   : > { %7430 = vst.msk [vmem:[%s8911_s17 + $0xe8] sm:$0xff] %vm526_vm3, %v7364_v11 }
 0x58c   : > { %8654 = shalt.err (!%p8651_p10)
}
 0x58d   : > { %8236 = dma.vmem_to_hbm [thread:$0]  (%p8851_p3), %s7486_s19, 4096, %s7488_s29, %s7466_s4, %s8756_s27, %s8756_s27, %s8757_s20  }
 0x58e PF: > { %p8247_p11 = scmp.ge.s32.totalorder %s8749_s22, 2  ;;  %s7519_s17 = sand.u32 1, %s8721_s15  }
 0x58f   : > { %s7520_s21 = scalar_lea.sflag [#allocation6], %s7519_s17 }
 0x590   : > { %p8241_p0 = pnand %p8247_p11, %p8866_p7 }
 0x592   : > { %p8242_p1 = pneg %p8241_p0 }
 0x594   : > { %8700 = dma.done.wait (%p8242_p1), %s7520_s21, 4096  }
 0x595   : > { %8702 = vsyncadd (%p8242_p1), %s7520_s21, 4294963200  ;;  %s7529_s25 = sand.u32 1, %s8709_s12   ;;  %p8244_p4 = pnand %p8247_p11, %p8890_p13 }
 0x596   : > { %s7530_s30 = scalar_lea.sflag [#allocation8], %s7529_s25 }
 0x597   : > { %p8245_p12 = pneg %p8244_p4 }
 0x599   : > { %8704 = dma.done.wait (%p8245_p12), %s7530_s30, 4096  }
 0x59a   : > { %8706 = vsyncadd (%p8245_p12), %s7530_s30, 4294963200  ;;  %s20_s22 = sadd.s32 1, %s8749_s22   ;;  %s11757_s15 = sld [smem:[#allocation16_spill]] }
 0x59b   : > { %p17_p3 = scmp.ge.s32.totalorder %s20_s22, 18   ;;  %s11758_s6 = sld [smem:[#allocation11_spill]] }
 0x59c   : > { %s11759_s17 = sld [smem:[#allocation17_spill]]  ;;  %s11764_s12 = smov %s8713_s13 }
 0x59d   : > { %s11760_s18 = sld [smem:[#allocation12_spill]]  ;;  %s11765_s13 = smov %s8717_s14 }
 0x59e   : > { %s11761_s19 = sld [smem:[#allocation13_spill]]  ;;  %19 = sbr.rel (!%p17_p3) target bundleno = 9 (0x9), region = 94 }
 0x59f   : > { %s11762_s20 = sld [smem:[#allocation14_spill]] }
 0x5a0   : > { %s11763_s21 = sld [smem:[#allocation15_spill]]  ;;  %s11766_s14 = smov %s11757_s15 }
 0x5a1   : > { %s11767_s15 = smov %s8725_s16  ;;  %s11768_s16 = smov %s11758_s6 }
 0x5a3   :  { %7536 = vsyncpa [#allocation6], 1 }
 0x5a4   :  { %7538 = vsyncpa [#allocation6 + $0x1], 1 }
 0x5a5   :  { %7539 = vsyncpa [#allocation8], 1 }
 0x5a6   :  { %7541 = vsyncpa [#allocation8 + $0x1], 1 }

</bundles_post_ra>
